<compile_context>
chip_gen: v5e
topology: v5e:2x2
jax: 0.10.0
libtpu: 0.0.40
codegen_flags: <defaults>
</compile_context>

<pallas_src>
import functools
import math

import jax
import jax.numpy as jnp
from jax.experimental import pallas as pl
from jax.experimental.pallas import tpu as pltpu

LN_EPS = 1e-5


# ---------------------------------------------------------------------------
# Shared forward math.  `p` values are either VMEM Refs (inside the kernel) or
# jnp arrays (pure-JAX reference); both support `[...]` and `[l]` indexing, so
# the exact same code defines the kernel body and the reference.
# ---------------------------------------------------------------------------
def _forward(x, attn_bias, p, *, num_heads, recip):
    H = p["emb_w"].shape[1]
    hd = H // num_heads
    L = p["enc_qkv_w"].shape[0]
    scale = 1.0 / math.sqrt(hd)

    def wdot(a, w):
        # bf16 weights / bf16-cast activation on the MXU, f32 accumulation.
        return jnp.dot(a.astype(w.dtype), w, preferred_element_type=jnp.float32)

    def layernorm(z, g, b):
        mu = jnp.mean(z, axis=-1, keepdims=True)
        c = z - mu
        var = jnp.mean(c * c, axis=-1, keepdims=True)
        return c * jax.lax.rsqrt(var + LN_EPS) * g + b

    def attend(q, k, v, wo, bo):
        # Static per-head loop on lane slices; no (h, S, hd) stack, no concat.
        # Output projection accumulated from Wo row slices per head.
        q = q * scale
        out = None
        for h in range(num_heads):
            cs = slice(h * hd, (h + 1) * hd)
            s = jax.lax.dot_general(q[:, cs], k[:, cs], (((1,), (1,)), ((), ())),
                                    preferred_element_type=jnp.float32)
            s = s + attn_bias                      # block-diag mask (0 / -1e30)
            s = s - jnp.max(s, axis=-1, keepdims=True)
            e = jnp.exp(s)
            a = e * recip(jnp.sum(e, axis=-1, keepdims=True))
            ctx = jnp.dot(a, v[:, cs], preferred_element_type=jnp.float32)
            part = wdot(ctx, wo[cs, :])
            out = part if out is None else out + part
        return out + bo

    def ffn(z, w1, b1, w2, b2):
        return wdot(jnp.maximum(wdot(z, w1) + b1, 0.0), w2) + b2

    # Embedding (PyTorch's unsqueeze(1) transformer-batch dim of 1 stays squeezed).
    h = wdot(x, p["emb_w"][...]) + p["emb_b"][...]

    # Encoder stack (post-LN) + final encoder LayerNorm.
    mem = h
    for l in range(L):
        ln = p["enc_ln"][l]
        qkv = wdot(mem, p["enc_qkv_w"][l]) + p["enc_qkv_b"][l]
        a = attend(qkv[:, :H], qkv[:, H:2 * H], qkv[:, 2 * H:],
                   p["enc_o_w"][l], p["enc_o_b"][l])
        mem = layernorm(mem + a, ln[0:1], ln[1:2])
        f = ffn(mem, p["enc_ff1_w"][l], p["enc_ff1_b"][l],
                p["enc_ff2_w"][l], p["enc_ff2_b"][l])
        mem = layernorm(mem + f, ln[2:3], ln[3:4])
    en = p["enc_norm"][...]
    mem = layernorm(mem, en[0:1], en[1:2])

    # Decoder stack: self-attn, cross-attn over memory, FFN (post-LN) + final LN.
    t = h
    for l in range(L):
        ln = p["dec_ln"][l]
        qkv = wdot(t, p["dec_sa_qkv_w"][l]) + p["dec_sa_qkv_b"][l]
        a = attend(qkv[:, :H], qkv[:, H:2 * H], qkv[:, 2 * H:],
                   p["dec_sa_o_w"][l], p["dec_sa_o_b"][l])
        t = layernorm(t + a, ln[0:1], ln[1:2])
        q = wdot(t, p["dec_ca_q_w"][l]) + p["dec_ca_q_b"][l]
        kv = wdot(mem, p["dec_ca_kv_w"][l]) + p["dec_ca_kv_b"][l]
        a = attend(q, kv[:, :H], kv[:, H:], p["dec_ca_o_w"][l], p["dec_ca_o_b"][l])
        t = layernorm(t + a, ln[2:3], ln[3:4])
        f = ffn(t, p["dec_ff1_w"][l], p["dec_ff1_b"][l],
                p["dec_ff2_w"][l], p["dec_ff2_b"][l])
        t = layernorm(t + f, ln[4:5], ln[5:6])
    dn = p["dec_norm"][...]
    t = layernorm(t, dn[0:1], dn[1:2])

    # fc (output columns zero-padded to 128 lanes -> dense store) + sigmoid.
    return jax.nn.sigmoid(wdot(t, p["fc_w"][...]) + p["fc_b"][...])


# ---------------------------------------------------------------------------
# Pallas kernel: one grid step = one block of `bb` independent samples (bb*S rows).
# ---------------------------------------------------------------------------
def _fused_kernel(treedef, num_heads, x_ref, bias_ref, *rest):
    o_ref = rest[-1]
    p = jax.tree_util.tree_unflatten(treedef, rest[:-1])
    o_ref[...] = _forward(
        x_ref[...], bias_ref[...], p, num_heads=num_heads,
        recip=lambda v: pl.reciprocal(v, approx=True))


def _const_spec(a):
    n = a.ndim
    return pl.BlockSpec(a.shape, lambda i, n=n: (0,) * n)


def transformer_classifier_forward(x, params, *, num_classes, num_heads=4,
                                   rows_per_block=128):
    """x: (S, input_size) single module call, or (B, S, input_size) = B independent calls."""
    squeeze = x.ndim == 2
    if squeeze:
        x = x[None]
    B, S, in_size = x.shape
    H = params["emb_w"].shape[1]
    assert H % num_heads == 0, "hidden_size must be divisible by num_heads"
    C_pad = params["fc_w"].shape[1]

    # Samples per kernel block: grow matmul M toward rows_per_block, keep rows % 8 == 0.
    bb = min(max(1, rows_per_block // S), B)
    while (bb * S) % 8:
        bb += 1
    B_pad = -(-B // bb) * bb
    M_blk = bb * S

    xf = x.astype(jnp.float32)
    if B_pad != B:
        xf = jnp.concatenate(
            [xf, jnp.zeros((B_pad - B, S, in_size), jnp.float32)], axis=0)
    xf = xf.reshape(B_pad * S, in_size)

    # Block-diagonal attention bias: 0 within a sample, -1e30 across samples, so
    # packing several independent samples into one row block is exact.
    sid = jnp.repeat(jnp.arange(bb, dtype=jnp.int32), S)
    bias = jnp.where(sid[:, None] == sid[None, :], 0.0, -1e30).astype(jnp.float32)

    flat, treedef = jax.tree_util.tree_flatten(params)
    kernel = functools.partial(_fused_kernel, treedef, num_heads)

    grid = (B_pad // bb,)
    in_specs = [pl.BlockSpec((M_blk, in_size), lambda i: (i, 0)),
                _const_spec(bias)] + [_const_spec(a) for a in flat]
    out_specs = pl.BlockSpec((M_blk, C_pad), lambda i: (i, 0))

    out = pl.pallas_call(
        kernel,
        out_shape=jax.ShapeDtypeStruct((B_pad * S, C_pad), jnp.float32),
        grid=grid,
        in_specs=in_specs,
        out_specs=out_specs,
        compiler_params=pltpu.CompilerParams(
            dimension_semantics=("parallel",),        # megacore sharding on v7x
            vmem_limit_bytes=32 * 1024 * 1024),
    )(xf, bias, *flat)

    out = out.reshape(B_pad, S, C_pad)[:B, :, :num_classes]
    return out[0] if squeeze else out


# ---------------------------------------------------------------------------
# Pure-JAX reference: per-sample, mask-free, exact division; same _forward math.
# ---------------------------------------------------------------------------
def reference_forward(x, params, *, num_classes, num_heads=4):
    squeeze = x.ndim == 2
    if squeeze:
        x = x[None]
    B, S, _ = x.shape
    bias0 = jnp.zeros((S, S), jnp.float32)
    outs = []
    for b in range(B):
        o = _forward(x[b].astype(jnp.float32), bias0, params,
                     num_heads=num_heads, recip=lambda v: 1.0 / v)
        outs.append(o[:, :num_classes])
    out = jnp.stack(outs, axis=0)
    return out[0] if squeeze else out


# ---------------------------------------------------------------------------
# Parameters: deterministic synthetic init, matching nn.Transformer defaults
# (nhead=4, dim_feedforward=2048, relu, post-LN, final encoder/decoder LayerNorm).
# Linear weights stored pre-transposed (in, out) in bf16; QKV packed (H, 3H); all
# per-layer tensors stacked over layers.  When porting a real PyTorch checkpoint,
# transpose nn.Linear (out,in) weights and in_proj_weight, then pack the same way.
# ---------------------------------------------------------------------------
def init_params(key, input_size, hidden_size, num_layers, num_classes,
                num_heads=4, dff=2048, out_pad=128):
    H, L = hidden_size, num_layers
    assert H % num_heads == 0
    kit = iter(jax.random.split(key, 64))

    def w(shape, s):
        return (s * jax.random.normal(next(kit), shape, jnp.float32)).astype(jnp.bfloat16)

    def b(shape, s=0.02):
        return s * jax.random.normal(next(kit), shape, jnp.float32)

    def ln(lead, n):  # -> (lead, 2n, H): rows [g0, b0, g1, b1, ...]
        g = 1.0 + 0.02 * jax.random.normal(next(kit), (lead, n, H), jnp.float32)
        bt = 0.02 * jax.random.normal(next(kit), (lead, n, H), jnp.float32)
        rows = []
        for i in range(n):
            rows += [g[:, i], bt[:, i]]
        return jnp.stack(rows, axis=1)

    params = dict(
        emb_w=w((input_size, H), 0.1), emb_b=b((1, H)),
        enc_qkv_w=w((L, H, 3 * H), 0.1), enc_qkv_b=b((L, 1, 3 * H)),
        enc_o_w=w((L, H, H), 0.1), enc_o_b=b((L, 1, H)),
        enc_ff1_w=w((L, H, dff), 0.06), enc_ff1_b=b((L, 1, dff)),
        enc_ff2_w=w((L, dff, H), 0.02), enc_ff2_b=b((L, 1, H)),
        enc_ln=ln(L, 2), enc_norm=ln(1, 1)[0],
        dec_sa_qkv_w=w((L, H, 3 * H), 0.1), dec_sa_qkv_b=b((L, 1, 3 * H)),
        dec_sa_o_w=w((L, H, H), 0.1), dec_sa_o_b=b((L, 1, H)),
        dec_ca_q_w=w((L, H, H), 0.1), dec_ca_q_b=b((L, 1, H)),
        dec_ca_kv_w=w((L, H, 2 * H), 0.1), dec_ca_kv_b=b((L, 1, 2 * H)),
        dec_ca_o_w=w((L, H, H), 0.1), dec_ca_o_b=b((L, 1, H)),
        dec_ff1_w=w((L, H, dff), 0.06), dec_ff1_b=b((L, 1, dff)),
        dec_ff2_w=w((L, dff, H), 0.02), dec_ff2_b=b((L, 1, H)),
        dec_ln=ln(L, 3), dec_norm=ln(1, 1)[0],
    )
    # fc padded to a lane-dense 128-column output; extra columns are zero / sliced off.
    fc_w = jnp.zeros((H, out_pad), jnp.float32).at[:, :num_classes].set(
        0.15 * jax.random.normal(next(kit), (H, num_classes), jnp.float32))
    fc_b = jnp.zeros((1, out_pad), jnp.float32).at[:, :num_classes].set(
        0.02 * jax.random.normal(next(kit), (1, num_classes), jnp.float32))
    params["fc_w"] = fc_w.astype(jnp.bfloat16)
    params["fc_b"] = fc_b
    return params


if __name__ == "__main__":
    input_size, hidden_size, num_layers, num_classes = 16, 32, 2, 4
    seq = 8  # classifier "batch" == transformer sequence length (transformer batch=1)

    key = jax.random.PRNGKey(0)
    pkey, xkey, bkey = jax.random.split(key, 3)
    params = init_params(pkey, input_size, hidden_size, num_layers, num_classes)

    # Case 1: module-faithful single call, x = (batch=8, input_size=16).
    x = jax.random.normal(xkey, (seq, input_size), jnp.float32)
    out = jax.block_until_ready(
        transformer_classifier_forward(x, params, num_classes=num_classes))
    assert out.shape == (seq, num_classes)
    assert bool(jnp.all(jnp.isfinite(out)))
    assert bool(jnp.all((out >= 0.0) & (out <= 1.0)))  # sigmoid range
    ref = reference_forward(x, params, num_classes=num_classes)
    err = float(jnp.max(jnp.abs(out - ref)))
    assert err < 2e-2, f"kernel vs reference mismatch: {err}"

    # Case 2: batched independent calls (4, 8, 16) — exercises the multi-sample row
    # block, the block-diagonal cross-sample mask, and the parallel grid path.
    xb = jax.random.normal(bkey, (4, seq, input_size), jnp.float32)
    outb = jax.block_until_ready(
        transformer_classifier_forward(xb, params, num_classes=num_classes))
    refb = reference_forward(xb, params, num_classes=num_classes)
    assert outb.shape == (4, seq, num_classes)
    errb = float(jnp.max(jnp.abs(outb - refb)))
    assert errb < 2e-2, f"batched kernel vs reference mismatch: {errb}"

    print("KERNEL_OK")
</pallas_src>

<mosaic_0001>
module attributes {stable_mosaic.version = 11 : i64} {
  func.func @_fused_kernel(%arg0: i32, %arg1: memref<8x16xf32, #tpu.memory_space<vmem>>, %arg2: memref<8x8xf32, #tpu.memory_space<vmem>>, %arg3: memref<2x1x64xf32, #tpu.memory_space<vmem>>, %arg4: memref<2x32x64xbf16, #tpu.memory_space<vmem>>, %arg5: memref<2x1x32xf32, #tpu.memory_space<vmem>>, %arg6: memref<2x32x32xbf16, #tpu.memory_space<vmem>>, %arg7: memref<2x1x32xf32, #tpu.memory_space<vmem>>, %arg8: memref<2x32x32xbf16, #tpu.memory_space<vmem>>, %arg9: memref<2x1x2048xf32, #tpu.memory_space<vmem>>, %arg10: memref<2x32x2048xbf16, #tpu.memory_space<vmem>>, %arg11: memref<2x1x32xf32, #tpu.memory_space<vmem>>, %arg12: memref<2x2048x32xbf16, #tpu.memory_space<vmem>>, %arg13: memref<2x6x32xf32, #tpu.memory_space<vmem>>, %arg14: memref<2x32xf32, #tpu.memory_space<vmem>>, %arg15: memref<2x1x32xf32, #tpu.memory_space<vmem>>, %arg16: memref<2x32x32xbf16, #tpu.memory_space<vmem>>, %arg17: memref<2x1x96xf32, #tpu.memory_space<vmem>>, %arg18: memref<2x32x96xbf16, #tpu.memory_space<vmem>>, %arg19: memref<1x32xf32, #tpu.memory_space<vmem>>, %arg20: memref<16x32xbf16, #tpu.memory_space<vmem>>, %arg21: memref<2x1x2048xf32, #tpu.memory_space<vmem>>, %arg22: memref<2x32x2048xbf16, #tpu.memory_space<vmem>>, %arg23: memref<2x1x32xf32, #tpu.memory_space<vmem>>, %arg24: memref<2x2048x32xbf16, #tpu.memory_space<vmem>>, %arg25: memref<2x4x32xf32, #tpu.memory_space<vmem>>, %arg26: memref<2x32xf32, #tpu.memory_space<vmem>>, %arg27: memref<2x1x32xf32, #tpu.memory_space<vmem>>, %arg28: memref<2x32x32xbf16, #tpu.memory_space<vmem>>, %arg29: memref<2x1x96xf32, #tpu.memory_space<vmem>>, %arg30: memref<2x32x96xbf16, #tpu.memory_space<vmem>>, %arg31: memref<1x128xf32, #tpu.memory_space<vmem>>, %arg32: memref<32x128xbf16, #tpu.memory_space<vmem>>, %arg33: memref<8x128xf32, #tpu.memory_space<vmem>>) attributes {dimension_semantics = [#tpu.dimension_semantics<parallel>], iteration_bounds = array<i64: 1>, scalar_prefetch = 0 : i64, scratch_operands = 0 : i64, tpu.core_type = #tpu.core_type<tc>, window_params = [{transform_indices = @transform_0, window_bounds = array<i64: 8, 16>}, {pipeline_mode = #tpu.pipeline_mode<synchronous>, transform_indices = @transform_1, window_bounds = array<i64: 8, 8>}, {pipeline_mode = #tpu.pipeline_mode<synchronous>, transform_indices = @transform_2, window_bounds = array<i64: 2, 1, 64>}, {pipeline_mode = #tpu.pipeline_mode<synchronous>, transform_indices = @transform_3, window_bounds = array<i64: 2, 32, 64>}, {pipeline_mode = #tpu.pipeline_mode<synchronous>, transform_indices = @transform_4, window_bounds = array<i64: 2, 1, 32>}, {pipeline_mode = #tpu.pipeline_mode<synchronous>, transform_indices = @transform_5, window_bounds = array<i64: 2, 32, 32>}, {pipeline_mode = #tpu.pipeline_mode<synchronous>, transform_indices = @transform_6, window_bounds = array<i64: 2, 1, 32>}, {pipeline_mode = #tpu.pipeline_mode<synchronous>, transform_indices = @transform_7, window_bounds = array<i64: 2, 32, 32>}, {pipeline_mode = #tpu.pipeline_mode<synchronous>, transform_indices = @transform_8, window_bounds = array<i64: 2, 1, 2048>}, {pipeline_mode = #tpu.pipeline_mode<synchronous>, transform_indices = @transform_9, window_bounds = array<i64: 2, 32, 2048>}, {pipeline_mode = #tpu.pipeline_mode<synchronous>, transform_indices = @transform_10, window_bounds = array<i64: 2, 1, 32>}, {pipeline_mode = #tpu.pipeline_mode<synchronous>, transform_indices = @transform_11, window_bounds = array<i64: 2, 2048, 32>}, {pipeline_mode = #tpu.pipeline_mode<synchronous>, transform_indices = @transform_12, window_bounds = array<i64: 2, 6, 32>}, {pipeline_mode = #tpu.pipeline_mode<synchronous>, transform_indices = @transform_13, window_bounds = array<i64: 2, 32>}, {pipeline_mode = #tpu.pipeline_mode<synchronous>, transform_indices = @transform_14, window_bounds = array<i64: 2, 1, 32>}, {pipeline_mode = #tpu.pipeline_mode<synchronous>, transform_indices = @transform_15, window_bounds = array<i64: 2, 32, 32>}, {pipeline_mode = #tpu.pipeline_mode<synchronous>, transform_indices = @transform_16, window_bounds = array<i64: 2, 1, 96>}, {pipeline_mode = #tpu.pipeline_mode<synchronous>, transform_indices = @transform_17, window_bounds = array<i64: 2, 32, 96>}, {pipeline_mode = #tpu.pipeline_mode<synchronous>, transform_indices = @transform_18, window_bounds = array<i64: 1, 32>}, {pipeline_mode = #tpu.pipeline_mode<synchronous>, transform_indices = @transform_19, window_bounds = array<i64: 16, 32>}, {pipeline_mode = #tpu.pipeline_mode<synchronous>, transform_indices = @transform_20, window_bounds = array<i64: 2, 1, 2048>}, {pipeline_mode = #tpu.pipeline_mode<synchronous>, transform_indices = @transform_21, window_bounds = array<i64: 2, 32, 2048>}, {pipeline_mode = #tpu.pipeline_mode<synchronous>, transform_indices = @transform_22, window_bounds = array<i64: 2, 1, 32>}, {pipeline_mode = #tpu.pipeline_mode<synchronous>, transform_indices = @transform_23, window_bounds = array<i64: 2, 2048, 32>}, {pipeline_mode = #tpu.pipeline_mode<synchronous>, transform_indices = @transform_24, window_bounds = array<i64: 2, 4, 32>}, {pipeline_mode = #tpu.pipeline_mode<synchronous>, transform_indices = @transform_25, window_bounds = array<i64: 2, 32>}, {pipeline_mode = #tpu.pipeline_mode<synchronous>, transform_indices = @transform_26, window_bounds = array<i64: 2, 1, 32>}, {pipeline_mode = #tpu.pipeline_mode<synchronous>, transform_indices = @transform_27, window_bounds = array<i64: 2, 32, 32>}, {pipeline_mode = #tpu.pipeline_mode<synchronous>, transform_indices = @transform_28, window_bounds = array<i64: 2, 1, 96>}, {pipeline_mode = #tpu.pipeline_mode<synchronous>, transform_indices = @transform_29, window_bounds = array<i64: 2, 32, 96>}, {pipeline_mode = #tpu.pipeline_mode<synchronous>, transform_indices = @transform_30, window_bounds = array<i64: 1, 128>}, {pipeline_mode = #tpu.pipeline_mode<synchronous>, transform_indices = @transform_31, window_bounds = array<i64: 32, 128>}, {transform_indices = @transform_32, window_bounds = array<i64: 8, 128>}]} {
    %c0 = arith.constant 0 : index
    %c0_0 = arith.constant 0 : index
    %0 = vector.load %arg1[%c0, %c0_0] : memref<8x16xf32, #tpu.memory_space<vmem>>, vector<8x16xf32>
    %c0_1 = arith.constant 0 : index
    %c0_2 = arith.constant 0 : index
    %1 = vector.load %arg2[%c0_1, %c0_2] : memref<8x8xf32, #tpu.memory_space<vmem>>, vector<8x8xf32>
    %c0_3 = arith.constant 0 : index
    %c0_4 = arith.constant 0 : index
    %2 = vector.load %arg20[%c0_3, %c0_4] : memref<16x32xbf16, #tpu.memory_space<vmem>>, vector<16x32xbf16>
    %3 = arith.truncf %0 : vector<8x16xf32> to vector<8x16xbf16>
    %cst = arith.constant dense<0.000000e+00> : vector<8x32xf32>
    %4 = tpu.matmul %3, %2, %cst {dimension_numbers = #tpu.dot_dimension_numbers<[1], [0], [0], [1], [0, 0, 1, 1], [], []>} : vector<8x16xbf16>, vector<16x32xbf16>, vector<8x32xf32> -> vector<8x32xf32>
    %c0_5 = arith.constant 0 : index
    %c0_6 = arith.constant 0 : index
    %5 = vector.load %arg19[%c0_5, %c0_6] : memref<1x32xf32, #tpu.memory_space<vmem>>, vector<1x32xf32>
    %6 = vector.broadcast %5 : vector<1x32xf32> to vector<8x32xf32>
    %7 = arith.addf %4, %6 : vector<8x32xf32>
    %c0_7 = arith.constant 0 : index
    %c0_8 = arith.constant 0 : index
    %c0_9 = arith.constant 0 : index
    %8 = vector.load %arg25[%c0_7, %c0_8, %c0_9] : memref<2x4x32xf32, #tpu.memory_space<vmem>>, vector<1x4x32xf32>
    %9 = vector.shape_cast %8 : vector<1x4x32xf32> to vector<4x32xf32>
    %c0_10 = arith.constant 0 : index
    %c0_11 = arith.constant 0 : index
    %c0_12 = arith.constant 0 : index
    %10 = vector.load %arg30[%c0_10, %c0_11, %c0_12] : memref<2x32x96xbf16, #tpu.memory_space<vmem>>, vector<1x32x96xbf16>
    %11 = vector.shape_cast %10 : vector<1x32x96xbf16> to vector<32x96xbf16>
    %12 = arith.truncf %7 : vector<8x32xf32> to vector<8x32xbf16>
    %cst_13 = arith.constant dense<0.000000e+00> : vector<8x96xf32>
    %13 = tpu.matmul %12, %11, %cst_13 {dimension_numbers = #tpu.dot_dimension_numbers<[1], [0], [0], [1], [0, 0, 1, 1], [], []>} : vector<8x32xbf16>, vector<32x96xbf16>, vector<8x96xf32> -> vector<8x96xf32>
    %c0_14 = arith.constant 0 : index
    %c0_15 = arith.constant 0 : index
    %c0_16 = arith.constant 0 : index
    %14 = vector.load %arg29[%c0_14, %c0_15, %c0_16] : memref<2x1x96xf32, #tpu.memory_space<vmem>>, vector<1x1x96xf32>
    %15 = vector.shape_cast %14 : vector<1x1x96xf32> to vector<1x96xf32>
    %16 = vector.broadcast %15 : vector<1x96xf32> to vector<8x96xf32>
    %17 = arith.addf %13, %16 : vector<8x96xf32>
    %18 = vector.extract_strided_slice %17 {offsets = [0, 0], sizes = [8, 32], strides = [1, 1]} : vector<8x96xf32> to vector<8x32xf32>
    %19 = vector.extract_strided_slice %17 {offsets = [0, 32], sizes = [8, 32], strides = [1, 1]} : vector<8x96xf32> to vector<8x32xf32>
    %20 = vector.extract_strided_slice %17 {offsets = [0, 64], sizes = [8, 32], strides = [1, 1]} : vector<8x96xf32> to vector<8x32xf32>
    %c0_17 = arith.constant 0 : index
    %c0_18 = arith.constant 0 : index
    %c0_19 = arith.constant 0 : index
    %21 = vector.load %arg28[%c0_17, %c0_18, %c0_19] : memref<2x32x32xbf16, #tpu.memory_space<vmem>>, vector<1x32x32xbf16>
    %22 = vector.shape_cast %21 : vector<1x32x32xbf16> to vector<32x32xbf16>
    %c0_20 = arith.constant 0 : index
    %c0_21 = arith.constant 0 : index
    %c0_22 = arith.constant 0 : index
    %23 = vector.load %arg27[%c0_20, %c0_21, %c0_22] : memref<2x1x32xf32, #tpu.memory_space<vmem>>, vector<1x1x32xf32>
    %24 = vector.shape_cast %23 : vector<1x1x32xf32> to vector<1x32xf32>
    %cst_23 = arith.constant 0.353553385 : f32
    %25 = vector.broadcast %cst_23 : f32 to vector<8x32xf32>
    %26 = arith.mulf %18, %25 : vector<8x32xf32>
    %27 = vector.extract_strided_slice %26 {offsets = [0, 0], sizes = [8, 8], strides = [1, 1]} : vector<8x32xf32> to vector<8x8xf32>
    %28 = vector.extract_strided_slice %19 {offsets = [0, 0], sizes = [8, 8], strides = [1, 1]} : vector<8x32xf32> to vector<8x8xf32>
    %cst_24 = arith.constant dense<0.000000e+00> : vector<8x8xf32>
    %29 = tpu.matmul %27, %28, %cst_24 {dimension_numbers = #tpu.dot_dimension_numbers<[1], [1], [0], [0], [0, 0, 1, 0], [], []>} : vector<8x8xf32>, vector<8x8xf32>, vector<8x8xf32> -> vector<8x8xf32>
    %30 = arith.addf %29, %1 : vector<8x8xf32>
    %cst_25 = arith.constant dense<0xFF800000> : vector<8xf32>
    %31 = vector.multi_reduction <maximumf>, %30, %cst_25 [1] : vector<8x8xf32> to vector<8xf32>
    %32 = vector.shape_cast %31 : vector<8xf32> to vector<8x1xf32>
    %33 = vector.broadcast %32 : vector<8x1xf32> to vector<8x8xf32>
    %34 = arith.subf %30, %33 : vector<8x8xf32>
    %35 = math.exp %34 : vector<8x8xf32>
    %cst_26 = arith.constant dense<0.000000e+00> : vector<8xf32>
    %36 = vector.multi_reduction <add>, %35, %cst_26 [1] : vector<8x8xf32> to vector<8xf32>
    %37 = vector.shape_cast %36 : vector<8xf32> to vector<8x1xf32>
    %38 = tpu.reciprocal %37 {approx = true} : vector<8x1xf32> -> vector<8x1xf32>
    %39 = vector.broadcast %38 : vector<8x1xf32> to vector<8x8xf32>
    %40 = arith.mulf %35, %39 : vector<8x8xf32>
    %41 = vector.extract_strided_slice %20 {offsets = [0, 0], sizes = [8, 8], strides = [1, 1]} : vector<8x32xf32> to vector<8x8xf32>
    %cst_27 = arith.constant dense<0.000000e+00> : vector<8x8xf32>
    %42 = tpu.matmul %40, %41, %cst_27 {dimension_numbers = #tpu.dot_dimension_numbers<[1], [0], [0], [1], [0, 0, 1, 1], [], []>} : vector<8x8xf32>, vector<8x8xf32>, vector<8x8xf32> -> vector<8x8xf32>
    %43 = vector.extract_strided_slice %22 {offsets = [0, 0], sizes = [8, 32], strides = [1, 1]} : vector<32x32xbf16> to vector<8x32xbf16>
    %44 = arith.truncf %42 : vector<8x8xf32> to vector<8x8xbf16>
    %cst_28 = arith.constant dense<0.000000e+00> : vector<8x32xf32>
    %45 = tpu.matmul %44, %43, %cst_28 {dimension_numbers = #tpu.dot_dimension_numbers<[1], [0], [0], [1], [0, 0, 1, 1], [], []>} : vector<8x8xbf16>, vector<8x32xbf16>, vector<8x32xf32> -> vector<8x32xf32>
    %46 = vector.extract_strided_slice %26 {offsets = [0, 8], sizes = [8, 8], strides = [1, 1]} : vector<8x32xf32> to vector<8x8xf32>
    %47 = vector.extract_strided_slice %19 {offsets = [0, 8], sizes = [8, 8], strides = [1, 1]} : vector<8x32xf32> to vector<8x8xf32>
    %cst_29 = arith.constant dense<0.000000e+00> : vector<8x8xf32>
    %48 = tpu.matmul %46, %47, %cst_29 {dimension_numbers = #tpu.dot_dimension_numbers<[1], [1], [0], [0], [0, 0, 1, 0], [], []>} : vector<8x8xf32>, vector<8x8xf32>, vector<8x8xf32> -> vector<8x8xf32>
    %49 = arith.addf %48, %1 : vector<8x8xf32>
    %cst_30 = arith.constant dense<0xFF800000> : vector<8xf32>
    %50 = vector.multi_reduction <maximumf>, %49, %cst_30 [1] : vector<8x8xf32> to vector<8xf32>
    %51 = vector.shape_cast %50 : vector<8xf32> to vector<8x1xf32>
    %52 = vector.broadcast %51 : vector<8x1xf32> to vector<8x8xf32>
    %53 = arith.subf %49, %52 : vector<8x8xf32>
    %54 = math.exp %53 : vector<8x8xf32>
    %cst_31 = arith.constant dense<0.000000e+00> : vector<8xf32>
    %55 = vector.multi_reduction <add>, %54, %cst_31 [1] : vector<8x8xf32> to vector<8xf32>
    %56 = vector.shape_cast %55 : vector<8xf32> to vector<8x1xf32>
    %57 = tpu.reciprocal %56 {approx = true} : vector<8x1xf32> -> vector<8x1xf32>
    %58 = vector.broadcast %57 : vector<8x1xf32> to vector<8x8xf32>
    %59 = arith.mulf %54, %58 : vector<8x8xf32>
    %60 = vector.extract_strided_slice %20 {offsets = [0, 8], sizes = [8, 8], strides = [1, 1]} : vector<8x32xf32> to vector<8x8xf32>
    %cst_32 = arith.constant dense<0.000000e+00> : vector<8x8xf32>
    %61 = tpu.matmul %59, %60, %cst_32 {dimension_numbers = #tpu.dot_dimension_numbers<[1], [0], [0], [1], [0, 0, 1, 1], [], []>} : vector<8x8xf32>, vector<8x8xf32>, vector<8x8xf32> -> vector<8x8xf32>
    %62 = vector.extract_strided_slice %22 {offsets = [8, 0], sizes = [8, 32], strides = [1, 1]} : vector<32x32xbf16> to vector<8x32xbf16>
    %63 = arith.truncf %61 : vector<8x8xf32> to vector<8x8xbf16>
    %cst_33 = arith.constant dense<0.000000e+00> : vector<8x32xf32>
    %64 = tpu.matmul %63, %62, %cst_33 {dimension_numbers = #tpu.dot_dimension_numbers<[1], [0], [0], [1], [0, 0, 1, 1], [], []>} : vector<8x8xbf16>, vector<8x32xbf16>, vector<8x32xf32> -> vector<8x32xf32>
    %65 = arith.addf %45, %64 : vector<8x32xf32>
    %66 = vector.extract_strided_slice %26 {offsets = [0, 16], sizes = [8, 8], strides = [1, 1]} : vector<8x32xf32> to vector<8x8xf32>
    %67 = vector.extract_strided_slice %19 {offsets = [0, 16], sizes = [8, 8], strides = [1, 1]} : vector<8x32xf32> to vector<8x8xf32>
    %cst_34 = arith.constant dense<0.000000e+00> : vector<8x8xf32>
    %68 = tpu.matmul %66, %67, %cst_34 {dimension_numbers = #tpu.dot_dimension_numbers<[1], [1], [0], [0], [0, 0, 1, 0], [], []>} : vector<8x8xf32>, vector<8x8xf32>, vector<8x8xf32> -> vector<8x8xf32>
    %69 = arith.addf %68, %1 : vector<8x8xf32>
    %cst_35 = arith.constant dense<0xFF800000> : vector<8xf32>
    %70 = vector.multi_reduction <maximumf>, %69, %cst_35 [1] : vector<8x8xf32> to vector<8xf32>
    %71 = vector.shape_cast %70 : vector<8xf32> to vector<8x1xf32>
    %72 = vector.broadcast %71 : vector<8x1xf32> to vector<8x8xf32>
    %73 = arith.subf %69, %72 : vector<8x8xf32>
    %74 = math.exp %73 : vector<8x8xf32>
    %cst_36 = arith.constant dense<0.000000e+00> : vector<8xf32>
    %75 = vector.multi_reduction <add>, %74, %cst_36 [1] : vector<8x8xf32> to vector<8xf32>
    %76 = vector.shape_cast %75 : vector<8xf32> to vector<8x1xf32>
    %77 = tpu.reciprocal %76 {approx = true} : vector<8x1xf32> -> vector<8x1xf32>
    %78 = vector.broadcast %77 : vector<8x1xf32> to vector<8x8xf32>
    %79 = arith.mulf %74, %78 : vector<8x8xf32>
    %80 = vector.extract_strided_slice %20 {offsets = [0, 16], sizes = [8, 8], strides = [1, 1]} : vector<8x32xf32> to vector<8x8xf32>
    %cst_37 = arith.constant dense<0.000000e+00> : vector<8x8xf32>
    %81 = tpu.matmul %79, %80, %cst_37 {dimension_numbers = #tpu.dot_dimension_numbers<[1], [0], [0], [1], [0, 0, 1, 1], [], []>} : vector<8x8xf32>, vector<8x8xf32>, vector<8x8xf32> -> vector<8x8xf32>
    %82 = vector.extract_strided_slice %22 {offsets = [16, 0], sizes = [8, 32], strides = [1, 1]} : vector<32x32xbf16> to vector<8x32xbf16>
    %83 = arith.truncf %81 : vector<8x8xf32> to vector<8x8xbf16>
    %cst_38 = arith.constant dense<0.000000e+00> : vector<8x32xf32>
    %84 = tpu.matmul %83, %82, %cst_38 {dimension_numbers = #tpu.dot_dimension_numbers<[1], [0], [0], [1], [0, 0, 1, 1], [], []>} : vector<8x8xbf16>, vector<8x32xbf16>, vector<8x32xf32> -> vector<8x32xf32>
    %85 = arith.addf %65, %84 : vector<8x32xf32>
    %86 = vector.extract_strided_slice %26 {offsets = [0, 24], sizes = [8, 8], strides = [1, 1]} : vector<8x32xf32> to vector<8x8xf32>
    %87 = vector.extract_strided_slice %19 {offsets = [0, 24], sizes = [8, 8], strides = [1, 1]} : vector<8x32xf32> to vector<8x8xf32>
    %cst_39 = arith.constant dense<0.000000e+00> : vector<8x8xf32>
    %88 = tpu.matmul %86, %87, %cst_39 {dimension_numbers = #tpu.dot_dimension_numbers<[1], [1], [0], [0], [0, 0, 1, 0], [], []>} : vector<8x8xf32>, vector<8x8xf32>, vector<8x8xf32> -> vector<8x8xf32>
    %89 = arith.addf %88, %1 : vector<8x8xf32>
    %cst_40 = arith.constant dense<0xFF800000> : vector<8xf32>
    %90 = vector.multi_reduction <maximumf>, %89, %cst_40 [1] : vector<8x8xf32> to vector<8xf32>
    %91 = vector.shape_cast %90 : vector<8xf32> to vector<8x1xf32>
    %92 = vector.broadcast %91 : vector<8x1xf32> to vector<8x8xf32>
    %93 = arith.subf %89, %92 : vector<8x8xf32>
    %94 = math.exp %93 : vector<8x8xf32>
    %cst_41 = arith.constant dense<0.000000e+00> : vector<8xf32>
    %95 = vector.multi_reduction <add>, %94, %cst_41 [1] : vector<8x8xf32> to vector<8xf32>
    %96 = vector.shape_cast %95 : vector<8xf32> to vector<8x1xf32>
    %97 = tpu.reciprocal %96 {approx = true} : vector<8x1xf32> -> vector<8x1xf32>
    %98 = vector.broadcast %97 : vector<8x1xf32> to vector<8x8xf32>
    %99 = arith.mulf %94, %98 : vector<8x8xf32>
    %100 = vector.extract_strided_slice %20 {offsets = [0, 24], sizes = [8, 8], strides = [1, 1]} : vector<8x32xf32> to vector<8x8xf32>
    %cst_42 = arith.constant dense<0.000000e+00> : vector<8x8xf32>
    %101 = tpu.matmul %99, %100, %cst_42 {dimension_numbers = #tpu.dot_dimension_numbers<[1], [0], [0], [1], [0, 0, 1, 1], [], []>} : vector<8x8xf32>, vector<8x8xf32>, vector<8x8xf32> -> vector<8x8xf32>
    %102 = vector.extract_strided_slice %22 {offsets = [24, 0], sizes = [8, 32], strides = [1, 1]} : vector<32x32xbf16> to vector<8x32xbf16>
    %103 = arith.truncf %101 : vector<8x8xf32> to vector<8x8xbf16>
    %cst_43 = arith.constant dense<0.000000e+00> : vector<8x32xf32>
    %104 = tpu.matmul %103, %102, %cst_43 {dimension_numbers = #tpu.dot_dimension_numbers<[1], [0], [0], [1], [0, 0, 1, 1], [], []>} : vector<8x8xbf16>, vector<8x32xbf16>, vector<8x32xf32> -> vector<8x32xf32>
    %105 = arith.addf %85, %104 : vector<8x32xf32>
    %106 = vector.broadcast %24 : vector<1x32xf32> to vector<8x32xf32>
    %107 = arith.addf %105, %106 : vector<8x32xf32>
    %108 = arith.addf %7, %107 : vector<8x32xf32>
    %109 = vector.extract_strided_slice %9 {offsets = [0, 0], sizes = [1, 32], strides = [1, 1]} : vector<4x32xf32> to vector<1x32xf32>
    %110 = vector.extract_strided_slice %9 {offsets = [1, 0], sizes = [1, 32], strides = [1, 1]} : vector<4x32xf32> to vector<1x32xf32>
    %cst_44 = arith.constant dense<0.000000e+00> : vector<8xf32>
    %111 = vector.multi_reduction <add>, %108, %cst_44 [1] : vector<8x32xf32> to vector<8xf32>
    %112 = vector.shape_cast %111 : vector<8xf32> to vector<8x1xf32>
    %cst_45 = arith.constant 3.200000e+01 : f32
    %113 = vector.broadcast %cst_45 : f32 to vector<8x1xf32>
    %114 = arith.divf %112, %113 : vector<8x1xf32>
    %115 = vector.broadcast %114 : vector<8x1xf32> to vector<8x32xf32>
    %116 = arith.subf %108, %115 : vector<8x32xf32>
    %117 = arith.mulf %116, %116 : vector<8x32xf32>
    %cst_46 = arith.constant dense<0.000000e+00> : vector<8xf32>
    %118 = vector.multi_reduction <add>, %117, %cst_46 [1] : vector<8x32xf32> to vector<8xf32>
    %119 = vector.shape_cast %118 : vector<8xf32> to vector<8x1xf32>
    %cst_47 = arith.constant 3.200000e+01 : f32
    %120 = vector.broadcast %cst_47 : f32 to vector<8x1xf32>
    %121 = arith.divf %119, %120 : vector<8x1xf32>
    %cst_48 = arith.constant 9.99999974E-6 : f32
    %122 = vector.broadcast %cst_48 : f32 to vector<8x1xf32>
    %123 = arith.addf %121, %122 : vector<8x1xf32>
    %124 = math.rsqrt %123 : vector<8x1xf32>
    %125 = vector.broadcast %124 : vector<8x1xf32> to vector<8x32xf32>
    %126 = arith.mulf %116, %125 : vector<8x32xf32>
    %127 = vector.broadcast %109 : vector<1x32xf32> to vector<8x32xf32>
    %128 = arith.mulf %126, %127 : vector<8x32xf32>
    %129 = vector.broadcast %110 : vector<1x32xf32> to vector<8x32xf32>
    %130 = arith.addf %128, %129 : vector<8x32xf32>
    %c0_49 = arith.constant 0 : index
    %c0_50 = arith.constant 0 : index
    %c0_51 = arith.constant 0 : index
    %131 = vector.load %arg22[%c0_49, %c0_50, %c0_51] : memref<2x32x2048xbf16, #tpu.memory_space<vmem>>, vector<1x32x2048xbf16>
    %132 = vector.shape_cast %131 : vector<1x32x2048xbf16> to vector<32x2048xbf16>
    %c0_52 = arith.constant 0 : index
    %c0_53 = arith.constant 0 : index
    %c0_54 = arith.constant 0 : index
    %133 = vector.load %arg21[%c0_52, %c0_53, %c0_54] : memref<2x1x2048xf32, #tpu.memory_space<vmem>>, vector<1x1x2048xf32>
    %134 = vector.shape_cast %133 : vector<1x1x2048xf32> to vector<1x2048xf32>
    %c0_55 = arith.constant 0 : index
    %c0_56 = arith.constant 0 : index
    %c0_57 = arith.constant 0 : index
    %135 = vector.load %arg24[%c0_55, %c0_56, %c0_57] : memref<2x2048x32xbf16, #tpu.memory_space<vmem>>, vector<1x2048x32xbf16>
    %136 = vector.shape_cast %135 : vector<1x2048x32xbf16> to vector<2048x32xbf16>
    %c0_58 = arith.constant 0 : index
    %c0_59 = arith.constant 0 : index
    %c0_60 = arith.constant 0 : index
    %137 = vector.load %arg23[%c0_58, %c0_59, %c0_60] : memref<2x1x32xf32, #tpu.memory_space<vmem>>, vector<1x1x32xf32>
    %138 = vector.shape_cast %137 : vector<1x1x32xf32> to vector<1x32xf32>
    %139 = arith.truncf %130 : vector<8x32xf32> to vector<8x32xbf16>
    %cst_61 = arith.constant dense<0.000000e+00> : vector<8x2048xf32>
    %140 = tpu.matmul %139, %132, %cst_61 {dimension_numbers = #tpu.dot_dimension_numbers<[1], [0], [0], [1], [0, 0, 1, 1], [], []>} : vector<8x32xbf16>, vector<32x2048xbf16>, vector<8x2048xf32> -> vector<8x2048xf32>
    %141 = vector.broadcast %134 : vector<1x2048xf32> to vector<8x2048xf32>
    %142 = arith.addf %140, %141 : vector<8x2048xf32>
    %cst_62 = arith.constant 0.000000e+00 : f32
    %143 = vector.broadcast %cst_62 : f32 to vector<8x2048xf32>
    %144 = arith.maximumf %142, %143 : vector<8x2048xf32>
    %145 = arith.truncf %144 : vector<8x2048xf32> to vector<8x2048xbf16>
    %cst_63 = arith.constant dense<0.000000e+00> : vector<8x32xf32>
    %146 = tpu.matmul %145, %136, %cst_63 {dimension_numbers = #tpu.dot_dimension_numbers<[1], [0], [0], [1], [0, 0, 1, 1], [], []>} : vector<8x2048xbf16>, vector<2048x32xbf16>, vector<8x32xf32> -> vector<8x32xf32>
    %147 = vector.broadcast %138 : vector<1x32xf32> to vector<8x32xf32>
    %148 = arith.addf %146, %147 : vector<8x32xf32>
    %149 = arith.addf %130, %148 : vector<8x32xf32>
    %150 = vector.extract_strided_slice %9 {offsets = [2, 0], sizes = [1, 32], strides = [1, 1]} : vector<4x32xf32> to vector<1x32xf32>
    %151 = vector.extract_strided_slice %9 {offsets = [3, 0], sizes = [1, 32], strides = [1, 1]} : vector<4x32xf32> to vector<1x32xf32>
    %cst_64 = arith.constant dense<0.000000e+00> : vector<8xf32>
    %152 = vector.multi_reduction <add>, %149, %cst_64 [1] : vector<8x32xf32> to vector<8xf32>
    %153 = vector.shape_cast %152 : vector<8xf32> to vector<8x1xf32>
    %cst_65 = arith.constant 3.200000e+01 : f32
    %154 = vector.broadcast %cst_65 : f32 to vector<8x1xf32>
    %155 = arith.divf %153, %154 : vector<8x1xf32>
    %156 = vector.broadcast %155 : vector<8x1xf32> to vector<8x32xf32>
    %157 = arith.subf %149, %156 : vector<8x32xf32>
    %158 = arith.mulf %157, %157 : vector<8x32xf32>
    %cst_66 = arith.constant dense<0.000000e+00> : vector<8xf32>
    %159 = vector.multi_reduction <add>, %158, %cst_66 [1] : vector<8x32xf32> to vector<8xf32>
    %160 = vector.shape_cast %159 : vector<8xf32> to vector<8x1xf32>
    %cst_67 = arith.constant 3.200000e+01 : f32
    %161 = vector.broadcast %cst_67 : f32 to vector<8x1xf32>
    %162 = arith.divf %160, %161 : vector<8x1xf32>
    %cst_68 = arith.constant 9.99999974E-6 : f32
    %163 = vector.broadcast %cst_68 : f32 to vector<8x1xf32>
    %164 = arith.addf %162, %163 : vector<8x1xf32>
    %165 = math.rsqrt %164 : vector<8x1xf32>
    %166 = vector.broadcast %165 : vector<8x1xf32> to vector<8x32xf32>
    %167 = arith.mulf %157, %166 : vector<8x32xf32>
    %168 = vector.broadcast %150 : vector<1x32xf32> to vector<8x32xf32>
    %169 = arith.mulf %167, %168 : vector<8x32xf32>
    %170 = vector.broadcast %151 : vector<1x32xf32> to vector<8x32xf32>
    %171 = arith.addf %169, %170 : vector<8x32xf32>
    %c1 = arith.constant 1 : index
    %c0_69 = arith.constant 0 : index
    %c0_70 = arith.constant 0 : index
    %172 = vector.load %arg25[%c1, %c0_69, %c0_70] : memref<2x4x32xf32, #tpu.memory_space<vmem>>, vector<1x4x32xf32>
    %173 = vector.shape_cast %172 : vector<1x4x32xf32> to vector<4x32xf32>
    %c1_71 = arith.constant 1 : index
    %c0_72 = arith.constant 0 : index
    %c0_73 = arith.constant 0 : index
    %174 = vector.load %arg30[%c1_71, %c0_72, %c0_73] : memref<2x32x96xbf16, #tpu.memory_space<vmem>>, vector<1x32x96xbf16>
    %175 = vector.shape_cast %174 : vector<1x32x96xbf16> to vector<32x96xbf16>
    %176 = arith.truncf %171 : vector<8x32xf32> to vector<8x32xbf16>
    %cst_74 = arith.constant dense<0.000000e+00> : vector<8x96xf32>
    %177 = tpu.matmul %176, %175, %cst_74 {dimension_numbers = #tpu.dot_dimension_numbers<[1], [0], [0], [1], [0, 0, 1, 1], [], []>} : vector<8x32xbf16>, vector<32x96xbf16>, vector<8x96xf32> -> vector<8x96xf32>
    %c1_75 = arith.constant 1 : index
    %c0_76 = arith.constant 0 : index
    %c0_77 = arith.constant 0 : index
    %178 = vector.load %arg29[%c1_75, %c0_76, %c0_77] : memref<2x1x96xf32, #tpu.memory_space<vmem>>, vector<1x1x96xf32>
    %179 = vector.shape_cast %178 : vector<1x1x96xf32> to vector<1x96xf32>
    %180 = vector.broadcast %179 : vector<1x96xf32> to vector<8x96xf32>
    %181 = arith.addf %177, %180 : vector<8x96xf32>
    %182 = vector.extract_strided_slice %181 {offsets = [0, 0], sizes = [8, 32], strides = [1, 1]} : vector<8x96xf32> to vector<8x32xf32>
    %183 = vector.extract_strided_slice %181 {offsets = [0, 32], sizes = [8, 32], strides = [1, 1]} : vector<8x96xf32> to vector<8x32xf32>
    %184 = vector.extract_strided_slice %181 {offsets = [0, 64], sizes = [8, 32], strides = [1, 1]} : vector<8x96xf32> to vector<8x32xf32>
    %c1_78 = arith.constant 1 : index
    %c0_79 = arith.constant 0 : index
    %c0_80 = arith.constant 0 : index
    %185 = vector.load %arg28[%c1_78, %c0_79, %c0_80] : memref<2x32x32xbf16, #tpu.memory_space<vmem>>, vector<1x32x32xbf16>
    %186 = vector.shape_cast %185 : vector<1x32x32xbf16> to vector<32x32xbf16>
    %c1_81 = arith.constant 1 : index
    %c0_82 = arith.constant 0 : index
    %c0_83 = arith.constant 0 : index
    %187 = vector.load %arg27[%c1_81, %c0_82, %c0_83] : memref<2x1x32xf32, #tpu.memory_space<vmem>>, vector<1x1x32xf32>
    %188 = vector.shape_cast %187 : vector<1x1x32xf32> to vector<1x32xf32>
    %cst_84 = arith.constant 0.353553385 : f32
    %189 = vector.broadcast %cst_84 : f32 to vector<8x32xf32>
    %190 = arith.mulf %182, %189 : vector<8x32xf32>
    %191 = vector.extract_strided_slice %190 {offsets = [0, 0], sizes = [8, 8], strides = [1, 1]} : vector<8x32xf32> to vector<8x8xf32>
    %192 = vector.extract_strided_slice %183 {offsets = [0, 0], sizes = [8, 8], strides = [1, 1]} : vector<8x32xf32> to vector<8x8xf32>
    %cst_85 = arith.constant dense<0.000000e+00> : vector<8x8xf32>
    %193 = tpu.matmul %191, %192, %cst_85 {dimension_numbers = #tpu.dot_dimension_numbers<[1], [1], [0], [0], [0, 0, 1, 0], [], []>} : vector<8x8xf32>, vector<8x8xf32>, vector<8x8xf32> -> vector<8x8xf32>
    %194 = arith.addf %193, %1 : vector<8x8xf32>
    %cst_86 = arith.constant dense<0xFF800000> : vector<8xf32>
    %195 = vector.multi_reduction <maximumf>, %194, %cst_86 [1] : vector<8x8xf32> to vector<8xf32>
    %196 = vector.shape_cast %195 : vector<8xf32> to vector<8x1xf32>
    %197 = vector.broadcast %196 : vector<8x1xf32> to vector<8x8xf32>
    %198 = arith.subf %194, %197 : vector<8x8xf32>
    %199 = math.exp %198 : vector<8x8xf32>
    %cst_87 = arith.constant dense<0.000000e+00> : vector<8xf32>
    %200 = vector.multi_reduction <add>, %199, %cst_87 [1] : vector<8x8xf32> to vector<8xf32>
    %201 = vector.shape_cast %200 : vector<8xf32> to vector<8x1xf32>
    %202 = tpu.reciprocal %201 {approx = true} : vector<8x1xf32> -> vector<8x1xf32>
    %203 = vector.broadcast %202 : vector<8x1xf32> to vector<8x8xf32>
    %204 = arith.mulf %199, %203 : vector<8x8xf32>
    %205 = vector.extract_strided_slice %184 {offsets = [0, 0], sizes = [8, 8], strides = [1, 1]} : vector<8x32xf32> to vector<8x8xf32>
    %cst_88 = arith.constant dense<0.000000e+00> : vector<8x8xf32>
    %206 = tpu.matmul %204, %205, %cst_88 {dimension_numbers = #tpu.dot_dimension_numbers<[1], [0], [0], [1], [0, 0, 1, 1], [], []>} : vector<8x8xf32>, vector<8x8xf32>, vector<8x8xf32> -> vector<8x8xf32>
    %207 = vector.extract_strided_slice %186 {offsets = [0, 0], sizes = [8, 32], strides = [1, 1]} : vector<32x32xbf16> to vector<8x32xbf16>
    %208 = arith.truncf %206 : vector<8x8xf32> to vector<8x8xbf16>
    %cst_89 = arith.constant dense<0.000000e+00> : vector<8x32xf32>
    %209 = tpu.matmul %208, %207, %cst_89 {dimension_numbers = #tpu.dot_dimension_numbers<[1], [0], [0], [1], [0, 0, 1, 1], [], []>} : vector<8x8xbf16>, vector<8x32xbf16>, vector<8x32xf32> -> vector<8x32xf32>
    %210 = vector.extract_strided_slice %190 {offsets = [0, 8], sizes = [8, 8], strides = [1, 1]} : vector<8x32xf32> to vector<8x8xf32>
    %211 = vector.extract_strided_slice %183 {offsets = [0, 8], sizes = [8, 8], strides = [1, 1]} : vector<8x32xf32> to vector<8x8xf32>
    %cst_90 = arith.constant dense<0.000000e+00> : vector<8x8xf32>
    %212 = tpu.matmul %210, %211, %cst_90 {dimension_numbers = #tpu.dot_dimension_numbers<[1], [1], [0], [0], [0, 0, 1, 0], [], []>} : vector<8x8xf32>, vector<8x8xf32>, vector<8x8xf32> -> vector<8x8xf32>
    %213 = arith.addf %212, %1 : vector<8x8xf32>
    %cst_91 = arith.constant dense<0xFF800000> : vector<8xf32>
    %214 = vector.multi_reduction <maximumf>, %213, %cst_91 [1] : vector<8x8xf32> to vector<8xf32>
    %215 = vector.shape_cast %214 : vector<8xf32> to vector<8x1xf32>
    %216 = vector.broadcast %215 : vector<8x1xf32> to vector<8x8xf32>
    %217 = arith.subf %213, %216 : vector<8x8xf32>
    %218 = math.exp %217 : vector<8x8xf32>
    %cst_92 = arith.constant dense<0.000000e+00> : vector<8xf32>
    %219 = vector.multi_reduction <add>, %218, %cst_92 [1] : vector<8x8xf32> to vector<8xf32>
    %220 = vector.shape_cast %219 : vector<8xf32> to vector<8x1xf32>
    %221 = tpu.reciprocal %220 {approx = true} : vector<8x1xf32> -> vector<8x1xf32>
    %222 = vector.broadcast %221 : vector<8x1xf32> to vector<8x8xf32>
    %223 = arith.mulf %218, %222 : vector<8x8xf32>
    %224 = vector.extract_strided_slice %184 {offsets = [0, 8], sizes = [8, 8], strides = [1, 1]} : vector<8x32xf32> to vector<8x8xf32>
    %cst_93 = arith.constant dense<0.000000e+00> : vector<8x8xf32>
    %225 = tpu.matmul %223, %224, %cst_93 {dimension_numbers = #tpu.dot_dimension_numbers<[1], [0], [0], [1], [0, 0, 1, 1], [], []>} : vector<8x8xf32>, vector<8x8xf32>, vector<8x8xf32> -> vector<8x8xf32>
    %226 = vector.extract_strided_slice %186 {offsets = [8, 0], sizes = [8, 32], strides = [1, 1]} : vector<32x32xbf16> to vector<8x32xbf16>
    %227 = arith.truncf %225 : vector<8x8xf32> to vector<8x8xbf16>
    %cst_94 = arith.constant dense<0.000000e+00> : vector<8x32xf32>
    %228 = tpu.matmul %227, %226, %cst_94 {dimension_numbers = #tpu.dot_dimension_numbers<[1], [0], [0], [1], [0, 0, 1, 1], [], []>} : vector<8x8xbf16>, vector<8x32xbf16>, vector<8x32xf32> -> vector<8x32xf32>
    %229 = arith.addf %209, %228 : vector<8x32xf32>
    %230 = vector.extract_strided_slice %190 {offsets = [0, 16], sizes = [8, 8], strides = [1, 1]} : vector<8x32xf32> to vector<8x8xf32>
    %231 = vector.extract_strided_slice %183 {offsets = [0, 16], sizes = [8, 8], strides = [1, 1]} : vector<8x32xf32> to vector<8x8xf32>
    %cst_95 = arith.constant dense<0.000000e+00> : vector<8x8xf32>
    %232 = tpu.matmul %230, %231, %cst_95 {dimension_numbers = #tpu.dot_dimension_numbers<[1], [1], [0], [0], [0, 0, 1, 0], [], []>} : vector<8x8xf32>, vector<8x8xf32>, vector<8x8xf32> -> vector<8x8xf32>
    %233 = arith.addf %232, %1 : vector<8x8xf32>
    %cst_96 = arith.constant dense<0xFF800000> : vector<8xf32>
    %234 = vector.multi_reduction <maximumf>, %233, %cst_96 [1] : vector<8x8xf32> to vector<8xf32>
    %235 = vector.shape_cast %234 : vector<8xf32> to vector<8x1xf32>
    %236 = vector.broadcast %235 : vector<8x1xf32> to vector<8x8xf32>
    %237 = arith.subf %233, %236 : vector<8x8xf32>
    %238 = math.exp %237 : vector<8x8xf32>
    %cst_97 = arith.constant dense<0.000000e+00> : vector<8xf32>
    %239 = vector.multi_reduction <add>, %238, %cst_97 [1] : vector<8x8xf32> to vector<8xf32>
    %240 = vector.shape_cast %239 : vector<8xf32> to vector<8x1xf32>
    %241 = tpu.reciprocal %240 {approx = true} : vector<8x1xf32> -> vector<8x1xf32>
    %242 = vector.broadcast %241 : vector<8x1xf32> to vector<8x8xf32>
    %243 = arith.mulf %238, %242 : vector<8x8xf32>
    %244 = vector.extract_strided_slice %184 {offsets = [0, 16], sizes = [8, 8], strides = [1, 1]} : vector<8x32xf32> to vector<8x8xf32>
    %cst_98 = arith.constant dense<0.000000e+00> : vector<8x8xf32>
    %245 = tpu.matmul %243, %244, %cst_98 {dimension_numbers = #tpu.dot_dimension_numbers<[1], [0], [0], [1], [0, 0, 1, 1], [], []>} : vector<8x8xf32>, vector<8x8xf32>, vector<8x8xf32> -> vector<8x8xf32>
    %246 = vector.extract_strided_slice %186 {offsets = [16, 0], sizes = [8, 32], strides = [1, 1]} : vector<32x32xbf16> to vector<8x32xbf16>
    %247 = arith.truncf %245 : vector<8x8xf32> to vector<8x8xbf16>
    %cst_99 = arith.constant dense<0.000000e+00> : vector<8x32xf32>
    %248 = tpu.matmul %247, %246, %cst_99 {dimension_numbers = #tpu.dot_dimension_numbers<[1], [0], [0], [1], [0, 0, 1, 1], [], []>} : vector<8x8xbf16>, vector<8x32xbf16>, vector<8x32xf32> -> vector<8x32xf32>
    %249 = arith.addf %229, %248 : vector<8x32xf32>
    %250 = vector.extract_strided_slice %190 {offsets = [0, 24], sizes = [8, 8], strides = [1, 1]} : vector<8x32xf32> to vector<8x8xf32>
    %251 = vector.extract_strided_slice %183 {offsets = [0, 24], sizes = [8, 8], strides = [1, 1]} : vector<8x32xf32> to vector<8x8xf32>
    %cst_100 = arith.constant dense<0.000000e+00> : vector<8x8xf32>
    %252 = tpu.matmul %250, %251, %cst_100 {dimension_numbers = #tpu.dot_dimension_numbers<[1], [1], [0], [0], [0, 0, 1, 0], [], []>} : vector<8x8xf32>, vector<8x8xf32>, vector<8x8xf32> -> vector<8x8xf32>
    %253 = arith.addf %252, %1 : vector<8x8xf32>
    %cst_101 = arith.constant dense<0xFF800000> : vector<8xf32>
    %254 = vector.multi_reduction <maximumf>, %253, %cst_101 [1] : vector<8x8xf32> to vector<8xf32>
    %255 = vector.shape_cast %254 : vector<8xf32> to vector<8x1xf32>
    %256 = vector.broadcast %255 : vector<8x1xf32> to vector<8x8xf32>
    %257 = arith.subf %253, %256 : vector<8x8xf32>
    %258 = math.exp %257 : vector<8x8xf32>
    %cst_102 = arith.constant dense<0.000000e+00> : vector<8xf32>
    %259 = vector.multi_reduction <add>, %258, %cst_102 [1] : vector<8x8xf32> to vector<8xf32>
    %260 = vector.shape_cast %259 : vector<8xf32> to vector<8x1xf32>
    %261 = tpu.reciprocal %260 {approx = true} : vector<8x1xf32> -> vector<8x1xf32>
    %262 = vector.broadcast %261 : vector<8x1xf32> to vector<8x8xf32>
    %263 = arith.mulf %258, %262 : vector<8x8xf32>
    %264 = vector.extract_strided_slice %184 {offsets = [0, 24], sizes = [8, 8], strides = [1, 1]} : vector<8x32xf32> to vector<8x8xf32>
    %cst_103 = arith.constant dense<0.000000e+00> : vector<8x8xf32>
    %265 = tpu.matmul %263, %264, %cst_103 {dimension_numbers = #tpu.dot_dimension_numbers<[1], [0], [0], [1], [0, 0, 1, 1], [], []>} : vector<8x8xf32>, vector<8x8xf32>, vector<8x8xf32> -> vector<8x8xf32>
    %266 = vector.extract_strided_slice %186 {offsets = [24, 0], sizes = [8, 32], strides = [1, 1]} : vector<32x32xbf16> to vector<8x32xbf16>
    %267 = arith.truncf %265 : vector<8x8xf32> to vector<8x8xbf16>
    %cst_104 = arith.constant dense<0.000000e+00> : vector<8x32xf32>
    %268 = tpu.matmul %267, %266, %cst_104 {dimension_numbers = #tpu.dot_dimension_numbers<[1], [0], [0], [1], [0, 0, 1, 1], [], []>} : vector<8x8xbf16>, vector<8x32xbf16>, vector<8x32xf32> -> vector<8x32xf32>
    %269 = arith.addf %249, %268 : vector<8x32xf32>
    %270 = vector.broadcast %188 : vector<1x32xf32> to vector<8x32xf32>
    %271 = arith.addf %269, %270 : vector<8x32xf32>
    %272 = arith.addf %171, %271 : vector<8x32xf32>
    %273 = vector.extract_strided_slice %173 {offsets = [0, 0], sizes = [1, 32], strides = [1, 1]} : vector<4x32xf32> to vector<1x32xf32>
    %274 = vector.extract_strided_slice %173 {offsets = [1, 0], sizes = [1, 32], strides = [1, 1]} : vector<4x32xf32> to vector<1x32xf32>
    %cst_105 = arith.constant dense<0.000000e+00> : vector<8xf32>
    %275 = vector.multi_reduction <add>, %272, %cst_105 [1] : vector<8x32xf32> to vector<8xf32>
    %276 = vector.shape_cast %275 : vector<8xf32> to vector<8x1xf32>
    %cst_106 = arith.constant 3.200000e+01 : f32
    %277 = vector.broadcast %cst_106 : f32 to vector<8x1xf32>
    %278 = arith.divf %276, %277 : vector<8x1xf32>
    %279 = vector.broadcast %278 : vector<8x1xf32> to vector<8x32xf32>
    %280 = arith.subf %272, %279 : vector<8x32xf32>
    %281 = arith.mulf %280, %280 : vector<8x32xf32>
    %cst_107 = arith.constant dense<0.000000e+00> : vector<8xf32>
    %282 = vector.multi_reduction <add>, %281, %cst_107 [1] : vector<8x32xf32> to vector<8xf32>
    %283 = vector.shape_cast %282 : vector<8xf32> to vector<8x1xf32>
    %cst_108 = arith.constant 3.200000e+01 : f32
    %284 = vector.broadcast %cst_108 : f32 to vector<8x1xf32>
    %285 = arith.divf %283, %284 : vector<8x1xf32>
    %cst_109 = arith.constant 9.99999974E-6 : f32
    %286 = vector.broadcast %cst_109 : f32 to vector<8x1xf32>
    %287 = arith.addf %285, %286 : vector<8x1xf32>
    %288 = math.rsqrt %287 : vector<8x1xf32>
    %289 = vector.broadcast %288 : vector<8x1xf32> to vector<8x32xf32>
    %290 = arith.mulf %280, %289 : vector<8x32xf32>
    %291 = vector.broadcast %273 : vector<1x32xf32> to vector<8x32xf32>
    %292 = arith.mulf %290, %291 : vector<8x32xf32>
    %293 = vector.broadcast %274 : vector<1x32xf32> to vector<8x32xf32>
    %294 = arith.addf %292, %293 : vector<8x32xf32>
    %c1_110 = arith.constant 1 : index
    %c0_111 = arith.constant 0 : index
    %c0_112 = arith.constant 0 : index
    %295 = vector.load %arg22[%c1_110, %c0_111, %c0_112] : memref<2x32x2048xbf16, #tpu.memory_space<vmem>>, vector<1x32x2048xbf16>
    %296 = vector.shape_cast %295 : vector<1x32x2048xbf16> to vector<32x2048xbf16>
    %c1_113 = arith.constant 1 : index
    %c0_114 = arith.constant 0 : index
    %c0_115 = arith.constant 0 : index
    %297 = vector.load %arg21[%c1_113, %c0_114, %c0_115] : memref<2x1x2048xf32, #tpu.memory_space<vmem>>, vector<1x1x2048xf32>
    %298 = vector.shape_cast %297 : vector<1x1x2048xf32> to vector<1x2048xf32>
    %c1_116 = arith.constant 1 : index
    %c0_117 = arith.constant 0 : index
    %c0_118 = arith.constant 0 : index
    %299 = vector.load %arg24[%c1_116, %c0_117, %c0_118] : memref<2x2048x32xbf16, #tpu.memory_space<vmem>>, vector<1x2048x32xbf16>
    %300 = vector.shape_cast %299 : vector<1x2048x32xbf16> to vector<2048x32xbf16>
    %c1_119 = arith.constant 1 : index
    %c0_120 = arith.constant 0 : index
    %c0_121 = arith.constant 0 : index
    %301 = vector.load %arg23[%c1_119, %c0_120, %c0_121] : memref<2x1x32xf32, #tpu.memory_space<vmem>>, vector<1x1x32xf32>
    %302 = vector.shape_cast %301 : vector<1x1x32xf32> to vector<1x32xf32>
    %303 = arith.truncf %294 : vector<8x32xf32> to vector<8x32xbf16>
    %cst_122 = arith.constant dense<0.000000e+00> : vector<8x2048xf32>
    %304 = tpu.matmul %303, %296, %cst_122 {dimension_numbers = #tpu.dot_dimension_numbers<[1], [0], [0], [1], [0, 0, 1, 1], [], []>} : vector<8x32xbf16>, vector<32x2048xbf16>, vector<8x2048xf32> -> vector<8x2048xf32>
    %305 = vector.broadcast %298 : vector<1x2048xf32> to vector<8x2048xf32>
    %306 = arith.addf %304, %305 : vector<8x2048xf32>
    %cst_123 = arith.constant 0.000000e+00 : f32
    %307 = vector.broadcast %cst_123 : f32 to vector<8x2048xf32>
    %308 = arith.maximumf %306, %307 : vector<8x2048xf32>
    %309 = arith.truncf %308 : vector<8x2048xf32> to vector<8x2048xbf16>
    %cst_124 = arith.constant dense<0.000000e+00> : vector<8x32xf32>
    %310 = tpu.matmul %309, %300, %cst_124 {dimension_numbers = #tpu.dot_dimension_numbers<[1], [0], [0], [1], [0, 0, 1, 1], [], []>} : vector<8x2048xbf16>, vector<2048x32xbf16>, vector<8x32xf32> -> vector<8x32xf32>
    %311 = vector.broadcast %302 : vector<1x32xf32> to vector<8x32xf32>
    %312 = arith.addf %310, %311 : vector<8x32xf32>
    %313 = arith.addf %294, %312 : vector<8x32xf32>
    %314 = vector.extract_strided_slice %173 {offsets = [2, 0], sizes = [1, 32], strides = [1, 1]} : vector<4x32xf32> to vector<1x32xf32>
    %315 = vector.extract_strided_slice %173 {offsets = [3, 0], sizes = [1, 32], strides = [1, 1]} : vector<4x32xf32> to vector<1x32xf32>
    %cst_125 = arith.constant dense<0.000000e+00> : vector<8xf32>
    %316 = vector.multi_reduction <add>, %313, %cst_125 [1] : vector<8x32xf32> to vector<8xf32>
    %317 = vector.shape_cast %316 : vector<8xf32> to vector<8x1xf32>
    %cst_126 = arith.constant 3.200000e+01 : f32
    %318 = vector.broadcast %cst_126 : f32 to vector<8x1xf32>
    %319 = arith.divf %317, %318 : vector<8x1xf32>
    %320 = vector.broadcast %319 : vector<8x1xf32> to vector<8x32xf32>
    %321 = arith.subf %313, %320 : vector<8x32xf32>
    %322 = arith.mulf %321, %321 : vector<8x32xf32>
    %cst_127 = arith.constant dense<0.000000e+00> : vector<8xf32>
    %323 = vector.multi_reduction <add>, %322, %cst_127 [1] : vector<8x32xf32> to vector<8xf32>
    %324 = vector.shape_cast %323 : vector<8xf32> to vector<8x1xf32>
    %cst_128 = arith.constant 3.200000e+01 : f32
    %325 = vector.broadcast %cst_128 : f32 to vector<8x1xf32>
    %326 = arith.divf %324, %325 : vector<8x1xf32>
    %cst_129 = arith.constant 9.99999974E-6 : f32
    %327 = vector.broadcast %cst_129 : f32 to vector<8x1xf32>
    %328 = arith.addf %326, %327 : vector<8x1xf32>
    %329 = math.rsqrt %328 : vector<8x1xf32>
    %330 = vector.broadcast %329 : vector<8x1xf32> to vector<8x32xf32>
    %331 = arith.mulf %321, %330 : vector<8x32xf32>
    %332 = vector.broadcast %314 : vector<1x32xf32> to vector<8x32xf32>
    %333 = arith.mulf %331, %332 : vector<8x32xf32>
    %334 = vector.broadcast %315 : vector<1x32xf32> to vector<8x32xf32>
    %335 = arith.addf %333, %334 : vector<8x32xf32>
    %c0_130 = arith.constant 0 : index
    %c0_131 = arith.constant 0 : index
    %336 = vector.load %arg26[%c0_130, %c0_131] : memref<2x32xf32, #tpu.memory_space<vmem>>, vector<2x32xf32>
    %337 = vector.extract_strided_slice %336 {offsets = [0, 0], sizes = [1, 32], strides = [1, 1]} : vector<2x32xf32> to vector<1x32xf32>
    %338 = vector.extract_strided_slice %336 {offsets = [1, 0], sizes = [1, 32], strides = [1, 1]} : vector<2x32xf32> to vector<1x32xf32>
    %cst_132 = arith.constant dense<0.000000e+00> : vector<8xf32>
    %339 = vector.multi_reduction <add>, %335, %cst_132 [1] : vector<8x32xf32> to vector<8xf32>
    %340 = vector.shape_cast %339 : vector<8xf32> to vector<8x1xf32>
    %cst_133 = arith.constant 3.200000e+01 : f32
    %341 = vector.broadcast %cst_133 : f32 to vector<8x1xf32>
    %342 = arith.divf %340, %341 : vector<8x1xf32>
    %343 = vector.broadcast %342 : vector<8x1xf32> to vector<8x32xf32>
    %344 = arith.subf %335, %343 : vector<8x32xf32>
    %345 = arith.mulf %344, %344 : vector<8x32xf32>
    %cst_134 = arith.constant dense<0.000000e+00> : vector<8xf32>
    %346 = vector.multi_reduction <add>, %345, %cst_134 [1] : vector<8x32xf32> to vector<8xf32>
    %347 = vector.shape_cast %346 : vector<8xf32> to vector<8x1xf32>
    %cst_135 = arith.constant 3.200000e+01 : f32
    %348 = vector.broadcast %cst_135 : f32 to vector<8x1xf32>
    %349 = arith.divf %347, %348 : vector<8x1xf32>
    %cst_136 = arith.constant 9.99999974E-6 : f32
    %350 = vector.broadcast %cst_136 : f32 to vector<8x1xf32>
    %351 = arith.addf %349, %350 : vector<8x1xf32>
    %352 = math.rsqrt %351 : vector<8x1xf32>
    %353 = vector.broadcast %352 : vector<8x1xf32> to vector<8x32xf32>
    %354 = arith.mulf %344, %353 : vector<8x32xf32>
    %355 = vector.broadcast %337 : vector<1x32xf32> to vector<8x32xf32>
    %356 = arith.mulf %354, %355 : vector<8x32xf32>
    %357 = vector.broadcast %338 : vector<1x32xf32> to vector<8x32xf32>
    %358 = arith.addf %356, %357 : vector<8x32xf32>
    %c0_137 = arith.constant 0 : index
    %c0_138 = arith.constant 0 : index
    %c0_139 = arith.constant 0 : index
    %359 = vector.load %arg13[%c0_137, %c0_138, %c0_139] : memref<2x6x32xf32, #tpu.memory_space<vmem>>, vector<1x6x32xf32>
    %360 = vector.shape_cast %359 : vector<1x6x32xf32> to vector<6x32xf32>
    %c0_140 = arith.constant 0 : index
    %c0_141 = arith.constant 0 : index
    %c0_142 = arith.constant 0 : index
    %361 = vector.load %arg18[%c0_140, %c0_141, %c0_142] : memref<2x32x96xbf16, #tpu.memory_space<vmem>>, vector<1x32x96xbf16>
    %362 = vector.shape_cast %361 : vector<1x32x96xbf16> to vector<32x96xbf16>
    %363 = arith.truncf %7 : vector<8x32xf32> to vector<8x32xbf16>
    %cst_143 = arith.constant dense<0.000000e+00> : vector<8x96xf32>
    %364 = tpu.matmul %363, %362, %cst_143 {dimension_numbers = #tpu.dot_dimension_numbers<[1], [0], [0], [1], [0, 0, 1, 1], [], []>} : vector<8x32xbf16>, vector<32x96xbf16>, vector<8x96xf32> -> vector<8x96xf32>
    %c0_144 = arith.constant 0 : index
    %c0_145 = arith.constant 0 : index
    %c0_146 = arith.constant 0 : index
    %365 = vector.load %arg17[%c0_144, %c0_145, %c0_146] : memref<2x1x96xf32, #tpu.memory_space<vmem>>, vector<1x1x96xf32>
    %366 = vector.shape_cast %365 : vector<1x1x96xf32> to vector<1x96xf32>
    %367 = vector.broadcast %366 : vector<1x96xf32> to vector<8x96xf32>
    %368 = arith.addf %364, %367 : vector<8x96xf32>
    %369 = vector.extract_strided_slice %368 {offsets = [0, 0], sizes = [8, 32], strides = [1, 1]} : vector<8x96xf32> to vector<8x32xf32>
    %370 = vector.extract_strided_slice %368 {offsets = [0, 32], sizes = [8, 32], strides = [1, 1]} : vector<8x96xf32> to vector<8x32xf32>
    %371 = vector.extract_strided_slice %368 {offsets = [0, 64], sizes = [8, 32], strides = [1, 1]} : vector<8x96xf32> to vector<8x32xf32>
    %c0_147 = arith.constant 0 : index
    %c0_148 = arith.constant 0 : index
    %c0_149 = arith.constant 0 : index
    %372 = vector.load %arg16[%c0_147, %c0_148, %c0_149] : memref<2x32x32xbf16, #tpu.memory_space<vmem>>, vector<1x32x32xbf16>
    %373 = vector.shape_cast %372 : vector<1x32x32xbf16> to vector<32x32xbf16>
    %c0_150 = arith.constant 0 : index
    %c0_151 = arith.constant 0 : index
    %c0_152 = arith.constant 0 : index
    %374 = vector.load %arg15[%c0_150, %c0_151, %c0_152] : memref<2x1x32xf32, #tpu.memory_space<vmem>>, vector<1x1x32xf32>
    %375 = vector.shape_cast %374 : vector<1x1x32xf32> to vector<1x32xf32>
    %cst_153 = arith.constant 0.353553385 : f32
    %376 = vector.broadcast %cst_153 : f32 to vector<8x32xf32>
    %377 = arith.mulf %369, %376 : vector<8x32xf32>
    %378 = vector.extract_strided_slice %377 {offsets = [0, 0], sizes = [8, 8], strides = [1, 1]} : vector<8x32xf32> to vector<8x8xf32>
    %379 = vector.extract_strided_slice %370 {offsets = [0, 0], sizes = [8, 8], strides = [1, 1]} : vector<8x32xf32> to vector<8x8xf32>
    %cst_154 = arith.constant dense<0.000000e+00> : vector<8x8xf32>
    %380 = tpu.matmul %378, %379, %cst_154 {dimension_numbers = #tpu.dot_dimension_numbers<[1], [1], [0], [0], [0, 0, 1, 0], [], []>} : vector<8x8xf32>, vector<8x8xf32>, vector<8x8xf32> -> vector<8x8xf32>
    %381 = arith.addf %380, %1 : vector<8x8xf32>
    %cst_155 = arith.constant dense<0xFF800000> : vector<8xf32>
    %382 = vector.multi_reduction <maximumf>, %381, %cst_155 [1] : vector<8x8xf32> to vector<8xf32>
    %383 = vector.shape_cast %382 : vector<8xf32> to vector<8x1xf32>
    %384 = vector.broadcast %383 : vector<8x1xf32> to vector<8x8xf32>
    %385 = arith.subf %381, %384 : vector<8x8xf32>
    %386 = math.exp %385 : vector<8x8xf32>
    %cst_156 = arith.constant dense<0.000000e+00> : vector<8xf32>
    %387 = vector.multi_reduction <add>, %386, %cst_156 [1] : vector<8x8xf32> to vector<8xf32>
    %388 = vector.shape_cast %387 : vector<8xf32> to vector<8x1xf32>
    %389 = tpu.reciprocal %388 {approx = true} : vector<8x1xf32> -> vector<8x1xf32>
    %390 = vector.broadcast %389 : vector<8x1xf32> to vector<8x8xf32>
    %391 = arith.mulf %386, %390 : vector<8x8xf32>
    %392 = vector.extract_strided_slice %371 {offsets = [0, 0], sizes = [8, 8], strides = [1, 1]} : vector<8x32xf32> to vector<8x8xf32>
    %cst_157 = arith.constant dense<0.000000e+00> : vector<8x8xf32>
    %393 = tpu.matmul %391, %392, %cst_157 {dimension_numbers = #tpu.dot_dimension_numbers<[1], [0], [0], [1], [0, 0, 1, 1], [], []>} : vector<8x8xf32>, vector<8x8xf32>, vector<8x8xf32> -> vector<8x8xf32>
    %394 = vector.extract_strided_slice %373 {offsets = [0, 0], sizes = [8, 32], strides = [1, 1]} : vector<32x32xbf16> to vector<8x32xbf16>
    %395 = arith.truncf %393 : vector<8x8xf32> to vector<8x8xbf16>
    %cst_158 = arith.constant dense<0.000000e+00> : vector<8x32xf32>
    %396 = tpu.matmul %395, %394, %cst_158 {dimension_numbers = #tpu.dot_dimension_numbers<[1], [0], [0], [1], [0, 0, 1, 1], [], []>} : vector<8x8xbf16>, vector<8x32xbf16>, vector<8x32xf32> -> vector<8x32xf32>
    %397 = vector.extract_strided_slice %377 {offsets = [0, 8], sizes = [8, 8], strides = [1, 1]} : vector<8x32xf32> to vector<8x8xf32>
    %398 = vector.extract_strided_slice %370 {offsets = [0, 8], sizes = [8, 8], strides = [1, 1]} : vector<8x32xf32> to vector<8x8xf32>
    %cst_159 = arith.constant dense<0.000000e+00> : vector<8x8xf32>
    %399 = tpu.matmul %397, %398, %cst_159 {dimension_numbers = #tpu.dot_dimension_numbers<[1], [1], [0], [0], [0, 0, 1, 0], [], []>} : vector<8x8xf32>, vector<8x8xf32>, vector<8x8xf32> -> vector<8x8xf32>
    %400 = arith.addf %399, %1 : vector<8x8xf32>
    %cst_160 = arith.constant dense<0xFF800000> : vector<8xf32>
    %401 = vector.multi_reduction <maximumf>, %400, %cst_160 [1] : vector<8x8xf32> to vector<8xf32>
    %402 = vector.shape_cast %401 : vector<8xf32> to vector<8x1xf32>
    %403 = vector.broadcast %402 : vector<8x1xf32> to vector<8x8xf32>
    %404 = arith.subf %400, %403 : vector<8x8xf32>
    %405 = math.exp %404 : vector<8x8xf32>
    %cst_161 = arith.constant dense<0.000000e+00> : vector<8xf32>
    %406 = vector.multi_reduction <add>, %405, %cst_161 [1] : vector<8x8xf32> to vector<8xf32>
    %407 = vector.shape_cast %406 : vector<8xf32> to vector<8x1xf32>
    %408 = tpu.reciprocal %407 {approx = true} : vector<8x1xf32> -> vector<8x1xf32>
    %409 = vector.broadcast %408 : vector<8x1xf32> to vector<8x8xf32>
    %410 = arith.mulf %405, %409 : vector<8x8xf32>
    %411 = vector.extract_strided_slice %371 {offsets = [0, 8], sizes = [8, 8], strides = [1, 1]} : vector<8x32xf32> to vector<8x8xf32>
    %cst_162 = arith.constant dense<0.000000e+00> : vector<8x8xf32>
    %412 = tpu.matmul %410, %411, %cst_162 {dimension_numbers = #tpu.dot_dimension_numbers<[1], [0], [0], [1], [0, 0, 1, 1], [], []>} : vector<8x8xf32>, vector<8x8xf32>, vector<8x8xf32> -> vector<8x8xf32>
    %413 = vector.extract_strided_slice %373 {offsets = [8, 0], sizes = [8, 32], strides = [1, 1]} : vector<32x32xbf16> to vector<8x32xbf16>
    %414 = arith.truncf %412 : vector<8x8xf32> to vector<8x8xbf16>
    %cst_163 = arith.constant dense<0.000000e+00> : vector<8x32xf32>
    %415 = tpu.matmul %414, %413, %cst_163 {dimension_numbers = #tpu.dot_dimension_numbers<[1], [0], [0], [1], [0, 0, 1, 1], [], []>} : vector<8x8xbf16>, vector<8x32xbf16>, vector<8x32xf32> -> vector<8x32xf32>
    %416 = arith.addf %396, %415 : vector<8x32xf32>
    %417 = vector.extract_strided_slice %377 {offsets = [0, 16], sizes = [8, 8], strides = [1, 1]} : vector<8x32xf32> to vector<8x8xf32>
    %418 = vector.extract_strided_slice %370 {offsets = [0, 16], sizes = [8, 8], strides = [1, 1]} : vector<8x32xf32> to vector<8x8xf32>
    %cst_164 = arith.constant dense<0.000000e+00> : vector<8x8xf32>
    %419 = tpu.matmul %417, %418, %cst_164 {dimension_numbers = #tpu.dot_dimension_numbers<[1], [1], [0], [0], [0, 0, 1, 0], [], []>} : vector<8x8xf32>, vector<8x8xf32>, vector<8x8xf32> -> vector<8x8xf32>
    %420 = arith.addf %419, %1 : vector<8x8xf32>
    %cst_165 = arith.constant dense<0xFF800000> : vector<8xf32>
    %421 = vector.multi_reduction <maximumf>, %420, %cst_165 [1] : vector<8x8xf32> to vector<8xf32>
    %422 = vector.shape_cast %421 : vector<8xf32> to vector<8x1xf32>
    %423 = vector.broadcast %422 : vector<8x1xf32> to vector<8x8xf32>
    %424 = arith.subf %420, %423 : vector<8x8xf32>
    %425 = math.exp %424 : vector<8x8xf32>
    %cst_166 = arith.constant dense<0.000000e+00> : vector<8xf32>
    %426 = vector.multi_reduction <add>, %425, %cst_166 [1] : vector<8x8xf32> to vector<8xf32>
    %427 = vector.shape_cast %426 : vector<8xf32> to vector<8x1xf32>
    %428 = tpu.reciprocal %427 {approx = true} : vector<8x1xf32> -> vector<8x1xf32>
    %429 = vector.broadcast %428 : vector<8x1xf32> to vector<8x8xf32>
    %430 = arith.mulf %425, %429 : vector<8x8xf32>
    %431 = vector.extract_strided_slice %371 {offsets = [0, 16], sizes = [8, 8], strides = [1, 1]} : vector<8x32xf32> to vector<8x8xf32>
    %cst_167 = arith.constant dense<0.000000e+00> : vector<8x8xf32>
    %432 = tpu.matmul %430, %431, %cst_167 {dimension_numbers = #tpu.dot_dimension_numbers<[1], [0], [0], [1], [0, 0, 1, 1], [], []>} : vector<8x8xf32>, vector<8x8xf32>, vector<8x8xf32> -> vector<8x8xf32>
    %433 = vector.extract_strided_slice %373 {offsets = [16, 0], sizes = [8, 32], strides = [1, 1]} : vector<32x32xbf16> to vector<8x32xbf16>
    %434 = arith.truncf %432 : vector<8x8xf32> to vector<8x8xbf16>
    %cst_168 = arith.constant dense<0.000000e+00> : vector<8x32xf32>
    %435 = tpu.matmul %434, %433, %cst_168 {dimension_numbers = #tpu.dot_dimension_numbers<[1], [0], [0], [1], [0, 0, 1, 1], [], []>} : vector<8x8xbf16>, vector<8x32xbf16>, vector<8x32xf32> -> vector<8x32xf32>
    %436 = arith.addf %416, %435 : vector<8x32xf32>
    %437 = vector.extract_strided_slice %377 {offsets = [0, 24], sizes = [8, 8], strides = [1, 1]} : vector<8x32xf32> to vector<8x8xf32>
    %438 = vector.extract_strided_slice %370 {offsets = [0, 24], sizes = [8, 8], strides = [1, 1]} : vector<8x32xf32> to vector<8x8xf32>
    %cst_169 = arith.constant dense<0.000000e+00> : vector<8x8xf32>
    %439 = tpu.matmul %437, %438, %cst_169 {dimension_numbers = #tpu.dot_dimension_numbers<[1], [1], [0], [0], [0, 0, 1, 0], [], []>} : vector<8x8xf32>, vector<8x8xf32>, vector<8x8xf32> -> vector<8x8xf32>
    %440 = arith.addf %439, %1 : vector<8x8xf32>
    %cst_170 = arith.constant dense<0xFF800000> : vector<8xf32>
    %441 = vector.multi_reduction <maximumf>, %440, %cst_170 [1] : vector<8x8xf32> to vector<8xf32>
    %442 = vector.shape_cast %441 : vector<8xf32> to vector<8x1xf32>
    %443 = vector.broadcast %442 : vector<8x1xf32> to vector<8x8xf32>
    %444 = arith.subf %440, %443 : vector<8x8xf32>
    %445 = math.exp %444 : vector<8x8xf32>
    %cst_171 = arith.constant dense<0.000000e+00> : vector<8xf32>
    %446 = vector.multi_reduction <add>, %445, %cst_171 [1] : vector<8x8xf32> to vector<8xf32>
    %447 = vector.shape_cast %446 : vector<8xf32> to vector<8x1xf32>
    %448 = tpu.reciprocal %447 {approx = true} : vector<8x1xf32> -> vector<8x1xf32>
    %449 = vector.broadcast %448 : vector<8x1xf32> to vector<8x8xf32>
    %450 = arith.mulf %445, %449 : vector<8x8xf32>
    %451 = vector.extract_strided_slice %371 {offsets = [0, 24], sizes = [8, 8], strides = [1, 1]} : vector<8x32xf32> to vector<8x8xf32>
    %cst_172 = arith.constant dense<0.000000e+00> : vector<8x8xf32>
    %452 = tpu.matmul %450, %451, %cst_172 {dimension_numbers = #tpu.dot_dimension_numbers<[1], [0], [0], [1], [0, 0, 1, 1], [], []>} : vector<8x8xf32>, vector<8x8xf32>, vector<8x8xf32> -> vector<8x8xf32>
    %453 = vector.extract_strided_slice %373 {offsets = [24, 0], sizes = [8, 32], strides = [1, 1]} : vector<32x32xbf16> to vector<8x32xbf16>
    %454 = arith.truncf %452 : vector<8x8xf32> to vector<8x8xbf16>
    %cst_173 = arith.constant dense<0.000000e+00> : vector<8x32xf32>
    %455 = tpu.matmul %454, %453, %cst_173 {dimension_numbers = #tpu.dot_dimension_numbers<[1], [0], [0], [1], [0, 0, 1, 1], [], []>} : vector<8x8xbf16>, vector<8x32xbf16>, vector<8x32xf32> -> vector<8x32xf32>
    %456 = arith.addf %436, %455 : vector<8x32xf32>
    %457 = vector.broadcast %375 : vector<1x32xf32> to vector<8x32xf32>
    %458 = arith.addf %456, %457 : vector<8x32xf32>
    %459 = arith.addf %7, %458 : vector<8x32xf32>
    %460 = vector.extract_strided_slice %360 {offsets = [0, 0], sizes = [1, 32], strides = [1, 1]} : vector<6x32xf32> to vector<1x32xf32>
    %461 = vector.extract_strided_slice %360 {offsets = [1, 0], sizes = [1, 32], strides = [1, 1]} : vector<6x32xf32> to vector<1x32xf32>
    %cst_174 = arith.constant dense<0.000000e+00> : vector<8xf32>
    %462 = vector.multi_reduction <add>, %459, %cst_174 [1] : vector<8x32xf32> to vector<8xf32>
    %463 = vector.shape_cast %462 : vector<8xf32> to vector<8x1xf32>
    %cst_175 = arith.constant 3.200000e+01 : f32
    %464 = vector.broadcast %cst_175 : f32 to vector<8x1xf32>
    %465 = arith.divf %463, %464 : vector<8x1xf32>
    %466 = vector.broadcast %465 : vector<8x1xf32> to vector<8x32xf32>
    %467 = arith.subf %459, %466 : vector<8x32xf32>
    %468 = arith.mulf %467, %467 : vector<8x32xf32>
    %cst_176 = arith.constant dense<0.000000e+00> : vector<8xf32>
    %469 = vector.multi_reduction <add>, %468, %cst_176 [1] : vector<8x32xf32> to vector<8xf32>
    %470 = vector.shape_cast %469 : vector<8xf32> to vector<8x1xf32>
    %cst_177 = arith.constant 3.200000e+01 : f32
    %471 = vector.broadcast %cst_177 : f32 to vector<8x1xf32>
    %472 = arith.divf %470, %471 : vector<8x1xf32>
    %cst_178 = arith.constant 9.99999974E-6 : f32
    %473 = vector.broadcast %cst_178 : f32 to vector<8x1xf32>
    %474 = arith.addf %472, %473 : vector<8x1xf32>
    %475 = math.rsqrt %474 : vector<8x1xf32>
    %476 = vector.broadcast %475 : vector<8x1xf32> to vector<8x32xf32>
    %477 = arith.mulf %467, %476 : vector<8x32xf32>
    %478 = vector.broadcast %460 : vector<1x32xf32> to vector<8x32xf32>
    %479 = arith.mulf %477, %478 : vector<8x32xf32>
    %480 = vector.broadcast %461 : vector<1x32xf32> to vector<8x32xf32>
    %481 = arith.addf %479, %480 : vector<8x32xf32>
    %c0_179 = arith.constant 0 : index
    %c0_180 = arith.constant 0 : index
    %c0_181 = arith.constant 0 : index
    %482 = vector.load %arg8[%c0_179, %c0_180, %c0_181] : memref<2x32x32xbf16, #tpu.memory_space<vmem>>, vector<1x32x32xbf16>
    %483 = vector.shape_cast %482 : vector<1x32x32xbf16> to vector<32x32xbf16>
    %484 = arith.truncf %481 : vector<8x32xf32> to vector<8x32xbf16>
    %cst_182 = arith.constant dense<0.000000e+00> : vector<8x32xf32>
    %485 = tpu.matmul %484, %483, %cst_182 {dimension_numbers = #tpu.dot_dimension_numbers<[1], [0], [0], [1], [0, 0, 1, 1], [], []>} : vector<8x32xbf16>, vector<32x32xbf16>, vector<8x32xf32> -> vector<8x32xf32>
    %c0_183 = arith.constant 0 : index
    %c0_184 = arith.constant 0 : index
    %c0_185 = arith.constant 0 : index
    %486 = vector.load %arg7[%c0_183, %c0_184, %c0_185] : memref<2x1x32xf32, #tpu.memory_space<vmem>>, vector<1x1x32xf32>
    %487 = vector.shape_cast %486 : vector<1x1x32xf32> to vector<1x32xf32>
    %488 = vector.broadcast %487 : vector<1x32xf32> to vector<8x32xf32>
    %489 = arith.addf %485, %488 : vector<8x32xf32>
    %c0_186 = arith.constant 0 : index
    %c0_187 = arith.constant 0 : index
    %c0_188 = arith.constant 0 : index
    %490 = vector.load %arg4[%c0_186, %c0_187, %c0_188] : memref<2x32x64xbf16, #tpu.memory_space<vmem>>, vector<1x32x64xbf16>
    %491 = vector.shape_cast %490 : vector<1x32x64xbf16> to vector<32x64xbf16>
    %492 = arith.truncf %358 : vector<8x32xf32> to vector<8x32xbf16>
    %cst_189 = arith.constant dense<0.000000e+00> : vector<8x64xf32>
    %493 = tpu.matmul %492, %491, %cst_189 {dimension_numbers = #tpu.dot_dimension_numbers<[1], [0], [0], [1], [0, 0, 1, 1], [], []>} : vector<8x32xbf16>, vector<32x64xbf16>, vector<8x64xf32> -> vector<8x64xf32>
    %c0_190 = arith.constant 0 : index
    %c0_191 = arith.constant 0 : index
    %c0_192 = arith.constant 0 : index
    %494 = vector.load %arg3[%c0_190, %c0_191, %c0_192] : memref<2x1x64xf32, #tpu.memory_space<vmem>>, vector<1x1x64xf32>
    %495 = vector.shape_cast %494 : vector<1x1x64xf32> to vector<1x64xf32>
    %496 = vector.broadcast %495 : vector<1x64xf32> to vector<8x64xf32>
    %497 = arith.addf %493, %496 : vector<8x64xf32>
    %498 = vector.extract_strided_slice %497 {offsets = [0, 0], sizes = [8, 32], strides = [1, 1]} : vector<8x64xf32> to vector<8x32xf32>
    %499 = vector.extract_strided_slice %497 {offsets = [0, 32], sizes = [8, 32], strides = [1, 1]} : vector<8x64xf32> to vector<8x32xf32>
    %c0_193 = arith.constant 0 : index
    %c0_194 = arith.constant 0 : index
    %c0_195 = arith.constant 0 : index
    %500 = vector.load %arg6[%c0_193, %c0_194, %c0_195] : memref<2x32x32xbf16, #tpu.memory_space<vmem>>, vector<1x32x32xbf16>
    %501 = vector.shape_cast %500 : vector<1x32x32xbf16> to vector<32x32xbf16>
    %c0_196 = arith.constant 0 : index
    %c0_197 = arith.constant 0 : index
    %c0_198 = arith.constant 0 : index
    %502 = vector.load %arg5[%c0_196, %c0_197, %c0_198] : memref<2x1x32xf32, #tpu.memory_space<vmem>>, vector<1x1x32xf32>
    %503 = vector.shape_cast %502 : vector<1x1x32xf32> to vector<1x32xf32>
    %cst_199 = arith.constant 0.353553385 : f32
    %504 = vector.broadcast %cst_199 : f32 to vector<8x32xf32>
    %505 = arith.mulf %489, %504 : vector<8x32xf32>
    %506 = vector.extract_strided_slice %505 {offsets = [0, 0], sizes = [8, 8], strides = [1, 1]} : vector<8x32xf32> to vector<8x8xf32>
    %507 = vector.extract_strided_slice %498 {offsets = [0, 0], sizes = [8, 8], strides = [1, 1]} : vector<8x32xf32> to vector<8x8xf32>
    %cst_200 = arith.constant dense<0.000000e+00> : vector<8x8xf32>
    %508 = tpu.matmul %506, %507, %cst_200 {dimension_numbers = #tpu.dot_dimension_numbers<[1], [1], [0], [0], [0, 0, 1, 0], [], []>} : vector<8x8xf32>, vector<8x8xf32>, vector<8x8xf32> -> vector<8x8xf32>
    %509 = arith.addf %508, %1 : vector<8x8xf32>
    %cst_201 = arith.constant dense<0xFF800000> : vector<8xf32>
    %510 = vector.multi_reduction <maximumf>, %509, %cst_201 [1] : vector<8x8xf32> to vector<8xf32>
    %511 = vector.shape_cast %510 : vector<8xf32> to vector<8x1xf32>
    %512 = vector.broadcast %511 : vector<8x1xf32> to vector<8x8xf32>
    %513 = arith.subf %509, %512 : vector<8x8xf32>
    %514 = math.exp %513 : vector<8x8xf32>
    %cst_202 = arith.constant dense<0.000000e+00> : vector<8xf32>
    %515 = vector.multi_reduction <add>, %514, %cst_202 [1] : vector<8x8xf32> to vector<8xf32>
    %516 = vector.shape_cast %515 : vector<8xf32> to vector<8x1xf32>
    %517 = tpu.reciprocal %516 {approx = true} : vector<8x1xf32> -> vector<8x1xf32>
    %518 = vector.broadcast %517 : vector<8x1xf32> to vector<8x8xf32>
    %519 = arith.mulf %514, %518 : vector<8x8xf32>
    %520 = vector.extract_strided_slice %499 {offsets = [0, 0], sizes = [8, 8], strides = [1, 1]} : vector<8x32xf32> to vector<8x8xf32>
    %cst_203 = arith.constant dense<0.000000e+00> : vector<8x8xf32>
    %521 = tpu.matmul %519, %520, %cst_203 {dimension_numbers = #tpu.dot_dimension_numbers<[1], [0], [0], [1], [0, 0, 1, 1], [], []>} : vector<8x8xf32>, vector<8x8xf32>, vector<8x8xf32> -> vector<8x8xf32>
    %522 = vector.extract_strided_slice %501 {offsets = [0, 0], sizes = [8, 32], strides = [1, 1]} : vector<32x32xbf16> to vector<8x32xbf16>
    %523 = arith.truncf %521 : vector<8x8xf32> to vector<8x8xbf16>
    %cst_204 = arith.constant dense<0.000000e+00> : vector<8x32xf32>
    %524 = tpu.matmul %523, %522, %cst_204 {dimension_numbers = #tpu.dot_dimension_numbers<[1], [0], [0], [1], [0, 0, 1, 1], [], []>} : vector<8x8xbf16>, vector<8x32xbf16>, vector<8x32xf32> -> vector<8x32xf32>
    %525 = vector.extract_strided_slice %505 {offsets = [0, 8], sizes = [8, 8], strides = [1, 1]} : vector<8x32xf32> to vector<8x8xf32>
    %526 = vector.extract_strided_slice %498 {offsets = [0, 8], sizes = [8, 8], strides = [1, 1]} : vector<8x32xf32> to vector<8x8xf32>
    %cst_205 = arith.constant dense<0.000000e+00> : vector<8x8xf32>
    %527 = tpu.matmul %525, %526, %cst_205 {dimension_numbers = #tpu.dot_dimension_numbers<[1], [1], [0], [0], [0, 0, 1, 0], [], []>} : vector<8x8xf32>, vector<8x8xf32>, vector<8x8xf32> -> vector<8x8xf32>
    %528 = arith.addf %527, %1 : vector<8x8xf32>
    %cst_206 = arith.constant dense<0xFF800000> : vector<8xf32>
    %529 = vector.multi_reduction <maximumf>, %528, %cst_206 [1] : vector<8x8xf32> to vector<8xf32>
    %530 = vector.shape_cast %529 : vector<8xf32> to vector<8x1xf32>
    %531 = vector.broadcast %530 : vector<8x1xf32> to vector<8x8xf32>
    %532 = arith.subf %528, %531 : vector<8x8xf32>
    %533 = math.exp %532 : vector<8x8xf32>
    %cst_207 = arith.constant dense<0.000000e+00> : vector<8xf32>
    %534 = vector.multi_reduction <add>, %533, %cst_207 [1] : vector<8x8xf32> to vector<8xf32>
    %535 = vector.shape_cast %534 : vector<8xf32> to vector<8x1xf32>
    %536 = tpu.reciprocal %535 {approx = true} : vector<8x1xf32> -> vector<8x1xf32>
    %537 = vector.broadcast %536 : vector<8x1xf32> to vector<8x8xf32>
    %538 = arith.mulf %533, %537 : vector<8x8xf32>
    %539 = vector.extract_strided_slice %499 {offsets = [0, 8], sizes = [8, 8], strides = [1, 1]} : vector<8x32xf32> to vector<8x8xf32>
    %cst_208 = arith.constant dense<0.000000e+00> : vector<8x8xf32>
    %540 = tpu.matmul %538, %539, %cst_208 {dimension_numbers = #tpu.dot_dimension_numbers<[1], [0], [0], [1], [0, 0, 1, 1], [], []>} : vector<8x8xf32>, vector<8x8xf32>, vector<8x8xf32> -> vector<8x8xf32>
    %541 = vector.extract_strided_slice %501 {offsets = [8, 0], sizes = [8, 32], strides = [1, 1]} : vector<32x32xbf16> to vector<8x32xbf16>
    %542 = arith.truncf %540 : vector<8x8xf32> to vector<8x8xbf16>
    %cst_209 = arith.constant dense<0.000000e+00> : vector<8x32xf32>
    %543 = tpu.matmul %542, %541, %cst_209 {dimension_numbers = #tpu.dot_dimension_numbers<[1], [0], [0], [1], [0, 0, 1, 1], [], []>} : vector<8x8xbf16>, vector<8x32xbf16>, vector<8x32xf32> -> vector<8x32xf32>
    %544 = arith.addf %524, %543 : vector<8x32xf32>
    %545 = vector.extract_strided_slice %505 {offsets = [0, 16], sizes = [8, 8], strides = [1, 1]} : vector<8x32xf32> to vector<8x8xf32>
    %546 = vector.extract_strided_slice %498 {offsets = [0, 16], sizes = [8, 8], strides = [1, 1]} : vector<8x32xf32> to vector<8x8xf32>
    %cst_210 = arith.constant dense<0.000000e+00> : vector<8x8xf32>
    %547 = tpu.matmul %545, %546, %cst_210 {dimension_numbers = #tpu.dot_dimension_numbers<[1], [1], [0], [0], [0, 0, 1, 0], [], []>} : vector<8x8xf32>, vector<8x8xf32>, vector<8x8xf32> -> vector<8x8xf32>
    %548 = arith.addf %547, %1 : vector<8x8xf32>
    %cst_211 = arith.constant dense<0xFF800000> : vector<8xf32>
    %549 = vector.multi_reduction <maximumf>, %548, %cst_211 [1] : vector<8x8xf32> to vector<8xf32>
    %550 = vector.shape_cast %549 : vector<8xf32> to vector<8x1xf32>
    %551 = vector.broadcast %550 : vector<8x1xf32> to vector<8x8xf32>
    %552 = arith.subf %548, %551 : vector<8x8xf32>
    %553 = math.exp %552 : vector<8x8xf32>
    %cst_212 = arith.constant dense<0.000000e+00> : vector<8xf32>
    %554 = vector.multi_reduction <add>, %553, %cst_212 [1] : vector<8x8xf32> to vector<8xf32>
    %555 = vector.shape_cast %554 : vector<8xf32> to vector<8x1xf32>
    %556 = tpu.reciprocal %555 {approx = true} : vector<8x1xf32> -> vector<8x1xf32>
    %557 = vector.broadcast %556 : vector<8x1xf32> to vector<8x8xf32>
    %558 = arith.mulf %553, %557 : vector<8x8xf32>
    %559 = vector.extract_strided_slice %499 {offsets = [0, 16], sizes = [8, 8], strides = [1, 1]} : vector<8x32xf32> to vector<8x8xf32>
    %cst_213 = arith.constant dense<0.000000e+00> : vector<8x8xf32>
    %560 = tpu.matmul %558, %559, %cst_213 {dimension_numbers = #tpu.dot_dimension_numbers<[1], [0], [0], [1], [0, 0, 1, 1], [], []>} : vector<8x8xf32>, vector<8x8xf32>, vector<8x8xf32> -> vector<8x8xf32>
    %561 = vector.extract_strided_slice %501 {offsets = [16, 0], sizes = [8, 32], strides = [1, 1]} : vector<32x32xbf16> to vector<8x32xbf16>
    %562 = arith.truncf %560 : vector<8x8xf32> to vector<8x8xbf16>
    %cst_214 = arith.constant dense<0.000000e+00> : vector<8x32xf32>
    %563 = tpu.matmul %562, %561, %cst_214 {dimension_numbers = #tpu.dot_dimension_numbers<[1], [0], [0], [1], [0, 0, 1, 1], [], []>} : vector<8x8xbf16>, vector<8x32xbf16>, vector<8x32xf32> -> vector<8x32xf32>
    %564 = arith.addf %544, %563 : vector<8x32xf32>
    %565 = vector.extract_strided_slice %505 {offsets = [0, 24], sizes = [8, 8], strides = [1, 1]} : vector<8x32xf32> to vector<8x8xf32>
    %566 = vector.extract_strided_slice %498 {offsets = [0, 24], sizes = [8, 8], strides = [1, 1]} : vector<8x32xf32> to vector<8x8xf32>
    %cst_215 = arith.constant dense<0.000000e+00> : vector<8x8xf32>
    %567 = tpu.matmul %565, %566, %cst_215 {dimension_numbers = #tpu.dot_dimension_numbers<[1], [1], [0], [0], [0, 0, 1, 0], [], []>} : vector<8x8xf32>, vector<8x8xf32>, vector<8x8xf32> -> vector<8x8xf32>
    %568 = arith.addf %567, %1 : vector<8x8xf32>
    %cst_216 = arith.constant dense<0xFF800000> : vector<8xf32>
    %569 = vector.multi_reduction <maximumf>, %568, %cst_216 [1] : vector<8x8xf32> to vector<8xf32>
    %570 = vector.shape_cast %569 : vector<8xf32> to vector<8x1xf32>
    %571 = vector.broadcast %570 : vector<8x1xf32> to vector<8x8xf32>
    %572 = arith.subf %568, %571 : vector<8x8xf32>
    %573 = math.exp %572 : vector<8x8xf32>
    %cst_217 = arith.constant dense<0.000000e+00> : vector<8xf32>
    %574 = vector.multi_reduction <add>, %573, %cst_217 [1] : vector<8x8xf32> to vector<8xf32>
    %575 = vector.shape_cast %574 : vector<8xf32> to vector<8x1xf32>
    %576 = tpu.reciprocal %575 {approx = true} : vector<8x1xf32> -> vector<8x1xf32>
    %577 = vector.broadcast %576 : vector<8x1xf32> to vector<8x8xf32>
    %578 = arith.mulf %573, %577 : vector<8x8xf32>
    %579 = vector.extract_strided_slice %499 {offsets = [0, 24], sizes = [8, 8], strides = [1, 1]} : vector<8x32xf32> to vector<8x8xf32>
    %cst_218 = arith.constant dense<0.000000e+00> : vector<8x8xf32>
    %580 = tpu.matmul %578, %579, %cst_218 {dimension_numbers = #tpu.dot_dimension_numbers<[1], [0], [0], [1], [0, 0, 1, 1], [], []>} : vector<8x8xf32>, vector<8x8xf32>, vector<8x8xf32> -> vector<8x8xf32>
    %581 = vector.extract_strided_slice %501 {offsets = [24, 0], sizes = [8, 32], strides = [1, 1]} : vector<32x32xbf16> to vector<8x32xbf16>
    %582 = arith.truncf %580 : vector<8x8xf32> to vector<8x8xbf16>
    %cst_219 = arith.constant dense<0.000000e+00> : vector<8x32xf32>
    %583 = tpu.matmul %582, %581, %cst_219 {dimension_numbers = #tpu.dot_dimension_numbers<[1], [0], [0], [1], [0, 0, 1, 1], [], []>} : vector<8x8xbf16>, vector<8x32xbf16>, vector<8x32xf32> -> vector<8x32xf32>
    %584 = arith.addf %564, %583 : vector<8x32xf32>
    %585 = vector.broadcast %503 : vector<1x32xf32> to vector<8x32xf32>
    %586 = arith.addf %584, %585 : vector<8x32xf32>
    %587 = arith.addf %481, %586 : vector<8x32xf32>
    %588 = vector.extract_strided_slice %360 {offsets = [2, 0], sizes = [1, 32], strides = [1, 1]} : vector<6x32xf32> to vector<1x32xf32>
    %589 = vector.extract_strided_slice %360 {offsets = [3, 0], sizes = [1, 32], strides = [1, 1]} : vector<6x32xf32> to vector<1x32xf32>
    %cst_220 = arith.constant dense<0.000000e+00> : vector<8xf32>
    %590 = vector.multi_reduction <add>, %587, %cst_220 [1] : vector<8x32xf32> to vector<8xf32>
    %591 = vector.shape_cast %590 : vector<8xf32> to vector<8x1xf32>
    %cst_221 = arith.constant 3.200000e+01 : f32
    %592 = vector.broadcast %cst_221 : f32 to vector<8x1xf32>
    %593 = arith.divf %591, %592 : vector<8x1xf32>
    %594 = vector.broadcast %593 : vector<8x1xf32> to vector<8x32xf32>
    %595 = arith.subf %587, %594 : vector<8x32xf32>
    %596 = arith.mulf %595, %595 : vector<8x32xf32>
    %cst_222 = arith.constant dense<0.000000e+00> : vector<8xf32>
    %597 = vector.multi_reduction <add>, %596, %cst_222 [1] : vector<8x32xf32> to vector<8xf32>
    %598 = vector.shape_cast %597 : vector<8xf32> to vector<8x1xf32>
    %cst_223 = arith.constant 3.200000e+01 : f32
    %599 = vector.broadcast %cst_223 : f32 to vector<8x1xf32>
    %600 = arith.divf %598, %599 : vector<8x1xf32>
    %cst_224 = arith.constant 9.99999974E-6 : f32
    %601 = vector.broadcast %cst_224 : f32 to vector<8x1xf32>
    %602 = arith.addf %600, %601 : vector<8x1xf32>
    %603 = math.rsqrt %602 : vector<8x1xf32>
    %604 = vector.broadcast %603 : vector<8x1xf32> to vector<8x32xf32>
    %605 = arith.mulf %595, %604 : vector<8x32xf32>
    %606 = vector.broadcast %588 : vector<1x32xf32> to vector<8x32xf32>
    %607 = arith.mulf %605, %606 : vector<8x32xf32>
    %608 = vector.broadcast %589 : vector<1x32xf32> to vector<8x32xf32>
    %609 = arith.addf %607, %608 : vector<8x32xf32>
    %c0_225 = arith.constant 0 : index
    %c0_226 = arith.constant 0 : index
    %c0_227 = arith.constant 0 : index
    %610 = vector.load %arg10[%c0_225, %c0_226, %c0_227] : memref<2x32x2048xbf16, #tpu.memory_space<vmem>>, vector<1x32x2048xbf16>
    %611 = vector.shape_cast %610 : vector<1x32x2048xbf16> to vector<32x2048xbf16>
    %c0_228 = arith.constant 0 : index
    %c0_229 = arith.constant 0 : index
    %c0_230 = arith.constant 0 : index
    %612 = vector.load %arg9[%c0_228, %c0_229, %c0_230] : memref<2x1x2048xf32, #tpu.memory_space<vmem>>, vector<1x1x2048xf32>
    %613 = vector.shape_cast %612 : vector<1x1x2048xf32> to vector<1x2048xf32>
    %c0_231 = arith.constant 0 : index
    %c0_232 = arith.constant 0 : index
    %c0_233 = arith.constant 0 : index
    %614 = vector.load %arg12[%c0_231, %c0_232, %c0_233] : memref<2x2048x32xbf16, #tpu.memory_space<vmem>>, vector<1x2048x32xbf16>
    %615 = vector.shape_cast %614 : vector<1x2048x32xbf16> to vector<2048x32xbf16>
    %c0_234 = arith.constant 0 : index
    %c0_235 = arith.constant 0 : index
    %c0_236 = arith.constant 0 : index
    %616 = vector.load %arg11[%c0_234, %c0_235, %c0_236] : memref<2x1x32xf32, #tpu.memory_space<vmem>>, vector<1x1x32xf32>
    %617 = vector.shape_cast %616 : vector<1x1x32xf32> to vector<1x32xf32>
    %618 = arith.truncf %609 : vector<8x32xf32> to vector<8x32xbf16>
    %cst_237 = arith.constant dense<0.000000e+00> : vector<8x2048xf32>
    %619 = tpu.matmul %618, %611, %cst_237 {dimension_numbers = #tpu.dot_dimension_numbers<[1], [0], [0], [1], [0, 0, 1, 1], [], []>} : vector<8x32xbf16>, vector<32x2048xbf16>, vector<8x2048xf32> -> vector<8x2048xf32>
    %620 = vector.broadcast %613 : vector<1x2048xf32> to vector<8x2048xf32>
    %621 = arith.addf %619, %620 : vector<8x2048xf32>
    %cst_238 = arith.constant 0.000000e+00 : f32
    %622 = vector.broadcast %cst_238 : f32 to vector<8x2048xf32>
    %623 = arith.maximumf %621, %622 : vector<8x2048xf32>
    %624 = arith.truncf %623 : vector<8x2048xf32> to vector<8x2048xbf16>
    %cst_239 = arith.constant dense<0.000000e+00> : vector<8x32xf32>
    %625 = tpu.matmul %624, %615, %cst_239 {dimension_numbers = #tpu.dot_dimension_numbers<[1], [0], [0], [1], [0, 0, 1, 1], [], []>} : vector<8x2048xbf16>, vector<2048x32xbf16>, vector<8x32xf32> -> vector<8x32xf32>
    %626 = vector.broadcast %617 : vector<1x32xf32> to vector<8x32xf32>
    %627 = arith.addf %625, %626 : vector<8x32xf32>
    %628 = arith.addf %609, %627 : vector<8x32xf32>
    %629 = vector.extract_strided_slice %360 {offsets = [4, 0], sizes = [1, 32], strides = [1, 1]} : vector<6x32xf32> to vector<1x32xf32>
    %630 = vector.extract_strided_slice %360 {offsets = [5, 0], sizes = [1, 32], strides = [1, 1]} : vector<6x32xf32> to vector<1x32xf32>
    %cst_240 = arith.constant dense<0.000000e+00> : vector<8xf32>
    %631 = vector.multi_reduction <add>, %628, %cst_240 [1] : vector<8x32xf32> to vector<8xf32>
    %632 = vector.shape_cast %631 : vector<8xf32> to vector<8x1xf32>
    %cst_241 = arith.constant 3.200000e+01 : f32
    %633 = vector.broadcast %cst_241 : f32 to vector<8x1xf32>
    %634 = arith.divf %632, %633 : vector<8x1xf32>
    %635 = vector.broadcast %634 : vector<8x1xf32> to vector<8x32xf32>
    %636 = arith.subf %628, %635 : vector<8x32xf32>
    %637 = arith.mulf %636, %636 : vector<8x32xf32>
    %cst_242 = arith.constant dense<0.000000e+00> : vector<8xf32>
    %638 = vector.multi_reduction <add>, %637, %cst_242 [1] : vector<8x32xf32> to vector<8xf32>
    %639 = vector.shape_cast %638 : vector<8xf32> to vector<8x1xf32>
    %cst_243 = arith.constant 3.200000e+01 : f32
    %640 = vector.broadcast %cst_243 : f32 to vector<8x1xf32>
    %641 = arith.divf %639, %640 : vector<8x1xf32>
    %cst_244 = arith.constant 9.99999974E-6 : f32
    %642 = vector.broadcast %cst_244 : f32 to vector<8x1xf32>
    %643 = arith.addf %641, %642 : vector<8x1xf32>
    %644 = math.rsqrt %643 : vector<8x1xf32>
    %645 = vector.broadcast %644 : vector<8x1xf32> to vector<8x32xf32>
    %646 = arith.mulf %636, %645 : vector<8x32xf32>
    %647 = vector.broadcast %629 : vector<1x32xf32> to vector<8x32xf32>
    %648 = arith.mulf %646, %647 : vector<8x32xf32>
    %649 = vector.broadcast %630 : vector<1x32xf32> to vector<8x32xf32>
    %650 = arith.addf %648, %649 : vector<8x32xf32>
    %c1_245 = arith.constant 1 : index
    %c0_246 = arith.constant 0 : index
    %c0_247 = arith.constant 0 : index
    %651 = vector.load %arg13[%c1_245, %c0_246, %c0_247] : memref<2x6x32xf32, #tpu.memory_space<vmem>>, vector<1x6x32xf32>
    %652 = vector.shape_cast %651 : vector<1x6x32xf32> to vector<6x32xf32>
    %c1_248 = arith.constant 1 : index
    %c0_249 = arith.constant 0 : index
    %c0_250 = arith.constant 0 : index
    %653 = vector.load %arg18[%c1_248, %c0_249, %c0_250] : memref<2x32x96xbf16, #tpu.memory_space<vmem>>, vector<1x32x96xbf16>
    %654 = vector.shape_cast %653 : vector<1x32x96xbf16> to vector<32x96xbf16>
    %655 = arith.truncf %650 : vector<8x32xf32> to vector<8x32xbf16>
    %cst_251 = arith.constant dense<0.000000e+00> : vector<8x96xf32>
    %656 = tpu.matmul %655, %654, %cst_251 {dimension_numbers = #tpu.dot_dimension_numbers<[1], [0], [0], [1], [0, 0, 1, 1], [], []>} : vector<8x32xbf16>, vector<32x96xbf16>, vector<8x96xf32> -> vector<8x96xf32>
    %c1_252 = arith.constant 1 : index
    %c0_253 = arith.constant 0 : index
    %c0_254 = arith.constant 0 : index
    %657 = vector.load %arg17[%c1_252, %c0_253, %c0_254] : memref<2x1x96xf32, #tpu.memory_space<vmem>>, vector<1x1x96xf32>
    %658 = vector.shape_cast %657 : vector<1x1x96xf32> to vector<1x96xf32>
    %659 = vector.broadcast %658 : vector<1x96xf32> to vector<8x96xf32>
    %660 = arith.addf %656, %659 : vector<8x96xf32>
    %661 = vector.extract_strided_slice %660 {offsets = [0, 0], sizes = [8, 32], strides = [1, 1]} : vector<8x96xf32> to vector<8x32xf32>
    %662 = vector.extract_strided_slice %660 {offsets = [0, 32], sizes = [8, 32], strides = [1, 1]} : vector<8x96xf32> to vector<8x32xf32>
    %663 = vector.extract_strided_slice %660 {offsets = [0, 64], sizes = [8, 32], strides = [1, 1]} : vector<8x96xf32> to vector<8x32xf32>
    %c1_255 = arith.constant 1 : index
    %c0_256 = arith.constant 0 : index
    %c0_257 = arith.constant 0 : index
    %664 = vector.load %arg16[%c1_255, %c0_256, %c0_257] : memref<2x32x32xbf16, #tpu.memory_space<vmem>>, vector<1x32x32xbf16>
    %665 = vector.shape_cast %664 : vector<1x32x32xbf16> to vector<32x32xbf16>
    %c1_258 = arith.constant 1 : index
    %c0_259 = arith.constant 0 : index
    %c0_260 = arith.constant 0 : index
    %666 = vector.load %arg15[%c1_258, %c0_259, %c0_260] : memref<2x1x32xf32, #tpu.memory_space<vmem>>, vector<1x1x32xf32>
    %667 = vector.shape_cast %666 : vector<1x1x32xf32> to vector<1x32xf32>
    %cst_261 = arith.constant 0.353553385 : f32
    %668 = vector.broadcast %cst_261 : f32 to vector<8x32xf32>
    %669 = arith.mulf %661, %668 : vector<8x32xf32>
    %670 = vector.extract_strided_slice %669 {offsets = [0, 0], sizes = [8, 8], strides = [1, 1]} : vector<8x32xf32> to vector<8x8xf32>
    %671 = vector.extract_strided_slice %662 {offsets = [0, 0], sizes = [8, 8], strides = [1, 1]} : vector<8x32xf32> to vector<8x8xf32>
    %cst_262 = arith.constant dense<0.000000e+00> : vector<8x8xf32>
    %672 = tpu.matmul %670, %671, %cst_262 {dimension_numbers = #tpu.dot_dimension_numbers<[1], [1], [0], [0], [0, 0, 1, 0], [], []>} : vector<8x8xf32>, vector<8x8xf32>, vector<8x8xf32> -> vector<8x8xf32>
    %673 = arith.addf %672, %1 : vector<8x8xf32>
    %cst_263 = arith.constant dense<0xFF800000> : vector<8xf32>
    %674 = vector.multi_reduction <maximumf>, %673, %cst_263 [1] : vector<8x8xf32> to vector<8xf32>
    %675 = vector.shape_cast %674 : vector<8xf32> to vector<8x1xf32>
    %676 = vector.broadcast %675 : vector<8x1xf32> to vector<8x8xf32>
    %677 = arith.subf %673, %676 : vector<8x8xf32>
    %678 = math.exp %677 : vector<8x8xf32>
    %cst_264 = arith.constant dense<0.000000e+00> : vector<8xf32>
    %679 = vector.multi_reduction <add>, %678, %cst_264 [1] : vector<8x8xf32> to vector<8xf32>
    %680 = vector.shape_cast %679 : vector<8xf32> to vector<8x1xf32>
    %681 = tpu.reciprocal %680 {approx = true} : vector<8x1xf32> -> vector<8x1xf32>
    %682 = vector.broadcast %681 : vector<8x1xf32> to vector<8x8xf32>
    %683 = arith.mulf %678, %682 : vector<8x8xf32>
    %684 = vector.extract_strided_slice %663 {offsets = [0, 0], sizes = [8, 8], strides = [1, 1]} : vector<8x32xf32> to vector<8x8xf32>
    %cst_265 = arith.constant dense<0.000000e+00> : vector<8x8xf32>
    %685 = tpu.matmul %683, %684, %cst_265 {dimension_numbers = #tpu.dot_dimension_numbers<[1], [0], [0], [1], [0, 0, 1, 1], [], []>} : vector<8x8xf32>, vector<8x8xf32>, vector<8x8xf32> -> vector<8x8xf32>
    %686 = vector.extract_strided_slice %665 {offsets = [0, 0], sizes = [8, 32], strides = [1, 1]} : vector<32x32xbf16> to vector<8x32xbf16>
    %687 = arith.truncf %685 : vector<8x8xf32> to vector<8x8xbf16>
    %cst_266 = arith.constant dense<0.000000e+00> : vector<8x32xf32>
    %688 = tpu.matmul %687, %686, %cst_266 {dimension_numbers = #tpu.dot_dimension_numbers<[1], [0], [0], [1], [0, 0, 1, 1], [], []>} : vector<8x8xbf16>, vector<8x32xbf16>, vector<8x32xf32> -> vector<8x32xf32>
    %689 = vector.extract_strided_slice %669 {offsets = [0, 8], sizes = [8, 8], strides = [1, 1]} : vector<8x32xf32> to vector<8x8xf32>
    %690 = vector.extract_strided_slice %662 {offsets = [0, 8], sizes = [8, 8], strides = [1, 1]} : vector<8x32xf32> to vector<8x8xf32>
    %cst_267 = arith.constant dense<0.000000e+00> : vector<8x8xf32>
    %691 = tpu.matmul %689, %690, %cst_267 {dimension_numbers = #tpu.dot_dimension_numbers<[1], [1], [0], [0], [0, 0, 1, 0], [], []>} : vector<8x8xf32>, vector<8x8xf32>, vector<8x8xf32> -> vector<8x8xf32>
    %692 = arith.addf %691, %1 : vector<8x8xf32>
    %cst_268 = arith.constant dense<0xFF800000> : vector<8xf32>
    %693 = vector.multi_reduction <maximumf>, %692, %cst_268 [1] : vector<8x8xf32> to vector<8xf32>
    %694 = vector.shape_cast %693 : vector<8xf32> to vector<8x1xf32>
    %695 = vector.broadcast %694 : vector<8x1xf32> to vector<8x8xf32>
    %696 = arith.subf %692, %695 : vector<8x8xf32>
    %697 = math.exp %696 : vector<8x8xf32>
    %cst_269 = arith.constant dense<0.000000e+00> : vector<8xf32>
    %698 = vector.multi_reduction <add>, %697, %cst_269 [1] : vector<8x8xf32> to vector<8xf32>
    %699 = vector.shape_cast %698 : vector<8xf32> to vector<8x1xf32>
    %700 = tpu.reciprocal %699 {approx = true} : vector<8x1xf32> -> vector<8x1xf32>
    %701 = vector.broadcast %700 : vector<8x1xf32> to vector<8x8xf32>
    %702 = arith.mulf %697, %701 : vector<8x8xf32>
    %703 = vector.extract_strided_slice %663 {offsets = [0, 8], sizes = [8, 8], strides = [1, 1]} : vector<8x32xf32> to vector<8x8xf32>
    %cst_270 = arith.constant dense<0.000000e+00> : vector<8x8xf32>
    %704 = tpu.matmul %702, %703, %cst_270 {dimension_numbers = #tpu.dot_dimension_numbers<[1], [0], [0], [1], [0, 0, 1, 1], [], []>} : vector<8x8xf32>, vector<8x8xf32>, vector<8x8xf32> -> vector<8x8xf32>
    %705 = vector.extract_strided_slice %665 {offsets = [8, 0], sizes = [8, 32], strides = [1, 1]} : vector<32x32xbf16> to vector<8x32xbf16>
    %706 = arith.truncf %704 : vector<8x8xf32> to vector<8x8xbf16>
    %cst_271 = arith.constant dense<0.000000e+00> : vector<8x32xf32>
    %707 = tpu.matmul %706, %705, %cst_271 {dimension_numbers = #tpu.dot_dimension_numbers<[1], [0], [0], [1], [0, 0, 1, 1], [], []>} : vector<8x8xbf16>, vector<8x32xbf16>, vector<8x32xf32> -> vector<8x32xf32>
    %708 = arith.addf %688, %707 : vector<8x32xf32>
    %709 = vector.extract_strided_slice %669 {offsets = [0, 16], sizes = [8, 8], strides = [1, 1]} : vector<8x32xf32> to vector<8x8xf32>
    %710 = vector.extract_strided_slice %662 {offsets = [0, 16], sizes = [8, 8], strides = [1, 1]} : vector<8x32xf32> to vector<8x8xf32>
    %cst_272 = arith.constant dense<0.000000e+00> : vector<8x8xf32>
    %711 = tpu.matmul %709, %710, %cst_272 {dimension_numbers = #tpu.dot_dimension_numbers<[1], [1], [0], [0], [0, 0, 1, 0], [], []>} : vector<8x8xf32>, vector<8x8xf32>, vector<8x8xf32> -> vector<8x8xf32>
    %712 = arith.addf %711, %1 : vector<8x8xf32>
    %cst_273 = arith.constant dense<0xFF800000> : vector<8xf32>
    %713 = vector.multi_reduction <maximumf>, %712, %cst_273 [1] : vector<8x8xf32> to vector<8xf32>
    %714 = vector.shape_cast %713 : vector<8xf32> to vector<8x1xf32>
    %715 = vector.broadcast %714 : vector<8x1xf32> to vector<8x8xf32>
    %716 = arith.subf %712, %715 : vector<8x8xf32>
    %717 = math.exp %716 : vector<8x8xf32>
    %cst_274 = arith.constant dense<0.000000e+00> : vector<8xf32>
    %718 = vector.multi_reduction <add>, %717, %cst_274 [1] : vector<8x8xf32> to vector<8xf32>
    %719 = vector.shape_cast %718 : vector<8xf32> to vector<8x1xf32>
    %720 = tpu.reciprocal %719 {approx = true} : vector<8x1xf32> -> vector<8x1xf32>
    %721 = vector.broadcast %720 : vector<8x1xf32> to vector<8x8xf32>
    %722 = arith.mulf %717, %721 : vector<8x8xf32>
    %723 = vector.extract_strided_slice %663 {offsets = [0, 16], sizes = [8, 8], strides = [1, 1]} : vector<8x32xf32> to vector<8x8xf32>
    %cst_275 = arith.constant dense<0.000000e+00> : vector<8x8xf32>
    %724 = tpu.matmul %722, %723, %cst_275 {dimension_numbers = #tpu.dot_dimension_numbers<[1], [0], [0], [1], [0, 0, 1, 1], [], []>} : vector<8x8xf32>, vector<8x8xf32>, vector<8x8xf32> -> vector<8x8xf32>
    %725 = vector.extract_strided_slice %665 {offsets = [16, 0], sizes = [8, 32], strides = [1, 1]} : vector<32x32xbf16> to vector<8x32xbf16>
    %726 = arith.truncf %724 : vector<8x8xf32> to vector<8x8xbf16>
    %cst_276 = arith.constant dense<0.000000e+00> : vector<8x32xf32>
    %727 = tpu.matmul %726, %725, %cst_276 {dimension_numbers = #tpu.dot_dimension_numbers<[1], [0], [0], [1], [0, 0, 1, 1], [], []>} : vector<8x8xbf16>, vector<8x32xbf16>, vector<8x32xf32> -> vector<8x32xf32>
    %728 = arith.addf %708, %727 : vector<8x32xf32>
    %729 = vector.extract_strided_slice %669 {offsets = [0, 24], sizes = [8, 8], strides = [1, 1]} : vector<8x32xf32> to vector<8x8xf32>
    %730 = vector.extract_strided_slice %662 {offsets = [0, 24], sizes = [8, 8], strides = [1, 1]} : vector<8x32xf32> to vector<8x8xf32>
    %cst_277 = arith.constant dense<0.000000e+00> : vector<8x8xf32>
    %731 = tpu.matmul %729, %730, %cst_277 {dimension_numbers = #tpu.dot_dimension_numbers<[1], [1], [0], [0], [0, 0, 1, 0], [], []>} : vector<8x8xf32>, vector<8x8xf32>, vector<8x8xf32> -> vector<8x8xf32>
    %732 = arith.addf %731, %1 : vector<8x8xf32>
    %cst_278 = arith.constant dense<0xFF800000> : vector<8xf32>
    %733 = vector.multi_reduction <maximumf>, %732, %cst_278 [1] : vector<8x8xf32> to vector<8xf32>
    %734 = vector.shape_cast %733 : vector<8xf32> to vector<8x1xf32>
    %735 = vector.broadcast %734 : vector<8x1xf32> to vector<8x8xf32>
    %736 = arith.subf %732, %735 : vector<8x8xf32>
    %737 = math.exp %736 : vector<8x8xf32>
    %cst_279 = arith.constant dense<0.000000e+00> : vector<8xf32>
    %738 = vector.multi_reduction <add>, %737, %cst_279 [1] : vector<8x8xf32> to vector<8xf32>
    %739 = vector.shape_cast %738 : vector<8xf32> to vector<8x1xf32>
    %740 = tpu.reciprocal %739 {approx = true} : vector<8x1xf32> -> vector<8x1xf32>
    %741 = vector.broadcast %740 : vector<8x1xf32> to vector<8x8xf32>
    %742 = arith.mulf %737, %741 : vector<8x8xf32>
    %743 = vector.extract_strided_slice %663 {offsets = [0, 24], sizes = [8, 8], strides = [1, 1]} : vector<8x32xf32> to vector<8x8xf32>
    %cst_280 = arith.constant dense<0.000000e+00> : vector<8x8xf32>
    %744 = tpu.matmul %742, %743, %cst_280 {dimension_numbers = #tpu.dot_dimension_numbers<[1], [0], [0], [1], [0, 0, 1, 1], [], []>} : vector<8x8xf32>, vector<8x8xf32>, vector<8x8xf32> -> vector<8x8xf32>
    %745 = vector.extract_strided_slice %665 {offsets = [24, 0], sizes = [8, 32], strides = [1, 1]} : vector<32x32xbf16> to vector<8x32xbf16>
    %746 = arith.truncf %744 : vector<8x8xf32> to vector<8x8xbf16>
    %cst_281 = arith.constant dense<0.000000e+00> : vector<8x32xf32>
    %747 = tpu.matmul %746, %745, %cst_281 {dimension_numbers = #tpu.dot_dimension_numbers<[1], [0], [0], [1], [0, 0, 1, 1], [], []>} : vector<8x8xbf16>, vector<8x32xbf16>, vector<8x32xf32> -> vector<8x32xf32>
    %748 = arith.addf %728, %747 : vector<8x32xf32>
    %749 = vector.broadcast %667 : vector<1x32xf32> to vector<8x32xf32>
    %750 = arith.addf %748, %749 : vector<8x32xf32>
    %751 = arith.addf %650, %750 : vector<8x32xf32>
    %752 = vector.extract_strided_slice %652 {offsets = [0, 0], sizes = [1, 32], strides = [1, 1]} : vector<6x32xf32> to vector<1x32xf32>
    %753 = vector.extract_strided_slice %652 {offsets = [1, 0], sizes = [1, 32], strides = [1, 1]} : vector<6x32xf32> to vector<1x32xf32>
    %cst_282 = arith.constant dense<0.000000e+00> : vector<8xf32>
    %754 = vector.multi_reduction <add>, %751, %cst_282 [1] : vector<8x32xf32> to vector<8xf32>
    %755 = vector.shape_cast %754 : vector<8xf32> to vector<8x1xf32>
    %cst_283 = arith.constant 3.200000e+01 : f32
    %756 = vector.broadcast %cst_283 : f32 to vector<8x1xf32>
    %757 = arith.divf %755, %756 : vector<8x1xf32>
    %758 = vector.broadcast %757 : vector<8x1xf32> to vector<8x32xf32>
    %759 = arith.subf %751, %758 : vector<8x32xf32>
    %760 = arith.mulf %759, %759 : vector<8x32xf32>
    %cst_284 = arith.constant dense<0.000000e+00> : vector<8xf32>
    %761 = vector.multi_reduction <add>, %760, %cst_284 [1] : vector<8x32xf32> to vector<8xf32>
    %762 = vector.shape_cast %761 : vector<8xf32> to vector<8x1xf32>
    %cst_285 = arith.constant 3.200000e+01 : f32
    %763 = vector.broadcast %cst_285 : f32 to vector<8x1xf32>
    %764 = arith.divf %762, %763 : vector<8x1xf32>
    %cst_286 = arith.constant 9.99999974E-6 : f32
    %765 = vector.broadcast %cst_286 : f32 to vector<8x1xf32>
    %766 = arith.addf %764, %765 : vector<8x1xf32>
    %767 = math.rsqrt %766 : vector<8x1xf32>
    %768 = vector.broadcast %767 : vector<8x1xf32> to vector<8x32xf32>
    %769 = arith.mulf %759, %768 : vector<8x32xf32>
    %770 = vector.broadcast %752 : vector<1x32xf32> to vector<8x32xf32>
    %771 = arith.mulf %769, %770 : vector<8x32xf32>
    %772 = vector.broadcast %753 : vector<1x32xf32> to vector<8x32xf32>
    %773 = arith.addf %771, %772 : vector<8x32xf32>
    %c1_287 = arith.constant 1 : index
    %c0_288 = arith.constant 0 : index
    %c0_289 = arith.constant 0 : index
    %774 = vector.load %arg8[%c1_287, %c0_288, %c0_289] : memref<2x32x32xbf16, #tpu.memory_space<vmem>>, vector<1x32x32xbf16>
    %775 = vector.shape_cast %774 : vector<1x32x32xbf16> to vector<32x32xbf16>
    %776 = arith.truncf %773 : vector<8x32xf32> to vector<8x32xbf16>
    %cst_290 = arith.constant dense<0.000000e+00> : vector<8x32xf32>
    %777 = tpu.matmul %776, %775, %cst_290 {dimension_numbers = #tpu.dot_dimension_numbers<[1], [0], [0], [1], [0, 0, 1, 1], [], []>} : vector<8x32xbf16>, vector<32x32xbf16>, vector<8x32xf32> -> vector<8x32xf32>
    %c1_291 = arith.constant 1 : index
    %c0_292 = arith.constant 0 : index
    %c0_293 = arith.constant 0 : index
    %778 = vector.load %arg7[%c1_291, %c0_292, %c0_293] : memref<2x1x32xf32, #tpu.memory_space<vmem>>, vector<1x1x32xf32>
    %779 = vector.shape_cast %778 : vector<1x1x32xf32> to vector<1x32xf32>
    %780 = vector.broadcast %779 : vector<1x32xf32> to vector<8x32xf32>
    %781 = arith.addf %777, %780 : vector<8x32xf32>
    %c1_294 = arith.constant 1 : index
    %c0_295 = arith.constant 0 : index
    %c0_296 = arith.constant 0 : index
    %782 = vector.load %arg4[%c1_294, %c0_295, %c0_296] : memref<2x32x64xbf16, #tpu.memory_space<vmem>>, vector<1x32x64xbf16>
    %783 = vector.shape_cast %782 : vector<1x32x64xbf16> to vector<32x64xbf16>
    %784 = arith.truncf %358 : vector<8x32xf32> to vector<8x32xbf16>
    %cst_297 = arith.constant dense<0.000000e+00> : vector<8x64xf32>
    %785 = tpu.matmul %784, %783, %cst_297 {dimension_numbers = #tpu.dot_dimension_numbers<[1], [0], [0], [1], [0, 0, 1, 1], [], []>} : vector<8x32xbf16>, vector<32x64xbf16>, vector<8x64xf32> -> vector<8x64xf32>
    %c1_298 = arith.constant 1 : index
    %c0_299 = arith.constant 0 : index
    %c0_300 = arith.constant 0 : index
    %786 = vector.load %arg3[%c1_298, %c0_299, %c0_300] : memref<2x1x64xf32, #tpu.memory_space<vmem>>, vector<1x1x64xf32>
    %787 = vector.shape_cast %786 : vector<1x1x64xf32> to vector<1x64xf32>
    %788 = vector.broadcast %787 : vector<1x64xf32> to vector<8x64xf32>
    %789 = arith.addf %785, %788 : vector<8x64xf32>
    %790 = vector.extract_strided_slice %789 {offsets = [0, 0], sizes = [8, 32], strides = [1, 1]} : vector<8x64xf32> to vector<8x32xf32>
    %791 = vector.extract_strided_slice %789 {offsets = [0, 32], sizes = [8, 32], strides = [1, 1]} : vector<8x64xf32> to vector<8x32xf32>
    %c1_301 = arith.constant 1 : index
    %c0_302 = arith.constant 0 : index
    %c0_303 = arith.constant 0 : index
    %792 = vector.load %arg6[%c1_301, %c0_302, %c0_303] : memref<2x32x32xbf16, #tpu.memory_space<vmem>>, vector<1x32x32xbf16>
    %793 = vector.shape_cast %792 : vector<1x32x32xbf16> to vector<32x32xbf16>
    %c1_304 = arith.constant 1 : index
    %c0_305 = arith.constant 0 : index
    %c0_306 = arith.constant 0 : index
    %794 = vector.load %arg5[%c1_304, %c0_305, %c0_306] : memref<2x1x32xf32, #tpu.memory_space<vmem>>, vector<1x1x32xf32>
    %795 = vector.shape_cast %794 : vector<1x1x32xf32> to vector<1x32xf32>
    %cst_307 = arith.constant 0.353553385 : f32
    %796 = vector.broadcast %cst_307 : f32 to vector<8x32xf32>
    %797 = arith.mulf %781, %796 : vector<8x32xf32>
    %798 = vector.extract_strided_slice %797 {offsets = [0, 0], sizes = [8, 8], strides = [1, 1]} : vector<8x32xf32> to vector<8x8xf32>
    %799 = vector.extract_strided_slice %790 {offsets = [0, 0], sizes = [8, 8], strides = [1, 1]} : vector<8x32xf32> to vector<8x8xf32>
    %cst_308 = arith.constant dense<0.000000e+00> : vector<8x8xf32>
    %800 = tpu.matmul %798, %799, %cst_308 {dimension_numbers = #tpu.dot_dimension_numbers<[1], [1], [0], [0], [0, 0, 1, 0], [], []>} : vector<8x8xf32>, vector<8x8xf32>, vector<8x8xf32> -> vector<8x8xf32>
    %801 = arith.addf %800, %1 : vector<8x8xf32>
    %cst_309 = arith.constant dense<0xFF800000> : vector<8xf32>
    %802 = vector.multi_reduction <maximumf>, %801, %cst_309 [1] : vector<8x8xf32> to vector<8xf32>
    %803 = vector.shape_cast %802 : vector<8xf32> to vector<8x1xf32>
    %804 = vector.broadcast %803 : vector<8x1xf32> to vector<8x8xf32>
    %805 = arith.subf %801, %804 : vector<8x8xf32>
    %806 = math.exp %805 : vector<8x8xf32>
    %cst_310 = arith.constant dense<0.000000e+00> : vector<8xf32>
    %807 = vector.multi_reduction <add>, %806, %cst_310 [1] : vector<8x8xf32> to vector<8xf32>
    %808 = vector.shape_cast %807 : vector<8xf32> to vector<8x1xf32>
    %809 = tpu.reciprocal %808 {approx = true} : vector<8x1xf32> -> vector<8x1xf32>
    %810 = vector.broadcast %809 : vector<8x1xf32> to vector<8x8xf32>
    %811 = arith.mulf %806, %810 : vector<8x8xf32>
    %812 = vector.extract_strided_slice %791 {offsets = [0, 0], sizes = [8, 8], strides = [1, 1]} : vector<8x32xf32> to vector<8x8xf32>
    %cst_311 = arith.constant dense<0.000000e+00> : vector<8x8xf32>
    %813 = tpu.matmul %811, %812, %cst_311 {dimension_numbers = #tpu.dot_dimension_numbers<[1], [0], [0], [1], [0, 0, 1, 1], [], []>} : vector<8x8xf32>, vector<8x8xf32>, vector<8x8xf32> -> vector<8x8xf32>
    %814 = vector.extract_strided_slice %793 {offsets = [0, 0], sizes = [8, 32], strides = [1, 1]} : vector<32x32xbf16> to vector<8x32xbf16>
    %815 = arith.truncf %813 : vector<8x8xf32> to vector<8x8xbf16>
    %cst_312 = arith.constant dense<0.000000e+00> : vector<8x32xf32>
    %816 = tpu.matmul %815, %814, %cst_312 {dimension_numbers = #tpu.dot_dimension_numbers<[1], [0], [0], [1], [0, 0, 1, 1], [], []>} : vector<8x8xbf16>, vector<8x32xbf16>, vector<8x32xf32> -> vector<8x32xf32>
    %817 = vector.extract_strided_slice %797 {offsets = [0, 8], sizes = [8, 8], strides = [1, 1]} : vector<8x32xf32> to vector<8x8xf32>
    %818 = vector.extract_strided_slice %790 {offsets = [0, 8], sizes = [8, 8], strides = [1, 1]} : vector<8x32xf32> to vector<8x8xf32>
    %cst_313 = arith.constant dense<0.000000e+00> : vector<8x8xf32>
    %819 = tpu.matmul %817, %818, %cst_313 {dimension_numbers = #tpu.dot_dimension_numbers<[1], [1], [0], [0], [0, 0, 1, 0], [], []>} : vector<8x8xf32>, vector<8x8xf32>, vector<8x8xf32> -> vector<8x8xf32>
    %820 = arith.addf %819, %1 : vector<8x8xf32>
    %cst_314 = arith.constant dense<0xFF800000> : vector<8xf32>
    %821 = vector.multi_reduction <maximumf>, %820, %cst_314 [1] : vector<8x8xf32> to vector<8xf32>
    %822 = vector.shape_cast %821 : vector<8xf32> to vector<8x1xf32>
    %823 = vector.broadcast %822 : vector<8x1xf32> to vector<8x8xf32>
    %824 = arith.subf %820, %823 : vector<8x8xf32>
    %825 = math.exp %824 : vector<8x8xf32>
    %cst_315 = arith.constant dense<0.000000e+00> : vector<8xf32>
    %826 = vector.multi_reduction <add>, %825, %cst_315 [1] : vector<8x8xf32> to vector<8xf32>
    %827 = vector.shape_cast %826 : vector<8xf32> to vector<8x1xf32>
    %828 = tpu.reciprocal %827 {approx = true} : vector<8x1xf32> -> vector<8x1xf32>
    %829 = vector.broadcast %828 : vector<8x1xf32> to vector<8x8xf32>
    %830 = arith.mulf %825, %829 : vector<8x8xf32>
    %831 = vector.extract_strided_slice %791 {offsets = [0, 8], sizes = [8, 8], strides = [1, 1]} : vector<8x32xf32> to vector<8x8xf32>
    %cst_316 = arith.constant dense<0.000000e+00> : vector<8x8xf32>
    %832 = tpu.matmul %830, %831, %cst_316 {dimension_numbers = #tpu.dot_dimension_numbers<[1], [0], [0], [1], [0, 0, 1, 1], [], []>} : vector<8x8xf32>, vector<8x8xf32>, vector<8x8xf32> -> vector<8x8xf32>
    %833 = vector.extract_strided_slice %793 {offsets = [8, 0], sizes = [8, 32], strides = [1, 1]} : vector<32x32xbf16> to vector<8x32xbf16>
    %834 = arith.truncf %832 : vector<8x8xf32> to vector<8x8xbf16>
    %cst_317 = arith.constant dense<0.000000e+00> : vector<8x32xf32>
    %835 = tpu.matmul %834, %833, %cst_317 {dimension_numbers = #tpu.dot_dimension_numbers<[1], [0], [0], [1], [0, 0, 1, 1], [], []>} : vector<8x8xbf16>, vector<8x32xbf16>, vector<8x32xf32> -> vector<8x32xf32>
    %836 = arith.addf %816, %835 : vector<8x32xf32>
    %837 = vector.extract_strided_slice %797 {offsets = [0, 16], sizes = [8, 8], strides = [1, 1]} : vector<8x32xf32> to vector<8x8xf32>
    %838 = vector.extract_strided_slice %790 {offsets = [0, 16], sizes = [8, 8], strides = [1, 1]} : vector<8x32xf32> to vector<8x8xf32>
    %cst_318 = arith.constant dense<0.000000e+00> : vector<8x8xf32>
    %839 = tpu.matmul %837, %838, %cst_318 {dimension_numbers = #tpu.dot_dimension_numbers<[1], [1], [0], [0], [0, 0, 1, 0], [], []>} : vector<8x8xf32>, vector<8x8xf32>, vector<8x8xf32> -> vector<8x8xf32>
    %840 = arith.addf %839, %1 : vector<8x8xf32>
    %cst_319 = arith.constant dense<0xFF800000> : vector<8xf32>
    %841 = vector.multi_reduction <maximumf>, %840, %cst_319 [1] : vector<8x8xf32> to vector<8xf32>
    %842 = vector.shape_cast %841 : vector<8xf32> to vector<8x1xf32>
    %843 = vector.broadcast %842 : vector<8x1xf32> to vector<8x8xf32>
    %844 = arith.subf %840, %843 : vector<8x8xf32>
    %845 = math.exp %844 : vector<8x8xf32>
    %cst_320 = arith.constant dense<0.000000e+00> : vector<8xf32>
    %846 = vector.multi_reduction <add>, %845, %cst_320 [1] : vector<8x8xf32> to vector<8xf32>
    %847 = vector.shape_cast %846 : vector<8xf32> to vector<8x1xf32>
    %848 = tpu.reciprocal %847 {approx = true} : vector<8x1xf32> -> vector<8x1xf32>
    %849 = vector.broadcast %848 : vector<8x1xf32> to vector<8x8xf32>
    %850 = arith.mulf %845, %849 : vector<8x8xf32>
    %851 = vector.extract_strided_slice %791 {offsets = [0, 16], sizes = [8, 8], strides = [1, 1]} : vector<8x32xf32> to vector<8x8xf32>
    %cst_321 = arith.constant dense<0.000000e+00> : vector<8x8xf32>
    %852 = tpu.matmul %850, %851, %cst_321 {dimension_numbers = #tpu.dot_dimension_numbers<[1], [0], [0], [1], [0, 0, 1, 1], [], []>} : vector<8x8xf32>, vector<8x8xf32>, vector<8x8xf32> -> vector<8x8xf32>
    %853 = vector.extract_strided_slice %793 {offsets = [16, 0], sizes = [8, 32], strides = [1, 1]} : vector<32x32xbf16> to vector<8x32xbf16>
    %854 = arith.truncf %852 : vector<8x8xf32> to vector<8x8xbf16>
    %cst_322 = arith.constant dense<0.000000e+00> : vector<8x32xf32>
    %855 = tpu.matmul %854, %853, %cst_322 {dimension_numbers = #tpu.dot_dimension_numbers<[1], [0], [0], [1], [0, 0, 1, 1], [], []>} : vector<8x8xbf16>, vector<8x32xbf16>, vector<8x32xf32> -> vector<8x32xf32>
    %856 = arith.addf %836, %855 : vector<8x32xf32>
    %857 = vector.extract_strided_slice %797 {offsets = [0, 24], sizes = [8, 8], strides = [1, 1]} : vector<8x32xf32> to vector<8x8xf32>
    %858 = vector.extract_strided_slice %790 {offsets = [0, 24], sizes = [8, 8], strides = [1, 1]} : vector<8x32xf32> to vector<8x8xf32>
    %cst_323 = arith.constant dense<0.000000e+00> : vector<8x8xf32>
    %859 = tpu.matmul %857, %858, %cst_323 {dimension_numbers = #tpu.dot_dimension_numbers<[1], [1], [0], [0], [0, 0, 1, 0], [], []>} : vector<8x8xf32>, vector<8x8xf32>, vector<8x8xf32> -> vector<8x8xf32>
    %860 = arith.addf %859, %1 : vector<8x8xf32>
    %cst_324 = arith.constant dense<0xFF800000> : vector<8xf32>
    %861 = vector.multi_reduction <maximumf>, %860, %cst_324 [1] : vector<8x8xf32> to vector<8xf32>
    %862 = vector.shape_cast %861 : vector<8xf32> to vector<8x1xf32>
    %863 = vector.broadcast %862 : vector<8x1xf32> to vector<8x8xf32>
    %864 = arith.subf %860, %863 : vector<8x8xf32>
    %865 = math.exp %864 : vector<8x8xf32>
    %cst_325 = arith.constant dense<0.000000e+00> : vector<8xf32>
    %866 = vector.multi_reduction <add>, %865, %cst_325 [1] : vector<8x8xf32> to vector<8xf32>
    %867 = vector.shape_cast %866 : vector<8xf32> to vector<8x1xf32>
    %868 = tpu.reciprocal %867 {approx = true} : vector<8x1xf32> -> vector<8x1xf32>
    %869 = vector.broadcast %868 : vector<8x1xf32> to vector<8x8xf32>
    %870 = arith.mulf %865, %869 : vector<8x8xf32>
    %871 = vector.extract_strided_slice %791 {offsets = [0, 24], sizes = [8, 8], strides = [1, 1]} : vector<8x32xf32> to vector<8x8xf32>
    %cst_326 = arith.constant dense<0.000000e+00> : vector<8x8xf32>
    %872 = tpu.matmul %870, %871, %cst_326 {dimension_numbers = #tpu.dot_dimension_numbers<[1], [0], [0], [1], [0, 0, 1, 1], [], []>} : vector<8x8xf32>, vector<8x8xf32>, vector<8x8xf32> -> vector<8x8xf32>
    %873 = vector.extract_strided_slice %793 {offsets = [24, 0], sizes = [8, 32], strides = [1, 1]} : vector<32x32xbf16> to vector<8x32xbf16>
    %874 = arith.truncf %872 : vector<8x8xf32> to vector<8x8xbf16>
    %cst_327 = arith.constant dense<0.000000e+00> : vector<8x32xf32>
    %875 = tpu.matmul %874, %873, %cst_327 {dimension_numbers = #tpu.dot_dimension_numbers<[1], [0], [0], [1], [0, 0, 1, 1], [], []>} : vector<8x8xbf16>, vector<8x32xbf16>, vector<8x32xf32> -> vector<8x32xf32>
    %876 = arith.addf %856, %875 : vector<8x32xf32>
    %877 = vector.broadcast %795 : vector<1x32xf32> to vector<8x32xf32>
    %878 = arith.addf %876, %877 : vector<8x32xf32>
    %879 = arith.addf %773, %878 : vector<8x32xf32>
    %880 = vector.extract_strided_slice %652 {offsets = [2, 0], sizes = [1, 32], strides = [1, 1]} : vector<6x32xf32> to vector<1x32xf32>
    %881 = vector.extract_strided_slice %652 {offsets = [3, 0], sizes = [1, 32], strides = [1, 1]} : vector<6x32xf32> to vector<1x32xf32>
    %cst_328 = arith.constant dense<0.000000e+00> : vector<8xf32>
    %882 = vector.multi_reduction <add>, %879, %cst_328 [1] : vector<8x32xf32> to vector<8xf32>
    %883 = vector.shape_cast %882 : vector<8xf32> to vector<8x1xf32>
    %cst_329 = arith.constant 3.200000e+01 : f32
    %884 = vector.broadcast %cst_329 : f32 to vector<8x1xf32>
    %885 = arith.divf %883, %884 : vector<8x1xf32>
    %886 = vector.broadcast %885 : vector<8x1xf32> to vector<8x32xf32>
    %887 = arith.subf %879, %886 : vector<8x32xf32>
    %888 = arith.mulf %887, %887 : vector<8x32xf32>
    %cst_330 = arith.constant dense<0.000000e+00> : vector<8xf32>
    %889 = vector.multi_reduction <add>, %888, %cst_330 [1] : vector<8x32xf32> to vector<8xf32>
    %890 = vector.shape_cast %889 : vector<8xf32> to vector<8x1xf32>
    %cst_331 = arith.constant 3.200000e+01 : f32
    %891 = vector.broadcast %cst_331 : f32 to vector<8x1xf32>
    %892 = arith.divf %890, %891 : vector<8x1xf32>
    %cst_332 = arith.constant 9.99999974E-6 : f32
    %893 = vector.broadcast %cst_332 : f32 to vector<8x1xf32>
    %894 = arith.addf %892, %893 : vector<8x1xf32>
    %895 = math.rsqrt %894 : vector<8x1xf32>
    %896 = vector.broadcast %895 : vector<8x1xf32> to vector<8x32xf32>
    %897 = arith.mulf %887, %896 : vector<8x32xf32>
    %898 = vector.broadcast %880 : vector<1x32xf32> to vector<8x32xf32>
    %899 = arith.mulf %897, %898 : vector<8x32xf32>
    %900 = vector.broadcast %881 : vector<1x32xf32> to vector<8x32xf32>
    %901 = arith.addf %899, %900 : vector<8x32xf32>
    %c1_333 = arith.constant 1 : index
    %c0_334 = arith.constant 0 : index
    %c0_335 = arith.constant 0 : index
    %902 = vector.load %arg10[%c1_333, %c0_334, %c0_335] : memref<2x32x2048xbf16, #tpu.memory_space<vmem>>, vector<1x32x2048xbf16>
    %903 = vector.shape_cast %902 : vector<1x32x2048xbf16> to vector<32x2048xbf16>
    %c1_336 = arith.constant 1 : index
    %c0_337 = arith.constant 0 : index
    %c0_338 = arith.constant 0 : index
    %904 = vector.load %arg9[%c1_336, %c0_337, %c0_338] : memref<2x1x2048xf32, #tpu.memory_space<vmem>>, vector<1x1x2048xf32>
    %905 = vector.shape_cast %904 : vector<1x1x2048xf32> to vector<1x2048xf32>
    %c1_339 = arith.constant 1 : index
    %c0_340 = arith.constant 0 : index
    %c0_341 = arith.constant 0 : index
    %906 = vector.load %arg12[%c1_339, %c0_340, %c0_341] : memref<2x2048x32xbf16, #tpu.memory_space<vmem>>, vector<1x2048x32xbf16>
    %907 = vector.shape_cast %906 : vector<1x2048x32xbf16> to vector<2048x32xbf16>
    %c1_342 = arith.constant 1 : index
    %c0_343 = arith.constant 0 : index
    %c0_344 = arith.constant 0 : index
    %908 = vector.load %arg11[%c1_342, %c0_343, %c0_344] : memref<2x1x32xf32, #tpu.memory_space<vmem>>, vector<1x1x32xf32>
    %909 = vector.shape_cast %908 : vector<1x1x32xf32> to vector<1x32xf32>
    %910 = arith.truncf %901 : vector<8x32xf32> to vector<8x32xbf16>
    %cst_345 = arith.constant dense<0.000000e+00> : vector<8x2048xf32>
    %911 = tpu.matmul %910, %903, %cst_345 {dimension_numbers = #tpu.dot_dimension_numbers<[1], [0], [0], [1], [0, 0, 1, 1], [], []>} : vector<8x32xbf16>, vector<32x2048xbf16>, vector<8x2048xf32> -> vector<8x2048xf32>
    %912 = vector.broadcast %905 : vector<1x2048xf32> to vector<8x2048xf32>
    %913 = arith.addf %911, %912 : vector<8x2048xf32>
    %cst_346 = arith.constant 0.000000e+00 : f32
    %914 = vector.broadcast %cst_346 : f32 to vector<8x2048xf32>
    %915 = arith.maximumf %913, %914 : vector<8x2048xf32>
    %916 = arith.truncf %915 : vector<8x2048xf32> to vector<8x2048xbf16>
    %cst_347 = arith.constant dense<0.000000e+00> : vector<8x32xf32>
    %917 = tpu.matmul %916, %907, %cst_347 {dimension_numbers = #tpu.dot_dimension_numbers<[1], [0], [0], [1], [0, 0, 1, 1], [], []>} : vector<8x2048xbf16>, vector<2048x32xbf16>, vector<8x32xf32> -> vector<8x32xf32>
    %918 = vector.broadcast %909 : vector<1x32xf32> to vector<8x32xf32>
    %919 = arith.addf %917, %918 : vector<8x32xf32>
    %920 = arith.addf %901, %919 : vector<8x32xf32>
    %921 = vector.extract_strided_slice %652 {offsets = [4, 0], sizes = [1, 32], strides = [1, 1]} : vector<6x32xf32> to vector<1x32xf32>
    %922 = vector.extract_strided_slice %652 {offsets = [5, 0], sizes = [1, 32], strides = [1, 1]} : vector<6x32xf32> to vector<1x32xf32>
    %cst_348 = arith.constant dense<0.000000e+00> : vector<8xf32>
    %923 = vector.multi_reduction <add>, %920, %cst_348 [1] : vector<8x32xf32> to vector<8xf32>
    %924 = vector.shape_cast %923 : vector<8xf32> to vector<8x1xf32>
    %cst_349 = arith.constant 3.200000e+01 : f32
    %925 = vector.broadcast %cst_349 : f32 to vector<8x1xf32>
    %926 = arith.divf %924, %925 : vector<8x1xf32>
    %927 = vector.broadcast %926 : vector<8x1xf32> to vector<8x32xf32>
    %928 = arith.subf %920, %927 : vector<8x32xf32>
    %929 = arith.mulf %928, %928 : vector<8x32xf32>
    %cst_350 = arith.constant dense<0.000000e+00> : vector<8xf32>
    %930 = vector.multi_reduction <add>, %929, %cst_350 [1] : vector<8x32xf32> to vector<8xf32>
    %931 = vector.shape_cast %930 : vector<8xf32> to vector<8x1xf32>
    %cst_351 = arith.constant 3.200000e+01 : f32
    %932 = vector.broadcast %cst_351 : f32 to vector<8x1xf32>
    %933 = arith.divf %931, %932 : vector<8x1xf32>
    %cst_352 = arith.constant 9.99999974E-6 : f32
    %934 = vector.broadcast %cst_352 : f32 to vector<8x1xf32>
    %935 = arith.addf %933, %934 : vector<8x1xf32>
    %936 = math.rsqrt %935 : vector<8x1xf32>
    %937 = vector.broadcast %936 : vector<8x1xf32> to vector<8x32xf32>
    %938 = arith.mulf %928, %937 : vector<8x32xf32>
    %939 = vector.broadcast %921 : vector<1x32xf32> to vector<8x32xf32>
    %940 = arith.mulf %938, %939 : vector<8x32xf32>
    %941 = vector.broadcast %922 : vector<1x32xf32> to vector<8x32xf32>
    %942 = arith.addf %940, %941 : vector<8x32xf32>
    %c0_353 = arith.constant 0 : index
    %c0_354 = arith.constant 0 : index
    %943 = vector.load %arg14[%c0_353, %c0_354] : memref<2x32xf32, #tpu.memory_space<vmem>>, vector<2x32xf32>
    %944 = vector.extract_strided_slice %943 {offsets = [0, 0], sizes = [1, 32], strides = [1, 1]} : vector<2x32xf32> to vector<1x32xf32>
    %945 = vector.extract_strided_slice %943 {offsets = [1, 0], sizes = [1, 32], strides = [1, 1]} : vector<2x32xf32> to vector<1x32xf32>
    %cst_355 = arith.constant dense<0.000000e+00> : vector<8xf32>
    %946 = vector.multi_reduction <add>, %942, %cst_355 [1] : vector<8x32xf32> to vector<8xf32>
    %947 = vector.shape_cast %946 : vector<8xf32> to vector<8x1xf32>
    %cst_356 = arith.constant 3.200000e+01 : f32
    %948 = vector.broadcast %cst_356 : f32 to vector<8x1xf32>
    %949 = arith.divf %947, %948 : vector<8x1xf32>
    %950 = vector.broadcast %949 : vector<8x1xf32> to vector<8x32xf32>
    %951 = arith.subf %942, %950 : vector<8x32xf32>
    %952 = arith.mulf %951, %951 : vector<8x32xf32>
    %cst_357 = arith.constant dense<0.000000e+00> : vector<8xf32>
    %953 = vector.multi_reduction <add>, %952, %cst_357 [1] : vector<8x32xf32> to vector<8xf32>
    %954 = vector.shape_cast %953 : vector<8xf32> to vector<8x1xf32>
    %cst_358 = arith.constant 3.200000e+01 : f32
    %955 = vector.broadcast %cst_358 : f32 to vector<8x1xf32>
    %956 = arith.divf %954, %955 : vector<8x1xf32>
    %cst_359 = arith.constant 9.99999974E-6 : f32
    %957 = vector.broadcast %cst_359 : f32 to vector<8x1xf32>
    %958 = arith.addf %956, %957 : vector<8x1xf32>
    %959 = math.rsqrt %958 : vector<8x1xf32>
    %960 = vector.broadcast %959 : vector<8x1xf32> to vector<8x32xf32>
    %961 = arith.mulf %951, %960 : vector<8x32xf32>
    %962 = vector.broadcast %944 : vector<1x32xf32> to vector<8x32xf32>
    %963 = arith.mulf %961, %962 : vector<8x32xf32>
    %964 = vector.broadcast %945 : vector<1x32xf32> to vector<8x32xf32>
    %965 = arith.addf %963, %964 : vector<8x32xf32>
    %c0_360 = arith.constant 0 : index
    %c0_361 = arith.constant 0 : index
    %966 = vector.load %arg32[%c0_360, %c0_361] : memref<32x128xbf16, #tpu.memory_space<vmem>>, vector<32x128xbf16>
    %967 = arith.truncf %965 : vector<8x32xf32> to vector<8x32xbf16>
    %cst_362 = arith.constant dense<0.000000e+00> : vector<8x128xf32>
    %968 = tpu.matmul %967, %966, %cst_362 {dimension_numbers = #tpu.dot_dimension_numbers<[1], [0], [0], [1], [0, 0, 1, 1], [], []>} : vector<8x32xbf16>, vector<32x128xbf16>, vector<8x128xf32> -> vector<8x128xf32>
    %c0_363 = arith.constant 0 : index
    %c0_364 = arith.constant 0 : index
    %969 = vector.load %arg31[%c0_363, %c0_364] : memref<1x128xf32, #tpu.memory_space<vmem>>, vector<1x128xf32>
    %970 = vector.broadcast %969 : vector<1x128xf32> to vector<8x128xf32>
    %971 = arith.addf %968, %970 : vector<8x128xf32>
    %972 = arith.negf %971 : vector<8x128xf32>
    %973 = math.exp %972 : vector<8x128xf32>
    %cst_365 = arith.constant 1.000000e+00 : f32
    %974 = vector.broadcast %cst_365 : f32 to vector<8x128xf32>
    %975 = arith.addf %974, %973 : vector<8x128xf32>
    %976 = arith.divf %974, %975 : vector<8x128xf32>
    %c0_366 = arith.constant 0 : index
    %c0_367 = arith.constant 0 : index
    %977 = vector.load %arg33[%c0_366, %c0_367] : memref<8x128xf32, #tpu.memory_space<vmem>>, vector<8x128xf32>
    tpu.vector_store %arg33[%c0_366, %c0_367], %976 {strides = array<i32>} : memref<8x128xf32, #tpu.memory_space<vmem>>, vector<8x128xf32>,
    return
  }
  func.func @transform_0(%arg0: i32) -> (i32, i32) {
    %c0_i32 = arith.constant 0 : i32
    %c0_i32_0 = arith.constant 0 : i32
    return %arg0, %c0_i32 : i32, i32
  }
  func.func @transform_1(%arg0: i32) -> (i32, i32) {
    %c0_i32 = arith.constant 0 : i32
    %c0_i32_0 = arith.constant 0 : i32
    %c0_i32_1 = arith.constant 0 : i32
    return %c0_i32, %c0_i32_0 : i32, i32
  }
  func.func @transform_2(%arg0: i32) -> (i32, i32, i32) {
    %c0_i32 = arith.constant 0 : i32
    %c0_i32_0 = arith.constant 0 : i32
    %c0_i32_1 = arith.constant 0 : i32
    %c0_i32_2 = arith.constant 0 : i32
    return %c0_i32, %c0_i32_0, %c0_i32_1 : i32, i32, i32
  }
  func.func @transform_3(%arg0: i32) -> (i32, i32, i32) {
    %c0_i32 = arith.constant 0 : i32
    %c0_i32_0 = arith.constant 0 : i32
    %c0_i32_1 = arith.constant 0 : i32
    %c0_i32_2 = arith.constant 0 : i32
    return %c0_i32, %c0_i32_0, %c0_i32_1 : i32, i32, i32
  }
  func.func @transform_4(%arg0: i32) -> (i32, i32, i32) {
    %c0_i32 = arith.constant 0 : i32
    %c0_i32_0 = arith.constant 0 : i32
    %c0_i32_1 = arith.constant 0 : i32
    %c0_i32_2 = arith.constant 0 : i32
    return %c0_i32, %c0_i32_0, %c0_i32_1 : i32, i32, i32
  }
  func.func @transform_5(%arg0: i32) -> (i32, i32, i32) {
    %c0_i32 = arith.constant 0 : i32
    %c0_i32_0 = arith.constant 0 : i32
    %c0_i32_1 = arith.constant 0 : i32
    %c0_i32_2 = arith.constant 0 : i32
    return %c0_i32, %c0_i32_0, %c0_i32_1 : i32, i32, i32
  }
  func.func @transform_6(%arg0: i32) -> (i32, i32, i32) {
    %c0_i32 = arith.constant 0 : i32
    %c0_i32_0 = arith.constant 0 : i32
    %c0_i32_1 = arith.constant 0 : i32
    %c0_i32_2 = arith.constant 0 : i32
    return %c0_i32, %c0_i32_0, %c0_i32_1 : i32, i32, i32
  }
  func.func @transform_7(%arg0: i32) -> (i32, i32, i32) {
    %c0_i32 = arith.constant 0 : i32
    %c0_i32_0 = arith.constant 0 : i32
    %c0_i32_1 = arith.constant 0 : i32
    %c0_i32_2 = arith.constant 0 : i32
    return %c0_i32, %c0_i32_0, %c0_i32_1 : i32, i32, i32
  }
  func.func @transform_8(%arg0: i32) -> (i32, i32, i32) {
    %c0_i32 = arith.constant 0 : i32
    %c0_i32_0 = arith.constant 0 : i32
    %c0_i32_1 = arith.constant 0 : i32
    %c0_i32_2 = arith.constant 0 : i32
    return %c0_i32, %c0_i32_0, %c0_i32_1 : i32, i32, i32
  }
  func.func @transform_9(%arg0: i32) -> (i32, i32, i32) {
    %c0_i32 = arith.constant 0 : i32
    %c0_i32_0 = arith.constant 0 : i32
    %c0_i32_1 = arith.constant 0 : i32
    %c0_i32_2 = arith.constant 0 : i32
    return %c0_i32, %c0_i32_0, %c0_i32_1 : i32, i32, i32
  }
  func.func @transform_10(%arg0: i32) -> (i32, i32, i32) {
    %c0_i32 = arith.constant 0 : i32
    %c0_i32_0 = arith.constant 0 : i32
    %c0_i32_1 = arith.constant 0 : i32
    %c0_i32_2 = arith.constant 0 : i32
    return %c0_i32, %c0_i32_0, %c0_i32_1 : i32, i32, i32
  }
  func.func @transform_11(%arg0: i32) -> (i32, i32, i32) {
    %c0_i32 = arith.constant 0 : i32
    %c0_i32_0 = arith.constant 0 : i32
    %c0_i32_1 = arith.constant 0 : i32
    %c0_i32_2 = arith.constant 0 : i32
    return %c0_i32, %c0_i32_0, %c0_i32_1 : i32, i32, i32
  }
  func.func @transform_12(%arg0: i32) -> (i32, i32, i32) {
    %c0_i32 = arith.constant 0 : i32
    %c0_i32_0 = arith.constant 0 : i32
    %c0_i32_1 = arith.constant 0 : i32
    %c0_i32_2 = arith.constant 0 : i32
    return %c0_i32, %c0_i32_0, %c0_i32_1 : i32, i32, i32
  }
  func.func @transform_13(%arg0: i32) -> (i32, i32) {
    %c0_i32 = arith.constant 0 : i32
    %c0_i32_0 = arith.constant 0 : i32
    %c0_i32_1 = arith.constant 0 : i32
    return %c0_i32, %c0_i32_0 : i32, i32
  }
  func.func @transform_14(%arg0: i32) -> (i32, i32, i32) {
    %c0_i32 = arith.constant 0 : i32
    %c0_i32_0 = arith.constant 0 : i32
    %c0_i32_1 = arith.constant 0 : i32
    %c0_i32_2 = arith.constant 0 : i32
    return %c0_i32, %c0_i32_0, %c0_i32_1 : i32, i32, i32
  }
  func.func @transform_15(%arg0: i32) -> (i32, i32, i32) {
    %c0_i32 = arith.constant 0 : i32
    %c0_i32_0 = arith.constant 0 : i32
    %c0_i32_1 = arith.constant 0 : i32
    %c0_i32_2 = arith.constant 0 : i32
    return %c0_i32, %c0_i32_0, %c0_i32_1 : i32, i32, i32
  }
  func.func @transform_16(%arg0: i32) -> (i32, i32, i32) {
    %c0_i32 = arith.constant 0 : i32
    %c0_i32_0 = arith.constant 0 : i32
    %c0_i32_1 = arith.constant 0 : i32
    %c0_i32_2 = arith.constant 0 : i32
    return %c0_i32, %c0_i32_0, %c0_i32_1 : i32, i32, i32
  }
  func.func @transform_17(%arg0: i32) -> (i32, i32, i32) {
    %c0_i32 = arith.constant 0 : i32
    %c0_i32_0 = arith.constant 0 : i32
    %c0_i32_1 = arith.constant 0 : i32
    %c0_i32_2 = arith.constant 0 : i32
    return %c0_i32, %c0_i32_0, %c0_i32_1 : i32, i32, i32
  }
  func.func @transform_18(%arg0: i32) -> (i32, i32) {
    %c0_i32 = arith.constant 0 : i32
    %c0_i32_0 = arith.constant 0 : i32
    %c0_i32_1 = arith.constant 0 : i32
    return %c0_i32, %c0_i32_0 : i32, i32
  }
  func.func @transform_19(%arg0: i32) -> (i32, i32) {
    %c0_i32 = arith.constant 0 : i32
    %c0_i32_0 = arith.constant 0 : i32
    %c0_i32_1 = arith.constant 0 : i32
    return %c0_i32, %c0_i32_0 : i32, i32
  }
  func.func @transform_20(%arg0: i32) -> (i32, i32, i32) {
    %c0_i32 = arith.constant 0 : i32
    %c0_i32_0 = arith.constant 0 : i32
    %c0_i32_1 = arith.constant 0 : i32
    %c0_i32_2 = arith.constant 0 : i32
    return %c0_i32, %c0_i32_0, %c0_i32_1 : i32, i32, i32
  }
  func.func @transform_21(%arg0: i32) -> (i32, i32, i32) {
    %c0_i32 = arith.constant 0 : i32
    %c0_i32_0 = arith.constant 0 : i32
    %c0_i32_1 = arith.constant 0 : i32
    %c0_i32_2 = arith.constant 0 : i32
    return %c0_i32, %c0_i32_0, %c0_i32_1 : i32, i32, i32
  }
  func.func @transform_22(%arg0: i32) -> (i32, i32, i32) {
    %c0_i32 = arith.constant 0 : i32
    %c0_i32_0 = arith.constant 0 : i32
    %c0_i32_1 = arith.constant 0 : i32
    %c0_i32_2 = arith.constant 0 : i32
    return %c0_i32, %c0_i32_0, %c0_i32_1 : i32, i32, i32
  }
  func.func @transform_23(%arg0: i32) -> (i32, i32, i32) {
    %c0_i32 = arith.constant 0 : i32
    %c0_i32_0 = arith.constant 0 : i32
    %c0_i32_1 = arith.constant 0 : i32
    %c0_i32_2 = arith.constant 0 : i32
    return %c0_i32, %c0_i32_0, %c0_i32_1 : i32, i32, i32
  }
  func.func @transform_24(%arg0: i32) -> (i32, i32, i32) {
    %c0_i32 = arith.constant 0 : i32
    %c0_i32_0 = arith.constant 0 : i32
    %c0_i32_1 = arith.constant 0 : i32
    %c0_i32_2 = arith.constant 0 : i32
    return %c0_i32, %c0_i32_0, %c0_i32_1 : i32, i32, i32
  }
  func.func @transform_25(%arg0: i32) -> (i32, i32) {
    %c0_i32 = arith.constant 0 : i32
    %c0_i32_0 = arith.constant 0 : i32
    %c0_i32_1 = arith.constant 0 : i32
    return %c0_i32, %c0_i32_0 : i32, i32
  }
  func.func @transform_26(%arg0: i32) -> (i32, i32, i32) {
    %c0_i32 = arith.constant 0 : i32
    %c0_i32_0 = arith.constant 0 : i32
    %c0_i32_1 = arith.constant 0 : i32
    %c0_i32_2 = arith.constant 0 : i32
    return %c0_i32, %c0_i32_0, %c0_i32_1 : i32, i32, i32
  }
  func.func @transform_27(%arg0: i32) -> (i32, i32, i32) {
    %c0_i32 = arith.constant 0 : i32
    %c0_i32_0 = arith.constant 0 : i32
    %c0_i32_1 = arith.constant 0 : i32
    %c0_i32_2 = arith.constant 0 : i32
    return %c0_i32, %c0_i32_0, %c0_i32_1 : i32, i32, i32
  }
  func.func @transform_28(%arg0: i32) -> (i32, i32, i32) {
    %c0_i32 = arith.constant 0 : i32
    %c0_i32_0 = arith.constant 0 : i32
    %c0_i32_1 = arith.constant 0 : i32
    %c0_i32_2 = arith.constant 0 : i32
    return %c0_i32, %c0_i32_0, %c0_i32_1 : i32, i32, i32
  }
  func.func @transform_29(%arg0: i32) -> (i32, i32, i32) {
    %c0_i32 = arith.constant 0 : i32
    %c0_i32_0 = arith.constant 0 : i32
    %c0_i32_1 = arith.constant 0 : i32
    %c0_i32_2 = arith.constant 0 : i32
    return %c0_i32, %c0_i32_0, %c0_i32_1 : i32, i32, i32
  }
  func.func @transform_30(%arg0: i32) -> (i32, i32) {
    %c0_i32 = arith.constant 0 : i32
    %c0_i32_0 = arith.constant 0 : i32
    %c0_i32_1 = arith.constant 0 : i32
    return %c0_i32, %c0_i32_0 : i32, i32
  }
  func.func @transform_31(%arg0: i32) -> (i32, i32) {
    %c0_i32 = arith.constant 0 : i32
    %c0_i32_0 = arith.constant 0 : i32
    %c0_i32_1 = arith.constant 0 : i32
    return %c0_i32, %c0_i32_0 : i32, i32
  }
  func.func @transform_32(%arg0: i32) -> (i32, i32) {
    %c0_i32 = arith.constant 0 : i32
    %c0_i32_0 = arith.constant 0 : i32
    return %arg0, %c0_i32 : i32, i32
  }
}

</mosaic_0001>

<bundles_post_ra>
// kernel: tpu_custom_call.1
= control target key start
LH: loop header
LB: loop body
LE: loop exit
PB: predicated region body
PF: predicated region fallthrough
CT: control target
= control target key end

     0   :  { %s14172_s6 = smov 1   ;;  %s14173_s10 = smov 2   ;;  %s15925_s0 = inlined_call_operand.smem [shape: u32[33], index: -1, kind: input, shape index: {}] }
   0x1   :  { %s14225_s5 = sld [smem:[%s15925_s0]]   ;;  %s14174_s14 = smov 3  }
   0x2   :  { %s14230_s9 = sld [smem:[%s15925_s0 + %s14172_s6]]   ;;  %s14175_s18 = smov 4  }
   0x3   :  { %s14235_s13 = sld [smem:[%s15925_s0 + %s14173_s10]]   ;;  %s14176_s22 = smov 5  }
   0x4   :  { %s14240_s17 = sld [smem:[%s15925_s0 + %s14174_s14]]   ;;  %s14177_s26 = smov 6  }
   0x5   :  { %s14245_s21 = sld [smem:[%s15925_s0 + %s14175_s18]]   ;;  %s14178_s30 = smov 7  }
   0x6   :  { %s14250_s25 = sld [smem:[%s15925_s0 + %s14176_s22]]   ;;  %s14179_s4 = smov 8  }
   0x7   :  { %s14255_s29 = sld [smem:[%s15925_s0 + %s14177_s26]]   ;;  %s14180_s10 = smov 9  }
   0x8   :  { %s14260_s3 = sld [smem:[%s15925_s0 + %s14178_s30]]   ;;  %s14181_s15 = smov 10  }
   0x9   :  { %15939 = sst [smem:[#allocation5_spill]] %s14235_s13  ;;  %s14182_s20 = smov 11  }
   0xa   :  { %15940 = sst [smem:[#allocation6_spill]] %s14240_s17  ;;  %s14183_s26 = smov 12  }
   0xb   :  { %15941 = sst [smem:[#allocation7_spill]] %s14245_s21  ;;  %s14184_s1 = smov 13  }
   0xc   :  { %15942 = sst [smem:[#allocation8_spill]] %s14250_s25  ;;  %s14185_s7 = smov 14  }
   0xd   :  { %15943 = sst [smem:[#allocation9_spill]] %s14255_s29  ;;  %s14187_s22 = smov 16  }
   0xe   :  { %15944 = sst [smem:[#allocation10_spill]] %s14260_s3  ;;  %s14188_s28 = smov 17  }
   0xf   :  { %s14265_s8 = sld [smem:[%s15925_s0 + %s14179_s4]]   ;;  %s14191_s23 = smov 20  }
  0x10   :  { %s14270_s14 = sld [smem:[%s15925_s0 + %s14180_s10]]   ;;  %s14193_s10 = smov 22  }
  0x11   :  { %s14275_s19 = sld [smem:[%s15925_s0 + %s14181_s15]]   ;;  %s14186_s15 = smov 15  }
  0x12   :  { %s14280_s24 = sld [smem:[%s15925_s0 + %s14182_s20]]   ;;  %s14194_s16 = smov 23  }
  0x13   :  { %s14285_s30 = sld [smem:[%s15925_s0 + %s14183_s26]]  }
  0x14   :  { %s14290_s6 = sld [smem:[%s15925_s0 + %s14184_s1]]   ;;  %s14192_s1 = smov 21  }
  0x15   :  { %15945 = sst [smem:[#allocation11_spill]] %s14265_s8 }
  0x16   :  { %15946 = sst [smem:[#allocation12_spill]] %s14270_s14 }
  0x17   :  { %15947 = sst [smem:[#allocation13_spill]] %s14275_s19 }
  0x18   :  { %15948 = sst [smem:[#allocation14_spill]] %s14280_s24 }
  0x19   :  { %15949 = sst [smem:[#allocation15_spill]] %s14285_s30 }
  0x1a   :  { %15950 = sst [smem:[#allocation16_spill]] %s14290_s6 }
  0x1b   :  { %s14295_s12 = sld [smem:[%s15925_s0 + %s14185_s7]]   ;;  %s14189_s7 = smov 18  }
  0x1c   :  { %s14300_s20 = sld [smem:[%s15925_s0 + %s14186_s15]]   ;;  %s14190_s15 = smov 19  }
  0x1d   :  { %s14305_s27 = sld [smem:[%s15925_s0 + %s14187_s22]]  }
  0x1e   :  { %s14310_s4 = sld [smem:[%s15925_s0 + %s14188_s28]]  }
  0x1f   :  { %s14315_s6 = sld [smem:[%s15925_s0 + %s14189_s7]]  }
  0x20   :  { %s9849_s19 = sld [smem:[%s15925_s0 + %s14190_s15]]  }
  0x21   :  { %15951 = sst [smem:[#allocation17_spill]] %s14295_s12 }
  0x22   :  { %15952 = sst [smem:[#allocation18_spill]] %s14300_s20 }
  0x23   :  { %s14323_s8 = sld [smem:[%s15925_s0 + %s14191_s23]]   ;;  %s14195_s23 = smov 24  }
  0x24   :  { %s14328_s24 = sld [smem:[%s15925_s0 + %s14192_s1]]   ;;  %s14196_s1 = smov 25  }
  0x25   :  { %s14333_s14 = sld [smem:[%s15925_s0 + %s14193_s10]]   ;;  %s14197_s10 = smov 26  }
  0x26   :  { %s14338_s21 = sld [smem:[%s15925_s0 + %s14194_s16]]   ;;  %s14198_s16 = smov 27  }
  0x27   :  { %s14343_s25 = sld [smem:[%s15925_s0 + %s14195_s23]]   ;;  %s14199_s23 = smov 28  }
  0x28   :  { %s14348_s29 = sld [smem:[%s15925_s0 + %s14196_s1]]   ;;  %s14200_s1 = smov 29  }
  0x29   :  { %s14353_s13 = sld [smem:[%s15925_s0 + %s14197_s10]]   ;;  %s14201_s10 = smov 30  }
  0x2a   :  { %s14358_s30 = sld [smem:[%s15925_s0 + %s14198_s16]]   ;;  %s14202_s16 = smov 31  }
  0x2b   :  { %s14363_s3 = sld [smem:[%s15925_s0 + %s14199_s23]]   ;;  %s14203_s23 = smov 32  }
  0x2c   :  { %s14373_s17 = sld [smem:[%s15925_s0 + %s14201_s10]]  }
  0x2d   :  { %s14378_s12 = sld [smem:[%s15925_s0 + %s14202_s16]]  }
  0x2e   :  { %15953 = sst [smem:[#allocation19_spill]] %s14348_s29 }
  0x2f   :  { %s14368_s29 = sld [smem:[%s15925_s0 + %s14200_s1]]  }
  0x30   :  { %s14383_s20 = sld [smem:[%s15925_s0 + %s14203_s23]]  }
  0x31   :  { %v13289_v0 = vld [vmem:[%s9849_s19] sm:$0xff]  ;;  %vm151_vm0 = vcmask 130048  }
  0x32   :  { %v136_v1 = vld [vmem:[%s14225_s5] sm:$0xff]  ;;  %162 = vmatpush.bf16.msra.mxu0 %v13289_v0 }
  0x33   :  { %v140_v3 = vpack.c.bf16 %v136_v1, %v136_v1 }
  0x35   :  { %v13291_v2 = vld [vmem:[%s14368_s29 + $0x8] sm:$0xff]  ;;  %9867 = vmatmul.msk.bf16.vlgmr.msra.gmra.mxu0 %vm151_vm0, %v140_v3 }
  0x36   :  { %200 = vmatpush.bf16.msra.mxu1 %v13291_v2 }
  0x37   :  { %70 = vsyncpa [#allocation3], 0  ;;  %v13290_v4 = vld [vmem:[%s14368_s29] sm:$0xff]  ;;  %vm190_vm1 = vcmask 261120   ;;  %s14204_s0 = smov 88   ;;  %s14205_s5 = smov 96  }
  0x38   :  { %v13993_v5 = vld [vmem:[%s14315_s6] ss:$0 sm:$0xff]  ;;  %s14206_s19 = smov 120   ;;  %vm216_vm2 = vcmask 64512   ;;  %s14207_s6 = smov 56   ;;  %vm349_vm3 = vcmask 1043456  }
  0x39   :  { %v13994_v10 = vld [vmem:[%s14363_s3] ss:$0 sm:$0xff]  ;;  %s14208_s1 = smov 112   ;;  %s14209_s28 = smov 64   ;;  %v208_v52 = vld [vmem:[%s14358_s30 + $0x4] sm:$0xf] }
  0x3a   :  { %201 = vmatpush.bf16.msra.mxu1 %v13290_v4  ;;  %v14409_v16 = vld [vmem:[%s14230_s9] sm:$0xff]  ;;  %s14210_s2 = smov 80   ;;  %s14211_s10 = smov 48   ;;  %v351_v53 = vsel %vm349_vm3, %v208_v52, 0 }
  0x3b   :  { %v207_v32 = vld [vmem:[%s14358_s30] sm:$0xf]  ;;  %s14212_s7 = smov 104   ;;  %s14213_s11 = smov 72  }
  0x3c   :  { %v370_v33 = vsel %vm349_vm3, %v207_v32, 0  ;;  %s14214_s16 = smov 40   ;;  %v9959_v52 = vld [vmem:[%s14328_s24 + $0x80] sm:$0xf]  ;;  %s15963_s15 = sld [smem:[#allocation7_spill]] }
  0x3d   :  { %379 = vmatpush.bf16.msrb.mxu0 %v370_v33  ;;  %v13995_v33 = vld [vmem:[%s14353_s13] ss:$0 sm:$0xff]  ;;  %s15964_s18 = sld [smem:[#allocation12_spill]] }
  0x3e   :  { %s15965_s23 = sld [smem:[#allocation14_spill]] }
  0x3f   :  { %s15966_s22 = sld [smem:[#allocation11_spill]] }
  0x40   :  { %s15967_s26 = sld [smem:[#allocation13_spill]] }
  0xb2   :  { %v164_v6 = vpop.f32.mrf.mxu0 }
  0xb3   :  { %v14389_v7 = vadd.f32 %v13993_v5, %v164_v6 }
  0xb5   :  { %v14393_v8 = vpack.c.bf16 %v14389_v7, %v14389_v7 }
  0xb7   :  { %9876 = vmatmul.msk.bf16.vlgmr.msra.gmra.mxu1 %vm190_vm1, %v14393_v8 }
  0xba   :  { %v166_v9 = vpop.f32.mrf.mxu0 }
 0x134   :  { %v203_v11 = vpop.f32.mrf.mxu1 }
 0x135   :  { %v14398_v12 = vadd.f32 %v13994_v10, %v203_v11  ;;  %v209_v10 = vld [vmem:[%s14358_s30 + $0x8] sm:$0xf] }
 0x136   :  { %v455_v11 = vsel %vm349_vm3, %v209_v10, 0 }
 0x137   :  { %282 = vrot.lane.b32.xlu2 %v14398_v12, %s14204_s0  ;;  %214 = vrot.lane.b32.xlu0 %v14398_v12, %s14205_s5  ;;  %v212_v14 = vmul.f32 0.35355338, %v14398_v12 }
 0x13c   :  { %v205_v13 = vpop.f32.mrf.mxu1 }
 0x13f   :  { %280 = vrot.lane.b32.xlu2 %v212_v14, %s14206_s19 }
 0x191   :  { %v283_v28 = vpop.permute.xlu2 %282 }
 0x199   :  { %v281_v31 = vpop.permute.xlu2 %280 }
 0x1a9   :  { %v215_v15 = vpop.permute.xlu0 %214 }
 0x1aa   :  { %9877 = vmatpush.xpose.msk.msra.mxu2 %vm216_vm2, %v215_v15 }
 0x1ad   :  { %9878 = vmatmul.msk.f32.vlgmr.msra.gmra.mxu2 %vm216_vm2, %v212_v14 }
 0x230   :  { %v239_v17 = vpop.f32.mrf.mxu2 }
 0x231   :  { %v240_v18 = vadd.f32 %v239_v17, %v14409_v16 }
 0x233   :  { %v242_v19 = vsel %vm216_vm2, %v240_v18, -inf }
 0x234   :  { %243 = vmax.xlane.f32.xlu0 %v242_v19 }
 0x248   :  { %319 = vrot.lane.b32.xlu0 %v14398_v12, %s14207_s6 }
 0x250   :  { %385 = vrot.lane.b32.xlu0 %v212_v14, %s14208_s1 }
 0x2a7   :  { %v244_v20 = vpop.xlane.xlu0 %243 }
 0x2a8   :  { %v245_v21 = vsub.f32 %v240_v18, %v244_v20 }
 0x2aa   :  { %v246_v22 = vmul.f32 1.442695, %v245_v21 }
 0x2ac   :  { %14013 = vpow2.f32 %v246_v22 }
 0x2b2   :  { %v14014_v23 = vpop.eup %14013 }
 0x2b3   :  { %v248_v24 = vsel %vm216_vm2, %v14014_v23, 0.0 }
 0x2b4   :  { %249 = vadd.xlane.f32.xlu1 %v248_v24 }
 0x2ba   :  { %v320_v25 = vpop.permute.xlu0 %319 }
 0x2bb   :  { %340 = vmatpush.msrb.mxu2 %v320_v25 }
 0x2c2   :  { %v386_v51 = vpop.permute.xlu0 %385 }
 0x2cd   :  { %253 = vrot.lane.b32.xlu1 %v14398_v12, %s14209_s28 }
 0x327   :  { %v250_v26 = vpop.xlane.xlu1 %249 }
 0x328   :  { %14015 = vrcp.f32 %v250_v26 }
 0x32e   :  { %v14016_v27 = vpop.eup %14015 }
 0x32f   :  { %v252_v30 = vmul.f32 %v14016_v27, %v14014_v23 }
 0x33f   :  { %v254_v29 = vpop.permute.xlu1 %253 }
 0x340   :  { %274 = vmatpush.msra.mxu3 %v254_v29 }
 0x341   :  { %9879 = vmatmul.msk.f32.vlgmr.msra.gmra.mxu3 %vm216_vm2, %v252_v30 }
 0x342   :  { %9880 = vmatpush.xpose.msk.msrb.mxu3 %vm216_vm2, %v283_v28 }
 0x346   :  { %360 = vmatpush.bf16.msra.mxu3 %v351_v53  ;;  %v13316_v53 = vld [vmem:[%s14328_s24 + $0xbc] sm:$0xf0] }
 0x349   :  { %9881 = vmatmul.msk.f32.vlgmr.msrb.gmra.mxu3 %vm216_vm2, %v281_v31 }
 0x3c4   :  { %v276_v34 = vpop.f32.mrf.mxu3 }
 0x3c5   :  { %v279_v35 = vpack.c.bf16 %v276_v34, %v276_v34 }
 0x3c7   :  { %9884 = vmatmul.msk.bf16.vlgmr.msrb.gmra.mxu0 %vm216_vm2, %v279_v35 }
 0x3cc   :  { %v305_v36 = vpop.f32.mrf.mxu3 }
 0x3cd   :  { %v306_v37 = vadd.f32 %v305_v36, %v14409_v16 }
 0x3cf   :  { %v308_v38 = vsel %vm216_vm2, %v306_v37, -inf }
 0x3d0   :  { %309 = vmax.xlane.f32.xlu2 %v308_v38 }
 0x3e8   :  { %387 = vrot.lane.b32.xlu2 %v14398_v12, %s14210_s2 }
 0x3f0   :  { %424 = vrot.lane.b32.xlu2 %v14398_v12, %s14211_s10 }
 0x3f8   :  { %471 = vrot.lane.b32.xlu2 %v212_v14, %s14212_s7 }
 0x443   :  { %v310_v39 = vpop.xlane.xlu2 %309 }
 0x444   :  { %v311_v40 = vsub.f32 %v306_v37, %v310_v39  ;;  %v14432_v41 = vpop.f32.mrf.mxu0 }
 0x446   :  { %v312_v42 = vmul.f32 1.442695, %v311_v40  ;;  %v14215_v40 = vmov 32.0  }
 0x448   :  { %14017 = vpow2.f32 %v312_v42 }
 0x44b   :  { %v388_v43 = vpop.permute.xlu2 %387 }
 0x44c   :  { %v383_v44 = vpop.f32.mrf.mxu0  ;;  %9885 = vmatpush.xpose.msk.msra.mxu2 %vm216_vm2, %v388_v43 }
 0x44e   :  { %v14018_v45 = vpop.eup %14017 }
 0x44f   :  { %v314_v46 = vsel %vm216_vm2, %v14018_v45, 0.0 }
 0x450   :  { %315 = vadd.xlane.f32.xlu1 %v314_v46 }
 0x453   :  { %v425_v47 = vpop.permute.xlu2 %424 }
 0x454   :  { %445 = vmatpush.msrb.mxu1 %v425_v47 }
 0x45b   :  { %v472_v6 = vpop.permute.xlu2 %471 }
 0x4c3   :  { %v316_v48 = vpop.xlane.xlu1 %315 }
 0x4c4   :  { %14019 = vrcp.f32 %v316_v48 }
 0x4ca   :  { %v14020_v49 = vpop.eup %14019 }
 0x4cb   :  { %v318_v50 = vmul.f32 %v14020_v49, %v14018_v45 }
 0x4cd   :  { %9882 = vmatmul.msk.f32.vlgmr.msrb.gmra.mxu2 %vm216_vm2, %v318_v50 }
 0x4ce   :  { %464 = vmatpush.bf16.msrb.mxu2 %v455_v11  ;;  %v13293_v11 = vld [vmem:[%s14328_s24 + $0xc] sm:$0xf] }
 0x4d5   :  { %9886 = vmatmul.msk.f32.vlgmr.msra.gmra.mxu2 %vm216_vm2, %v386_v51 }
 0x550   :  { %v342_v54 = vpop.f32.mrf.mxu2 }
 0x551   :  { %v345_v55 = vpack.c.bf16 %v342_v54, %v342_v54  ;;  %v13308_v54 = vld [vmem:[%s14328_s24 + $0x84] sm:$0xf] }
 0x553   :  { %9883 = vmatmul.msk.bf16.vlgmr.msra.gmra.mxu3 %vm216_vm2, %v345_v55  ;;  %v9960_v55 = vor.u32 %v13316_v53, %v9959_v52 }
 0x558   :  { %v410_v56 = vpop.f32.mrf.mxu2 }
 0x559   :  { %v411_v57 = vadd.f32 %v410_v56, %v14409_v16  ;;  %v9961_v56 = vld [vmem:[%s14328_s24 + $0xc0] sm:$0xf0] }
 0x55b   :  { %v413_v58 = vsel %vm216_vm2, %v411_v57, -inf }
 0x55c   :  { %414 = vmax.xlane.f32.xlu1 %v413_v58  ;;  %v13317_v58 = vld [vmem:[%s14328_s24 + $0xc4] sm:$0xf0] }
 0x575   :  { %473 = vrot.lane.b32.xlu1 %v14398_v12, %s14213_s11 }
 0x5cf   :  { %v415_v59 = vpop.xlane.xlu1 %414 }
 0x5d0   :  { %v416_v60 = vsub.f32 %v411_v57, %v415_v59  ;;  %v9967_v57 = vld [vmem:[%s14328_s24 + $0x88] sm:$0xf]  ;;  %v9964_v59 = vor.u32 %v13308_v54, %v9961_v56  ;;  %v13320_v56 = vld [vmem:[%s14328_s24 + $0xdc] sm:$0xf0] }
 0x5d2   :  { %v417_v61 = vmul.f32 1.442695, %v416_v60  ;;  %v9968_v60 = vor.u32 %v13317_v58, %v9967_v57  ;;  %v13312_v57 = vld [vmem:[%s14328_s24 + $0xa4] sm:$0xf] }
 0x5d3   :  { %v9993_v58 = vld [vmem:[%s14328_s24 + $0xe0] sm:$0xf0] }
 0x5d4   :  { %14021 = vpow2.f32 %v417_v61  ;;  %v13309_v61 = vld [vmem:[%s14328_s24 + $0x8c] sm:$0xf]  ;;  %1116 = vmatpush.bf16.msra.mxu2 %v9968_v60 }
 0x5d6   :  { %v362_v62 = vpop.f32.mrf.mxu3 }
 0x5d7   :  { %v382_v31 = vadd.f32 %v14432_v41, %v362_v62  ;;  %v9969_v62 = vld [vmem:[%s14328_s24 + $0xc8] sm:$0xf0] }
 0x5da   :  { %v14022_v63 = vpop.eup %14021 }
 0x5db   :  { %v419_v0 = vsel %vm216_vm2, %v14022_v63, 0.0 }
 0x5dc   :  { %420 = vadd.xlane.f32.xlu0 %v419_v0  ;;  %v9895_v0 = vld [vmem:[%s14328_s24] sm:$0xf] }
 0x5de   :  { %v364_v1 = vpop.f32.mrf.mxu3 }
 0x5df   :  { %v13300_v1 = vld [vmem:[%s14328_s24 + $0x3c] sm:$0xf0] }
 0x5e7   :  { %v474_v2 = vpop.permute.xlu1 %473 }
 0x5e8   :  { %9889 = vmatpush.xpose.msk.msra.mxu1 %vm216_vm2, %v474_v2  ;;  %v13292_v2 = vld [vmem:[%s14328_s24 + $0x4] sm:$0xf] }
 0x5f0   :  { %510 = vrot.lane.b32.xlu0 %v14398_v12, %s14214_s16 }
 0x64f   :  { %v421_v3 = vpop.xlane.xlu0 %420 }
 0x650   :  { %14023 = vrcp.f32 %v421_v3  ;;  %v9896_v3 = vor.u32 %v13300_v1, %v9895_v0  ;;  %v9996_v1 = vor.u32 %v13312_v57, %v9993_v58  ;;  %v13352_v57 = vld [vmem:[%s14338_s21 + $0xe0] sm:$0xff] }
 0x651   :  { %v13336_v58 = vld [vmem:[%s14338_s21 + $0x60] sm:$0xff] }
 0x656   :  { %v14024_v4 = vpop.eup %14023 }
 0x657   :  { %v423_v5 = vmul.f32 %v14024_v4, %v14022_v63  ;;  %v9972_v63 = vor.u32 %v13309_v61, %v9969_v62  ;;  %v9897_v4 = vld [vmem:[%s14328_s24 + $0x40] sm:$0xf0]  ;;  %v13321_v61 = vld [vmem:[%s14328_s24 + $0xe4] sm:$0xf0]  ;;  %v13313_v62 = vld [vmem:[%s14328_s24 + $0xac] sm:$0xf] }
 0x659   :  { %9887 = vmatmul.msk.f32.vlgmr.msrb.gmra.mxu1 %vm216_vm2, %v423_v5  ;;  %v9903_v5 = vld [vmem:[%s14328_s24 + $0x8] sm:$0xf] }
 0x65a   :  { %1090 = vmatpush.bf16.msrb.mxu1 %v9960_v55  ;;  %v9991_v55 = vld [vmem:[%s14328_s24 + $0xa0] sm:$0xf] }
 0x65b   :  { %v9992_v0 = vor.u32 %v13320_v56, %v9991_v55  ;;  %v13345_v55 = vld [vmem:[%s14338_s21 + $0xa8] sm:$0xff]  ;;  %v13328_v56 = vld [vmem:[%s14338_s21 + $0x20] sm:$0xff] }
 0x65e   :  { %1091 = vmatpush.bf16.msrb.mxu1 %v9896_v3  ;;  %v13304_v3 = vld [vmem:[%s14328_s24 + $0x5c] sm:$0xf0] }
 0x661   :  { %9890 = vmatmul.msk.f32.vlgmr.msra.gmra.mxu1 %vm216_vm2, %v472_v6  ;;  %v13301_v6 = vld [vmem:[%s14328_s24 + $0x44] sm:$0xf0] }
 0x662   :  { %v511_v9 = vpop.permute.xlu0 %510  ;;  %v9904_v10 = vor.u32 %v13301_v6, %v9903_v5  ;;  %v13296_v6 = vld [vmem:[%s14328_s24 + $0x24] sm:$0xf] }
 0x663   :  { %531 = vmatpush.msrb.mxu3 %v511_v9  ;;  %v9900_v9 = vor.u32 %v13292_v2, %v9897_v4  ;;  %v9927_v2 = vld [vmem:[%s14328_s24 + $0x20] sm:$0xf] }
 0x664   :  { %1117 = vmatpush.bf16.msra.mxu2 %v9904_v10  ;;  %v9935_v10 = vld [vmem:[%s14328_s24 + $0x28] sm:$0xf] }
 0x665   :  { %1103 = vmatpush.bf16.msra.mxu3 %v9964_v59  ;;  %v9999_v59 = vld [vmem:[%s14328_s24 + $0xa8] sm:$0xf] }
 0x666   :  { %v10000_v4 = vor.u32 %v13321_v61, %v9999_v59  ;;  %v13344_v59 = vld [vmem:[%s14338_s21 + $0xa0] sm:$0xff]  ;;  %v13327_v61 = vld [vmem:[%s14338_s21 + $0x18] sm:$0xff] }
 0x669   :  { %1104 = vmatpush.bf16.msra.mxu3 %v9900_v9  ;;  %v9929_v9 = vld [vmem:[%s14328_s24 + $0x60] sm:$0xf0] }
 0x6d6   :  { %v447_v13 = vpop.f32.mrf.mxu1 }
 0x6d7   :  { %v450_v14 = vpack.c.bf16 %v447_v13, %v447_v13  ;;  %v9905_v13 = vld [vmem:[%s14328_s24 + $0x48] sm:$0xf0] }
 0x6d9   :  { %9888 = vmatmul.msk.bf16.vlgmr.msrb.gmra.mxu2 %vm216_vm2, %v450_v14  ;;  %v9908_v14 = vor.u32 %v13293_v11, %v9905_v13  ;;  %v13305_v11 = vld [vmem:[%s14328_s24 + $0x64] sm:$0xf0]  ;;  %v13297_v13 = vld [vmem:[%s14328_s24 + $0x2c] sm:$0xf] }
 0x6de   :  { %v496_v12 = vpop.f32.mrf.mxu1 }
 0x6df   :  { %v497_v15 = vadd.f32 %v496_v12, %v14409_v16  ;;  %v210_v16 = vld [vmem:[%s14358_s30 + $0xc] sm:$0xf] }
 0x6e0   :  { %v541_v28 = vsel %vm349_vm3, %v210_v16, 0  ;;  %v9911_v16 = vld [vmem:[%s14328_s24 + $0x10] sm:$0xf] }
 0x6e1   :  { %v499_v17 = vsel %vm216_vm2, %v497_v15, -inf  ;;  %550 = vmatpush.bf16.msra.mxu0 %v541_v28 }
 0x6e2   :  { %500 = vmax.xlane.f32.xlu2 %v499_v17  ;;  %v13318_v17 = vld [vmem:[%s14328_s24 + $0xcc] sm:$0xf0] }
 0x6e5   :  { %1129 = vmatpush.bf16.msrb.mxu0 %v9972_v63  ;;  %v10001_v63 = vld [vmem:[%s14328_s24 + $0xe8] sm:$0xf0] }
 0x6e6   :  { %v10004_v5 = vor.u32 %v13313_v62, %v10001_v63  ;;  %v13351_v62 = vld [vmem:[%s14338_s21 + $0xd8] sm:$0xff] }
 0x6e7   :  { %v13335_v63 = vld [vmem:[%s14338_s21 + $0x58] sm:$0xff] }
 0x6e9   :  { %1130 = vmatpush.bf16.msrb.mxu0 %v9908_v14  ;;  %v9937_v14 = vld [vmem:[%s14328_s24 + $0x68] sm:$0xf0] }
 0x755   :  { %v501_v18 = vpop.xlane.xlu2 %500 }
 0x756   :  { %v502_v19 = vsub.f32 %v497_v15, %v501_v18  ;;  %v9975_v15 = vld [vmem:[%s14328_s24 + $0x90] sm:$0xf]  ;;  %v13310_v18 = vld [vmem:[%s14328_s24 + $0x94] sm:$0xf] }
 0x758   :  { %v503_v20 = vmul.f32 1.442695, %v502_v19 }
 0x75a   :  { %14025 = vpow2.f32 %v503_v20  ;;  %v9976_v20 = vor.u32 %v13318_v17, %v9975_v15  ;;  %v9932_v15 = vor.u32 %v13296_v6, %v9929_v9  ;;  %v9936_v17 = vor.u32 %v13305_v11, %v9935_v10  ;;  %v13333_v6 = vld [vmem:[%s14338_s21 + $0x48] sm:$0xff]  ;;  %v13324_v10 = vld [vmem:[%s14338_s21] sm:$0xff] }
 0x75b   :  { %v13341_v9 = vld [vmem:[%s14338_s21 + $0x88] sm:$0xff]  ;;  %v13348_v11 = vld [vmem:[%s14338_s21 + $0xc0] sm:$0xff] }
 0x75c   :  { %v466_v21 = vpop.f32.mrf.mxu2  ;;  %1142 = vmatpush.bf16.msra.mxu1 %v9976_v20  ;;  %v13322_v20 = vld [vmem:[%s14328_s24 + $0xec] sm:$0xf0] }
 0x75d   :  { %v470_v32 = vadd.f32 %v466_v21, %v382_v31  ;;  %v9977_v21 = vld [vmem:[%s14328_s24 + $0xd0] sm:$0xf0] }
 0x75e   :  { %v13294_v31 = vld [vmem:[%s14328_s24 + $0x14] sm:$0xf] }
 0x760   :  { %v14026_v22 = vpop.eup %14025 }
 0x761   :  { %v505_v23 = vsel %vm216_vm2, %v14026_v22, 0.0 }
 0x762   :  { %506 = vadd.xlane.f32.xlu1 %v505_v23  ;;  %v13319_v23 = vld [vmem:[%s14328_s24 + $0xd4] sm:$0xf0] }
 0x764   :  { %v468_v24 = vpop.f32.mrf.mxu2 }
 0x765   :  { %v9980_v24 = vor.u32 %v13310_v18, %v9977_v21  ;;  %v9940_v18 = vor.u32 %v13297_v13, %v9937_v14  ;;  %v13314_v21 = vld [vmem:[%s14328_s24 + $0xb4] sm:$0xf]  ;;  %v13363_v13 = vld [vmem:[%s14338_s21 + $0x138] sm:$0xff] }
 0x766   :  { %v13387_v14 = vld [vmem:[%s14338_s21 + $0x1f8] sm:$0xff] }
 0x7d5   :  { %v507_v25 = vpop.xlane.xlu1 %506 }
 0x7d6   :  { %14027 = vrcp.f32 %v507_v25 }
 0x7d7   :  { %14029 = vrcp.f32 %v14215_v40 }
 0x7dc   :  { %v14028_v26 = vpop.eup %14027 }
 0x7dd   :  { %v509_v27 = vmul.f32 %v14028_v26, %v14026_v22  ;;  %v14030_v42 = vpop.eup %14029  ;;  %v9983_v22 = vld [vmem:[%s14328_s24 + $0x98] sm:$0xf]  ;;  %v13311_v26 = vld [vmem:[%s14328_s24 + $0x9c] sm:$0xf] }
 0x7de   :  { %v566_v43 = vmul.f32 32.0, %v14030_v42  ;;  %vm570_vm4 = vweird.f32 %v14030_v42  ;;  %v9984_v25 = vor.u32 %v13319_v23, %v9983_v22  ;;  %v10009_v22 = vld [vmem:[%s14328_s24 + $0xf0] sm:$0xf0]  ;;  %v10015_v23 = vld [vmem:[%s14328_s24 + $0xb8] sm:$0xf] }
 0x7df   :  { %9891 = vmatmul.msk.f32.vlgmr.msrb.gmra.mxu3 %vm216_vm2, %v509_v27  ;;  %v9985_v27 = vld [vmem:[%s14328_s24 + $0xd8] sm:$0xf0] }
 0x7e0   :  { %v567_v41 = vsub.f32 1.0, %v566_v43  ;;  %1155 = vmatpush.bf16.msrb.mxu3 %v9980_v24  ;;  %1168 = vmatpush.bf16.msrb.mxu2 %v9984_v25  ;;  %v13323_v24 = vld [vmem:[%s14328_s24 + $0xf4] sm:$0xf0]  ;;  %v13315_v25 = vld [vmem:[%s14328_s24 + $0xbc] sm:$0xf] }
 0x7e2   :  { %v568_v44 = vmul.f32 %v14030_v42, %v567_v41 }
 0x7e4   :  { %v569_v45 = vadd.f32 %v14030_v42, %v568_v44 }
 0x7e6   :  { %v14465_v46 = vsel %vm570_vm4, %v14030_v42, %v569_v45  ;;  %v168_v45 = vld [vmem:[%s14343_s25] sm:$0xf] }
 0x7e7   :  { %v593_v52 = vperm.slane %v168_v45, 1 }
 0x862   :  { %v533_v29 = vpop.f32.mrf.mxu3 }
 0x863   :  { %v536_v30 = vpack.c.bf16 %v533_v29, %v533_v29  ;;  %v9988_v29 = vor.u32 %v13311_v26, %v9985_v27  ;;  %v10017_v26 = vld [vmem:[%s14328_s24 + $0xf8] sm:$0xf0] }
 0x865   :  { %9892 = vmatmul.msk.bf16.vlgmr.msra.gmra.mxu0 %vm216_vm2, %v536_v30  ;;  %v13302_v30 = vld [vmem:[%s14328_s24 + $0x4c] sm:$0xf0] }
 0x866   :  { %1181 = vmatpush.bf16.msra.mxu0 %v9988_v29  ;;  %v13306_v29 = vld [vmem:[%s14328_s24 + $0x6c] sm:$0xf0] }
 0x8e2   :  { %v552_v34 = vpop.f32.mrf.mxu0 }
 0x8e3   :  { %v556_v35 = vadd.f32 %v552_v34, %v470_v32  ;;  %v9912_v32 = vor.u32 %v13302_v30, %v9911_v16  ;;  %v9919_v34 = vld [vmem:[%s14328_s24 + $0x18] sm:$0xf]  ;;  %v10012_v16 = vor.u32 %v13314_v21, %v10009_v22  ;;  %v10016_v30 = vor.u32 %v13323_v24, %v10015_v23  ;;  %v13370_v21 = vld [vmem:[%s14338_s21 + $0x170] sm:$0xff]  ;;  %v13361_v23 = vld [vmem:[%s14338_s21 + $0x128] sm:$0xff] }
 0x8e4   :  { %v13378_v22 = vld [vmem:[%s14338_s21 + $0x1b0] sm:$0xff]  ;;  %v13385_v24 = vld [vmem:[%s14338_s21 + $0x1e8] sm:$0xff] }
 0x8e5   :  { %v560_v36 = vadd.f32 %v13995_v33, %v556_v35  ;;  %v9913_v33 = vld [vmem:[%s14328_s24 + $0x50] sm:$0xf0]  ;;  %v13303_v35 = vld [vmem:[%s14328_s24 + $0x54] sm:$0xf0]  ;;  %1143 = vmatpush.bf16.msra.mxu1 %v9912_v32 }
 0x8e6   :  { %v13298_v32 = vld [vmem:[%s14328_s24 + $0x34] sm:$0xf] }
 0x8e7   :  { %v561_v37 = vadd.f32 %v560_v36, %v14389_v7  ;;  %v9916_v36 = vor.u32 %v13294_v31, %v9913_v33  ;;  %v10020_v31 = vor.u32 %v13315_v25, %v10017_v26  ;;  %v9945_v33 = vld [vmem:[%s14328_s24 + $0x70] sm:$0xf0]  ;;  %v13369_v25 = vld [vmem:[%s14338_s21 + $0x168] sm:$0xff] }
 0x8e8   :  { %v13377_v26 = vld [vmem:[%s14338_s21 + $0x1a8] sm:$0xff] }
 0x8e9   :  { %v562_v38 = vsel %vm190_vm1, %v561_v37, 0.0  ;;  %1156 = vmatpush.bf16.msrb.mxu3 %v9916_v36  ;;  %v13299_v36 = vld [vmem:[%s14328_s24 + $0x3c] sm:$0xf] }
 0x8ea   :  { %563 = vadd.xlane.f32.xlu2 %v562_v38  ;;  %v554_v39 = vpop.f32.mrf.mxu0  ;;  %v13295_v38 = vld [vmem:[%s14328_s24 + $0x1c] sm:$0xf] }
 0x8eb   :  { %v9921_v39 = vld [vmem:[%s14328_s24 + $0x58] sm:$0xf0] }
 0x8ec   :  { %v9924_v40 = vor.u32 %v13295_v38, %v9921_v39  ;;  %v9948_v39 = vor.u32 %v13298_v32, %v9945_v33  ;;  %v13358_v32 = vld [vmem:[%s14338_s21 + $0x110] sm:$0xff] }
 0x8ed   :  { %v13382_v33 = vld [vmem:[%s14338_s21 + $0x1d0] sm:$0xff] }
 0x8ee   :  { %1182 = vmatpush.bf16.msra.mxu0 %v9924_v40 }
 0x95d   :  { %v564_v47 = vpop.xlane.xlu2 %563 }
 0x95e   :  { %v572_v48 = vmul.f32 %v14465_v46, %v564_v47 }
 0x960   :  { %v14468_v49 = vsub.f32 %v561_v37, %v572_v48  ;;  %v9920_v37 = vor.u32 %v13303_v35, %v9919_v34  ;;  %v9951_v34 = vld [vmem:[%s14328_s24 + $0x38] sm:$0xf] }
 0x961   :  { %v13307_v35 = vld [vmem:[%s14328_s24 + $0x74] sm:$0xf0] }
 0x962   :  { %v574_v50 = vmul.f32 %v14468_v49, %v14468_v49  ;;  %1169 = vmatpush.bf16.msrb.mxu2 %v9920_v37  ;;  %v9953_v37 = vld [vmem:[%s14328_s24 + $0x78] sm:$0xf0]  ;;  %v9952_v40 = vor.u32 %v13307_v35, %v9951_v34 }
 0x963   :  { %v13367_v34 = vld [vmem:[%s14338_s21 + $0x158] sm:$0xff] }
 0x964   :  { %v575_v51 = vsel %vm190_vm1, %v574_v50, 0.0  ;;  %v591_v50 = vperm.slane %v168_v45, 0  ;;  %v13347_v45 = vld [vmem:[%s14338_s21 + $0xb8] sm:$0xff] }
 0x965   :  { %576 = vadd.xlane.f32.xlu0 %v575_v51  ;;  %v13375_v35 = vld [vmem:[%s14338_s21 + $0x198] sm:$0xff] }
 0x9d8   :  { %v577_v12 = vpop.xlane.xlu0 %576 }
 0x9d9   :  { %v578_v19 = vmul.f32 %v577_v12, %v14465_v46  ;;  %v9928_v12 = vor.u32 %v13304_v3, %v9927_v2  ;;  %v13350_v2 = vld [vmem:[%s14338_s21 + $0xd0] sm:$0xff] }
 0x9da   :  { %v13334_v3 = vld [vmem:[%s14338_s21 + $0x50] sm:$0xff] }
 0x9db   :  { %v579_v28 = vadd.f32 1e-05, %v578_v19  ;;  %v10007_v19 = vld [vmem:[%s14328_s24 + $0xb0] sm:$0xf] }
 0x9dc   :  { %v10008_v27 = vor.u32 %v13322_v20, %v10007_v19  ;;  %v13362_v19 = vld [vmem:[%s14338_s21 + $0x130] sm:$0xff] }
 0x9dd   :  { %14031 = vrsqrt.f32 %v579_v28  ;;  %vm586_vm6 = vweird.f32 %v579_v28  ;;  %v13386_v20 = vld [vmem:[%s14338_s21 + $0x1f0] sm:$0xff] }
 0x9e3   :  { %v14032_v42 = vpop.eup %14031 }
 0x9e4   :  { %v581_v43 = vmul.f32 %v14032_v42, %v579_v28  ;;  %vm587_vm5 = vweird.f32 %v14032_v42  ;;  %v9943_v28 = vld [vmem:[%s14328_s24 + $0x30] sm:$0xf] }
 0x9e5   :  { %vm588_vm7 = vmor %vm586_vm6, %vm587_vm5  ;;  %v9944_v38 = vor.u32 %v13306_v29, %v9943_v28  ;;  %v13368_v28 = vld [vmem:[%s14338_s21 + $0x160] sm:$0xff] }
 0x9e6   :  { %v582_v41 = vmul.f32 %v14032_v42, %v581_v43  ;;  %v13331_v43 = vld [vmem:[%s14338_s21 + $0x38] sm:$0xff]  ;;  %v13376_v29 = vld [vmem:[%s14338_s21 + $0x1a0] sm:$0xff] }
 0x9e8   :  { %v583_v44 = vmul.f32 0.5, %v582_v41  ;;  %v13355_v41 = vld [vmem:[%s14338_s21 + $0xf8] sm:$0xff] }
 0x9ea   :  { %v584_v47 = vsub.f32 1.5, %v583_v44  ;;  %v13339_v44 = vld [vmem:[%s14338_s21 + $0x78] sm:$0xff] }
 0x9ec   :  { %v585_v48 = vmul.f32 %v14032_v42, %v584_v47  ;;  %v13330_v47 = vld [vmem:[%s14338_s21 + $0x30] sm:$0xff] }
 0x9ee   :  { %v589_v51 = vsel %vm588_vm7, %v14032_v42, %v585_v48  ;;  %v9956_v42 = vor.u32 %v13299_v36, %v9953_v37  ;;  %v13354_v48 = vld [vmem:[%s14338_s21 + $0xf0] sm:$0xff]  ;;  %v13357_v36 = vld [vmem:[%s14338_s21 + $0x108] sm:$0xff] }
 0x9ef   :  { %v590_v53 = vmul.f32 %v589_v51, %v14468_v49  ;;  %v13346_v51 = vld [vmem:[%s14338_s21 + $0xb0] sm:$0xff]  ;;  %v13381_v37 = vld [vmem:[%s14338_s21 + $0x1c8] sm:$0xff] }
 0x9f1   :  { %v592_v54 = vmul.f32 %v591_v50, %v590_v53  ;;  %v13338_v50 = vld [vmem:[%s14338_s21 + $0x70] sm:$0xff]  ;;  %v13353_v53 = vld [vmem:[%s14338_s21 + $0xe8] sm:$0xff] }
 0x9f3   :  { %v14513_v60 = vadd.f32 %v593_v52, %v592_v54  ;;  %v13329_v52 = vld [vmem:[%s14338_s21 + $0x28] sm:$0xff] }
 0x9f4   :  { %v13337_v54 = vld [vmem:[%s14338_s21 + $0x68] sm:$0xff] }
 0x9f5   :  { %v14520_v49 = vpack.c.bf16 %v14513_v60, %v14513_v60 }
 0x9f7   :  { %10021 = vmatmul.msk.bf16.vlgmr.msrb.gmra.mxu1 %vm190_vm1, %v14520_v49  ;;  %10022 = vmatmul.msk.bf16.vlgmr.msra.gmra.mxu3 %vm190_vm1, %v14520_v49 }
 0x9f8   :  { %10023 = vmatmul.msk.bf16.vlgmr.msra.gmra.mxu2 %vm190_vm1, %v14520_v49  ;;  %10024 = vmatmul.msk.bf16.vlgmr.msrb.gmra.mxu0 %vm190_vm1, %v14520_v49 }
 0x9f9   :  { %1194 = vmatpush.bf16.msrb.mxu1 %v9992_v0  ;;  %1207 = vmatpush.bf16.msra.mxu3 %v9996_v1  ;;  %v13343_v0 = vld [vmem:[%s14338_s21 + $0x98] sm:$0xff]  ;;  %v13326_v1 = vld [vmem:[%s14338_s21 + $0x10] sm:$0xff] }
 0x9fa   :  { %1220 = vmatpush.bf16.msra.mxu2 %v10000_v4  ;;  %1233 = vmatpush.bf16.msrb.mxu0 %v10004_v5  ;;  %v13342_v4 = vld [vmem:[%s14338_s21 + $0x90] sm:$0xff]  ;;  %v13325_v5 = vld [vmem:[%s14338_s21 + $0x8] sm:$0xff] }
 0x9fd   :  { %1195 = vmatpush.bf16.msrb.mxu1 %v9928_v12  ;;  %1208 = vmatpush.bf16.msra.mxu3 %v9932_v15  ;;  %v13332_v12 = vld [vmem:[%s14338_s21 + $0x40] sm:$0xff] }
 0x9fe   :  { %1221 = vmatpush.bf16.msra.mxu2 %v9936_v17  ;;  %1234 = vmatpush.bf16.msrb.mxu0 %v9940_v18  ;;  %v13340_v15 = vld [vmem:[%s14338_s21 + $0x80] sm:$0xff]  ;;  %v13371_v17 = vld [vmem:[%s14338_s21 + $0x178] sm:$0xff] }
 0x9ff   :  { %v13379_v18 = vld [vmem:[%s14338_s21 + $0x1b8] sm:$0xff] }
 0xa07   :  { %10025 = vmatmul.msk.bf16.vlgmr.msra.gmra.mxu1 %vm190_vm1, %v14520_v49  ;;  %10026 = vmatmul.msk.bf16.vlgmr.msrb.gmra.mxu3 %vm190_vm1, %v14520_v49 }
 0xa08   :  { %10027 = vmatmul.msk.bf16.vlgmr.msrb.gmra.mxu2 %vm190_vm1, %v14520_v49  ;;  %10028 = vmatmul.msk.bf16.vlgmr.msra.gmra.mxu0 %vm190_vm1, %v14520_v49 }
 0xa09   :  { %1246 = vmatpush.bf16.msra.mxu1 %v10008_v27  ;;  %1259 = vmatpush.bf16.msrb.mxu3 %v10012_v16  ;;  %v13360_v27 = vld [vmem:[%s14338_s21 + $0x120] sm:$0xff] }
 0xa0a   :  { %1272 = vmatpush.bf16.msrb.mxu2 %v10016_v30  ;;  %1285 = vmatpush.bf16.msra.mxu0 %v10020_v31  ;;  %v13384_v16 = vld [vmem:[%s14338_s21 + $0x1e0] sm:$0xff]  ;;  %v13359_v30 = vld [vmem:[%s14338_s21 + $0x118] sm:$0xff] }
 0xa0b   :  { %v13383_v31 = vld [vmem:[%s14338_s21 + $0x1d8] sm:$0xff] }
 0xa0d   :  { %1247 = vmatpush.bf16.msra.mxu1 %v9944_v38  ;;  %1260 = vmatpush.bf16.msrb.mxu3 %v9948_v39  ;;  %v13366_v38 = vld [vmem:[%s14338_s21 + $0x150] sm:$0xff] }
 0xa0e   :  { %1273 = vmatpush.bf16.msrb.mxu2 %v9952_v40  ;;  %1286 = vmatpush.bf16.msra.mxu0 %v9956_v42  ;;  %v13374_v39 = vld [vmem:[%s14338_s21 + $0x190] sm:$0xff]  ;;  %v13356_v40 = vld [vmem:[%s14338_s21 + $0x100] sm:$0xff] }
 0xa0f   :  { %v13380_v42 = vld [vmem:[%s14338_s21 + $0x1c0] sm:$0xff] }
 0xa17   :  { %10029 = vmatmul.msk.bf16.vlgmr.msrb.gmra.mxu1 %vm190_vm1, %v14520_v49  ;;  %10030 = vmatmul.msk.bf16.vlgmr.msra.gmra.mxu3 %vm190_vm1, %v14520_v49 }
 0xa18   :  { %10031 = vmatmul.msk.bf16.vlgmr.msra.gmra.mxu2 %vm190_vm1, %v14520_v49  ;;  %10032 = vmatmul.msk.bf16.vlgmr.msrb.gmra.mxu0 %vm190_vm1, %v14520_v49 }
 0xa19   :  { %2095 = vmatpush.bf16.msrb.mxu1 %v13331_v43  ;;  %2134 = vmatpush.bf16.msrb.mxu0 %v13355_v41  ;;  %v13365_v43 = vld [vmem:[%s14338_s21 + $0x148] sm:$0xff] }
 0xa1a   :  { %2108 = vmatpush.bf16.msra.mxu3 %v13339_v44  ;;  %2121 = vmatpush.bf16.msra.mxu2 %v13347_v45  ;;  %v13373_v41 = vld [vmem:[%s14338_s21 + $0x188] sm:$0xff]  ;;  %v13364_v44 = vld [vmem:[%s14338_s21 + $0x140] sm:$0xff] }
 0xa1b   :  { %v13372_v45 = vld [vmem:[%s14338_s21 + $0x180] sm:$0xff] }
 0xa1d   :  { %2096 = vmatpush.bf16.msrb.mxu1 %v13330_v47  ;;  %2135 = vmatpush.bf16.msrb.mxu0 %v13354_v48  ;;  %v14643_v47 = vld [vmem:[%s14323_s8] sm:$0xff] }
 0xa1e   :  { %2109 = vmatpush.bf16.msra.mxu3 %v13338_v50  ;;  %2122 = vmatpush.bf16.msra.mxu2 %v13346_v51  ;;  %v889_v48 = vperm.slane %v14643_v47, 0  ;;  %v892_v50 = vperm.slane %v14643_v47, 3 }
 0xa21   :  { %2097 = vmatpush.bf16.msrb.mxu1 %v13329_v52  ;;  %2136 = vmatpush.bf16.msrb.mxu0 %v13353_v53 }
 0xa22   :  { %2110 = vmatpush.bf16.msra.mxu3 %v13337_v54  ;;  %2123 = vmatpush.bf16.msra.mxu2 %v13345_v55 }
 0xa25   :  { %2098 = vmatpush.bf16.msrb.mxu1 %v13328_v56  ;;  %2137 = vmatpush.bf16.msrb.mxu0 %v13352_v57  ;;  %v890_v56 = vperm.slane %v14643_v47, 1 }
 0xa26   :  { %2111 = vmatpush.bf16.msra.mxu3 %v13336_v58  ;;  %2124 = vmatpush.bf16.msra.mxu2 %v13344_v59  ;;  %v891_v58 = vperm.slane %v14643_v47, 2  ;;  %v13395_v59 = vld [vmem:[%s14338_s21 + $0x238] sm:$0xff] }
 0xa27   :  { %10033 = vmatmul.msk.bf16.vlgmr.msra.gmra.mxu1 %vm190_vm1, %v14520_v49  ;;  %10034 = vmatmul.msk.bf16.vlgmr.msrb.gmra.mxu3 %vm190_vm1, %v14520_v49 }
 0xa28   :  { %10035 = vmatmul.msk.bf16.vlgmr.msrb.gmra.mxu2 %vm190_vm1, %v14520_v49  ;;  %10036 = vmatmul.msk.bf16.vlgmr.msra.gmra.mxu0 %vm190_vm1, %v14520_v49  ;;  %v13349_v49 = vld [vmem:[%s14338_s21 + $0xc8] sm:$0xff] }
 0xa29   :  { %2099 = vmatpush.bf16.msrb.mxu1 %v13327_v61  ;;  %2138 = vmatpush.bf16.msrb.mxu0 %v13351_v62  ;;  %v13419_v62 = vld [vmem:[%s14338_s21 + $0x2f8] sm:$0xff] }
 0xa2a   :  { %2112 = vmatpush.bf16.msra.mxu3 %v13335_v63  ;;  %2125 = vmatpush.bf16.msra.mxu2 %v13343_v0 }
 0xa2d   :  { %2100 = vmatpush.bf16.msrb.mxu1 %v13326_v1  ;;  %2139 = vmatpush.bf16.msrb.mxu0 %v13350_v2 }
 0xa2e   :  { %2113 = vmatpush.bf16.msra.mxu3 %v13334_v3  ;;  %2126 = vmatpush.bf16.msra.mxu2 %v13342_v4 }
 0xa31   :  { %2101 = vmatpush.bf16.msrb.mxu1 %v13325_v5  ;;  %2140 = vmatpush.bf16.msrb.mxu0 %v13349_v49  ;;  %v13394_v5 = vld [vmem:[%s14338_s21 + $0x230] sm:$0xff] }
 0xa32   :  { %2114 = vmatpush.bf16.msra.mxu3 %v13333_v6  ;;  %2127 = vmatpush.bf16.msra.mxu2 %v13341_v9  ;;  %v13418_v9 = vld [vmem:[%s14338_s21 + $0x2f0] sm:$0xff] }
 0xa35   :  { %2102 = vmatpush.bf16.msrb.mxu1 %v13324_v10  ;;  %2141 = vmatpush.bf16.msrb.mxu0 %v13348_v11  ;;  %v13403_v11 = vld [vmem:[%s14338_s21 + $0x278] sm:$0xff] }
 0xa36   :  { %2115 = vmatpush.bf16.msra.mxu3 %v13332_v12  ;;  %2128 = vmatpush.bf16.msra.mxu2 %v13340_v15  ;;  %v13393_v15 = vld [vmem:[%s14338_s21 + $0x228] sm:$0xff] }
 0xa39   :  { %2147 = vmatpush.bf16.msra.mxu1 %v13363_v13  ;;  %2186 = vmatpush.bf16.msra.mxu0 %v13387_v14  ;;  %v13411_v14 = vld [vmem:[%s14338_s21 + $0x2b8] sm:$0xff] }
 0xa3a   :  { %2160 = vmatpush.bf16.msrb.mxu3 %v13371_v17  ;;  %2173 = vmatpush.bf16.msrb.mxu2 %v13379_v18  ;;  %v13417_v17 = vld [vmem:[%s14338_s21 + $0x2e8] sm:$0xff]  ;;  %v893_v18 = vperm.slane %v14643_v47, 4 }
 0xa3d   :  { %2148 = vmatpush.bf16.msra.mxu1 %v13362_v19  ;;  %2187 = vmatpush.bf16.msra.mxu0 %v13386_v20  ;;  %v896_v20 = vperm.slane %v14643_v47, 7 }
 0xa3e   :  { %2161 = vmatpush.bf16.msrb.mxu3 %v13370_v21  ;;  %2174 = vmatpush.bf16.msrb.mxu2 %v13378_v22  ;;  %v13402_v21 = vld [vmem:[%s14338_s21 + $0x270] sm:$0xff] }
 0xa41   :  { %2149 = vmatpush.bf16.msra.mxu1 %v13361_v23  ;;  %2188 = vmatpush.bf16.msra.mxu0 %v13385_v24  ;;  %v13410_v23 = vld [vmem:[%s14338_s21 + $0x2b0] sm:$0xff] }
 0xa42   :  { %2162 = vmatpush.bf16.msrb.mxu3 %v13369_v25  ;;  %2175 = vmatpush.bf16.msrb.mxu2 %v13377_v26  ;;  %v13392_v25 = vld [vmem:[%s14338_s21 + $0x220] sm:$0xff] }
 0xa45   :  { %2150 = vmatpush.bf16.msra.mxu1 %v13360_v27  ;;  %2189 = vmatpush.bf16.msra.mxu0 %v13384_v16  ;;  %v13416_v16 = vld [vmem:[%s14338_s21 + $0x2e0] sm:$0xff] }
 0xa46   :  { %2163 = vmatpush.bf16.msrb.mxu3 %v13368_v28  ;;  %2176 = vmatpush.bf16.msrb.mxu2 %v13376_v29  ;;  %v13401_v29 = vld [vmem:[%s14338_s21 + $0x268] sm:$0xff] }
 0xa49   :  { %2151 = vmatpush.bf16.msra.mxu1 %v13359_v30  ;;  %2190 = vmatpush.bf16.msra.mxu0 %v13383_v31  ;;  %v13409_v31 = vld [vmem:[%s14338_s21 + $0x2a8] sm:$0xff] }
 0xa4a   :  { %2164 = vmatpush.bf16.msrb.mxu3 %v13367_v34  ;;  %2177 = vmatpush.bf16.msrb.mxu2 %v13375_v35  ;;  %v895_v34 = vperm.slane %v14643_v47, 6  ;;  %v13391_v35 = vld [vmem:[%s14338_s21 + $0x218] sm:$0xff] }
 0xa4d   :  { %2152 = vmatpush.bf16.msra.mxu1 %v13358_v32  ;;  %2191 = vmatpush.bf16.msra.mxu0 %v13382_v33  ;;  %v894_v32 = vperm.slane %v14643_v47, 5  ;;  %v13390_v47 = vld [vmem:[%s14338_s21 + $0x210] sm:$0xff] }
 0xa4e   :  { %2165 = vmatpush.bf16.msrb.mxu3 %v13366_v38  ;;  %2178 = vmatpush.bf16.msrb.mxu2 %v13374_v39 }
 0xa51   :  { %2153 = vmatpush.bf16.msra.mxu1 %v13357_v36  ;;  %2192 = vmatpush.bf16.msra.mxu0 %v13381_v37  ;;  %v13415_v37 = vld [vmem:[%s14338_s21 + $0x2d8] sm:$0xff] }
 0xa52   :  { %2166 = vmatpush.bf16.msrb.mxu3 %v13365_v43  ;;  %2179 = vmatpush.bf16.msrb.mxu2 %v13373_v41  ;;  %v13408_v41 = vld [vmem:[%s14338_s21 + $0x2a0] sm:$0xff] }
 0xa55   :  { %2154 = vmatpush.bf16.msra.mxu1 %v13356_v40  ;;  %2193 = vmatpush.bf16.msra.mxu0 %v13380_v42  ;;  %v13400_v40 = vld [vmem:[%s14338_s21 + $0x260] sm:$0xff] }
 0xa56   :  { %2167 = vmatpush.bf16.msrb.mxu3 %v13364_v44  ;;  %2180 = vmatpush.bf16.msrb.mxu2 %v13372_v45 }
 0xa74   :  { %v1093_v51 = vpop.f32.mrf.mxu1 }
 0xa75   :  { %v1094_v52 = vadd.f32 %v1093_v51, %v889_v48  ;;  %v1132_v53 = vpop.f32.mrf.mxu0  ;;  %v13414_v51 = vld [vmem:[%s14338_s21 + $0x2d0] sm:$0xff] }
 0xa76   :  { %v1133_v54 = vadd.f32 %v1132_v53, %v892_v50  ;;  %v13399_v53 = vld [vmem:[%s14338_s21 + $0x258] sm:$0xff] }
 0xa77   :  { %v1292_v55 = vmax.f32 %v1094_v52, 0.0 }
 0xa78   :  { %v1295_v57 = vmax.f32 %v1133_v54, 0.0  ;;  %v14675_v54 = vld [vmem:[%s14323_s8 + $0x8] sm:$0xff] }
 0xa79   :  { %v1308_v61 = vpack.c.bf16 %v1292_v55, %v1292_v55 }
 0xa7a   :  { %v1311_v63 = vpack.c.bf16 %v1295_v57, %v1295_v57  ;;  %v1106_v0 = vpop.f32.mrf.mxu3 }
 0xa7b   :  { %v1107_v1 = vadd.f32 %v1106_v0, %v890_v56  ;;  %v1119_v2 = vpop.f32.mrf.mxu2  ;;  %2103 = vmatmul.bf16.vlgmr.msrb.gmra.mxu1 %v1308_v61  ;;  %v13407_v56 = vld [vmem:[%s14338_s21 + $0x298] sm:$0xff]  ;;  %v897_v61 = vperm.slane %v14675_v54, 0  ;;  %v13398_v0 = vld [vmem:[%s14338_s21 + $0x250] sm:$0xff] }
 0xa7c   :  { %v1120_v3 = vadd.f32 %v1119_v2, %v891_v58  ;;  %2142 = vmatmul.bf16.vlgmr.msrb.gmra.mxu0 %v1311_v63  ;;  %2199 = vmatpush.bf16.msrb.mxu1 %v13395_v59  ;;  %v1095_v4 = vpop.f32.mrf.mxu1  ;;  %v13389_v58 = vld [vmem:[%s14338_s21 + $0x208] sm:$0xff]  ;;  %v900_v63 = vperm.slane %v14675_v54, 3  ;;  %v13406_v2 = vld [vmem:[%s14338_s21 + $0x290] sm:$0xff] }
 0xa7d   :  { %v1293_v49 = vmax.f32 %v1107_v1, 0.0  ;;  %2238 = vmatpush.bf16.msrb.mxu0 %v13419_v62  ;;  %v1134_v6 = vpop.f32.mrf.mxu0  ;;  %v13413_v59 = vld [vmem:[%s14338_s21 + $0x2c8] sm:$0xff]  ;;  %v13388_v4 = vld [vmem:[%s14338_s21 + $0x200] sm:$0xff] }
 0xa7e   :  { %v1294_v10 = vmax.f32 %v1120_v3, 0.0  ;;  %v13412_v6 = vld [vmem:[%s14338_s21 + $0x2c0] sm:$0xff] }
 0xa7f   :  { %v1309_v13 = vpack.c.bf16 %v1293_v49, %v1293_v49 }
 0xa80   :  { %v1310_v12 = vpack.c.bf16 %v1294_v10, %v1294_v10  ;;  %2200 = vmatpush.bf16.msrb.mxu1 %v13394_v5 }
 0xa81   :  { %2239 = vmatpush.bf16.msrb.mxu0 %v13418_v9  ;;  %2116 = vmatmul.bf16.vlgmr.msra.gmra.mxu3 %v1309_v13  ;;  %v13427_v9 = vld [vmem:[%s14338_s21 + $0x338] sm:$0xff]  ;;  %v13397_v13 = vld [vmem:[%s14338_s21 + $0x248] sm:$0xff] }
 0xa82   :  { %2129 = vmatmul.bf16.vlgmr.msra.gmra.mxu2 %v1310_v12  ;;  %2212 = vmatpush.bf16.msra.mxu3 %v13403_v11  ;;  %v1108_v19 = vpop.f32.mrf.mxu3  ;;  %v13451_v11 = vld [vmem:[%s14338_s21 + $0x3f8] sm:$0xff]  ;;  %v13405_v12 = vld [vmem:[%s14338_s21 + $0x288] sm:$0xff] }
 0xa83   :  { %2225 = vmatpush.bf16.msra.mxu2 %v13411_v14  ;;  %v1121_v22 = vpop.f32.mrf.mxu2 }
 0xa84   :  { %2201 = vmatpush.bf16.msrb.mxu1 %v13393_v15  ;;  %v1145_v24 = vpop.f32.mrf.mxu1  ;;  %v898_v15 = vperm.slane %v14675_v54, 1 }
 0xa85   :  { %2240 = vmatpush.bf16.msrb.mxu0 %v13417_v17  ;;  %v1146_v26 = vadd.f32 %v1145_v24, %v893_v18  ;;  %v1184_v27 = vpop.f32.mrf.mxu0  ;;  %v899_v18 = vperm.slane %v14675_v54, 2  ;;  %v13396_v24 = vld [vmem:[%s14338_s21 + $0x240] sm:$0xff] }
 0xa86   :  { %v1185_v28 = vadd.f32 %v1184_v27, %v896_v20  ;;  %2213 = vmatpush.bf16.msra.mxu3 %v13402_v21  ;;  %v13426_v20 = vld [vmem:[%s14338_s21 + $0x330] sm:$0xff]  ;;  %v13404_v27 = vld [vmem:[%s14338_s21 + $0x280] sm:$0xff] }
 0xa87   :  { %v1296_v30 = vmax.f32 %v1146_v26, 0.0  ;;  %2226 = vmatpush.bf16.msra.mxu2 %v13410_v23  ;;  %v13450_v23 = vld [vmem:[%s14338_s21 + $0x3f0] sm:$0xff] }
 0xa88   :  { %v1299_v33 = vmax.f32 %v1185_v28, 0.0  ;;  %2202 = vmatpush.bf16.msrb.mxu1 %v13392_v25 }
 0xa89   :  { %v1312_v36 = vpack.c.bf16 %v1296_v30, %v1296_v30  ;;  %2241 = vmatpush.bf16.msrb.mxu0 %v13416_v16  ;;  %v13435_v16 = vld [vmem:[%s14338_s21 + $0x378] sm:$0xff] }
 0xa8a   :  { %v1315_v38 = vpack.c.bf16 %v1299_v33, %v1299_v33  ;;  %2214 = vmatpush.bf16.msra.mxu3 %v13401_v29  ;;  %v1158_v39 = vpop.f32.mrf.mxu3  ;;  %v13443_v30 = vld [vmem:[%s14338_s21 + $0x3b8] sm:$0xff]  ;;  %v13425_v33 = vld [vmem:[%s14338_s21 + $0x328] sm:$0xff] }
 0xa8b   :  { %2227 = vmatpush.bf16.msra.mxu2 %v13409_v31  ;;  %v1159_v42 = vadd.f32 %v1158_v39, %v894_v32  ;;  %v1171_v43 = vpop.f32.mrf.mxu2  ;;  %2155 = vmatmul.bf16.vlgmr.msra.gmra.mxu1 %v1312_v36  ;;  %v13442_v39 = vld [vmem:[%s14338_s21 + $0x3b0] sm:$0xff] }
 0xa8c   :  { %v1172_v44 = vadd.f32 %v1171_v43, %v895_v34  ;;  %2194 = vmatmul.bf16.vlgmr.msra.gmra.mxu0 %v1315_v38  ;;  %2203 = vmatpush.bf16.msrb.mxu1 %v13391_v35  ;;  %v1147_v45 = vpop.f32.mrf.mxu1  ;;  %v13449_v35 = vld [vmem:[%s14338_s21 + $0x3e8] sm:$0xff]  ;;  %v13448_v43 = vld [vmem:[%s14338_s21 + $0x3e0] sm:$0xff] }
 0xa8d   :  { %v1297_v48 = vmax.f32 %v1159_v42, 0.0  ;;  %2242 = vmatpush.bf16.msrb.mxu0 %v13415_v37  ;;  %v1186_v50 = vpop.f32.mrf.mxu0  ;;  %v13434_v37 = vld [vmem:[%s14338_s21 + $0x370] sm:$0xff] }
 0xa8e   :  { %v1298_v52 = vmax.f32 %v1172_v44, 0.0  ;;  %2215 = vmatpush.bf16.msra.mxu3 %v13400_v40  ;;  %v13424_v40 = vld [vmem:[%s14338_s21 + $0x320] sm:$0xff]  ;;  %v13433_v44 = vld [vmem:[%s14338_s21 + $0x368] sm:$0xff]  ;;  %v13423_v50 = vld [vmem:[%s14338_s21 + $0x318] sm:$0xff] }
 0xa8f   :  { %v1313_v55 = vpack.c.bf16 %v1297_v48, %v1297_v48  ;;  %2228 = vmatpush.bf16.msra.mxu2 %v13408_v41 }
 0xa90   :  { %v1314_v57 = vpack.c.bf16 %v1298_v52, %v1298_v52  ;;  %2204 = vmatpush.bf16.msrb.mxu1 %v13390_v47  ;;  %v13441_v47 = vld [vmem:[%s14338_s21 + $0x3a8] sm:$0xff]  ;;  %v13432_v52 = vld [vmem:[%s14338_s21 + $0x360] sm:$0xff] }
 0xa91   :  { %2243 = vmatpush.bf16.msrb.mxu0 %v13414_v51  ;;  %2168 = vmatmul.bf16.vlgmr.msrb.gmra.mxu3 %v1313_v55  ;;  %v13447_v51 = vld [vmem:[%s14338_s21 + $0x3d8] sm:$0xff]  ;;  %v13422_v55 = vld [vmem:[%s14338_s21 + $0x310] sm:$0xff] }
 0xa92   :  { %2181 = vmatmul.bf16.vlgmr.msrb.gmra.mxu2 %v1314_v57  ;;  %2216 = vmatpush.bf16.msra.mxu3 %v13399_v53  ;;  %v1160_v62 = vpop.f32.mrf.mxu3  ;;  %v13440_v53 = vld [vmem:[%s14338_s21 + $0x3a0] sm:$0xff] }
 0xa93   :  { %2229 = vmatpush.bf16.msra.mxu2 %v13407_v56  ;;  %v1173_v1 = vpop.f32.mrf.mxu2  ;;  %v901_v56 = vperm.slane %v14675_v54, 4  ;;  %v13431_v62 = vld [vmem:[%s14338_s21 + $0x358] sm:$0xff] }
 0xa94   :  { %2205 = vmatpush.bf16.msrb.mxu1 %v13389_v58  ;;  %v1197_v3 = vpop.f32.mrf.mxu1  ;;  %v13446_v58 = vld [vmem:[%s14338_s21 + $0x3d0] sm:$0xff] }
 0xa95   :  { %2244 = vmatpush.bf16.msrb.mxu0 %v13413_v59  ;;  %v1198_v5 = vadd.f32 %v1197_v3, %v897_v61  ;;  %v1236_v49 = vpop.f32.mrf.mxu0  ;;  %v904_v59 = vperm.slane %v14675_v54, 7 }
 0xa96   :  { %v1237_v10 = vadd.f32 %v1236_v49, %v900_v63  ;;  %2217 = vmatpush.bf16.msra.mxu3 %v13398_v0  ;;  %v13439_v0 = vld [vmem:[%s14338_s21 + $0x398] sm:$0xff]  ;;  %v13430_v49 = vld [vmem:[%s14338_s21 + $0x350] sm:$0xff] }
 0xa97   :  { %v1300_v14 = vmax.f32 %v1198_v5, 0.0  ;;  %2230 = vmatpush.bf16.msra.mxu2 %v13406_v2  ;;  %v13421_v2 = vld [vmem:[%s14338_s21 + $0x308] sm:$0xff] }
 0xa98   :  { %v1303_v17 = vmax.f32 %v1237_v10, 0.0  ;;  %2206 = vmatpush.bf16.msrb.mxu1 %v13388_v4  ;;  %v13445_v4 = vld [vmem:[%s14338_s21 + $0x3c8] sm:$0xff]  ;;  %v903_v10 = vperm.slane %v14675_v54, 6 }
 0xa99   :  { %v1316_v19 = vpack.c.bf16 %v1300_v14, %v1300_v14  ;;  %2245 = vmatpush.bf16.msrb.mxu0 %v13412_v6  ;;  %v902_v6 = vperm.slane %v14675_v54, 5 }
 0xa9a   :  { %v1319_v21 = vpack.c.bf16 %v1303_v17, %v1303_v17  ;;  %2218 = vmatpush.bf16.msra.mxu3 %v13397_v13  ;;  %v1210_v22 = vpop.f32.mrf.mxu3 }
 0xa9b   :  { %2231 = vmatpush.bf16.msra.mxu2 %v13405_v12  ;;  %v1211_v25 = vadd.f32 %v1210_v22, %v898_v15  ;;  %v1223_v26 = vpop.f32.mrf.mxu2  ;;  %2207 = vmatmul.bf16.vlgmr.msrb.gmra.mxu1 %v1316_v19  ;;  %v13444_v12 = vld [vmem:[%s14338_s21 + $0x3c0] sm:$0xff] }
 0xa9c   :  { %2251 = vmatpush.bf16.msra.mxu1 %v13427_v9  ;;  %v1224_v28 = vadd.f32 %v1223_v26, %v899_v18  ;;  %2246 = vmatmul.bf16.vlgmr.msrb.gmra.mxu0 %v1319_v21  ;;  %v1199_v29 = vpop.f32.mrf.mxu1  ;;  %v13438_v9 = vld [vmem:[%s14338_s21 + $0x390] sm:$0xff]  ;;  %v13429_v18 = vld [vmem:[%s14338_s21 + $0x348] sm:$0xff] }
 0xa9d   :  { %2290 = vmatpush.bf16.msra.mxu0 %v13451_v11  ;;  %v1301_v31 = vmax.f32 %v1211_v25, 0.0  ;;  %v1238_v32 = vpop.f32.mrf.mxu0  ;;  %v13420_v11 = vld [vmem:[%s14338_s21 + $0x300] sm:$0xff] }
 0xa9e   :  { %v1302_v34 = vmax.f32 %v1224_v28, 0.0  ;;  %2219 = vmatpush.bf16.msra.mxu3 %v13396_v24  ;;  %v13436_v25 = vld [vmem:[%s14338_s21 + $0x380] sm:$0xff] }
 0xa9f   :  { %v1317_v36 = vpack.c.bf16 %v1301_v31, %v1301_v31  ;;  %2232 = vmatpush.bf16.msra.mxu2 %v13404_v27 }
 0xaa0   :  { %2252 = vmatpush.bf16.msra.mxu1 %v13426_v20  ;;  %v1318_v38 = vpack.c.bf16 %v1302_v34, %v1302_v34  ;;  %v13437_v20 = vld [vmem:[%s14338_s21 + $0x388] sm:$0xff] }
 0xaa1   :  { %2291 = vmatpush.bf16.msra.mxu0 %v13450_v23  ;;  %2220 = vmatmul.bf16.vlgmr.msra.gmra.mxu3 %v1317_v36  ;;  %v13428_v23 = vld [vmem:[%s14338_s21 + $0x340] sm:$0xff] }
 0xaa2   :  { %2264 = vmatpush.bf16.msrb.mxu3 %v13435_v16  ;;  %2233 = vmatmul.bf16.vlgmr.msra.gmra.mxu2 %v1318_v38  ;;  %v1212_v42 = vpop.f32.mrf.mxu3 }
 0xaa3   :  { %2277 = vmatpush.bf16.msrb.mxu2 %v13443_v30  ;;  %v1225_v41 = vpop.f32.mrf.mxu2 }
 0xaa4   :  { %2253 = vmatpush.bf16.msra.mxu1 %v13425_v33  ;;  %v1249_v45 = vpop.f32.mrf.mxu1 }
 0xaa5   :  { %2292 = vmatpush.bf16.msra.mxu0 %v13449_v35  ;;  %v1288_v48 = vpop.f32.mrf.mxu0  ;;  %v1250_v3 = vadd.f32 %v1249_v45, %v901_v56 }
 0xaa6   :  { %2265 = vmatpush.bf16.msrb.mxu3 %v13434_v37  ;;  %v1289_v5 = vadd.f32 %v1288_v48, %v904_v59 }
 0xaa7   :  { %2278 = vmatpush.bf16.msrb.mxu2 %v13442_v39  ;;  %v1304_v13 = vmax.f32 %v1250_v3, 0.0 }
 0xaa8   :  { %2254 = vmatpush.bf16.msra.mxu1 %v13424_v40  ;;  %v1307_v15 = vmax.f32 %v1289_v5, 0.0  ;;  %v13996_v40 = vld [vmem:[%s14333_s14] ss:$0 sm:$0xff] }
 0xaa9   :  { %2293 = vmatpush.bf16.msra.mxu0 %v13448_v43  ;;  %v1320_v22 = vpack.c.bf16 %v1304_v13, %v1304_v13 }
 0xaaa   :  { %2266 = vmatpush.bf16.msrb.mxu3 %v13433_v44  ;;  %v1262_v57 = vpop.f32.mrf.mxu3  ;;  %v1323_v54 = vpack.c.bf16 %v1307_v15, %v1307_v15 }
 0xaab   :  { %2279 = vmatpush.bf16.msrb.mxu2 %v13441_v47  ;;  %v1275_v61 = vpop.f32.mrf.mxu2  ;;  %v1263_v19 = vadd.f32 %v1262_v57, %v902_v6 }
 0xaac   :  { %2255 = vmatpush.bf16.msra.mxu1 %v13423_v50  ;;  %v1251_v63 = vpop.f32.mrf.mxu1  ;;  %v1276_v21 = vadd.f32 %v1275_v61, %v903_v10 }
 0xaad   :  { %2294 = vmatpush.bf16.msra.mxu0 %v13447_v51  ;;  %v1290_v1 = vpop.f32.mrf.mxu0  ;;  %v1305_v24 = vmax.f32 %v1263_v19, 0.0 }
 0xaae   :  { %2267 = vmatpush.bf16.msrb.mxu3 %v13432_v52  ;;  %v1306_v26 = vmax.f32 %v1276_v21, 0.0 }
 0xaaf   :  { %2280 = vmatpush.bf16.msrb.mxu2 %v13440_v53  ;;  %v1321_v27 = vpack.c.bf16 %v1305_v24, %v1305_v24 }
 0xab0   :  { %2256 = vmatpush.bf16.msra.mxu1 %v13422_v55  ;;  %v1322_v16 = vpack.c.bf16 %v1306_v26, %v1306_v26  ;;  %v13452_v26 = vld [vmem:[%s14368_s29 + $0x10] sm:$0xff] }
 0xab1   :  { %2295 = vmatpush.bf16.msra.mxu0 %v13446_v58 }
 0xab2   :  { %2268 = vmatpush.bf16.msrb.mxu3 %v13431_v62  ;;  %v1264_v14 = vpop.f32.mrf.mxu3 }
 0xab3   :  { %2281 = vmatpush.bf16.msrb.mxu2 %v13439_v0  ;;  %v1277_v17 = vpop.f32.mrf.mxu2 }
 0xab4   :  { %2257 = vmatpush.bf16.msra.mxu1 %v13421_v2 }
 0xab5   :  { %2296 = vmatpush.bf16.msra.mxu0 %v13445_v4 }
 0xab6   :  { %2269 = vmatpush.bf16.msrb.mxu3 %v13430_v49 }
 0xab7   :  { %2282 = vmatpush.bf16.msrb.mxu2 %v13438_v9 }
 0xab8   :  { %2258 = vmatpush.bf16.msra.mxu1 %v13420_v11 }
 0xab9   :  { %2297 = vmatpush.bf16.msra.mxu0 %v13444_v12 }
 0xaba   :  { %2270 = vmatpush.bf16.msrb.mxu3 %v13429_v18 }
 0xabb   :  { %2283 = vmatpush.bf16.msrb.mxu2 %v13437_v20  ;;  %2259 = vmatmul.bf16.vlgmr.msra.gmra.mxu1 %v1320_v22 }
 0xabc   :  { %2298 = vmatmul.bf16.vlgmr.msra.gmra.mxu0 %v1323_v54 }
 0xabe   :  { %2271 = vmatpush.bf16.msrb.mxu3 %v13428_v23 }
 0xabf   :  { %2284 = vmatpush.bf16.msrb.mxu2 %v13436_v25  ;;  %v13453_v25 = vld [vmem:[%s14368_s29 + $0x18] sm:$0xff]  ;;  %s15956_s29 = sld [smem:[#allocation6_spill]] }
 0xac0   :  { %2364 = vmatpush.bf16.msrb.mxu1 %v13453_v25 }
 0xac1   :  { %2272 = vmatmul.bf16.vlgmr.msrb.gmra.mxu3 %v1321_v27 }
 0xac2   :  { %2285 = vmatmul.bf16.vlgmr.msrb.gmra.mxu2 %v1322_v16 }
 0xac4   :  { %2365 = vmatpush.bf16.msrb.mxu1 %v13452_v26 }
 0xaf8   :  { %v2104_v28 = vpop.f32.mrf.mxu1 }
 0xaf9   :  { %v2143_v29 = vpop.f32.mrf.mxu0  ;;  %v2105_v41 = vadd.f32 %v13996_v40, %v2104_v28 }
 0xb00   :  { %v2106_v30 = vpop.f32.mrf.mxu1 }
 0xb01   :  { %v2145_v31 = vpop.f32.mrf.mxu0 }
 0xb04   :  { %v2117_v32 = vpop.f32.mrf.mxu3 }
 0xb05   :  { %v2130_v33 = vpop.f32.mrf.mxu2  ;;  %v2118_v47 = vadd.f32 %v2117_v32, %v2105_v41 }
 0xb07   :  { %v2131_v51 = vadd.f32 %v2130_v33, %v2118_v47 }
 0xb08   :  { %v2156_v34 = vpop.f32.mrf.mxu1 }
 0xb09   :  { %v2195_v35 = vpop.f32.mrf.mxu0  ;;  %v2144_v55 = vadd.f32 %v2143_v29, %v2131_v51 }
 0xb0b   :  { %v2157_v58 = vadd.f32 %v2156_v34, %v2144_v55  ;;  %v14139_v34 = vld [vmem:[%s14343_s25] sm:$0xf] }
 0xb0c   :  { %v2119_v36 = vpop.f32.mrf.mxu3 }
 0xb0d   :  { %v2132_v37 = vpop.f32.mrf.mxu2 }
 0xb0e   :  { %v2328_v37 = vperm.slane %v14139_v34, 3 }
 0xb10   :  { %v2158_v38 = vpop.f32.mrf.mxu1 }
 0xb11   :  { %v2197_v39 = vpop.f32.mrf.mxu0 }
 0xb14   :  { %v2169_v42 = vpop.f32.mrf.mxu3 }
 0xb15   :  { %v2182_v43 = vpop.f32.mrf.mxu2  ;;  %v2170_v59 = vadd.f32 %v2169_v42, %v2157_v58  ;;  %v14759_v58 = vld [vmem:[%s14230_s9] sm:$0xff] }
 0xb17   :  { %v2183_v61 = vadd.f32 %v2182_v43, %v2170_v59  ;;  %v13997_v43 = vld [vmem:[%s14363_s3 + $0x1] ss:$0 sm:$0xff]  ;;  %s15958_s3 = sld [smem:[#allocation10_spill]] }
 0xb18   :  { %v2208_v44 = vpop.f32.mrf.mxu1 }
 0xb19   :  { %v2247_v45 = vpop.f32.mrf.mxu0  ;;  %v2196_v0 = vadd.f32 %v2195_v35, %v2183_v61  ;;  %v2326_v35 = vperm.slane %v14139_v34, 2 }
 0xb1b   :  { %v2209_v1 = vadd.f32 %v2208_v44, %v2196_v0 }
 0xb1c   :  { %v2171_v48 = vpop.f32.mrf.mxu3 }
 0xb1d   :  { %v2184_v50 = vpop.f32.mrf.mxu2 }
 0xb20   :  { %v2210_v52 = vpop.f32.mrf.mxu1 }
 0xb21   :  { %v2249_v53 = vpop.f32.mrf.mxu0 }
 0xb24   :  { %v2221_v56 = vpop.f32.mrf.mxu3 }
 0xb25   :  { %v2234_v57 = vpop.f32.mrf.mxu2  ;;  %v2222_v3 = vadd.f32 %v2221_v56, %v2209_v1 }
 0xb27   :  { %v2235_v5 = vadd.f32 %v2234_v57, %v2222_v3 }
 0xb29   :  { %v2248_v6 = vadd.f32 %v2247_v45, %v2235_v5 }
 0xb2c   :  { %v2223_v62 = vpop.f32.mrf.mxu3 }
 0xb2d   :  { %v2236_v63 = vpop.f32.mrf.mxu2 }
 0xb38   :  { %v2260_v2 = vpop.f32.mrf.mxu1 }
 0xb39   :  { %v2299_v4 = vpop.f32.mrf.mxu0  ;;  %v2261_v10 = vadd.f32 %v2260_v2, %v2248_v6 }
 0xb40   :  { %v2262_v49 = vpop.f32.mrf.mxu1 }
 0xb41   :  { %v2301_v9 = vpop.f32.mrf.mxu0 }
 0xb44   :  { %v2273_v11 = vpop.f32.mrf.mxu3 }
 0xb45   :  { %v2274_v13 = vadd.f32 %v2273_v11, %v2261_v10  ;;  %v2286_v14 = vpop.f32.mrf.mxu2 }
 0xb47   :  { %v2287_v12 = vadd.f32 %v2286_v14, %v2274_v13 }
 0xb49   :  { %v2300_v15 = vadd.f32 %v2299_v4, %v2287_v12 }
 0xb4b   :  { %v2303_v17 = vadd.f32 %v2300_v15, %v14513_v60 }
 0xb4c   :  { %v2275_v18 = vpop.f32.mrf.mxu3 }
 0xb4d   :  { %v2288_v19 = vpop.f32.mrf.mxu2  ;;  %v2304_v20 = vsel %vm190_vm1, %v2303_v17, 0.0 }
 0xb4e   :  { %2305 = vadd.xlane.f32.xlu2 %v2304_v20 }
 0xbc1   :  { %v2306_v21 = vpop.xlane.xlu2 %2305 }
 0xbc2   :  { %v2307_v22 = vmul.f32 %v2306_v21, %v14465_v46 }
 0xbc4   :  { %v2308_v54 = vsub.f32 %v2303_v17, %v2307_v22 }
 0xbc6   :  { %v2309_v23 = vmul.f32 %v2308_v54, %v2308_v54 }
 0xbc8   :  { %v2310_v24 = vsel %vm190_vm1, %v2309_v23, 0.0 }
 0xbc9   :  { %2311 = vadd.xlane.f32.xlu1 %v2310_v24 }
 0xc3c   :  { %v2312_v27 = vpop.xlane.xlu1 %2311 }
 0xc3d   :  { %v2313_v60 = vmul.f32 %v2312_v27, %v14465_v46  ;;  %v10565_v27 = vld [vmem:[%s14358_s30 + $0x14] sm:$0xf] }
 0xc3f   :  { %v2314_v16 = vadd.f32 1e-05, %v2313_v60 }
 0xc41   :  { %14033 = vrsqrt.f32 %v2314_v16  ;;  %vm2321_vm9 = vweird.f32 %v2314_v16 }
 0xc47   :  { %v14034_v28 = vpop.eup %14033 }
 0xc48   :  { %v2316_v29 = vmul.f32 %v14034_v28, %v2314_v16  ;;  %vm2322_vm8 = vweird.f32 %v14034_v28 }
 0xc49   :  { %vm2323_vm10 = vmor %vm2321_vm9, %vm2322_vm8 }
 0xc4a   :  { %v2317_v30 = vmul.f32 %v14034_v28, %v2316_v29 }
 0xc4c   :  { %v2318_v31 = vmul.f32 0.5, %v2317_v30 }
 0xc4e   :  { %v2319_v32 = vsub.f32 1.5, %v2318_v31 }
 0xc50   :  { %v2320_v33 = vmul.f32 %v14034_v28, %v2319_v32 }
 0xc52   :  { %v2324_v36 = vsel %vm2323_vm10, %v14034_v28, %v2320_v33  ;;  %v2515_v28 = vsel %vm349_vm3, %v10565_v27, 0  ;;  %v10566_v33 = vld [vmem:[%s14358_s30 + $0x18] sm:$0xf] }
 0xc53   :  { %v2325_v38 = vmul.f32 %v2324_v36, %v2308_v54  ;;  %v2619_v34 = vsel %vm349_vm3, %v10566_v33, 0  ;;  %v10880_v33 = vld [vmem:[%s14328_s24 + $0x140] sm:$0xf0] }
 0xc55   :  { %v2327_v39 = vmul.f32 %v2326_v35, %v2325_v38  ;;  %v10564_v35 = vld [vmem:[%s14358_s30 + $0x10] sm:$0xf] }
 0xc56   :  { %v2534_v36 = vsel %vm349_vm3, %v10564_v35, 0  ;;  %v13463_v35 = vld [vmem:[%s14328_s24 + $0x144] sm:$0xf0] }
 0xc57   :  { %v14737_v40 = vadd.f32 %v2328_v37, %v2327_v39  ;;  %2543 = vmatpush.bf16.msra.mxu1 %v2534_v36 }
 0xc59   :  { %v2337_v42 = vpack.c.bf16 %v14737_v40, %v14737_v40 }
 0xc5b   :  { %10563 = vmatmul.msk.bf16.vlgmr.msrb.gmra.mxu1 %vm190_vm1, %v2337_v42 }
 0xcd8   :  { %v2367_v41 = vpop.f32.mrf.mxu1 }
 0xcd9   :  { %v2368_v44 = vadd.f32 %v13997_v43, %v2367_v41 }
 0xcdb   :  { %2551 = vrot.lane.b32.xlu0 %v2368_v44, %s14210_s2  ;;  %2447 = vrot.lane.b32.xlu1 %v2368_v44, %s14204_s0  ;;  %v2378_v47 = vmul.f32 0.35355338, %v2368_v44 }
 0xcdc   :  { %2380 = vrot.lane.b32.xlu2 %v2368_v44, %s14205_s5 }
 0xce0   :  { %v2369_v45 = vpop.f32.mrf.mxu1 }
 0xce3   :  { %2588 = vrot.lane.b32.xlu0 %v2368_v44, %s14211_s10  ;;  %2549 = vrot.lane.b32.xlu1 %v2378_v47, %s14208_s1 }
 0xce4   :  { %2445 = vrot.lane.b32.xlu2 %v2378_v47, %s14206_s19 }
 0xceb   :  { %2637 = vrot.lane.b32.xlu0 %v2368_v44, %s14213_s11 }
 0xcf3   :  { %2635 = vrot.lane.b32.xlu0 %v2378_v47, %s14212_s7 }
 0xd36   :  { %v2381_v48 = vpop.permute.xlu2 %2380 }
 0xd37   :  { %10569 = vmatpush.xpose.msk.msra.mxu3 %vm216_vm2, %v2381_v48 }
 0xd3a   :  { %10570 = vmatmul.msk.f32.vlgmr.msra.gmra.mxu3 %vm216_vm2, %v2378_v47 }
 0xd3e   :  { %v2446_v52 = vpop.permute.xlu2 %2445 }
 0xd4d   :  { %v2552_v50 = vpop.permute.xlu0 %2551  ;;  %v2448_v51 = vpop.permute.xlu1 %2447 }
 0xd4e   :  { %10572 = vmatpush.xpose.msk.msrb.mxu3 %vm216_vm2, %v2448_v51 }
 0xd51   :  { %10573 = vmatmul.msk.f32.vlgmr.msrb.gmra.mxu3 %vm216_vm2, %v2446_v52 }
 0xd52   :  { %10577 = vmatpush.xpose.msk.msra.mxu3 %vm216_vm2, %v2552_v50 }
 0xd55   :  { %v2589_v53 = vpop.permute.xlu0 %2588  ;;  %v2550_v55 = vpop.permute.xlu1 %2549 }
 0xd56   :  { %2609 = vmatpush.msrb.mxu0 %v2589_v53  ;;  %2628 = vmatpush.bf16.msrb.mxu3 %v2619_v34  ;;  %v10886_v34 = vld [vmem:[%s14328_s24 + $0x108] sm:$0xf] }
 0xd59   :  { %10578 = vmatmul.msk.f32.vlgmr.msra.gmra.mxu3 %vm216_vm2, %v2550_v55 }
 0xd5d   :  { %v2638_v56 = vpop.permute.xlu0 %2637 }
 0xd5e   :  { %10581 = vmatpush.xpose.msk.msra.mxu0 %vm216_vm2, %v2638_v56 }
 0xd65   :  { %v2636_v4 = vpop.permute.xlu0 %2635 }
 0xdbd   :  { %v2404_v57 = vpop.f32.mrf.mxu3 }
 0xdbe   :  { %v2405_v59 = vadd.f32 %v14759_v58, %v2404_v57 }
 0xdc0   :  { %v2407_v61 = vsel %vm216_vm2, %v2405_v59, -inf }
 0xdc1   :  { %2408 = vmax.xlane.f32.xlu0 %v2407_v61 }
 0xdd4   :  { %v2470_v62 = vpop.f32.mrf.mxu3 }
 0xdd5   :  { %2674 = vrot.lane.b32.xlu0 %v2368_v44, %s14214_s16  ;;  %v2471_v2 = vadd.f32 %v14759_v58, %v2470_v62 }
 0xdd7   :  { %v2473_v3 = vsel %vm216_vm2, %v2471_v2, -inf }
 0xddc   :  { %v2574_v63 = vpop.f32.mrf.mxu3 }
 0xddd   :  { %v2575_v0 = vadd.f32 %v14759_v58, %v2574_v63 }
 0xddf   :  { %v2577_v1 = vsel %vm216_vm2, %v2575_v0, -inf }
 0xde0   :  { %2578 = vmax.xlane.f32.xlu2 %v2577_v1  ;;  %v10567_v1 = vld [vmem:[%s14358_s30 + $0x1c] sm:$0xf]  ;;  %s15962_s30 = sld [smem:[#allocation8_spill]] }
 0xde8   :  { %2474 = vmax.xlane.f32.xlu2 %v2473_v3 }
 0xe34   :  { %v2409_v5 = vpop.xlane.xlu0 %2408 }
 0xe35   :  { %v2410_v9 = vsub.f32 %v2405_v59, %v2409_v5 }
 0xe37   :  { %v2411_v11 = vmul.f32 1.442695, %v2410_v9 }
 0xe47   :  { %v2675_v32 = vpop.permute.xlu0 %2674 }
 0xe53   :  { %v2579_v49 = vpop.xlane.xlu2 %2578 }
 0xe54   :  { %v2580_v6 = vsub.f32 %v2575_v0, %v2579_v49 }
 0xe56   :  { %v2581_v10 = vmul.f32 1.442695, %v2580_v6  ;;  %v13998_v6 = vld [vmem:[%s14353_s13 + $0x1] ss:$0 sm:$0xff]  ;;  %s15954_s13 = sld [smem:[#allocation18_spill]] }
 0xe58   :  { %14035 = vpow2.f32 %v2581_v10 }
 0xe59   :  { %14037 = vpow2.f32 %v2411_v11 }
 0xe5b   :  { %v2475_v13 = vpop.xlane.xlu2 %2474 }
 0xe5c   :  { %v2476_v14 = vsub.f32 %v2471_v2, %v2475_v13  ;;  %v2705_v2 = vsel %vm349_vm3, %v10567_v1, 0  ;;  %v10896_v1 = vld [vmem:[%s14328_s24 + $0x150] sm:$0xf0] }
 0xe5d   :  { %2714 = vmatpush.bf16.msrb.mxu1 %v2705_v2  ;;  %v10902_v2 = vld [vmem:[%s14328_s24 + $0x118] sm:$0xf] }
 0xe5e   :  { %v14036_v12 = vpop.eup %14035  ;;  %v2477_v15 = vmul.f32 1.442695, %v2476_v14 }
 0xe5f   :  { %v2583_v17 = vsel %vm216_vm2, %v14036_v12, 0.0  ;;  %v14038_v18 = vpop.eup %14037 }
 0xe60   :  { %14039 = vpow2.f32 %v2477_v15  ;;  %2584 = vadd.xlane.f32.xlu1 %v2583_v17  ;;  %v2413_v21 = vsel %vm216_vm2, %v14038_v18, 0.0 }
 0xe66   :  { %v14040_v19 = vpop.eup %14039 }
 0xe67   :  { %v2479_v20 = vsel %vm216_vm2, %v14040_v19, 0.0 }
 0xe68   :  { %2480 = vadd.xlane.f32.xlu2 %v2479_v20  ;;  %2414 = vadd.xlane.f32.xlu1 %v2413_v21  ;;  %v13478_v21 = vld [vmem:[%s14328_s24 + $0x1bc] sm:$0xf0] }
 0xe80   :  { %2484 = vrot.lane.b32.xlu2 %v2368_v44, %s14207_s6 }
 0xe81   :  { %2418 = vrot.lane.b32.xlu1 %v2368_v44, %s14209_s28 }
 0xed3   :  { %v2585_v22 = vpop.xlane.xlu1 %2584 }
 0xed4   :  { %14041 = vrcp.f32 %v2585_v22  ;;  %v13470_v22 = vld [vmem:[%s14328_s24 + $0x184] sm:$0xf] }
 0xeda   :  { %v14042_v54 = vpop.eup %14041 }
 0xedb   :  { %v2587_v23 = vmul.f32 %v14042_v54, %v14036_v12  ;;  %v2415_v24 = vpop.xlane.xlu1 %2414  ;;  %v2481_v25 = vpop.xlane.xlu2 %2480 }
 0xedc   :  { %14043 = vrcp.f32 %v2415_v24  ;;  %v10950_v24 = vld [vmem:[%s14328_s24 + $0x188] sm:$0xf] }
 0xedd   :  { %10579 = vmatmul.msk.f32.vlgmr.msrb.gmra.mxu0 %vm216_vm2, %v2587_v23  ;;  %14045 = vrcp.f32 %v2481_v25  ;;  %v10944_v23 = vld [vmem:[%s14328_s24 + $0x1c0] sm:$0xf0]  ;;  %v13479_v25 = vld [vmem:[%s14328_s24 + $0x1c4] sm:$0xf0] }
 0xede   :  { %v10951_v27 = vor.u32 %v13479_v25, %v10950_v24  ;;  %v13474_v24 = vld [vmem:[%s14328_s24 + $0x1a4] sm:$0xf] }
 0xedf   :  { %v10976_v25 = vld [vmem:[%s14328_s24 + $0x1e0] sm:$0xf0] }
 0xee0   :  { %3277 = vmatpush.bf16.msra.mxu3 %v10951_v27 }
 0xee2   :  { %v14044_v26 = vpop.eup %14043 }
 0xee3   :  { %v2417_v60 = vmul.f32 %v14044_v26, %v14038_v18  ;;  %v2485_v29 = vpop.permute.xlu2 %2484  ;;  %v14046_v30 = vpop.eup %14045  ;;  %v10947_v26 = vor.u32 %v13470_v22, %v10944_v23  ;;  %v13482_v23 = vld [vmem:[%s14328_s24 + $0x1dc] sm:$0xf0] }
 0xee4   :  { %v2483_v31 = vmul.f32 %v14046_v30, %v14040_v19  ;;  %v13462_v30 = vld [vmem:[%s14328_s24 + $0x13c] sm:$0xf0] }
 0xee5   :  { %10582 = vmatmul.msk.f32.vlgmr.msra.gmra.mxu0 %vm216_vm2, %v2636_v4 }
 0xef3   :  { %v2419_v16 = vpop.permute.xlu1 %2418 }
 0xef4   :  { %2439 = vmatpush.msra.mxu2 %v2419_v16  ;;  %v10952_v16 = vld [vmem:[%s14328_s24 + $0x1c8] sm:$0xf0] }
 0xef5   :  { %10571 = vmatmul.msk.f32.vlgmr.msra.gmra.mxu2 %vm216_vm2, %v2417_v60  ;;  %v13471_v60 = vld [vmem:[%s14328_s24 + $0x18c] sm:$0xf] }
 0xef6   :  { %2505 = vmatpush.msrb.mxu2 %v2485_v29  ;;  %v10878_v29 = vld [vmem:[%s14328_s24 + $0x100] sm:$0xf] }
 0xef8   :  { %2524 = vmatpush.bf16.msra.mxu2 %v2515_v28  ;;  %v10955_v28 = vor.u32 %v13471_v60, %v10952_v16  ;;  %v13483_v60 = vld [vmem:[%s14328_s24 + $0x1e4] sm:$0xf0]  ;;  %v13475_v16 = vld [vmem:[%s14328_s24 + $0x1ac] sm:$0xf] }
 0xefd   :  { %10574 = vmatmul.msk.f32.vlgmr.msrb.gmra.mxu2 %vm216_vm2, %v2483_v31  ;;  %v13454_v31 = vld [vmem:[%s14328_s24 + $0x104] sm:$0xf] }
 0xefe   :  { %2695 = vmatpush.msrb.mxu2 %v2675_v32  ;;  %v10879_v32 = vor.u32 %v13462_v30, %v10878_v29  ;;  %v10883_v36 = vor.u32 %v13454_v31, %v10880_v33  ;;  %v10979_v30 = vor.u32 %v13474_v24, %v10976_v25  ;;  %v10910_v31 = vld [vmem:[%s14328_s24 + $0x120] sm:$0xf] }
 0xeff   :  { %v13514_v24 = vld [vmem:[%s14338_s21 + $0x4e0] sm:$0xff] }
 0xf00   :  { %v13498_v25 = vld [vmem:[%s14338_s21 + $0x460] sm:$0xff] }
 0xf5a   :  { %v2611_v37 = vpop.f32.mrf.mxu0 }
 0xf5b   :  { %v2614_v38 = vpack.c.bf16 %v2611_v37, %v2611_v37  ;;  %v10887_v37 = vor.u32 %v13463_v35, %v10886_v34  ;;  %v13458_v35 = vld [vmem:[%s14328_s24 + $0x124] sm:$0xf] }
 0xf5d   :  { %10580 = vmatmul.msk.bf16.vlgmr.msrb.gmra.mxu3 %vm216_vm2, %v2614_v38  ;;  %v13455_v38 = vld [vmem:[%s14328_s24 + $0x10c] sm:$0xf] }
 0xf5e   :  { %3278 = vmatpush.bf16.msra.mxu3 %v10887_v37  ;;  %v10918_v37 = vld [vmem:[%s14328_s24 + $0x128] sm:$0xf] }
 0xf62   :  { %v2660_v39 = vpop.f32.mrf.mxu0 }
 0xf63   :  { %v2661_v42 = vadd.f32 %v14759_v58, %v2660_v39  ;;  %v10888_v39 = vld [vmem:[%s14328_s24 + $0x148] sm:$0xf0] }
 0xf65   :  { %v2663_v43 = vsel %vm216_vm2, %v2661_v42, -inf }
 0xf66   :  { %2664 = vmax.xlane.f32.xlu1 %v2663_v43 }
 0xf78   :  { %v2441_v41 = vpop.f32.mrf.mxu2 }
 0xf79   :  { %v2444_v44 = vpack.c.bf16 %v2441_v41, %v2441_v41  ;;  %v10958_v41 = vld [vmem:[%s14328_s24 + $0x190] sm:$0xf] }
 0xf7b   :  { %10576 = vmatmul.msk.bf16.vlgmr.msra.gmra.mxu1 %vm216_vm2, %v2444_v44  ;;  %v13480_v44 = vld [vmem:[%s14328_s24 + $0x1cc] sm:$0xf0] }
 0xf7c   :  { %3290 = vmatpush.bf16.msra.mxu1 %v10955_v28  ;;  %v10984_v28 = vld [vmem:[%s14328_s24 + $0x1e8] sm:$0xf0] }
 0xf7d   :  { %v10987_v34 = vor.u32 %v13475_v16, %v10984_v28  ;;  %v13513_v16 = vld [vmem:[%s14338_s21 + $0x4d8] sm:$0xff] }
 0xf7e   :  { %v13497_v28 = vld [vmem:[%s14338_s21 + $0x458] sm:$0xff] }
 0xf80   :  { %v2507_v45 = vpop.f32.mrf.mxu2 }
 0xf81   :  { %v2510_v47 = vpack.c.bf16 %v2507_v45, %v2507_v45  ;;  %v13472_v45 = vld [vmem:[%s14328_s24 + $0x194] sm:$0xf] }
 0xf83   :  { %10575 = vmatmul.msk.bf16.vlgmr.msra.gmra.mxu2 %vm216_vm2, %v2510_v47 }
 0xf84   :  { %3264 = vmatpush.bf16.msra.mxu2 %v10947_v26  ;;  %v10982_v26 = vld [vmem:[%s14328_s24 + $0x1a8] sm:$0xf] }
 0xf85   :  { %v10983_v33 = vor.u32 %v13483_v60, %v10982_v26  ;;  %v13506_v26 = vld [vmem:[%s14338_s21 + $0x4a0] sm:$0xff]  ;;  %v13489_v60 = vld [vmem:[%s14338_s21 + $0x418] sm:$0xff] }
 0xf88   :  { %3265 = vmatpush.bf16.msra.mxu2 %v10883_v36  ;;  %v10912_v36 = vld [vmem:[%s14328_s24 + $0x160] sm:$0xf0] }
 0xfd9   :  { %v2665_v48 = vpop.xlane.xlu1 %2664 }
 0xfda   :  { %v2666_v50 = vsub.f32 %v2661_v42, %v2665_v48  ;;  %v10891_v42 = vor.u32 %v13455_v38, %v10888_v39  ;;  %v10959_v48 = vor.u32 %v13480_v44, %v10958_v41  ;;  %v13467_v38 = vld [vmem:[%s14328_s24 + $0x164] sm:$0xf0]  ;;  %v13459_v39 = vld [vmem:[%s14328_s24 + $0x12c] sm:$0xf]  ;;  %v10915_v41 = vor.u32 %v13458_v35, %v10912_v36 }
 0xfdb   :  { %v10919_v44 = vor.u32 %v13467_v38, %v10918_v37  ;;  %v13495_v35 = vld [vmem:[%s14338_s21 + $0x448] sm:$0xff]  ;;  %v13486_v37 = vld [vmem:[%s14338_s21 + $0x400] sm:$0xff] }
 0xfdc   :  { %v2667_v51 = vmul.f32 1.442695, %v2666_v50  ;;  %3291 = vmatpush.bf16.msra.mxu1 %v10891_v42  ;;  %v10960_v50 = vld [vmem:[%s14328_s24 + $0x1d0] sm:$0xf0]  ;;  %v10920_v42 = vld [vmem:[%s14328_s24 + $0x168] sm:$0xf0] }
 0xfdd   :  { %v13503_v36 = vld [vmem:[%s14338_s21 + $0x488] sm:$0xff]  ;;  %v13510_v38 = vld [vmem:[%s14338_s21 + $0x4c0] sm:$0xff] }
 0xfde   :  { %14047 = vpow2.f32 %v2667_v51  ;;  %v10966_v51 = vld [vmem:[%s14328_s24 + $0x198] sm:$0xf] }
 0xfe0   :  { %v2630_v52 = vpop.f32.mrf.mxu3 }
 0xfe4   :  { %v14048_v53 = vpop.eup %14047 }
 0xfe5   :  { %v2669_v55 = vsel %vm216_vm2, %v14048_v53, 0.0 }
 0xfe6   :  { %2670 = vadd.xlane.f32.xlu2 %v2669_v55 }
 0xfe8   :  { %v2632_v56 = vpop.f32.mrf.mxu3 }
 0xfe9   :  { %v13473_v56 = vld [vmem:[%s14328_s24 + $0x19c] sm:$0xf] }
 0xff8   :  { %v2545_v57 = vpop.f32.mrf.mxu1 }
0x1000   :  { %v2547_v58 = vpop.f32.mrf.mxu1 }
0x1001   :  { %v10894_v58 = vld [vmem:[%s14328_s24 + $0x110] sm:$0xf] }
0x1006   :  { %v2526_v59 = vpop.f32.mrf.mxu2 }
0x1007   :  { %v2546_v5 = vadd.f32 %v2545_v57, %v2526_v59  ;;  %v10968_v57 = vld [vmem:[%s14328_s24 + $0x1d8] sm:$0xf0] }
0x1009   :  { %v2634_v49 = vadd.f32 %v2630_v52, %v2546_v5  ;;  %v13481_v52 = vld [vmem:[%s14328_s24 + $0x1d4] sm:$0xf0] }
0x100a   :  { %v10967_v55 = vor.u32 %v13481_v52, %v10966_v51  ;;  %v10992_v51 = vld [vmem:[%s14328_s24 + $0x1f0] sm:$0xf0]  ;;  %v10998_v52 = vld [vmem:[%s14328_s24 + $0x1b8] sm:$0xf] }
0x100c   :  { %3329 = vmatpush.bf16.msrb.mxu3 %v10967_v55  ;;  %v13477_v55 = vld [vmem:[%s14328_s24 + $0x1bc] sm:$0xf] }
0x100e   :  { %v2528_v61 = vpop.f32.mrf.mxu2 }
0x100f   :  { %v10971_v61 = vor.u32 %v13473_v56, %v10968_v57  ;;  %v11000_v56 = vld [vmem:[%s14328_s24 + $0x1f8] sm:$0xf0] }
0x1059   :  { %v2671_v62 = vpop.xlane.xlu2 %2670 }
0x105a   :  { %14049 = vrcp.f32 %v2671_v62  ;;  %v13464_v62 = vld [vmem:[%s14328_s24 + $0x14c] sm:$0xf0] }
0x1060   :  { %v14050_v63 = vpop.eup %14049 }
0x1061   :  { %v2673_v0 = vmul.f32 %v14050_v63, %v14048_v53  ;;  %v10963_v53 = vor.u32 %v13472_v45, %v10960_v50  ;;  %v13456_v63 = vld [vmem:[%s14328_s24 + $0x114] sm:$0xf]  ;;  %v10923_v45 = vor.u32 %v13459_v39, %v10920_v42  ;;  %v13525_v39 = vld [vmem:[%s14338_s21 + $0x538] sm:$0xff] }
0x1062   :  { %v13476_v50 = vld [vmem:[%s14328_s24 + $0x1b4] sm:$0xf]  ;;  %v13549_v42 = vld [vmem:[%s14338_s21 + $0x5f8] sm:$0xff] }
0x1063   :  { %10583 = vmatmul.msk.f32.vlgmr.msrb.gmra.mxu2 %vm216_vm2, %v2673_v0  ;;  %v10895_v0 = vor.u32 %v13464_v62, %v10894_v58  ;;  %v10995_v58 = vor.u32 %v13476_v50, %v10992_v51  ;;  %v13532_v50 = vld [vmem:[%s14338_s21 + $0x570] sm:$0xff] }
0x1064   :  { %3316 = vmatpush.bf16.msrb.mxu2 %v10963_v53  ;;  %v13485_v53 = vld [vmem:[%s14328_s24 + $0x1f4] sm:$0xf0]  ;;  %v13540_v51 = vld [vmem:[%s14338_s21 + $0x5b0] sm:$0xff] }
0x1065   :  { %v10999_v62 = vor.u32 %v13485_v53, %v10998_v52  ;;  %v13523_v52 = vld [vmem:[%s14338_s21 + $0x528] sm:$0xff] }
0x1066   :  { %v13547_v53 = vld [vmem:[%s14338_s21 + $0x5e8] sm:$0xff] }
0x10e6   :  { %v2697_v3 = vpop.f32.mrf.mxu2 }
0x10e7   :  { %v2700_v4 = vpack.c.bf16 %v2697_v3, %v2697_v3  ;;  %v13465_v3 = vld [vmem:[%s14328_s24 + $0x154] sm:$0xf0] }
0x10e8   :  { %v10903_v5 = vor.u32 %v13465_v3, %v10902_v2  ;;  %v10934_v2 = vld [vmem:[%s14328_s24 + $0x138] sm:$0xf] }
0x10e9   :  { %10584 = vmatmul.msk.bf16.vlgmr.msrb.gmra.mxu1 %vm216_vm2, %v2700_v4  ;;  %v10899_v4 = vor.u32 %v13456_v63, %v10896_v1  ;;  %v11003_v63 = vor.u32 %v13477_v55, %v11000_v56  ;;  %v10928_v1 = vld [vmem:[%s14328_s24 + $0x170] sm:$0xf0]  ;;  %v13469_v3 = vld [vmem:[%s14328_s24 + $0x174] sm:$0xf0]  ;;  %v13531_v55 = vld [vmem:[%s14338_s21 + $0x568] sm:$0xff] }
0x10ea   :  { %3342 = vmatpush.bf16.msrb.mxu1 %v10971_v61  ;;  %3330 = vmatpush.bf16.msrb.mxu3 %v10903_v5  ;;  %v13468_v61 = vld [vmem:[%s14328_s24 + $0x16c] sm:$0xf0]  ;;  %v10936_v5 = vld [vmem:[%s14328_s24 + $0x178] sm:$0xf0]  ;;  %v13539_v56 = vld [vmem:[%s14338_s21 + $0x5a8] sm:$0xff] }
0x10eb   :  { %3317 = vmatpush.bf16.msrb.mxu2 %v10899_v4  ;;  %v13461_v4 = vld [vmem:[%s14328_s24 + $0x13c] sm:$0xf] }
0x1166   :  { %v2716_v9 = vpop.f32.mrf.mxu1 }
0x1167   :  { %v2720_v10 = vadd.f32 %v2716_v9, %v2634_v49  ;;  %v13457_v49 = vld [vmem:[%s14328_s24 + $0x11c] sm:$0xf] }
0x1169   :  { %v2724_v11 = vadd.f32 %v13998_v6, %v2720_v10  ;;  %v10904_v6 = vld [vmem:[%s14328_s24 + $0x158] sm:$0xf0] }
0x116a   :  { %v10907_v9 = vor.u32 %v13457_v49, %v10904_v6 }
0x116b   :  { %v2725_v13 = vadd.f32 %v2724_v11, %v14737_v40  ;;  %v10942_v40 = vld [vmem:[%s14328_s24 + $0x180] sm:$0xf] }
0x116c   :  { %v10943_v54 = vor.u32 %v13478_v21, %v10942_v40  ;;  %3343 = vmatpush.bf16.msrb.mxu1 %v10907_v9  ;;  %v10935_v9 = vor.u32 %v13469_v3, %v10934_v2  ;;  %v13529_v2 = vld [vmem:[%s14338_s21 + $0x558] sm:$0xff] }
0x116d   :  { %v2726_v14 = vsel %vm190_vm1, %v2725_v13, 0.0  ;;  %v13537_v3 = vld [vmem:[%s14338_s21 + $0x598] sm:$0xff] }
0x116e   :  { %2727 = vadd.xlane.f32.xlu0 %v2726_v14  ;;  %v2718_v12 = vpop.f32.mrf.mxu1  ;;  %3251 = vmatpush.bf16.msrb.mxu0 %v10943_v54  ;;  %v10974_v54 = vld [vmem:[%s14328_s24 + $0x1a0] sm:$0xf] }
0x116f   :  { %v10549_v12 = vld [vmem:[%s14343_s25 + $0x4] sm:$0xf]  ;;  %v10975_v29 = vor.u32 %v13482_v23, %v10974_v54  ;;  %v13507_v54 = vld [vmem:[%s14338_s21 + $0x4a8] sm:$0xff] }
0x1170   :  { %v2750_v40 = vperm.slane %v10549_v12, 1  ;;  %v13490_v23 = vld [vmem:[%s14338_s21 + $0x420] sm:$0xff] }
0x1172   :  { %3252 = vmatpush.bf16.msrb.mxu0 %v10879_v32  ;;  %v13466_v32 = vld [vmem:[%s14328_s24 + $0x15c] sm:$0xf0] }
0x1176   :  { %3303 = vmatpush.bf16.msra.mxu0 %v10959_v48  ;;  %v13484_v48 = vld [vmem:[%s14328_s24 + $0x1ec] sm:$0xf0] }
0x117a   :  { %3304 = vmatpush.bf16.msra.mxu0 %v10895_v0  ;;  %v13460_v0 = vld [vmem:[%s14328_s24 + $0x134] sm:$0xf] }
0x117b   :  { %v10931_v6 = vor.u32 %v13460_v0, %v10928_v1  ;;  %v13520_v0 = vld [vmem:[%s14338_s21 + $0x510] sm:$0xff] }
0x117c   :  { %v13544_v1 = vld [vmem:[%s14338_s21 + $0x5d0] sm:$0xff] }
0x11e1   :  { %v2728_v15 = vpop.xlane.xlu0 %2727 }
0x11e2   :  { %v2729_v17 = vmul.f32 %v2728_v15, %v14465_v46 }
0x11e4   :  { %v14797_v18 = vsub.f32 %v2725_v13, %v2729_v17 }
0x11e6   :  { %v2731_v19 = vmul.f32 %v14797_v18, %v14797_v18 }
0x11e8   :  { %v2732_v20 = vsel %vm190_vm1, %v2731_v19, 0.0  ;;  %v2748_v19 = vperm.slane %v10549_v12, 0  ;;  %v13509_v12 = vld [vmem:[%s14338_s21 + $0x4b8] sm:$0xff] }
0x11e9   :  { %2733 = vadd.xlane.f32.xlu1 %v2732_v20 }
0x125c   :  { %v2734_v43 = vpop.xlane.xlu1 %2733 }
0x125d   :  { %v2735_v47 = vmul.f32 %v2734_v43, %v14465_v46  ;;  %v10911_v43 = vor.u32 %v13466_v32, %v10910_v31  ;;  %v13512_v31 = vld [vmem:[%s14338_s21 + $0x4d0] sm:$0xff] }
0x125e   :  { %v13496_v32 = vld [vmem:[%s14338_s21 + $0x450] sm:$0xff] }
0x125f   :  { %v2736_v59 = vadd.f32 1e-05, %v2735_v47  ;;  %v10990_v47 = vld [vmem:[%s14328_s24 + $0x1b0] sm:$0xf] }
0x1260   :  { %v10991_v57 = vor.u32 %v13484_v48, %v10990_v47  ;;  %v13524_v47 = vld [vmem:[%s14338_s21 + $0x530] sm:$0xff] }
0x1261   :  { %14051 = vrsqrt.f32 %v2736_v59  ;;  %vm2743_vm12 = vweird.f32 %v2736_v59  ;;  %v13548_v48 = vld [vmem:[%s14338_s21 + $0x5f0] sm:$0xff] }
0x1267   :  { %v14052_v10 = vpop.eup %14051 }
0x1268   :  { %v2738_v11 = vmul.f32 %v14052_v10, %v2736_v59  ;;  %vm2744_vm11 = vweird.f32 %v14052_v10  ;;  %v10926_v59 = vld [vmem:[%s14328_s24 + $0x130] sm:$0xf]  ;;  %s15961_s24 = sld [smem:[#allocation9_spill]] }
0x1269   :  { %vm2745_vm13 = vmor %vm2743_vm12, %vm2744_vm11  ;;  %v10927_v49 = vor.u32 %v13468_v61, %v10926_v59  ;;  %v13530_v59 = vld [vmem:[%s14338_s21 + $0x560] sm:$0xff] }
0x126a   :  { %v2739_v13 = vmul.f32 %v14052_v10, %v2738_v11  ;;  %v13493_v11 = vld [vmem:[%s14338_s21 + $0x438] sm:$0xff]  ;;  %v13538_v61 = vld [vmem:[%s14338_s21 + $0x5a0] sm:$0xff] }
0x126c   :  { %v2740_v14 = vmul.f32 0.5, %v2739_v13  ;;  %v13517_v13 = vld [vmem:[%s14338_s21 + $0x4f8] sm:$0xff] }
0x126e   :  { %v2741_v15 = vsub.f32 1.5, %v2740_v14  ;;  %v13501_v14 = vld [vmem:[%s14338_s21 + $0x478] sm:$0xff] }
0x1270   :  { %v2742_v17 = vmul.f32 %v14052_v10, %v2741_v15  ;;  %v13492_v15 = vld [vmem:[%s14338_s21 + $0x430] sm:$0xff] }
0x1272   :  { %v2746_v20 = vsel %vm2745_vm13, %v14052_v10, %v2742_v17  ;;  %v10939_v10 = vor.u32 %v13461_v4, %v10936_v5  ;;  %v13516_v17 = vld [vmem:[%s14338_s21 + $0x4f0] sm:$0xff]  ;;  %v13519_v4 = vld [vmem:[%s14338_s21 + $0x508] sm:$0xff] }
0x1273   :  { %v2747_v21 = vmul.f32 %v2746_v20, %v14797_v18  ;;  %v13508_v20 = vld [vmem:[%s14338_s21 + $0x4b0] sm:$0xff]  ;;  %v13543_v5 = vld [vmem:[%s14338_s21 + $0x5c8] sm:$0xff] }
0x1275   :  { %v2749_v22 = vmul.f32 %v2748_v19, %v2747_v21  ;;  %v13500_v19 = vld [vmem:[%s14338_s21 + $0x470] sm:$0xff]  ;;  %v13515_v21 = vld [vmem:[%s14338_s21 + $0x4e8] sm:$0xff] }
0x1277   :  { %v14842_v27 = vadd.f32 %v2750_v40, %v2749_v22  ;;  %v13491_v40 = vld [vmem:[%s14338_s21 + $0x428] sm:$0xff] }
0x1278   :  { %v13499_v22 = vld [vmem:[%s14338_s21 + $0x468] sm:$0xff] }
0x1279   :  { %v14849_v18 = vpack.c.bf16 %v14842_v27, %v14842_v27 }
0x127b   :  { %11004 = vmatmul.msk.bf16.vlgmr.msrb.gmra.mxu0 %vm190_vm1, %v14849_v18  ;;  %11005 = vmatmul.msk.bf16.vlgmr.msra.gmra.mxu2 %vm190_vm1, %v14849_v18 }
0x127c   :  { %11006 = vmatmul.msk.bf16.vlgmr.msra.gmra.mxu3 %vm190_vm1, %v14849_v18  ;;  %11007 = vmatmul.msk.bf16.vlgmr.msra.gmra.mxu1 %vm190_vm1, %v14849_v18 }
0x127d   :  { %3355 = vmatpush.bf16.msrb.mxu0 %v10975_v29  ;;  %3368 = vmatpush.bf16.msra.mxu2 %v10979_v30  ;;  %v13505_v29 = vld [vmem:[%s14338_s21 + $0x498] sm:$0xff]  ;;  %v13488_v30 = vld [vmem:[%s14338_s21 + $0x410] sm:$0xff] }
0x127e   :  { %3381 = vmatpush.bf16.msra.mxu3 %v10983_v33  ;;  %3394 = vmatpush.bf16.msra.mxu1 %v10987_v34  ;;  %v13504_v33 = vld [vmem:[%s14338_s21 + $0x490] sm:$0xff]  ;;  %v13487_v34 = vld [vmem:[%s14338_s21 + $0x408] sm:$0xff] }
0x1281   :  { %3356 = vmatpush.bf16.msrb.mxu0 %v10911_v43  ;;  %3369 = vmatpush.bf16.msra.mxu2 %v10915_v41  ;;  %v13494_v43 = vld [vmem:[%s14338_s21 + $0x440] sm:$0xff] }
0x1282   :  { %3382 = vmatpush.bf16.msra.mxu3 %v10919_v44  ;;  %3395 = vmatpush.bf16.msra.mxu1 %v10923_v45  ;;  %v13502_v41 = vld [vmem:[%s14338_s21 + $0x480] sm:$0xff]  ;;  %v13533_v44 = vld [vmem:[%s14338_s21 + $0x578] sm:$0xff] }
0x1283   :  { %v13541_v45 = vld [vmem:[%s14338_s21 + $0x5b8] sm:$0xff] }
0x128b   :  { %11008 = vmatmul.msk.bf16.vlgmr.msra.gmra.mxu0 %vm190_vm1, %v14849_v18  ;;  %11009 = vmatmul.msk.bf16.vlgmr.msrb.gmra.mxu2 %vm190_vm1, %v14849_v18 }
0x128c   :  { %11010 = vmatmul.msk.bf16.vlgmr.msrb.gmra.mxu3 %vm190_vm1, %v14849_v18  ;;  %11011 = vmatmul.msk.bf16.vlgmr.msrb.gmra.mxu1 %vm190_vm1, %v14849_v18 }
0x128d   :  { %3407 = vmatpush.bf16.msra.mxu0 %v10991_v57  ;;  %3420 = vmatpush.bf16.msrb.mxu2 %v10995_v58  ;;  %v13522_v57 = vld [vmem:[%s14338_s21 + $0x520] sm:$0xff] }
0x128e   :  { %3433 = vmatpush.bf16.msrb.mxu3 %v10999_v62  ;;  %3446 = vmatpush.bf16.msrb.mxu1 %v11003_v63  ;;  %v13546_v58 = vld [vmem:[%s14338_s21 + $0x5e0] sm:$0xff]  ;;  %v13521_v62 = vld [vmem:[%s14338_s21 + $0x518] sm:$0xff] }
0x128f   :  { %v13545_v63 = vld [vmem:[%s14338_s21 + $0x5d8] sm:$0xff] }
0x1291   :  { %3408 = vmatpush.bf16.msra.mxu0 %v10927_v49  ;;  %3421 = vmatpush.bf16.msrb.mxu2 %v10931_v6  ;;  %v13528_v49 = vld [vmem:[%s14338_s21 + $0x550] sm:$0xff] }
0x1292   :  { %3434 = vmatpush.bf16.msrb.mxu3 %v10935_v9  ;;  %3447 = vmatpush.bf16.msrb.mxu1 %v10939_v10  ;;  %v13536_v6 = vld [vmem:[%s14338_s21 + $0x590] sm:$0xff]  ;;  %v13518_v9 = vld [vmem:[%s14338_s21 + $0x500] sm:$0xff] }
0x1293   :  { %v13542_v10 = vld [vmem:[%s14338_s21 + $0x5c0] sm:$0xff] }
0x129b   :  { %11012 = vmatmul.msk.bf16.vlgmr.msrb.gmra.mxu0 %vm190_vm1, %v14849_v18  ;;  %11013 = vmatmul.msk.bf16.vlgmr.msra.gmra.mxu2 %vm190_vm1, %v14849_v18 }
0x129c   :  { %11014 = vmatmul.msk.bf16.vlgmr.msra.gmra.mxu3 %vm190_vm1, %v14849_v18  ;;  %11015 = vmatmul.msk.bf16.vlgmr.msra.gmra.mxu1 %vm190_vm1, %v14849_v18 }
0x129d   :  { %4256 = vmatpush.bf16.msrb.mxu0 %v13493_v11  ;;  %4295 = vmatpush.bf16.msra.mxu1 %v13517_v13  ;;  %v13527_v11 = vld [vmem:[%s14338_s21 + $0x548] sm:$0xff] }
0x129e   :  { %4269 = vmatpush.bf16.msra.mxu2 %v13501_v14  ;;  %4282 = vmatpush.bf16.msra.mxu3 %v13509_v12  ;;  %v13535_v13 = vld [vmem:[%s14338_s21 + $0x588] sm:$0xff]  ;;  %v13526_v14 = vld [vmem:[%s14338_s21 + $0x540] sm:$0xff] }
0x129f   :  { %v13534_v12 = vld [vmem:[%s14338_s21 + $0x580] sm:$0xff] }
0x12a1   :  { %4257 = vmatpush.bf16.msrb.mxu0 %v13492_v15  ;;  %4296 = vmatpush.bf16.msra.mxu1 %v13516_v17  ;;  %v14972_v15 = vld [vmem:[%s14323_s8 + $0x10] sm:$0xff] }
0x12a2   :  { %4270 = vmatpush.bf16.msra.mxu2 %v13500_v19  ;;  %4283 = vmatpush.bf16.msra.mxu3 %v13508_v20  ;;  %v3050_v17 = vperm.slane %v14972_v15, 0  ;;  %v3053_v19 = vperm.slane %v14972_v15, 3 }
0x12a5   :  { %4258 = vmatpush.bf16.msrb.mxu0 %v13491_v40  ;;  %4297 = vmatpush.bf16.msra.mxu1 %v13515_v21 }
0x12a6   :  { %4271 = vmatpush.bf16.msra.mxu2 %v13499_v22  ;;  %4284 = vmatpush.bf16.msra.mxu3 %v13507_v54 }
0x12a9   :  { %4259 = vmatpush.bf16.msrb.mxu0 %v13490_v23  ;;  %4298 = vmatpush.bf16.msra.mxu1 %v13514_v24  ;;  %v3051_v23 = vperm.slane %v14972_v15, 1 }
0x12aa   :  { %4272 = vmatpush.bf16.msra.mxu2 %v13498_v25  ;;  %4285 = vmatpush.bf16.msra.mxu3 %v13506_v26  ;;  %v3052_v25 = vperm.slane %v14972_v15, 2  ;;  %v13557_v26 = vld [vmem:[%s14338_s21 + $0x638] sm:$0xff] }
0x12ab   :  { %11016 = vmatmul.msk.bf16.vlgmr.msra.gmra.mxu0 %vm190_vm1, %v14849_v18  ;;  %11017 = vmatmul.msk.bf16.vlgmr.msrb.gmra.mxu2 %vm190_vm1, %v14849_v18 }
0x12ac   :  { %11018 = vmatmul.msk.bf16.vlgmr.msrb.gmra.mxu3 %vm190_vm1, %v14849_v18  ;;  %11019 = vmatmul.msk.bf16.vlgmr.msrb.gmra.mxu1 %vm190_vm1, %v14849_v18  ;;  %v13511_v18 = vld [vmem:[%s14338_s21 + $0x4c8] sm:$0xff] }
0x12ad   :  { %4260 = vmatpush.bf16.msrb.mxu0 %v13489_v60  ;;  %4299 = vmatpush.bf16.msra.mxu1 %v13513_v16  ;;  %v13581_v16 = vld [vmem:[%s14338_s21 + $0x6f8] sm:$0xff] }
0x12ae   :  { %4273 = vmatpush.bf16.msra.mxu2 %v13497_v28  ;;  %4286 = vmatpush.bf16.msra.mxu3 %v13505_v29 }
0x12b1   :  { %4261 = vmatpush.bf16.msrb.mxu0 %v13488_v30  ;;  %4300 = vmatpush.bf16.msra.mxu1 %v13512_v31 }
0x12b2   :  { %4274 = vmatpush.bf16.msra.mxu2 %v13496_v32  ;;  %4287 = vmatpush.bf16.msra.mxu3 %v13504_v33 }
0x12b5   :  { %4262 = vmatpush.bf16.msrb.mxu0 %v13487_v34  ;;  %4301 = vmatpush.bf16.msra.mxu1 %v13511_v18  ;;  %v13556_v34 = vld [vmem:[%s14338_s21 + $0x630] sm:$0xff] }
0x12b6   :  { %4275 = vmatpush.bf16.msra.mxu2 %v13495_v35  ;;  %4288 = vmatpush.bf16.msra.mxu3 %v13503_v36  ;;  %v13580_v36 = vld [vmem:[%s14338_s21 + $0x6f0] sm:$0xff] }
0x12b9   :  { %4263 = vmatpush.bf16.msrb.mxu0 %v13486_v37  ;;  %4302 = vmatpush.bf16.msra.mxu1 %v13510_v38  ;;  %v13565_v38 = vld [vmem:[%s14338_s21 + $0x678] sm:$0xff] }
0x12ba   :  { %4276 = vmatpush.bf16.msra.mxu2 %v13494_v43  ;;  %4289 = vmatpush.bf16.msra.mxu3 %v13502_v41  ;;  %v13555_v41 = vld [vmem:[%s14338_s21 + $0x628] sm:$0xff] }
0x12bd   :  { %4308 = vmatpush.bf16.msra.mxu0 %v13525_v39  ;;  %4347 = vmatpush.bf16.msrb.mxu1 %v13549_v42  ;;  %v13573_v42 = vld [vmem:[%s14338_s21 + $0x6b8] sm:$0xff] }
0x12be   :  { %4321 = vmatpush.bf16.msrb.mxu2 %v13533_v44  ;;  %4334 = vmatpush.bf16.msrb.mxu3 %v13541_v45  ;;  %v13579_v44 = vld [vmem:[%s14338_s21 + $0x6e8] sm:$0xff]  ;;  %v3054_v45 = vperm.slane %v14972_v15, 4 }
0x12c1   :  { %4309 = vmatpush.bf16.msra.mxu0 %v13524_v47  ;;  %4348 = vmatpush.bf16.msrb.mxu1 %v13548_v48  ;;  %v3057_v48 = vperm.slane %v14972_v15, 7 }
0x12c2   :  { %4322 = vmatpush.bf16.msrb.mxu2 %v13532_v50  ;;  %4335 = vmatpush.bf16.msrb.mxu3 %v13540_v51  ;;  %v13564_v50 = vld [vmem:[%s14338_s21 + $0x670] sm:$0xff] }
0x12c5   :  { %4310 = vmatpush.bf16.msra.mxu0 %v13523_v52  ;;  %4349 = vmatpush.bf16.msrb.mxu1 %v13547_v53  ;;  %v13572_v52 = vld [vmem:[%s14338_s21 + $0x6b0] sm:$0xff] }
0x12c6   :  { %4323 = vmatpush.bf16.msrb.mxu2 %v13531_v55  ;;  %4336 = vmatpush.bf16.msrb.mxu3 %v13539_v56  ;;  %v13554_v55 = vld [vmem:[%s14338_s21 + $0x620] sm:$0xff] }
0x12c9   :  { %4311 = vmatpush.bf16.msra.mxu0 %v13522_v57  ;;  %4350 = vmatpush.bf16.msrb.mxu1 %v13546_v58  ;;  %v13578_v58 = vld [vmem:[%s14338_s21 + $0x6e0] sm:$0xff] }
0x12ca   :  { %4324 = vmatpush.bf16.msrb.mxu2 %v13530_v59  ;;  %4337 = vmatpush.bf16.msrb.mxu3 %v13538_v61  ;;  %v13563_v61 = vld [vmem:[%s14338_s21 + $0x668] sm:$0xff] }
0x12cd   :  { %4312 = vmatpush.bf16.msra.mxu0 %v13521_v62  ;;  %4351 = vmatpush.bf16.msrb.mxu1 %v13545_v63  ;;  %v13571_v63 = vld [vmem:[%s14338_s21 + $0x6a8] sm:$0xff] }
0x12ce   :  { %4325 = vmatpush.bf16.msrb.mxu2 %v13529_v2  ;;  %4338 = vmatpush.bf16.msrb.mxu3 %v13537_v3  ;;  %v3056_v2 = vperm.slane %v14972_v15, 6  ;;  %v13553_v3 = vld [vmem:[%s14338_s21 + $0x618] sm:$0xff] }
0x12d1   :  { %4313 = vmatpush.bf16.msra.mxu0 %v13520_v0  ;;  %4352 = vmatpush.bf16.msrb.mxu1 %v13544_v1  ;;  %v3055_v0 = vperm.slane %v14972_v15, 5  ;;  %v13552_v15 = vld [vmem:[%s14338_s21 + $0x610] sm:$0xff] }
0x12d2   :  { %4326 = vmatpush.bf16.msrb.mxu2 %v13528_v49  ;;  %4339 = vmatpush.bf16.msrb.mxu3 %v13536_v6 }
0x12d5   :  { %4314 = vmatpush.bf16.msra.mxu0 %v13519_v4  ;;  %4353 = vmatpush.bf16.msrb.mxu1 %v13543_v5  ;;  %v13577_v5 = vld [vmem:[%s14338_s21 + $0x6d8] sm:$0xff] }
0x12d6   :  { %4327 = vmatpush.bf16.msrb.mxu2 %v13527_v11  ;;  %4340 = vmatpush.bf16.msrb.mxu3 %v13535_v13  ;;  %v13570_v13 = vld [vmem:[%s14338_s21 + $0x6a0] sm:$0xff] }
0x12d9   :  { %4315 = vmatpush.bf16.msra.mxu0 %v13518_v9  ;;  %4354 = vmatpush.bf16.msrb.mxu1 %v13542_v10  ;;  %v13562_v9 = vld [vmem:[%s14338_s21 + $0x660] sm:$0xff] }
0x12da   :  { %4328 = vmatpush.bf16.msrb.mxu2 %v13526_v14  ;;  %4341 = vmatpush.bf16.msrb.mxu3 %v13534_v12 }
0x12f8   :  { %v3254_v20 = vpop.f32.mrf.mxu0 }
0x12f9   :  { %v3255_v40 = vadd.f32 %v3254_v20, %v3050_v17  ;;  %v3293_v21 = vpop.f32.mrf.mxu1  ;;  %v13576_v20 = vld [vmem:[%s14338_s21 + $0x6d0] sm:$0xff] }
0x12fa   :  { %v3294_v22 = vadd.f32 %v3293_v21, %v3053_v19  ;;  %v13561_v21 = vld [vmem:[%s14338_s21 + $0x658] sm:$0xff] }
0x12fb   :  { %v3453_v54 = vmax.f32 %v3255_v40, 0.0 }
0x12fc   :  { %v3456_v24 = vmax.f32 %v3294_v22, 0.0  ;;  %v15004_v22 = vld [vmem:[%s14323_s8 + $0x18] sm:$0xff]  ;;  %s15959_s8 = sld [smem:[#allocation15_spill]] }
0x12fd   :  { %v3469_v60 = vpack.c.bf16 %v3453_v54, %v3453_v54 }
0x12fe   :  { %v3472_v28 = vpack.c.bf16 %v3456_v24, %v3456_v24  ;;  %v3267_v29 = vpop.f32.mrf.mxu2 }
0x12ff   :  { %v3268_v30 = vadd.f32 %v3267_v29, %v3051_v23  ;;  %v3280_v31 = vpop.f32.mrf.mxu3  ;;  %4264 = vmatmul.bf16.vlgmr.msrb.gmra.mxu0 %v3469_v60  ;;  %v13569_v23 = vld [vmem:[%s14338_s21 + $0x698] sm:$0xff]  ;;  %v3058_v60 = vperm.slane %v15004_v22, 0  ;;  %v13560_v29 = vld [vmem:[%s14338_s21 + $0x650] sm:$0xff] }
0x1300   :  { %v3281_v32 = vadd.f32 %v3280_v31, %v3052_v25  ;;  %4303 = vmatmul.bf16.vlgmr.msra.gmra.mxu1 %v3472_v28  ;;  %4360 = vmatpush.bf16.msrb.mxu0 %v13557_v26  ;;  %v3256_v33 = vpop.f32.mrf.mxu0  ;;  %v13551_v25 = vld [vmem:[%s14338_s21 + $0x608] sm:$0xff]  ;;  %v3061_v28 = vperm.slane %v15004_v22, 3  ;;  %v13568_v31 = vld [vmem:[%s14338_s21 + $0x690] sm:$0xff] }
0x1301   :  { %v3454_v18 = vmax.f32 %v3268_v30, 0.0  ;;  %4399 = vmatpush.bf16.msra.mxu1 %v13581_v16  ;;  %v3295_v35 = vpop.f32.mrf.mxu1  ;;  %v13575_v26 = vld [vmem:[%s14338_s21 + $0x6c8] sm:$0xff]  ;;  %v13550_v33 = vld [vmem:[%s14338_s21 + $0x600] sm:$0xff] }
0x1302   :  { %v3455_v37 = vmax.f32 %v3281_v32, 0.0  ;;  %v13574_v35 = vld [vmem:[%s14338_s21 + $0x6c0] sm:$0xff] }
0x1303   :  { %v3470_v39 = vpack.c.bf16 %v3454_v18, %v3454_v18 }
0x1304   :  { %v3471_v43 = vpack.c.bf16 %v3455_v37, %v3455_v37  ;;  %4361 = vmatpush.bf16.msrb.mxu0 %v13556_v34 }
0x1305   :  { %4400 = vmatpush.bf16.msra.mxu1 %v13580_v36  ;;  %4277 = vmatmul.bf16.vlgmr.msra.gmra.mxu2 %v3470_v39  ;;  %v13589_v36 = vld [vmem:[%s14338_s21 + $0x738] sm:$0xff]  ;;  %v13559_v39 = vld [vmem:[%s14338_s21 + $0x648] sm:$0xff] }
0x1306   :  { %4290 = vmatmul.bf16.vlgmr.msra.gmra.mxu3 %v3471_v43  ;;  %4373 = vmatpush.bf16.msra.mxu2 %v13565_v38  ;;  %v3269_v47 = vpop.f32.mrf.mxu2  ;;  %v13613_v38 = vld [vmem:[%s14338_s21 + $0x7f8] sm:$0xff]  ;;  %v13567_v43 = vld [vmem:[%s14338_s21 + $0x688] sm:$0xff] }
0x1307   :  { %4386 = vmatpush.bf16.msra.mxu3 %v13573_v42  ;;  %v3282_v51 = vpop.f32.mrf.mxu3 }
0x1308   :  { %4362 = vmatpush.bf16.msrb.mxu0 %v13555_v41  ;;  %v3306_v53 = vpop.f32.mrf.mxu0  ;;  %v3059_v41 = vperm.slane %v15004_v22, 1 }
0x1309   :  { %4401 = vmatpush.bf16.msra.mxu1 %v13579_v44  ;;  %v3307_v56 = vadd.f32 %v3306_v53, %v3054_v45  ;;  %v3345_v57 = vpop.f32.mrf.mxu1  ;;  %v3060_v45 = vperm.slane %v15004_v22, 2  ;;  %v13558_v53 = vld [vmem:[%s14338_s21 + $0x640] sm:$0xff] }
0x130a   :  { %v3346_v59 = vadd.f32 %v3345_v57, %v3057_v48  ;;  %4374 = vmatpush.bf16.msra.mxu2 %v13564_v50  ;;  %v13588_v48 = vld [vmem:[%s14338_s21 + $0x730] sm:$0xff]  ;;  %v13566_v57 = vld [vmem:[%s14338_s21 + $0x680] sm:$0xff] }
0x130b   :  { %v3457_v62 = vmax.f32 %v3307_v56, 0.0  ;;  %4387 = vmatpush.bf16.msra.mxu3 %v13572_v52  ;;  %v13612_v52 = vld [vmem:[%s14338_s21 + $0x7f0] sm:$0xff] }
0x130c   :  { %v3460_v1 = vmax.f32 %v3346_v59, 0.0  ;;  %4363 = vmatpush.bf16.msrb.mxu0 %v13554_v55 }
0x130d   :  { %v3473_v4 = vpack.c.bf16 %v3457_v62, %v3457_v62  ;;  %4402 = vmatpush.bf16.msra.mxu1 %v13578_v58  ;;  %v13597_v58 = vld [vmem:[%s14338_s21 + $0x778] sm:$0xff] }
0x130e   :  { %v3476_v49 = vpack.c.bf16 %v3460_v1, %v3460_v1  ;;  %4375 = vmatpush.bf16.msra.mxu2 %v13563_v61  ;;  %v3319_v6 = vpop.f32.mrf.mxu2  ;;  %v13605_v62 = vld [vmem:[%s14338_s21 + $0x7b8] sm:$0xff]  ;;  %v13587_v1 = vld [vmem:[%s14338_s21 + $0x728] sm:$0xff] }
0x130f   :  { %4388 = vmatpush.bf16.msra.mxu3 %v13571_v63  ;;  %v3320_v10 = vadd.f32 %v3319_v6, %v3055_v0  ;;  %v3332_v11 = vpop.f32.mrf.mxu3  ;;  %4316 = vmatmul.bf16.vlgmr.msra.gmra.mxu0 %v3473_v4  ;;  %v13604_v6 = vld [vmem:[%s14338_s21 + $0x7b0] sm:$0xff] }
0x1310   :  { %v3333_v14 = vadd.f32 %v3332_v11, %v3056_v2  ;;  %4355 = vmatmul.bf16.vlgmr.msrb.gmra.mxu1 %v3476_v49  ;;  %4364 = vmatpush.bf16.msrb.mxu0 %v13553_v3  ;;  %v3308_v12 = vpop.f32.mrf.mxu0  ;;  %v13611_v3 = vld [vmem:[%s14338_s21 + $0x7e8] sm:$0xff]  ;;  %v13610_v11 = vld [vmem:[%s14338_s21 + $0x7e0] sm:$0xff] }
0x1311   :  { %v3458_v17 = vmax.f32 %v3320_v10, 0.0  ;;  %4403 = vmatpush.bf16.msra.mxu1 %v13577_v5  ;;  %v3347_v19 = vpop.f32.mrf.mxu1  ;;  %v13596_v5 = vld [vmem:[%s14338_s21 + $0x770] sm:$0xff] }
0x1312   :  { %v3459_v40 = vmax.f32 %v3333_v14, 0.0  ;;  %4376 = vmatpush.bf16.msra.mxu2 %v13562_v9  ;;  %v13586_v9 = vld [vmem:[%s14338_s21 + $0x720] sm:$0xff]  ;;  %v13595_v14 = vld [vmem:[%s14338_s21 + $0x768] sm:$0xff]  ;;  %v13585_v19 = vld [vmem:[%s14338_s21 + $0x718] sm:$0xff] }
0x1313   :  { %v3474_v54 = vpack.c.bf16 %v3458_v17, %v3458_v17  ;;  %4389 = vmatpush.bf16.msra.mxu3 %v13570_v13 }
0x1314   :  { %v3475_v24 = vpack.c.bf16 %v3459_v40, %v3459_v40  ;;  %4365 = vmatpush.bf16.msrb.mxu0 %v13552_v15  ;;  %v13603_v15 = vld [vmem:[%s14338_s21 + $0x7a8] sm:$0xff]  ;;  %v13594_v40 = vld [vmem:[%s14338_s21 + $0x760] sm:$0xff] }
0x1315   :  { %4404 = vmatpush.bf16.msra.mxu1 %v13576_v20  ;;  %4329 = vmatmul.bf16.vlgmr.msrb.gmra.mxu2 %v3474_v54  ;;  %v13609_v20 = vld [vmem:[%s14338_s21 + $0x7d8] sm:$0xff]  ;;  %v13584_v54 = vld [vmem:[%s14338_s21 + $0x710] sm:$0xff] }
0x1316   :  { %4342 = vmatmul.bf16.vlgmr.msrb.gmra.mxu3 %v3475_v24  ;;  %4377 = vmatpush.bf16.msra.mxu2 %v13561_v21  ;;  %v3321_v16 = vpop.f32.mrf.mxu2  ;;  %v13602_v21 = vld [vmem:[%s14338_s21 + $0x7a0] sm:$0xff] }
0x1317   :  { %4390 = vmatpush.bf16.msra.mxu3 %v13569_v23  ;;  %v3334_v30 = vpop.f32.mrf.mxu3  ;;  %v3062_v23 = vperm.slane %v15004_v22, 4  ;;  %v13593_v16 = vld [vmem:[%s14338_s21 + $0x758] sm:$0xff] }
0x1318   :  { %4366 = vmatpush.bf16.msrb.mxu0 %v13551_v25  ;;  %v3358_v32 = vpop.f32.mrf.mxu0  ;;  %v13608_v25 = vld [vmem:[%s14338_s21 + $0x7d0] sm:$0xff] }
0x1319   :  { %4405 = vmatpush.bf16.msra.mxu1 %v13575_v26  ;;  %v3359_v34 = vadd.f32 %v3358_v32, %v3058_v60  ;;  %v3397_v18 = vpop.f32.mrf.mxu1  ;;  %v3065_v26 = vperm.slane %v15004_v22, 7 }
0x131a   :  { %v3398_v37 = vadd.f32 %v3397_v18, %v3061_v28  ;;  %4378 = vmatpush.bf16.msra.mxu2 %v13560_v29  ;;  %v13601_v29 = vld [vmem:[%s14338_s21 + $0x798] sm:$0xff]  ;;  %v13592_v18 = vld [vmem:[%s14338_s21 + $0x750] sm:$0xff] }
0x131b   :  { %v3461_v42 = vmax.f32 %v3359_v34, 0.0  ;;  %4391 = vmatpush.bf16.msra.mxu3 %v13568_v31  ;;  %v13583_v31 = vld [vmem:[%s14338_s21 + $0x708] sm:$0xff] }
0x131c   :  { %v3464_v44 = vmax.f32 %v3398_v37, 0.0  ;;  %4367 = vmatpush.bf16.msrb.mxu0 %v13550_v33  ;;  %v13607_v33 = vld [vmem:[%s14338_s21 + $0x7c8] sm:$0xff]  ;;  %v3064_v37 = vperm.slane %v15004_v22, 6 }
0x131d   :  { %v3477_v47 = vpack.c.bf16 %v3461_v42, %v3461_v42  ;;  %4406 = vmatpush.bf16.msra.mxu1 %v13574_v35  ;;  %v3063_v35 = vperm.slane %v15004_v22, 5 }
0x131e   :  { %v3480_v50 = vpack.c.bf16 %v3464_v44, %v3464_v44  ;;  %4379 = vmatpush.bf16.msra.mxu2 %v13559_v39  ;;  %v3371_v51 = vpop.f32.mrf.mxu2 }
0x131f   :  { %4392 = vmatpush.bf16.msra.mxu3 %v13567_v43  ;;  %v3372_v55 = vadd.f32 %v3371_v51, %v3059_v41  ;;  %v3384_v56 = vpop.f32.mrf.mxu3  ;;  %4368 = vmatmul.bf16.vlgmr.msrb.gmra.mxu0 %v3477_v47  ;;  %v13606_v43 = vld [vmem:[%s14338_s21 + $0x7c0] sm:$0xff]  ;;  %v13615_v41 = vld [vmem:[%s14310_s4 + $0x8] sm:$0xff] }
0x1320   :  { %4412 = vmatpush.bf16.msra.mxu0 %v13589_v36  ;;  %v3385_v59 = vadd.f32 %v3384_v56, %v3060_v45  ;;  %4407 = vmatmul.bf16.vlgmr.msra.gmra.mxu1 %v3480_v50  ;;  %v3360_v61 = vpop.f32.mrf.mxu0  ;;  %v13600_v36 = vld [vmem:[%s14338_s21 + $0x790] sm:$0xff]  ;;  %v13591_v47 = vld [vmem:[%s14338_s21 + $0x748] sm:$0xff] }
0x1321   :  { %4451 = vmatpush.bf16.msrb.mxu1 %v13613_v38  ;;  %v3462_v63 = vmax.f32 %v3372_v55, 0.0  ;;  %v3399_v0 = vpop.f32.mrf.mxu1  ;;  %v13582_v38 = vld [vmem:[%s14338_s21 + $0x700] sm:$0xff]  ;;  %v13599_v50 = vld [vmem:[%s14338_s21 + $0x788] sm:$0xff] }
0x1322   :  { %v3463_v2 = vmax.f32 %v3385_v59, 0.0  ;;  %4380 = vmatpush.bf16.msra.mxu2 %v13558_v53  ;;  %v13590_v55 = vld [vmem:[%s14338_s21 + $0x740] sm:$0xff] }
0x1323   :  { %v3478_v4 = vpack.c.bf16 %v3462_v63, %v3462_v63  ;;  %4393 = vmatpush.bf16.msra.mxu3 %v13566_v57  ;;  %v13598_v57 = vld [vmem:[%s14338_s21 + $0x780] sm:$0xff]  ;;  %s15955_s21 = sld [smem:[#allocation17_spill]] }
0x1324   :  { %4413 = vmatpush.bf16.msra.mxu0 %v13588_v48  ;;  %v3479_v49 = vpack.c.bf16 %v3463_v2, %v3463_v2  ;;  %v13999_v0 = vld [vmem:[%s14333_s14 + $0x1] ss:$0 sm:$0xff]  ;;  %s15960_s14 = sld [smem:[#allocation5_spill]] }
0x1325   :  { %4452 = vmatpush.bf16.msrb.mxu1 %v13612_v52  ;;  %4381 = vmatmul.bf16.vlgmr.msra.gmra.mxu2 %v3478_v4  ;;  %v13614_v52 = vld [vmem:[%s14310_s4] sm:$0xff] }
0x1326   :  { %4425 = vmatpush.bf16.msrb.mxu2 %v13597_v58  ;;  %4394 = vmatmul.bf16.vlgmr.msra.gmra.mxu3 %v3479_v49  ;;  %v3373_v10 = vpop.f32.mrf.mxu2 }
0x1327   :  { %4438 = vmatpush.bf16.msrb.mxu3 %v13605_v62  ;;  %v3386_v13 = vpop.f32.mrf.mxu3 }
0x1328   :  { %4414 = vmatpush.bf16.msra.mxu0 %v13587_v1  ;;  %v3410_v12 = vpop.f32.mrf.mxu0 }
0x1329   :  { %4453 = vmatpush.bf16.msrb.mxu1 %v13611_v3  ;;  %v3449_v17 = vpop.f32.mrf.mxu1  ;;  %v3411_v32 = vadd.f32 %v3410_v12, %v3062_v23 }
0x132a   :  { %4426 = vmatpush.bf16.msrb.mxu2 %v13596_v5  ;;  %v3450_v34 = vadd.f32 %v3449_v17, %v3065_v26 }
0x132b   :  { %4439 = vmatpush.bf16.msrb.mxu3 %v13604_v6  ;;  %v3465_v39 = vmax.f32 %v3411_v32, 0.0 }
0x132c   :  { %4415 = vmatpush.bf16.msra.mxu0 %v13586_v9  ;;  %v3468_v44 = vmax.f32 %v3450_v34, 0.0 }
0x132d   :  { %4454 = vmatpush.bf16.msrb.mxu1 %v13610_v11  ;;  %v3481_v22 = vpack.c.bf16 %v3465_v39, %v3465_v39 }
0x132e   :  { %4427 = vmatpush.bf16.msrb.mxu2 %v13595_v14  ;;  %v3423_v24 = vpop.f32.mrf.mxu2  ;;  %v3484_v53 = vpack.c.bf16 %v3468_v44, %v3468_v44 }
0x132f   :  { %4440 = vmatpush.bf16.msrb.mxu3 %v13603_v15  ;;  %v3436_v60 = vpop.f32.mrf.mxu3  ;;  %v3424_v48 = vadd.f32 %v3423_v24, %v3063_v35 }
0x1330   :  { %4416 = vmatpush.bf16.msra.mxu0 %v13585_v19  ;;  %v3412_v28 = vpop.f32.mrf.mxu0  ;;  %v3437_v51 = vadd.f32 %v3436_v60, %v3064_v37 }
0x1331   :  { %4455 = vmatpush.bf16.msrb.mxu1 %v13609_v20  ;;  %v3451_v30 = vpop.f32.mrf.mxu1  ;;  %v3466_v56 = vmax.f32 %v3424_v48, 0.0 }
0x1332   :  { %4428 = vmatpush.bf16.msrb.mxu2 %v13594_v40  ;;  %v3467_v58 = vmax.f32 %v3437_v51, 0.0 }
0x1333   :  { %4441 = vmatpush.bf16.msrb.mxu3 %v13602_v21  ;;  %v3482_v59 = vpack.c.bf16 %v3466_v56, %v3466_v56 }
0x1334   :  { %4417 = vmatpush.bf16.msra.mxu0 %v13584_v54  ;;  %v3483_v61 = vpack.c.bf16 %v3467_v58, %v3467_v58 }
0x1335   :  { %4456 = vmatpush.bf16.msrb.mxu1 %v13608_v25 }
0x1336   :  { %4429 = vmatpush.bf16.msrb.mxu2 %v13593_v16  ;;  %v3425_v42 = vpop.f32.mrf.mxu2 }
0x1337   :  { %4442 = vmatpush.bf16.msrb.mxu3 %v13601_v29  ;;  %v3438_v45 = vpop.f32.mrf.mxu3 }
0x1338   :  { %4418 = vmatpush.bf16.msra.mxu0 %v13583_v31 }
0x1339   :  { %4457 = vmatpush.bf16.msrb.mxu1 %v13607_v33 }
0x133a   :  { %4430 = vmatpush.bf16.msrb.mxu2 %v13592_v18 }
0x133b   :  { %4443 = vmatpush.bf16.msrb.mxu3 %v13600_v36 }
0x133c   :  { %4419 = vmatpush.bf16.msra.mxu0 %v13582_v38 }
0x133d   :  { %4458 = vmatpush.bf16.msrb.mxu1 %v13606_v43 }
0x133e   :  { %4431 = vmatpush.bf16.msrb.mxu2 %v13591_v47 }
0x133f   :  { %4444 = vmatpush.bf16.msrb.mxu3 %v13599_v50  ;;  %4420 = vmatmul.bf16.vlgmr.msra.gmra.mxu0 %v3481_v22 }
0x1340   :  { %4545 = vmatpush.bf16.msrb.mxu0 %v13615_v41  ;;  %4459 = vmatmul.bf16.vlgmr.msrb.gmra.mxu1 %v3484_v53  ;;  %v14000_v41 = vld [vmem:[%s14305_s27] ss:$0 sm:$0xff] }
0x1342   :  { %4432 = vmatpush.bf16.msrb.mxu2 %v13590_v55 }
0x1343   :  { %4445 = vmatpush.bf16.msrb.mxu3 %v13598_v57 }
0x1344   :  { %4546 = vmatpush.bf16.msrb.mxu0 %v13614_v52 }
0x1345   :  { %4433 = vmatmul.bf16.vlgmr.msrb.gmra.mxu2 %v3482_v59 }
0x1346   :  { %4446 = vmatmul.bf16.vlgmr.msrb.gmra.mxu3 %v3483_v61 }
0x134f   :  { %11540 = vmatmul.msk.bf16.vlgmr.msrb.gmra.mxu0 %vm190_vm1, %v14393_v8 }
0x137c   :  { %v4265_v62 = vpop.f32.mrf.mxu0 }
0x137d   :  { %v4304_v63 = vpop.f32.mrf.mxu1  ;;  %v4266_v3 = vadd.f32 %v13999_v0, %v4265_v62  ;;  %v15083_v62 = vld [vmem:[%s14230_s9] sm:$0xff] }
0x1384   :  { %v4267_v1 = vpop.f32.mrf.mxu0 }
0x1385   :  { %v4306_v2 = vpop.f32.mrf.mxu1 }
0x1388   :  { %v4278_v4 = vpop.f32.mrf.mxu2 }
0x1389   :  { %v4279_v5 = vadd.f32 %v4278_v4, %v4266_v3  ;;  %v4291_v49 = vpop.f32.mrf.mxu3 }
0x138b   :  { %v4292_v6 = vadd.f32 %v4291_v49, %v4279_v5 }
0x138c   :  { %v4317_v9 = vpop.f32.mrf.mxu0 }
0x138d   :  { %v4305_v10 = vadd.f32 %v4304_v63, %v4292_v6  ;;  %v4356_v11 = vpop.f32.mrf.mxu1 }
0x138f   :  { %v4318_v17 = vadd.f32 %v4317_v9, %v4305_v10 }
0x1390   :  { %v4280_v13 = vpop.f32.mrf.mxu2 }
0x1391   :  { %v4293_v14 = vpop.f32.mrf.mxu3 }
0x1394   :  { %v4319_v12 = vpop.f32.mrf.mxu0 }
0x1395   :  { %v4358_v15 = vpop.f32.mrf.mxu1 }
0x1398   :  { %v4330_v19 = vpop.f32.mrf.mxu2 }
0x1399   :  { %v4331_v8 = vadd.f32 %v4330_v19, %v4318_v17  ;;  %v4343_v20 = vpop.f32.mrf.mxu3 }
0x139b   :  { %v4344_v40 = vadd.f32 %v4343_v20, %v4331_v8 }
0x139c   :  { %v4369_v21 = vpop.f32.mrf.mxu0 }
0x139d   :  { %v4357_v54 = vadd.f32 %v4356_v11, %v4344_v40  ;;  %v4408_v23 = vpop.f32.mrf.mxu1 }
0x139f   :  { %v4370_v16 = vadd.f32 %v4369_v21, %v4357_v54 }
0x13a0   :  { %v4332_v24 = vpop.f32.mrf.mxu2 }
0x13a1   :  { %v4345_v25 = vpop.f32.mrf.mxu3 }
0x13a4   :  { %v4371_v26 = vpop.f32.mrf.mxu0 }
0x13a5   :  { %v4410_v60 = vpop.f32.mrf.mxu1 }
0x13a8   :  { %v4382_v28 = vpop.f32.mrf.mxu2 }
0x13a9   :  { %v4383_v29 = vadd.f32 %v4382_v28, %v4370_v16  ;;  %v4395_v30 = vpop.f32.mrf.mxu3 }
0x13ab   :  { %v4396_v31 = vadd.f32 %v4395_v30, %v4383_v29 }
0x13ad   :  { %v4409_v32 = vadd.f32 %v4408_v23, %v4396_v31 }
0x13b0   :  { %v4384_v33 = vpop.f32.mrf.mxu2 }
0x13b1   :  { %v4397_v34 = vpop.f32.mrf.mxu3 }
0x13bc   :  { %v4421_v18 = vpop.f32.mrf.mxu0 }
0x13bd   :  { %v4460_v35 = vpop.f32.mrf.mxu1  ;;  %v4422_v38 = vadd.f32 %v4421_v18, %v4409_v32  ;;  %v4553_v32 = vld [vmem:[%s15954_s13 + $0x4] sm:$0xf] }
0x13be   :  { %v4694_v33 = vsel %vm349_vm3, %v4553_v32, 0 }
0x13c4   :  { %v4423_v36 = vpop.f32.mrf.mxu0 }
0x13c5   :  { %v4462_v37 = vpop.f32.mrf.mxu1 }
0x13c6   :  { %v4554_v37 = vld [vmem:[%s15954_s13 + $0x8] sm:$0xf] }
0x13c8   :  { %v4434_v39 = vpop.f32.mrf.mxu2 }
0x13c9   :  { %v4435_v42 = vadd.f32 %v4434_v39, %v4422_v38  ;;  %v4447_v43 = vpop.f32.mrf.mxu3  ;;  %v4798_v38 = vsel %vm349_vm3, %v4554_v37, 0 }
0x13cb   :  { %v4448_v44 = vadd.f32 %v4447_v43, %v4435_v42 }
0x13cc   :  { %v4548_v45 = vpop.f32.mrf.mxu0 }
0x13cd   :  { %v15063_v47 = vadd.f32 %v4460_v35, %v4448_v44  ;;  %v15065_v48 = vadd.f32 %v14000_v41, %v4548_v45 }
0x13cf   :  { %4626 = vrot.lane.b32.xlu1 %v15065_v48, %s14204_s0  ;;  %4559 = vrot.lane.b32.xlu2 %v15065_v48, %s14205_s5  ;;  %v4557_v50 = vmul.f32 0.35355338, %v15065_v48 }
0x13d0   :  { %v4436_v51 = vpop.f32.mrf.mxu2 }
0x13d1   :  { %v4449_v22 = vpop.f32.mrf.mxu3  ;;  %4624 = vrot.lane.b32.xlu0 %v4557_v50, %s14206_s19 }
0x13d4   :  { %v4550_v52 = vpop.f32.mrf.mxu0 }
0x13d7   :  { %4730 = vrot.lane.b32.xlu2 %v15065_v48, %s14210_s2 }
0x13df   :  { %4728 = vrot.lane.b32.xlu2 %v4557_v50, %s14208_s1 }
0x1429   :  { %v4560_v53 = vpop.permute.xlu2 %4559 }
0x142a   :  { %11541 = vmatpush.xpose.msk.msra.mxu2 %vm216_vm2, %v4560_v53 }
0x142d   :  { %11542 = vmatmul.msk.f32.vlgmr.msra.gmra.mxu2 %vm216_vm2, %v4557_v50 }
0x1431   :  { %v4731_v56 = vpop.permute.xlu2 %4730 }
0x1439   :  { %v4729_v58 = vpop.permute.xlu2 %4728 }
0x1441   :  { %v4627_v55 = vpop.permute.xlu1 %4626 }
0x1442   :  { %11544 = vmatpush.xpose.msk.msrb.mxu2 %vm216_vm2, %v4627_v55 }
0x1443   :  { %v4625_v57 = vpop.permute.xlu0 %4624 }
0x1445   :  { %11545 = vmatmul.msk.f32.vlgmr.msrb.gmra.mxu2 %vm216_vm2, %v4625_v57 }
0x1446   :  { %11549 = vmatpush.xpose.msk.msra.mxu2 %vm216_vm2, %v4731_v56 }
0x144a   :  { %4807 = vmatpush.bf16.msrb.mxu2 %v4798_v38 }
0x144d   :  { %11550 = vmatmul.msk.f32.vlgmr.msra.gmra.mxu2 %vm216_vm2, %v4729_v58 }
0x14b0   :  { %v4583_v59 = vpop.f32.mrf.mxu2 }
0x14b1   :  { %v4584_v4 = vadd.f32 %v15083_v62, %v4583_v59 }
0x14b3   :  { %v4586_v5 = vsel %vm216_vm2, %v4584_v4, -inf }
0x14c8   :  { %v4649_v61 = vpop.f32.mrf.mxu2 }
0x14c9   :  { %v4650_v63 = vadd.f32 %v15083_v62, %v4649_v61 }
0x14cb   :  { %v4652_v0 = vsel %vm216_vm2, %v4650_v63, -inf }
0x14cc   :  { %4653 = vmax.xlane.f32.xlu1 %v4652_v0 }
0x14d0   :  { %v4753_v1 = vpop.f32.mrf.mxu2 }
0x14d1   :  { %v4754_v2 = vadd.f32 %v15083_v62, %v4753_v1  ;;  %v4464_v1 = vadd.f32 %v15063_v47, %v14842_v27  ;;  %v4555_v27 = vld [vmem:[%s15954_s13 + $0xc] sm:$0xf] }
0x14d2   :  { %v4884_v47 = vsel %vm349_vm3, %v4555_v27, 0 }
0x14d3   :  { %v4756_v3 = vsel %vm216_vm2, %v4754_v2, -inf }
0x14d4   :  { %4757 = vmax.xlane.f32.xlu2 %v4756_v3 }
0x14ec   :  { %4663 = vrot.lane.b32.xlu2 %v15065_v48, %s14207_s6 }
0x1515   :  { %4587 = vmax.xlane.f32.xlu2 %v4586_v5 }
0x152d   :  { %4597 = vrot.lane.b32.xlu2 %v15065_v48, %s14209_s28 }
0x153f   :  { %v4654_v49 = vpop.xlane.xlu1 %4653 }
0x1540   :  { %v4655_v6 = vsub.f32 %v4650_v63, %v4654_v49 }
0x1542   :  { %v4656_v9 = vmul.f32 1.442695, %v4655_v6 }
0x1544   :  { %14053 = vpow2.f32 %v4656_v9 }
0x1547   :  { %v4758_v10 = vpop.xlane.xlu2 %4757 }
0x1548   :  { %v4759_v11 = vsub.f32 %v4754_v2, %v4758_v10  ;;  %v4465_v2 = vsel %vm190_vm1, %v4464_v1, 0.0 }
0x154a   :  { %v14054_v13 = vpop.eup %14053  ;;  %v4760_v14 = vmul.f32 1.442695, %v4759_v11 }
0x154b   :  { %v4658_v12 = vsel %vm216_vm2, %v14054_v13, 0.0 }
0x154c   :  { %14055 = vpow2.f32 %v4760_v14  ;;  %4659 = vadd.xlane.f32.xlu0 %v4658_v12 }
0x154f   :  { %v4664_v15 = vpop.permute.xlu2 %4663 }
0x1550   :  { %4684 = vmatpush.msra.mxu1 %v4664_v15 }
0x1552   :  { %v14056_v17 = vpop.eup %14055 }
0x1553   :  { %v4762_v19 = vsel %vm216_vm2, %v14056_v17, 0.0 }
0x1554   :  { %4763 = vadd.xlane.f32.xlu1 %v4762_v19 }
0x1560   :  { %4816 = vrot.lane.b32.xlu0 %v15065_v48, %s14213_s11 }
0x1568   :  { %4814 = vrot.lane.b32.xlu0 %v4557_v50, %s14212_s7  ;;  %v4552_v50 = vld [vmem:[%s15954_s13] sm:$0xf] }
0x1569   :  { %v4713_v51 = vsel %vm349_vm3, %v4552_v50, 0 }
0x156a   :  { %4722 = vmatpush.bf16.msra.mxu0 %v4713_v51 }
0x156d   :  { %4767 = vrot.lane.b32.xlu1 %v15065_v48, %s14211_s10 }
0x156e   :  { %4893 = vmatpush.bf16.msrb.mxu0 %v4884_v47 }
0x1588   :  { %v4588_v8 = vpop.xlane.xlu2 %4587 }
0x1589   :  { %v4589_v20 = vsub.f32 %v4584_v4, %v4588_v8 }
0x158b   :  { %v4590_v40 = vmul.f32 1.442695, %v4589_v20 }
0x158d   :  { %14057 = vpow2.f32 %v4590_v40 }
0x1590   :  { %v4598_v21 = vpop.permute.xlu2 %4597 }
0x1591   :  { %4618 = vmatpush.msra.mxu3 %v4598_v21 }
0x1593   :  { %v14058_v54 = vpop.eup %14057  ;;  %4703 = vmatpush.bf16.msrb.mxu3 %v4694_v33 }
0x1594   :  { %v4592_v23 = vsel %vm216_vm2, %v14058_v54, 0.0 }
0x1595   :  { %4593 = vadd.xlane.f32.xlu0 %v4592_v23 }
0x15a9   :  { %4853 = vrot.lane.b32.xlu0 %v15065_v48, %s14214_s16 }
0x15bf   :  { %v4660_v24 = vpop.xlane.xlu0 %4659 }
0x15c0   :  { %14059 = vrcp.f32 %v4660_v24 }
0x15c6   :  { %v14060_v25 = vpop.eup %14059 }
0x15c7   :  { %v4662_v26 = vmul.f32 %v14060_v25, %v14054_v13  ;;  %v4764_v60 = vpop.xlane.xlu1 %4763  ;;  %v14142_v25 = vld [vmem:[%s14343_s25 + $0x4] sm:$0xf]  ;;  %s15957_s25 = sld [smem:[#allocation19_spill]] }
0x15c8   :  { %14061 = vrcp.f32 %v4764_v60 }
0x15c9   :  { %11546 = vmatmul.msk.f32.vlgmr.msra.gmra.mxu1 %vm216_vm2, %v4662_v26  ;;  %v4487_v26 = vperm.slane %v14142_v25, 2 }
0x15ce   :  { %v14062_v16 = vpop.eup %14061 }
0x15cf   :  { %v4766_v29 = vmul.f32 %v14062_v16, %v14056_v17 }
0x15d2   :  { %v4817_v28 = vpop.permute.xlu0 %4816 }
0x15da   :  { %v4815_v31 = vpop.permute.xlu0 %4814 }
0x15df   :  { %v4768_v30 = vpop.permute.xlu1 %4767 }
0x15e0   :  { %4788 = vmatpush.msrb.mxu1 %v4768_v30 }
0x15e1   :  { %11551 = vmatmul.msk.f32.vlgmr.msrb.gmra.mxu1 %vm216_vm2, %v4766_v29 }
0x15e2   :  { %11553 = vmatpush.xpose.msk.msra.mxu1 %vm216_vm2, %v4817_v28  ;;  %v4489_v28 = vperm.slane %v14142_v25, 3 }
0x15e9   :  { %11554 = vmatmul.msk.f32.vlgmr.msra.gmra.mxu1 %vm216_vm2, %v4815_v31 }
0x1608   :  { %v4594_v34 = vpop.xlane.xlu0 %4593 }
0x1609   :  { %14063 = vrcp.f32 %v4594_v34  ;;  %v14001_v34 = vld [vmem:[%s15955_s21] ss:$0 sm:$0xff] }
0x160f   :  { %v14064_v18 = vpop.eup %14063 }
0x1610   :  { %v4596_v35 = vmul.f32 %v14064_v18, %v14058_v54 }
0x1612   :  { %11543 = vmatmul.msk.f32.vlgmr.msra.gmra.mxu3 %vm216_vm2, %v4596_v35 }
0x161b   :  { %v4854_v36 = vpop.permute.xlu0 %4853 }
0x161c   :  { %4874 = vmatpush.msra.mxu3 %v4854_v36 }
0x1646   :  { %v4686_v39 = vpop.f32.mrf.mxu1 }
0x1647   :  { %v4689_v42 = vpack.c.bf16 %v4686_v39, %v4686_v39 }
0x1649   :  { %11547 = vmatmul.msk.bf16.vlgmr.msrb.gmra.mxu3 %vm216_vm2, %v4689_v42 }
0x165e   :  { %v4790_v43 = vpop.f32.mrf.mxu1 }
0x165f   :  { %v4793_v41 = vpack.c.bf16 %v4790_v43, %v4790_v43 }
0x1661   :  { %11552 = vmatmul.msk.bf16.vlgmr.msrb.gmra.mxu2 %vm216_vm2, %v4793_v41 }
0x1666   :  { %v4839_v44 = vpop.f32.mrf.mxu1 }
0x1667   :  { %v4840_v45 = vadd.f32 %v15083_v62, %v4839_v44 }
0x1669   :  { %v4842_v48 = vsel %vm216_vm2, %v4840_v45, -inf }
0x166a   :  { %4843 = vmax.xlane.f32.xlu1 %v4842_v48  ;;  %v13619_v48 = vld [vmem:[%s15956_s29 + $0x8] sm:$0xff] }
0x166b   :  { %4998 = vmatpush.bf16.msrb.mxu3 %v13619_v48 }
0x1695   :  { %v4620_v22 = vpop.f32.mrf.mxu3 }
0x1696   :  { %v4623_v52 = vpack.c.bf16 %v4620_v22, %v4620_v22  ;;  %v13618_v22 = vld [vmem:[%s15956_s29] sm:$0xff] }
0x1697   :  { %4999 = vmatpush.bf16.msrb.mxu3 %v13618_v22 }
0x1698   :  { %11548 = vmatmul.msk.bf16.vlgmr.msra.gmra.mxu0 %vm216_vm2, %v4623_v52 }
0x16cc   :  { %v4705_v53 = vpop.f32.mrf.mxu3 }
0x16d4   :  { %v4707_v55 = vpop.f32.mrf.mxu3 }
0x16dd   :  { %v4844_v56 = vpop.xlane.xlu1 %4843 }
0x16de   :  { %v4845_v57 = vsub.f32 %v4840_v45, %v4844_v56 }
0x16e0   :  { %v4846_v58 = vmul.f32 1.442695, %v4845_v57 }
0x16e2   :  { %14065 = vpow2.f32 %v4846_v58 }
0x16e4   :  { %v4809_v59 = vpop.f32.mrf.mxu2 }
0x16e8   :  { %v14066_v61 = vpop.eup %14065 }
0x16e9   :  { %v4848_v63 = vsel %vm216_vm2, %v14066_v61, 0.0 }
0x16ea   :  { %4849 = vadd.xlane.f32.xlu1 %v4848_v63 }
0x16ec   :  { %v4811_v0 = vpop.f32.mrf.mxu2 }
0x16ed   :  { %v4491_v0 = vld [vmem:[%s15957_s25] sm:$0x3] }
0x16f2   :  { %4466 = vadd.xlane.f32.xlu1 %v4465_v2 }
0x1715   :  { %v4724_v3 = vpop.f32.mrf.mxu0 }
0x1716   :  { %v4725_v32 = vadd.f32 %v4724_v3, %v4705_v53  ;;  %v4514_v3 = vperm.slane %v4491_v0, 0 }
0x1718   :  { %v4813_v33 = vadd.f32 %v4809_v59, %v4725_v32 }
0x171d   :  { %v4726_v4 = vpop.f32.mrf.mxu0 }
0x175d   :  { %v4850_v5 = vpop.xlane.xlu1 %4849 }
0x175e   :  { %14067 = vrcp.f32 %v4850_v5  ;;  %v4516_v5 = vperm.slane %v4491_v0, 1 }
0x1764   :  { %v14068_v49 = vpop.eup %14067 }
0x1765   :  { %v4852_v6 = vmul.f32 %v14068_v49, %v14066_v61  ;;  %v4467_v9 = vpop.xlane.xlu1 %4466 }
0x1766   :  { %v4468_v10 = vmul.f32 %v4467_v9, %v14465_v46 }
0x1767   :  { %11555 = vmatmul.msk.f32.vlgmr.msra.gmra.mxu3 %vm216_vm2, %v4852_v6 }
0x1768   :  { %v4469_v11 = vsub.f32 %v4464_v1, %v4468_v10 }
0x176a   :  { %v4470_v13 = vmul.f32 %v4469_v11, %v4469_v11 }
0x176c   :  { %v4471_v14 = vsel %vm190_vm1, %v4470_v13, 0.0  ;;  %v13616_v13 = vld [vmem:[%s15958_s3] sm:$0xff] }
0x176d   :  { %4472 = vadd.xlane.f32.xlu1 %v4471_v14 }
0x17e0   :  { %v4473_v12 = vpop.xlane.xlu1 %4472 }
0x17e1   :  { %v4474_v15 = vmul.f32 %v4473_v12, %v14465_v46 }
0x17e3   :  { %v4475_v17 = vadd.f32 1e-05, %v4474_v15 }
0x17e5   :  { %14069 = vrsqrt.f32 %v4475_v17  ;;  %vm4482_vm15 = vweird.f32 %v4475_v17 }
0x17ea   :  { %v4876_v19 = vpop.f32.mrf.mxu3 }
0x17eb   :  { %v14070_v8 = vpop.eup %14069  ;;  %v4879_v20 = vpack.c.bf16 %v4876_v19, %v4876_v19 }
0x17ec   :  { %v4477_v40 = vmul.f32 %v14070_v8, %v4475_v17  ;;  %vm4483_vm14 = vweird.f32 %v14070_v8 }
0x17ed   :  { %11556 = vmatmul.msk.bf16.vlgmr.msrb.gmra.mxu0 %vm216_vm2, %v4879_v20  ;;  %vm4484_vm0 = vmor %vm4482_vm15, %vm4483_vm14 }
0x17ee   :  { %v4478_v21 = vmul.f32 %v14070_v8, %v4477_v40 }
0x17f0   :  { %v4479_v54 = vmul.f32 0.5, %v4478_v21 }
0x17f2   :  { %v4480_v23 = vsub.f32 1.5, %v4479_v54 }
0x17f4   :  { %v4481_v24 = vmul.f32 %v14070_v8, %v4480_v23 }
0x17f6   :  { %v4485_v60 = vsel %vm4484_vm0, %v14070_v8, %v4481_v24  ;;  %v15153_v8 = vld [vmem:[%s15959_s8] sm:$0x3f] }
0x17f7   :  { %v4486_v16 = vmul.f32 %v4485_v60, %v4469_v11  ;;  %v13617_v11 = vld [vmem:[%s15958_s3 + $0x8] sm:$0xff]  ;;  %v4927_v21 = vperm.slane %v15153_v8, 0  ;;  %v4929_v23 = vperm.slane %v15153_v8, 1 }
0x17f8   :  { %4961 = vmatpush.bf16.msrb.mxu1 %v13617_v11 }
0x17f9   :  { %v4488_v29 = vmul.f32 %v4487_v26, %v4486_v16  ;;  %v14002_v16 = vld [vmem:[%s15960_s14] ss:$0 sm:$0xff] }
0x17fb   :  { %v4490_v30 = vadd.f32 %v4489_v28, %v4488_v29 }
0x17fc   :  { %4962 = vmatpush.bf16.msrb.mxu1 %v13616_v13 }
0x17fd   :  { %v4492_v31 = vsel %vm190_vm1, %v4490_v30, 0.0 }
0x17fe   :  { %4493 = vadd.xlane.f32.xlu2 %v4492_v31  ;;  %v14003_v31 = vld [vmem:[%s15961_s24] ss:$0 sm:$0xff] }
0x186a   :  { %v4895_v18 = vpop.f32.mrf.mxu0 }
0x186b   :  { %v4899_v35 = vadd.f32 %v4895_v18, %v4813_v33 }
0x186d   :  { %v4903_v36 = vadd.f32 %v14001_v34, %v4899_v35 }
0x186f   :  { %v4904_v37 = vadd.f32 %v4903_v36, %v14389_v7 }
0x1871   :  { %v4494_v38 = vpop.xlane.xlu2 %4493  ;;  %v4905_v39 = vsel %vm190_vm1, %v4904_v37, 0.0 }
0x1872   :  { %v4495_v42 = vmul.f32 %v4494_v38, %v14465_v46  ;;  %4906 = vadd.xlane.f32.xlu0 %v4905_v39  ;;  %v4897_v43 = vpop.f32.mrf.mxu0 }
0x1874   :  { %v4496_v41 = vsub.f32 %v4490_v30, %v4495_v42 }
0x1876   :  { %v4497_v44 = vmul.f32 %v4496_v41, %v4496_v41 }
0x1878   :  { %v4498_v45 = vsel %vm190_vm1, %v4497_v44, 0.0 }
0x1879   :  { %4499 = vadd.xlane.f32.xlu1 %v4498_v45 }
0x18e5   :  { %v4907_v50 = vpop.xlane.xlu0 %4906 }
0x18e6   :  { %v4908_v51 = vmul.f32 %v4907_v50, %v14465_v46 }
0x18e8   :  { %v4909_v7 = vsub.f32 %v4904_v37, %v4908_v51 }
0x18ea   :  { %v4910_v52 = vmul.f32 %v4909_v7, %v4909_v7 }
0x18ec   :  { %v4500_v53 = vpop.xlane.xlu1 %4499  ;;  %v4911_v55 = vsel %vm190_vm1, %v4910_v52, 0.0 }
0x18ed   :  { %v4501_v56 = vmul.f32 %v4500_v53, %v14465_v46  ;;  %4912 = vadd.xlane.f32.xlu1 %v4911_v55 }
0x18ef   :  { %v4502_v57 = vadd.f32 1e-05, %v4501_v56 }
0x18f1   :  { %14071 = vrsqrt.f32 %v4502_v57  ;;  %vm4509_vm5 = vweird.f32 %v4502_v57 }
0x18f7   :  { %v14072_v58 = vpop.eup %14071 }
0x18f8   :  { %v4504_v59 = vmul.f32 %v14072_v58, %v4502_v57  ;;  %vm4510_vm4 = vweird.f32 %v14072_v58 }
0x18f9   :  { %vm4511_vm6 = vmor %vm4509_vm5, %vm4510_vm4 }
0x18fa   :  { %v4505_v61 = vmul.f32 %v14072_v58, %v4504_v59 }
0x18fc   :  { %v4506_v63 = vmul.f32 0.5, %v4505_v61 }
0x18fe   :  { %v4507_v1 = vsub.f32 1.5, %v4506_v63 }
0x1900   :  { %v4508_v2 = vmul.f32 %v14072_v58, %v4507_v1 }
0x1902   :  { %v4512_v4 = vsel %vm4511_vm6, %v14072_v58, %v4508_v2 }
0x1903   :  { %v4513_v49 = vmul.f32 %v4512_v4, %v4496_v41 }
0x1905   :  { %v4515_v6 = vmul.f32 %v4514_v3, %v4513_v49 }
0x1907   :  { %v4517_v9 = vadd.f32 %v4516_v5, %v4515_v6 }
0x1909   :  { %v15145_v10 = vpack.c.bf16 %v4517_v9, %v4517_v9 }
0x190b   :  { %11574 = vmatmul.msk.bf16.vlgmr.msrb.gmra.mxu3 %vm190_vm1, %v15145_v10 }
0x1960   :  { %v4913_v14 = vpop.xlane.xlu1 %4912 }
0x1961   :  { %v4914_v27 = vmul.f32 %v4913_v14, %v14465_v46 }
0x1963   :  { %v4915_v47 = vadd.f32 1e-05, %v4914_v27 }
0x1965   :  { %14073 = vrsqrt.f32 %v4915_v47  ;;  %vm4922_vm8 = vweird.f32 %v4915_v47 }
0x196b   :  { %v14074_v12 = vpop.eup %14073 }
0x196c   :  { %v4917_v15 = vmul.f32 %v14074_v12, %v4915_v47  ;;  %vm4923_vm7 = vweird.f32 %v14074_v12 }
0x196d   :  { %vm4924_vm9 = vmor %vm4922_vm8, %vm4923_vm7 }
0x196e   :  { %v4918_v17 = vmul.f32 %v14074_v12, %v4917_v15  ;;  %v5006_v15 = vld [vmem:[%s15962_s30 + $0x4] sm:$0xf] }
0x1970   :  { %v4919_v19 = vmul.f32 0.5, %v4918_v17  ;;  %v5145_v17 = vsel %vm349_vm3, %v5006_v15, 0  ;;  %v11667_v15 = vld [vmem:[%s15964_s18 + $0xc8] sm:$0xf0] }
0x1971   :  { %5154 = vmatpush.bf16.msra.mxu3 %v5145_v17 }
0x1972   :  { %v4920_v20 = vsub.f32 1.5, %v4919_v19  ;;  %v5007_v19 = vld [vmem:[%s15962_s30 + $0x8] sm:$0xf] }
0x1974   :  { %v4921_v40 = vmul.f32 %v14074_v12, %v4920_v20  ;;  %v5249_v20 = vsel %vm349_vm3, %v5007_v19, 0  ;;  %v11593_v19 = vld [vmem:[%s15964_s18] sm:$0xf] }
0x1976   :  { %v4925_v54 = vsel %vm4924_vm9, %v14074_v12, %v4921_v40 }
0x1977   :  { %v4926_v24 = vmul.f32 %v4925_v54, %v4909_v7 }
0x1979   :  { %v4928_v25 = vmul.f32 %v4927_v21, %v4926_v24 }
0x197b   :  { %v15157_v26 = vadd.f32 %v4929_v23, %v4928_v25 }
0x197d   :  { %v4935_v60 = vpack.c.bf16 %v15157_v26, %v15157_v26 }
0x197f   :  { %11565 = vmatmul.msk.bf16.vlgmr.msrb.gmra.mxu1 %vm190_vm1, %v4935_v60 }
0x198e   :  { %v5001_v28 = vpop.f32.mrf.mxu3 }
0x198f   :  { %v15163_v29 = vadd.f32 %v14002_v16, %v5001_v28 }
0x1991   :  { %5077 = vrot.lane.b32.xlu1 %v15163_v29, %s14206_s19  ;;  %11575 = vmatpush.xpose.msk.msra.mxu2 %vm216_vm2, %v15163_v29 }
0x1996   :  { %v5003_v30 = vpop.f32.mrf.mxu3 }
0x1999   :  { %5181 = vrot.lane.b32.xlu1 %v15163_v29, %s14208_s1 }
0x19fc   :  { %v4964_v32 = vpop.f32.mrf.mxu1 }
0x19fd   :  { %v4965_v33 = vadd.f32 %v14003_v31, %v4964_v32 }
0x19ff   :  { %v5010_v34 = vmul.f32 0.35355338, %v4965_v33 }
0x1a01   :  { %5179 = vrot.lane.b32.xlu0 %v5010_v34, %s14208_s1  ;;  %5075 = vrot.lane.b32.xlu2 %v5010_v34, %s14206_s19 }
0x1a02   :  { %11576 = vmatmul.msk.f32.vlgmr.msra.gmra.mxu2 %vm216_vm2, %v5010_v34 }
0x1a03   :  { %v5078_v18 = vpop.permute.xlu1 %5077 }
0x1a04   :  { %v4966_v35 = vpop.f32.mrf.mxu1  ;;  %11578 = vmatpush.xpose.msk.msrb.mxu2 %vm216_vm2, %v5078_v18 }
0x1a0b   :  { %v5182_v36 = vpop.permute.xlu1 %5181 }
0x1a0c   :  { %11583 = vmatpush.xpose.msk.msra.mxu2 %vm216_vm2, %v5182_v36  ;;  %v5005_v36 = vld [vmem:[%s15962_s30] sm:$0xf] }
0x1a5b   :  { %v5076_v37 = vpop.permute.xlu2 %5075 }
0x1a5c   :  { %11579 = vmatmul.msk.f32.vlgmr.msrb.gmra.mxu2 %vm216_vm2, %v5076_v37 }
0x1a5d   :  { %5258 = vmatpush.bf16.msrb.mxu2 %v5249_v20  ;;  %v13628_v20 = vld [vmem:[%s15964_s18 + $0x3c] sm:$0xf0] }
0x1a73   :  { %v5180_v38 = vpop.permute.xlu0 %5179 }
0x1a74   :  { %11584 = vmatmul.msk.f32.vlgmr.msra.gmra.mxu2 %vm216_vm2, %v5180_v38  ;;  %v5164_v38 = vsel %vm349_vm3, %v5005_v36, 0  ;;  %v13647_v36 = vld [vmem:[%s15964_s18 + $0xd4] sm:$0xf0] }
0x1a85   :  { %v5034_v39 = vpop.f32.mrf.mxu2 }
0x1a86   :  { %v5035_v59 = vadd.f32 %v15083_v62, %v5034_v39 }
0x1a88   :  { %v5037_v61 = vsel %vm216_vm2, %v5035_v59, -inf }
0x1adf   :  { %v5100_v42 = vpop.f32.mrf.mxu2 }
0x1ae0   :  { %v5101_v43 = vadd.f32 %v15083_v62, %v5100_v42 }
0x1ae2   :  { %v5103_v41 = vsel %vm216_vm2, %v5101_v43, -inf }
0x1ae3   :  { %5104 = vmax.xlane.f32.xlu1 %v5103_v41 }
0x1af7   :  { %v5204_v44 = vpop.f32.mrf.mxu2 }
0x1af8   :  { %v5205_v45 = vadd.f32 %v15083_v62, %v5204_v44 }
0x1afa   :  { %v5207_v48 = vsel %vm216_vm2, %v5205_v45, -inf }
0x1afb   :  { %5208 = vmax.xlane.f32.xlu2 %v5207_v48 }
0x1b13   :  { %5218 = vrot.lane.b32.xlu2 %v15163_v29, %s14210_s2 }
0x1b56   :  { %v5105_v50 = vpop.xlane.xlu1 %5104 }
0x1b57   :  { %v5106_v51 = vsub.f32 %v5101_v43, %v5105_v50 }
0x1b59   :  { %v5107_v22 = vmul.f32 1.442695, %v5106_v51  ;;  %v5008_v51 = vld [vmem:[%s15962_s30 + $0xc] sm:$0xf] }
0x1b5b   :  { %14075 = vpow2.f32 %v5107_v22  ;;  %v5335_v22 = vsel %vm349_vm3, %v5008_v51, 0  ;;  %v11611_v51 = vld [vmem:[%s15964_s18 + $0x50] sm:$0xf0] }
0x1b61   :  { %v14076_v7 = vpop.eup %14075 }
0x1b62   :  { %v5109_v52 = vsel %vm216_vm2, %v14076_v7, 0.0 }
0x1b63   :  { %5110 = vadd.xlane.f32.xlu0 %v5109_v52 }
0x1b6e   :  { %v5209_v53 = vpop.xlane.xlu2 %5208 }
0x1b6f   :  { %v5210_v55 = vsub.f32 %v5205_v45, %v5209_v53 }
0x1b71   :  { %v5211_v56 = vmul.f32 1.442695, %v5210_v55 }
0x1b73   :  { %14077 = vpow2.f32 %v5211_v56  ;;  %v14004_v56 = vld [vmem:[%s15963_s15] ss:$0 sm:$0xff] }
0x1b76   :  { %v5219_v4 = vpop.permute.xlu2 %5218 }
0x1b77   :  { %5267 = vrot.lane.b32.xlu0 %v15163_v29, %s14212_s7 }
0x1b79   :  { %v14078_v57 = vpop.eup %14077 }
0x1b7a   :  { %v5213_v58 = vsel %vm216_vm2, %v14078_v57, 0.0 }
0x1b7b   :  { %5214 = vadd.xlane.f32.xlu1 %v5213_v58 }
0x1b7f   :  { %5265 = vrot.lane.b32.xlu0 %v5010_v34, %s14212_s7 }
0x1b94   :  { %5114 = vrot.lane.b32.xlu1 %v15163_v29, %s14204_s0 }
0x1bbe   :  { %5038 = vmax.xlane.f32.xlu1 %v5037_v61 }
0x1bd6   :  { %v5111_v63 = vpop.xlane.xlu0 %5110 }
0x1bd7   :  { %5048 = vrot.lane.b32.xlu1 %v15163_v29, %s14205_s5  ;;  %14079 = vrcp.f32 %v5111_v63 }
0x1bdd   :  { %v14080_v1 = vpop.eup %14079 }
0x1bde   :  { %v5113_v2 = vmul.f32 %v14080_v1, %v14076_v7 }
0x1be9   :  { %v5268_v5 = vpop.permute.xlu0 %5267 }
0x1bee   :  { %v5215_v0 = vpop.xlane.xlu1 %5214 }
0x1bef   :  { %14081 = vrcp.f32 %v5215_v0 }
0x1bf1   :  { %v5266_v9 = vpop.permute.xlu0 %5265 }
0x1bf5   :  { %v14082_v49 = vpop.eup %14081 }
0x1bf6   :  { %v5217_v6 = vmul.f32 %v14082_v49, %v14078_v57  ;;  %v13644_v49 = vld [vmem:[%s15964_s18 + $0xbc] sm:$0xf0] }
0x1c06   :  { %v5115_v3 = vpop.permute.xlu1 %5114 }
0x1c07   :  { %5135 = vmatpush.msra.mxu1 %v5115_v3 }
0x1c08   :  { %11580 = vmatmul.msk.f32.vlgmr.msra.gmra.mxu1 %vm216_vm2, %v5113_v2 }
0x1c09   :  { %5239 = vmatpush.msrb.mxu1 %v5219_v4 }
0x1c0b   :  { %11587 = vmatpush.xpose.msk.msra.mxu1 %vm216_vm2, %v5268_v5 }
0x1c10   :  { %11585 = vmatmul.msk.f32.vlgmr.msrb.gmra.mxu1 %vm216_vm2, %v5217_v6  ;;  %v13636_v6 = vld [vmem:[%s15964_s18 + $0x84] sm:$0xf] }
0x1c18   :  { %11588 = vmatmul.msk.f32.vlgmr.msra.gmra.mxu1 %vm216_vm2, %v5266_v9 }
0x1c31   :  { %v5039_v11 = vpop.xlane.xlu1 %5038 }
0x1c32   :  { %v5040_v13 = vsub.f32 %v5035_v59, %v5039_v11  ;;  %v11659_v11 = vld [vmem:[%s15964_s18 + $0xc0] sm:$0xf0] }
0x1c34   :  { %v5041_v14 = vmul.f32 1.442695, %v5040_v13  ;;  %v11665_v13 = vld [vmem:[%s15964_s18 + $0x88] sm:$0xf] }
0x1c36   :  { %14083 = vpow2.f32 %v5041_v14  ;;  %v13645_v14 = vld [vmem:[%s15964_s18 + $0xc4] sm:$0xf0] }
0x1c3c   :  { %v14084_v27 = vpop.eup %14083 }
0x1c3d   :  { %v5043_v47 = vsel %vm216_vm2, %v14084_v27, 0.0 }
0x1c3e   :  { %5044 = vadd.xlane.f32.xlu0 %v5043_v47  ;;  %v11666_v47 = vor.u32 %v13645_v14, %v11665_v13  ;;  %v11691_v13 = vld [vmem:[%s15964_s18 + $0xe0] sm:$0xf0]  ;;  %v11697_v14 = vld [vmem:[%s15964_s18 + $0xa8] sm:$0xf] }
0x1c40   :  { %5903 = vmatpush.bf16.msra.mxu2 %v11666_v47  ;;  %v13649_v47 = vld [vmem:[%s15964_s18 + $0xe4] sm:$0xf0] }
0x1c49   :  { %v5049_v12 = vpop.permute.xlu1 %5048 }
0x1c4a   :  { %5069 = vmatpush.msra.mxu0 %v5049_v12  ;;  %v13637_v12 = vld [vmem:[%s15964_s18 + $0x8c] sm:$0xf] }
0x1c4b   :  { %v11670_v17 = vor.u32 %v13637_v12, %v11667_v15  ;;  %v13641_v12 = vld [vmem:[%s15964_s18 + $0xac] sm:$0xf] }
0x1c4c   :  { %5173 = vmatpush.bf16.msrb.mxu0 %v5164_v38 }
0x1c52   :  { %5304 = vrot.lane.b32.xlu0 %v15163_v29, %s14213_s11 }
0x1c85   :  { %v5137_v40 = vpop.f32.mrf.mxu1 }
0x1c86   :  { %v5140_v21 = vpack.c.bf16 %v5137_v40, %v5137_v40  ;;  %v13620_v40 = vld [vmem:[%s15964_s18 + $0x4] sm:$0xf] }
0x1c88   :  { %11581 = vmatmul.msk.bf16.vlgmr.msra.gmra.mxu3 %vm216_vm2, %v5140_v21  ;;  %v11594_v21 = vor.u32 %v13628_v20, %v11593_v19  ;;  %v11625_v19 = vld [vmem:[%s15964_s18 + $0x20] sm:$0xf] }
0x1c89   :  { %v13632_v20 = vld [vmem:[%s15964_s18 + $0x5c] sm:$0xf0] }
0x1c8d   :  { %v5241_v54 = vpop.f32.mrf.mxu1 }
0x1c8e   :  { %v5244_v23 = vpack.c.bf16 %v5241_v54, %v5241_v54  ;;  %v11595_v54 = vld [vmem:[%s15964_s18 + $0x40] sm:$0xf0] }
0x1c90   :  { %11586 = vmatmul.msk.bf16.vlgmr.msrb.gmra.mxu2 %vm216_vm2, %v5244_v23  ;;  %v11601_v23 = vld [vmem:[%s15964_s18 + $0x8] sm:$0xf] }
0x1c95   :  { %v5290_v24 = vpop.f32.mrf.mxu1 }
0x1c96   :  { %v5291_v25 = vadd.f32 %v15083_v62, %v5290_v24  ;;  %v13629_v24 = vld [vmem:[%s15964_s18 + $0x44] sm:$0xf0] }
0x1c98   :  { %v5293_v60 = vsel %vm216_vm2, %v5291_v25, -inf }
0x1c99   :  { %5294 = vmax.xlane.f32.xlu2 %v5293_v60  ;;  %v11602_v60 = vor.u32 %v13629_v24, %v11601_v23  ;;  %v11627_v23 = vld [vmem:[%s15964_s18 + $0x60] sm:$0xf0]  ;;  %v11633_v24 = vld [vmem:[%s15964_s18 + $0x28] sm:$0xf] }
0x1c9b   :  { %5904 = vmatpush.bf16.msra.mxu2 %v11602_v60  ;;  %v13625_v60 = vld [vmem:[%s15964_s18 + $0x2c] sm:$0xf] }
0x1cb1   :  { %v5045_v16 = vpop.xlane.xlu0 %5044 }
0x1cb2   :  { %14085 = vrcp.f32 %v5045_v16  ;;  %v13621_v16 = vld [vmem:[%s15964_s18 + $0xc] sm:$0xf] }
0x1cb8   :  { %v14086_v28 = vpop.eup %14085 }
0x1cb9   :  { %v5047_v29 = vmul.f32 %v14086_v28, %v14084_v27  ;;  %v11662_v27 = vor.u32 %v13636_v6, %v11659_v11  ;;  %v11603_v28 = vld [vmem:[%s15964_s18 + $0x48] sm:$0xf0]  ;;  %v11689_v6 = vld [vmem:[%s15964_s18 + $0xa0] sm:$0xf]  ;;  %v13640_v11 = vld [vmem:[%s15964_s18 + $0xa4] sm:$0xf] }
0x1cbb   :  { %11577 = vmatmul.msk.f32.vlgmr.msra.gmra.mxu0 %vm216_vm2, %v5047_v29  ;;  %v11606_v29 = vor.u32 %v13621_v16, %v11603_v28  ;;  %v11635_v16 = vld [vmem:[%s15964_s18 + $0x68] sm:$0xf0]  ;;  %v11626_v28 = vor.u32 %v13632_v20, %v11625_v19  ;;  %v13662_v19 = vld [vmem:[%s15965_s23 + $0x50] sm:$0xff] }
0x1cbc   :  { %5344 = vmatpush.bf16.msra.mxu0 %v5335_v22  ;;  %v11617_v22 = vld [vmem:[%s15964_s18 + $0x18] sm:$0xf]  ;;  %v13670_v20 = vld [vmem:[%s15965_s23 + $0x90] sm:$0xff] }
0x1cc4   :  { %v5305_v30 = vpop.permute.xlu0 %5304 }
0x1cc5   :  { %5325 = vmatpush.msrb.mxu3 %v5305_v30 }
0x1cc7   :  { %5890 = vmatpush.bf16.msra.mxu3 %v11662_v27 }
0x1d0b   :  { %v5156_v31 = vpop.f32.mrf.mxu3 }
0x1d0c   :  { %v5295_v32 = vpop.xlane.xlu2 %5294 }
0x1d0d   :  { %v5296_v33 = vsub.f32 %v5291_v25, %v5295_v32  ;;  %v11598_v25 = vor.u32 %v13620_v40, %v11595_v54  ;;  %v13646_v32 = vld [vmem:[%s15964_s18 + $0xcc] sm:$0xf0]  ;;  %v11698_v40 = vor.u32 %v13649_v47, %v11697_v14  ;;  %v13624_v54 = vld [vmem:[%s15964_s18 + $0x24] sm:$0xf]  ;;  %v13655_v14 = vld [vmem:[%s15965_s23 + $0x18] sm:$0xff] }
0x1d0e   :  { %v13679_v47 = vld [vmem:[%s15965_s23 + $0xd8] sm:$0xff] }
0x1d0f   :  { %v5297_v34 = vmul.f32 1.442695, %v5296_v33  ;;  %5891 = vmatpush.bf16.msra.mxu3 %v11598_v25  ;;  %v13638_v33 = vld [vmem:[%s15964_s18 + $0x94] sm:$0xf]  ;;  %v13633_v25 = vld [vmem:[%s15964_s18 + $0x64] sm:$0xf0] }
0x1d11   :  { %14087 = vpow2.f32 %v5297_v34 }
0x1d13   :  { %v5158_v18 = vpop.f32.mrf.mxu3  ;;  %v5260_v35 = vpop.f32.mrf.mxu2 }
0x1d17   :  { %v14088_v62 = vpop.eup %14087 }
0x1d18   :  { %v5299_v37 = vsel %vm216_vm2, %v14088_v62, 0.0 }
0x1d19   :  { %5300 = vadd.xlane.f32.xlu2 %v5299_v37 }
0x1d1b   :  { %v5262_v39 = vpop.f32.mrf.mxu2 }
0x1d1c   :  { %v13639_v39 = vld [vmem:[%s15964_s18 + $0x9c] sm:$0xf] }
0x1d38   :  { %v5071_v42 = vpop.f32.mrf.mxu0 }
0x1d39   :  { %v5074_v43 = vpack.c.bf16 %v5071_v42, %v5071_v42  ;;  %v11683_v42 = vld [vmem:[%s15964_s18 + $0xd8] sm:$0xf0] }
0x1d3b   :  { %11582 = vmatmul.msk.bf16.vlgmr.msrb.gmra.mxu0 %vm216_vm2, %v5074_v43  ;;  %v11609_v43 = vld [vmem:[%s15964_s18 + $0x10] sm:$0xf] }
0x1d3c   :  { %5916 = vmatpush.bf16.msrb.mxu0 %v11670_v17  ;;  %v11694_v17 = vor.u32 %v13640_v11, %v11691_v13  ;;  %v13664_v11 = vld [vmem:[%s15965_s23 + $0x60] sm:$0xff] }
0x1d3d   :  { %v13672_v13 = vld [vmem:[%s15965_s23 + $0xa0] sm:$0xff] }
0x1d40   :  { %5917 = vmatpush.bf16.msrb.mxu0 %v11606_v29  ;;  %v11630_v29 = vor.u32 %v13624_v54, %v11627_v23  ;;  %v13669_v54 = vld [vmem:[%s15965_s23 + $0x88] sm:$0xff]  ;;  %v13652_v23 = vld [vmem:[%s15965_s23] sm:$0xff] }
0x1d8c   :  { %v5301_v41 = vpop.xlane.xlu2 %5300 }
0x1d8d   :  { %14089 = vrcp.f32 %v5301_v41 }
0x1d93   :  { %v14090_v44 = vpop.eup %14089 }
0x1d94   :  { %v5303_v45 = vmul.f32 %v14090_v44, %v14088_v62  ;;  %v11681_v62 = vld [vmem:[%s15964_s18 + $0x98] sm:$0xf]  ;;  %v11686_v44 = vor.u32 %v13639_v39, %v11683_v42  ;;  %v11641_v42 = vld [vmem:[%s15964_s18 + $0x30] sm:$0xf] }
0x1d95   :  { %v11682_v38 = vor.u32 %v13647_v36, %v11681_v62  ;;  %v13651_v62 = vld [vmem:[%s15964_s18 + $0xf4] sm:$0xf0]  ;;  %v13643_v36 = vld [vmem:[%s15964_s18 + $0xbc] sm:$0xf] }
0x1d96   :  { %11589 = vmatmul.msk.f32.vlgmr.msrb.gmra.mxu3 %vm216_vm2, %v5303_v45  ;;  %v13630_v45 = vld [vmem:[%s15964_s18 + $0x4c] sm:$0xf0] }
0x1d97   :  { %5955 = vmatpush.bf16.msrb.mxu2 %v11682_v38 }
0x1db8   :  { %v5175_v48 = vpop.f32.mrf.mxu0 }
0x1db9   :  { %v5176_v53 = vadd.f32 %v5175_v48, %v5156_v31  ;;  %v11673_v31 = vld [vmem:[%s15964_s18 + $0x90] sm:$0xf]  ;;  %v13622_v48 = vld [vmem:[%s15964_s18 + $0x14] sm:$0xf] }
0x1dba   :  { %v11674_v18 = vor.u32 %v13646_v32, %v11673_v31  ;;  %v11638_v31 = vor.u32 %v13625_v60, %v11635_v16  ;;  %v11705_v32 = vld [vmem:[%s15964_s18 + $0xb0] sm:$0xf]  ;;  %v13715_v60 = vld [vmem:[%s15965_s23 + $0x1f8] sm:$0xff]  ;;  %v13660_v16 = vld [vmem:[%s15965_s23 + $0x40] sm:$0xff] }
0x1dbb   :  { %v5264_v55 = vadd.f32 %v5260_v35, %v5176_v53  ;;  %v11675_v35 = vld [vmem:[%s15964_s18 + $0xd0] sm:$0xf0] }
0x1dbc   :  { %v11678_v37 = vor.u32 %v13638_v33, %v11675_v35  ;;  %v13650_v33 = vld [vmem:[%s15964_s18 + $0xec] sm:$0xf0]  ;;  %v11713_v35 = vld [vmem:[%s15964_s18 + $0xb8] sm:$0xf] }
0x1dbd   :  { %v11706_v38 = vor.u32 %v13650_v33, %v11705_v32  ;;  %v13714_v32 = vld [vmem:[%s15965_s23 + $0x1f0] sm:$0xff] }
0x1dbe   :  { %5942 = vmatpush.bf16.msrb.mxu3 %v11678_v37  ;;  %v11715_v37 = vld [vmem:[%s15964_s18 + $0xf8] sm:$0xf0]  ;;  %v13698_v33 = vld [vmem:[%s15965_s23 + $0x170] sm:$0xff] }
0x1dc0   :  { %v5177_v50 = vpop.f32.mrf.mxu0 }
0x1dc1   :  { %v11610_v50 = vor.u32 %v13630_v45, %v11609_v43  ;;  %v13634_v43 = vld [vmem:[%s15964_s18 + $0x6c] sm:$0xf0]  ;;  %v13626_v45 = vld [vmem:[%s15964_s18 + $0x34] sm:$0xf] }
0x1e19   :  { %v5327_v7 = vpop.f32.mrf.mxu3 }
0x1e1a   :  { %v5330_v52 = vpack.c.bf16 %v5327_v7, %v5327_v7  ;;  %v13631_v7 = vld [vmem:[%s15964_s18 + $0x54] sm:$0xf0] }
0x1e1b   :  { %v11618_v53 = vor.u32 %v13631_v7, %v11617_v22  ;;  %v13627_v22 = vld [vmem:[%s15964_s18 + $0x3c] sm:$0xf] }
0x1e1c   :  { %11590 = vmatmul.msk.bf16.vlgmr.msra.gmra.mxu0 %vm216_vm2, %v5330_v52  ;;  %v11614_v52 = vor.u32 %v13622_v48, %v11611_v51  ;;  %v11643_v48 = vld [vmem:[%s15964_s18 + $0x70] sm:$0xf0]  ;;  %v13635_v51 = vld [vmem:[%s15964_s18 + $0x74] sm:$0xf0]  ;;  %v11651_v7 = vld [vmem:[%s15964_s18 + $0x78] sm:$0xf0] }
0x1e1d   :  { %5968 = vmatpush.bf16.msra.mxu0 %v11686_v44  ;;  %5956 = vmatpush.bf16.msrb.mxu2 %v11618_v53  ;;  %v11718_v44 = vor.u32 %v13643_v36, %v11715_v37  ;;  %v11646_v53 = vor.u32 %v13626_v45, %v11643_v48  ;;  %v13705_v36 = vld [vmem:[%s15965_s23 + $0x1a8] sm:$0xff]  ;;  %v13688_v37 = vld [vmem:[%s15965_s23 + $0x120] sm:$0xff]  ;;  %v13710_v45 = vld [vmem:[%s15965_s23 + $0x1d0] sm:$0xff] }
0x1e1e   :  { %5943 = vmatpush.bf16.msrb.mxu3 %v11614_v52  ;;  %v11642_v52 = vor.u32 %v13634_v43, %v11641_v42  ;;  %v13704_v42 = vld [vmem:[%s15965_s23 + $0x1a0] sm:$0xff]  ;;  %v13687_v43 = vld [vmem:[%s15965_s23 + $0x118] sm:$0xff] }
0x1e1f   :  { %v13695_v48 = vld [vmem:[%s15965_s23 + $0x158] sm:$0xff] }
0x1e99   :  { %v5346_v57 = vpop.f32.mrf.mxu0 }
0x1e9a   :  { %v5350_v58 = vadd.f32 %v5346_v57, %v5264_v55  ;;  %v13623_v55 = vld [vmem:[%s15964_s18 + $0x1c] sm:$0xf] }
0x1e9c   :  { %v5354_v59 = vadd.f32 %v14004_v56, %v5350_v58  ;;  %v11619_v56 = vld [vmem:[%s15964_s18 + $0x58] sm:$0xf0] }
0x1e9d   :  { %v11622_v57 = vor.u32 %v13623_v55, %v11619_v56  ;;  %v11654_v56 = vor.u32 %v13627_v22, %v11651_v7  ;;  %v13709_v22 = vld [vmem:[%s15965_s23 + $0x1c8] sm:$0xff]  ;;  %v13694_v7 = vld [vmem:[%s15965_s23 + $0x150] sm:$0xff] }
0x1e9e   :  { %v5355_v61 = vadd.f32 %v5354_v59, %v15157_v26  ;;  %v11657_v26 = vld [vmem:[%s15964_s18 + $0x80] sm:$0xf] }
0x1e9f   :  { %v11658_v9 = vor.u32 %v13644_v49, %v11657_v26  ;;  %5969 = vmatpush.bf16.msra.mxu0 %v11622_v57  ;;  %v13659_v57 = vld [vmem:[%s15965_s23 + $0x38] sm:$0xff] }
0x1ea0   :  { %v5356_v63 = vsel %vm190_vm1, %v5355_v61, 0.0 }
0x1ea1   :  { %v5348_v0 = vpop.f32.mrf.mxu0  ;;  %5357 = vadd.xlane.f32.xlu2 %v5356_v63  ;;  %5877 = vmatpush.bf16.msrb.mxu1 %v11658_v9  ;;  %v13648_v9 = vld [vmem:[%s15964_s18 + $0xdc] sm:$0xf0] }
0x1ea2   :  { %v11690_v15 = vor.u32 %v13648_v9, %v11689_v6  ;;  %v13656_v6 = vld [vmem:[%s15965_s23 + $0x20] sm:$0xff] }
0x1ea3   :  { %v13680_v9 = vld [vmem:[%s15965_s23 + $0xe0] sm:$0xff] }
0x1ea5   :  { %5878 = vmatpush.bf16.msrb.mxu1 %v11594_v21 }
0x1ea9   :  { %5929 = vmatpush.bf16.msra.mxu1 %v11674_v18  ;;  %v11707_v18 = vld [vmem:[%s15964_s18 + $0xf0] sm:$0xf0] }
0x1ead   :  { %5930 = vmatpush.bf16.msra.mxu1 %v11610_v50  ;;  %v11649_v50 = vld [vmem:[%s15964_s18 + $0x38] sm:$0xf] }
0x1eae   :  { %v11650_v55 = vor.u32 %v13635_v51, %v11649_v50  ;;  %v13703_v50 = vld [vmem:[%s15965_s23 + $0x198] sm:$0xff]  ;;  %v13685_v51 = vld [vmem:[%s15965_s23 + $0x108] sm:$0xff] }
0x1f14   :  { %v5358_v1 = vpop.xlane.xlu2 %5357 }
0x1f15   :  { %v5359_v2 = vmul.f32 %v5358_v1, %v14465_v46 }
0x1f17   :  { %v15224_v3 = vsub.f32 %v5355_v61, %v5359_v2  ;;  %v5378_v2 = vperm.slane %v15153_v8, 2 }
0x1f19   :  { %v5361_v4 = vmul.f32 %v15224_v3, %v15224_v3 }
0x1f1b   :  { %v5362_v5 = vsel %vm190_vm1, %v5361_v4, 0.0 }
0x1f1c   :  { %5363 = vadd.xlane.f32.xlu2 %v5362_v5  ;;  %v5380_v5 = vperm.slane %v15153_v8, 3  ;;  %v11699_v8 = vld [vmem:[%s15964_s18 + $0xe8] sm:$0xf0] }
0x1f1d   :  { %v11702_v21 = vor.u32 %v13641_v12, %v11699_v8  ;;  %v13663_v12 = vld [vmem:[%s15965_s23 + $0x58] sm:$0xff] }
0x1f1e   :  { %v13671_v8 = vld [vmem:[%s15965_s23 + $0x98] sm:$0xff] }
0x1f8f   :  { %v5364_v30 = vpop.xlane.xlu2 %5363 }
0x1f90   :  { %v5365_v34 = vmul.f32 %v5364_v30, %v14465_v46  ;;  %v11634_v30 = vor.u32 %v13633_v25, %v11633_v24  ;;  %v13676_v24 = vld [vmem:[%s15965_s23 + $0xc0] sm:$0xff]  ;;  %v13691_v25 = vld [vmem:[%s15965_s23 + $0x138] sm:$0xff] }
0x1f92   :  { %v5366_v41 = vadd.f32 1e-05, %v5365_v34  ;;  %v13642_v34 = vld [vmem:[%s15964_s18 + $0xb4] sm:$0xf] }
0x1f93   :  { %v11710_v39 = vor.u32 %v13642_v34, %v11707_v18  ;;  %v13706_v34 = vld [vmem:[%s15965_s23 + $0x1b0] sm:$0xff]  ;;  %v13689_v18 = vld [vmem:[%s15965_s23 + $0x128] sm:$0xff] }
0x1f94   :  { %14091 = vrsqrt.f32 %v5366_v41  ;;  %vm5373_vm11 = vweird.f32 %v5366_v41 }
0x1f9a   :  { %v14092_v58 = vpop.eup %14091 }
0x1f9b   :  { %v5368_v59 = vmul.f32 %v14092_v58, %v5366_v41  ;;  %vm5374_vm10 = vweird.f32 %v14092_v58  ;;  %v11714_v41 = vor.u32 %v13651_v62, %v11713_v35  ;;  %v13713_v35 = vld [vmem:[%s15965_s23 + $0x1e8] sm:$0xff] }
0x1f9c   :  { %vm5375_vm12 = vmor %vm5373_vm11, %vm5374_vm10  ;;  %v13697_v62 = vld [vmem:[%s15965_s23 + $0x168] sm:$0xff] }
0x1f9d   :  { %v5369_v61 = vmul.f32 %v14092_v58, %v5368_v59  ;;  %v13667_v59 = vld [vmem:[%s15965_s23 + $0x78] sm:$0xff] }
0x1f9f   :  { %v5370_v63 = vmul.f32 0.5, %v5369_v61  ;;  %v13675_v61 = vld [vmem:[%s15965_s23 + $0xb8] sm:$0xff] }
0x1fa1   :  { %v5371_v0 = vsub.f32 1.5, %v5370_v63  ;;  %v13658_v63 = vld [vmem:[%s15965_s23 + $0x30] sm:$0xff] }
0x1fa3   :  { %v5372_v1 = vmul.f32 %v14092_v58, %v5371_v0  ;;  %v13682_v0 = vld [vmem:[%s15965_s23 + $0xf0] sm:$0xff] }
0x1fa5   :  { %v5376_v4 = vsel %vm5375_vm12, %v14092_v58, %v5372_v1  ;;  %v13683_v58 = vld [vmem:[%s15965_s23 + $0xf8] sm:$0xff]  ;;  %v13666_v1 = vld [vmem:[%s15965_s23 + $0x70] sm:$0xff] }
0x1fa6   :  { %v5377_v26 = vmul.f32 %v5376_v4, %v15224_v3  ;;  %v13657_v4 = vld [vmem:[%s15965_s23 + $0x28] sm:$0xff] }
0x1fa8   :  { %v5379_v49 = vmul.f32 %v5378_v2, %v5377_v26  ;;  %v13674_v2 = vld [vmem:[%s15965_s23 + $0xb0] sm:$0xff]  ;;  %v13665_v26 = vld [vmem:[%s15965_s23 + $0x68] sm:$0xff] }
0x1faa   :  { %v15270_v27 = vadd.f32 %v5380_v5, %v5379_v49  ;;  %v13681_v5 = vld [vmem:[%s15965_s23 + $0xe8] sm:$0xff] }
0x1fab   :  { %v13673_v49 = vld [vmem:[%s15965_s23 + $0xa8] sm:$0xff] }
0x1fac   :  { %v15277_v3 = vpack.c.bf16 %v15270_v27, %v15270_v27 }
0x1fae   :  { %11719 = vmatmul.msk.bf16.vlgmr.msrb.gmra.mxu1 %vm190_vm1, %v15277_v3  ;;  %11720 = vmatmul.msk.bf16.vlgmr.msra.gmra.mxu3 %vm190_vm1, %v15277_v3 }
0x1faf   :  { %11721 = vmatmul.msk.bf16.vlgmr.msra.gmra.mxu2 %vm190_vm1, %v15277_v3  ;;  %11722 = vmatmul.msk.bf16.vlgmr.msrb.gmra.mxu0 %vm190_vm1, %v15277_v3 }
0x1fb0   :  { %5981 = vmatpush.bf16.msrb.mxu1 %v11690_v15  ;;  %5994 = vmatpush.bf16.msra.mxu3 %v11694_v17  ;;  %v13654_v15 = vld [vmem:[%s15965_s23 + $0x10] sm:$0xff] }
0x1fb1   :  { %6007 = vmatpush.bf16.msra.mxu2 %v11698_v40  ;;  %6020 = vmatpush.bf16.msrb.mxu0 %v11702_v21  ;;  %v13678_v17 = vld [vmem:[%s15965_s23 + $0xd0] sm:$0xff]  ;;  %v13653_v40 = vld [vmem:[%s15965_s23 + $0x8] sm:$0xff] }
0x1fb2   :  { %v13661_v21 = vld [vmem:[%s15965_s23 + $0x48] sm:$0xff] }
0x1fb4   :  { %5982 = vmatpush.bf16.msrb.mxu1 %v11626_v28  ;;  %5995 = vmatpush.bf16.msra.mxu3 %v11630_v29  ;;  %v13668_v28 = vld [vmem:[%s15965_s23 + $0x80] sm:$0xff]  ;;  %v13699_v29 = vld [vmem:[%s15965_s23 + $0x178] sm:$0xff] }
0x1fb5   :  { %6008 = vmatpush.bf16.msra.mxu2 %v11634_v30  ;;  %6021 = vmatpush.bf16.msrb.mxu0 %v11638_v31  ;;  %v13707_v30 = vld [vmem:[%s15965_s23 + $0x1b8] sm:$0xff]  ;;  %v13690_v31 = vld [vmem:[%s15965_s23 + $0x130] sm:$0xff] }
0x1fbe   :  { %11723 = vmatmul.msk.bf16.vlgmr.msra.gmra.mxu1 %vm190_vm1, %v15277_v3  ;;  %11724 = vmatmul.msk.bf16.vlgmr.msrb.gmra.mxu3 %vm190_vm1, %v15277_v3 }
0x1fbf   :  { %11725 = vmatmul.msk.bf16.vlgmr.msrb.gmra.mxu2 %vm190_vm1, %v15277_v3  ;;  %11726 = vmatmul.msk.bf16.vlgmr.msra.gmra.mxu0 %vm190_vm1, %v15277_v3 }
0x1fc0   :  { %6033 = vmatpush.bf16.msra.mxu1 %v11706_v38  ;;  %6046 = vmatpush.bf16.msrb.mxu3 %v11710_v39  ;;  %v13712_v38 = vld [vmem:[%s15965_s23 + $0x1e0] sm:$0xff] }
0x1fc1   :  { %6059 = vmatpush.bf16.msrb.mxu2 %v11714_v41  ;;  %6072 = vmatpush.bf16.msra.mxu0 %v11718_v44  ;;  %v13696_v39 = vld [vmem:[%s15965_s23 + $0x160] sm:$0xff]  ;;  %v13711_v41 = vld [vmem:[%s15965_s23 + $0x1d8] sm:$0xff]  ;;  %v13686_v44 = vld [vmem:[%s15965_s23 + $0x110] sm:$0xff] }
0x1fc4   :  { %6034 = vmatpush.bf16.msra.mxu1 %v11642_v52  ;;  %6047 = vmatpush.bf16.msrb.mxu3 %v11646_v53  ;;  %v13702_v52 = vld [vmem:[%s15965_s23 + $0x190] sm:$0xff]  ;;  %v13684_v53 = vld [vmem:[%s15965_s23 + $0x100] sm:$0xff] }
0x1fc5   :  { %6060 = vmatpush.bf16.msrb.mxu2 %v11650_v55  ;;  %6073 = vmatpush.bf16.msra.mxu0 %v11654_v56  ;;  %v13708_v55 = vld [vmem:[%s15965_s23 + $0x1c0] sm:$0xff]  ;;  %v13693_v56 = vld [vmem:[%s15965_s23 + $0x148] sm:$0xff] }
0x1fce   :  { %11727 = vmatmul.msk.bf16.vlgmr.msrb.gmra.mxu1 %vm190_vm1, %v15277_v3  ;;  %11728 = vmatmul.msk.bf16.vlgmr.msra.gmra.mxu3 %vm190_vm1, %v15277_v3 }
0x1fcf   :  { %11729 = vmatmul.msk.bf16.vlgmr.msra.gmra.mxu2 %vm190_vm1, %v15277_v3  ;;  %11730 = vmatmul.msk.bf16.vlgmr.msrb.gmra.mxu0 %vm190_vm1, %v15277_v3 }
0x1fd0   :  { %6882 = vmatpush.bf16.msrb.mxu1 %v13659_v57  ;;  %6921 = vmatpush.bf16.msrb.mxu0 %v13683_v58  ;;  %v13701_v57 = vld [vmem:[%s15965_s23 + $0x188] sm:$0xff]  ;;  %v13692_v58 = vld [vmem:[%s15965_s23 + $0x140] sm:$0xff] }
0x1fd1   :  { %6895 = vmatpush.bf16.msra.mxu3 %v13667_v59  ;;  %6908 = vmatpush.bf16.msra.mxu2 %v13675_v61  ;;  %v13700_v59 = vld [vmem:[%s15965_s23 + $0x180] sm:$0xff] }
0x1fd2   :  { %v15400_v61 = vld [vmem:[%s15966_s22] sm:$0xff] }
0x1fd4   :  { %6883 = vmatpush.bf16.msrb.mxu1 %v13658_v63  ;;  %6922 = vmatpush.bf16.msrb.mxu0 %v13682_v0  ;;  %v5676_v63 = vperm.slane %v15400_v61, 0  ;;  %v5679_v0 = vperm.slane %v15400_v61, 3 }
0x1fd5   :  { %6896 = vmatpush.bf16.msra.mxu3 %v13666_v1  ;;  %6909 = vmatpush.bf16.msra.mxu2 %v13674_v2 }
0x1fd8   :  { %6884 = vmatpush.bf16.msrb.mxu1 %v13657_v4  ;;  %6923 = vmatpush.bf16.msrb.mxu0 %v13681_v5 }
0x1fd9   :  { %6897 = vmatpush.bf16.msra.mxu3 %v13665_v26  ;;  %6910 = vmatpush.bf16.msra.mxu2 %v13673_v49  ;;  %v5677_v49 = vperm.slane %v15400_v61, 1 }
0x1fdc   :  { %6885 = vmatpush.bf16.msrb.mxu1 %v13656_v6  ;;  %6924 = vmatpush.bf16.msrb.mxu0 %v13680_v9  ;;  %v5678_v9 = vperm.slane %v15400_v61, 2 }
0x1fdd   :  { %6898 = vmatpush.bf16.msra.mxu3 %v13664_v11  ;;  %6911 = vmatpush.bf16.msra.mxu2 %v13672_v13  ;;  %v13723_v11 = vld [vmem:[%s15965_s23 + $0x238] sm:$0xff] }
0x1fde   :  { %11731 = vmatmul.msk.bf16.vlgmr.msra.gmra.mxu1 %vm190_vm1, %v15277_v3  ;;  %11732 = vmatmul.msk.bf16.vlgmr.msrb.gmra.mxu3 %vm190_vm1, %v15277_v3 }
0x1fdf   :  { %11733 = vmatmul.msk.bf16.vlgmr.msrb.gmra.mxu2 %vm190_vm1, %v15277_v3  ;;  %11734 = vmatmul.msk.bf16.vlgmr.msra.gmra.mxu0 %vm190_vm1, %v15277_v3  ;;  %v13677_v3 = vld [vmem:[%s15965_s23 + $0xc8] sm:$0xff] }
0x1fe0   :  { %6886 = vmatpush.bf16.msrb.mxu1 %v13655_v14  ;;  %6925 = vmatpush.bf16.msrb.mxu0 %v13679_v47  ;;  %v13747_v14 = vld [vmem:[%s15965_s23 + $0x2f8] sm:$0xff] }
0x1fe1   :  { %6899 = vmatpush.bf16.msra.mxu3 %v13663_v12  ;;  %6912 = vmatpush.bf16.msra.mxu2 %v13671_v8 }
0x1fe4   :  { %6887 = vmatpush.bf16.msrb.mxu1 %v13654_v15  ;;  %6926 = vmatpush.bf16.msrb.mxu0 %v13678_v17 }
0x1fe5   :  { %6900 = vmatpush.bf16.msra.mxu3 %v13662_v19  ;;  %6913 = vmatpush.bf16.msra.mxu2 %v13670_v20  ;;  %v13722_v20 = vld [vmem:[%s15965_s23 + $0x230] sm:$0xff] }
0x1fe8   :  { %6888 = vmatpush.bf16.msrb.mxu1 %v13653_v40  ;;  %6927 = vmatpush.bf16.msrb.mxu0 %v13677_v3 }
0x1fe9   :  { %6901 = vmatpush.bf16.msra.mxu3 %v13661_v21  ;;  %6914 = vmatpush.bf16.msra.mxu2 %v13669_v54  ;;  %v13746_v21 = vld [vmem:[%s15965_s23 + $0x2f0] sm:$0xff] }
0x1fec   :  { %6889 = vmatpush.bf16.msrb.mxu1 %v13652_v23  ;;  %6928 = vmatpush.bf16.msrb.mxu0 %v13676_v24  ;;  %v13731_v23 = vld [vmem:[%s15965_s23 + $0x278] sm:$0xff] }
0x1fed   :  { %6902 = vmatpush.bf16.msra.mxu3 %v13660_v16  ;;  %6915 = vmatpush.bf16.msra.mxu2 %v13668_v28  ;;  %v13721_v16 = vld [vmem:[%s15965_s23 + $0x228] sm:$0xff] }
0x1fee   :  { %v13745_v28 = vld [vmem:[%s15965_s23 + $0x2e8] sm:$0xff] }
0x1ff0   :  { %6934 = vmatpush.bf16.msra.mxu1 %v13691_v25  ;;  %6973 = vmatpush.bf16.msra.mxu0 %v13715_v60  ;;  %v13739_v25 = vld [vmem:[%s15965_s23 + $0x2b8] sm:$0xff] }
0x1ff1   :  { %6947 = vmatpush.bf16.msrb.mxu3 %v13699_v29  ;;  %6960 = vmatpush.bf16.msrb.mxu2 %v13707_v30  ;;  %v5680_v29 = vperm.slane %v15400_v61, 4 }
0x1ff4   :  { %6935 = vmatpush.bf16.msra.mxu1 %v13690_v31  ;;  %6974 = vmatpush.bf16.msra.mxu0 %v13714_v32  ;;  %v5683_v31 = vperm.slane %v15400_v61, 7  ;;  %v13730_v32 = vld [vmem:[%s15965_s23 + $0x270] sm:$0xff] }
0x1ff5   :  { %6948 = vmatpush.bf16.msrb.mxu3 %v13698_v33  ;;  %6961 = vmatpush.bf16.msrb.mxu2 %v13706_v34  ;;  %v13738_v34 = vld [vmem:[%s15965_s23 + $0x2b0] sm:$0xff] }
0x1ff8   :  { %6936 = vmatpush.bf16.msra.mxu1 %v13689_v18  ;;  %6975 = vmatpush.bf16.msra.mxu0 %v13713_v35  ;;  %v13720_v35 = vld [vmem:[%s15965_s23 + $0x220] sm:$0xff] }
0x1ff9   :  { %6949 = vmatpush.bf16.msrb.mxu3 %v13697_v62  ;;  %6962 = vmatpush.bf16.msrb.mxu2 %v13705_v36 }
0x1ffc   :  { %6937 = vmatpush.bf16.msra.mxu1 %v13688_v37  ;;  %6976 = vmatpush.bf16.msra.mxu0 %v13712_v38  ;;  %v13744_v37 = vld [vmem:[%s15965_s23 + $0x2e0] sm:$0xff] }
0x1ffd   :  { %6950 = vmatpush.bf16.msrb.mxu3 %v13696_v39  ;;  %6963 = vmatpush.bf16.msrb.mxu2 %v13704_v42  ;;  %v13729_v39 = vld [vmem:[%s15965_s23 + $0x268] sm:$0xff] }
0x2000   :  { %6938 = vmatpush.bf16.msra.mxu1 %v13687_v43  ;;  %6977 = vmatpush.bf16.msra.mxu0 %v13711_v41  ;;  %v13737_v43 = vld [vmem:[%s15965_s23 + $0x2a8] sm:$0xff]  ;;  %v5681_v41 = vperm.slane %v15400_v61, 5 }
0x2001   :  { %6951 = vmatpush.bf16.msrb.mxu3 %v13695_v48  ;;  %6964 = vmatpush.bf16.msrb.mxu2 %v13703_v50  ;;  %v13719_v48 = vld [vmem:[%s15965_s23 + $0x218] sm:$0xff] }
0x2004   :  { %6939 = vmatpush.bf16.msra.mxu1 %v13686_v44  ;;  %6978 = vmatpush.bf16.msra.mxu0 %v13710_v45  ;;  %v5682_v45 = vperm.slane %v15400_v61, 6 }
0x2005   :  { %6952 = vmatpush.bf16.msrb.mxu3 %v13694_v7  ;;  %6965 = vmatpush.bf16.msrb.mxu2 %v13702_v52  ;;  %v13728_v52 = vld [vmem:[%s15965_s23 + $0x260] sm:$0xff] }
0x2008   :  { %6940 = vmatpush.bf16.msra.mxu1 %v13685_v51  ;;  %6979 = vmatpush.bf16.msra.mxu0 %v13709_v22  ;;  %v13743_v51 = vld [vmem:[%s15965_s23 + $0x2d8] sm:$0xff] }
0x2009   :  { %6953 = vmatpush.bf16.msrb.mxu3 %v13693_v56  ;;  %6966 = vmatpush.bf16.msrb.mxu2 %v13701_v57  ;;  %v13736_v56 = vld [vmem:[%s15965_s23 + $0x2a0] sm:$0xff] }
0x200c   :  { %6941 = vmatpush.bf16.msra.mxu1 %v13684_v53  ;;  %6980 = vmatpush.bf16.msra.mxu0 %v13708_v55 }
0x200d   :  { %6954 = vmatpush.bf16.msrb.mxu3 %v13692_v58  ;;  %6967 = vmatpush.bf16.msrb.mxu2 %v13700_v59  ;;  %v13718_v59 = vld [vmem:[%s15965_s23 + $0x210] sm:$0xff] }
0x202b   :  { %v5880_v1 = vpop.f32.mrf.mxu1 }
0x202c   :  { %v5881_v2 = vadd.f32 %v5880_v1, %v5676_v63  ;;  %v5919_v4 = vpop.f32.mrf.mxu0 }
0x202d   :  { %v5920_v5 = vadd.f32 %v5919_v4, %v5679_v0  ;;  %v13742_v0 = vld [vmem:[%s15965_s23 + $0x2d0] sm:$0xff]  ;;  %v15432_v4 = vld [vmem:[%s15966_s22 + $0x8] sm:$0xff] }
0x202e   :  { %v6079_v26 = vmax.f32 %v5881_v2, 0.0  ;;  %v13727_v2 = vld [vmem:[%s15965_s23 + $0x258] sm:$0xff] }
0x202f   :  { %v6082_v6 = vmax.f32 %v5920_v5, 0.0 }
0x2030   :  { %v6095_v13 = vpack.c.bf16 %v6079_v26, %v6079_v26  ;;  %v13735_v26 = vld [vmem:[%s15965_s23 + $0x298] sm:$0xff] }
0x2031   :  { %v6098_v47 = vpack.c.bf16 %v6082_v6, %v6082_v6  ;;  %v5893_v12 = vpop.f32.mrf.mxu3  ;;  %v13717_v6 = vld [vmem:[%s15965_s23 + $0x208] sm:$0xff] }
0x2032   :  { %v5894_v8 = vadd.f32 %v5893_v12, %v5677_v49  ;;  %v5906_v15 = vpop.f32.mrf.mxu2  ;;  %6890 = vmatmul.bf16.vlgmr.msrb.gmra.mxu1 %v6095_v13 }
0x2033   :  { %v5907_v17 = vadd.f32 %v5906_v15, %v5678_v9  ;;  %6929 = vmatmul.bf16.vlgmr.msrb.gmra.mxu0 %v6098_v47  ;;  %6986 = vmatpush.bf16.msrb.mxu1 %v13723_v11  ;;  %v5882_v19 = vpop.f32.mrf.mxu1  ;;  %v13741_v9 = vld [vmem:[%s15965_s23 + $0x2c8] sm:$0xff]  ;;  %v5684_v11 = vperm.slane %v15432_v4, 0  ;;  %v13726_v47 = vld [vmem:[%s15965_s23 + $0x250] sm:$0xff] }
0x2034   :  { %v6080_v40 = vmax.f32 %v5894_v8, 0.0  ;;  %7025 = vmatpush.bf16.msrb.mxu0 %v13747_v14  ;;  %v5921_v3 = vpop.f32.mrf.mxu0  ;;  %v5687_v14 = vperm.slane %v15432_v4, 3  ;;  %v13734_v8 = vld [vmem:[%s15965_s23 + $0x290] sm:$0xff] }
0x2035   :  { %v6081_v54 = vmax.f32 %v5907_v17, 0.0  ;;  %v13716_v17 = vld [vmem:[%s15965_s23 + $0x200] sm:$0xff]  ;;  %v13755_v3 = vld [vmem:[%s15965_s23 + $0x338] sm:$0xff] }
0x2036   :  { %v6096_v24 = vpack.c.bf16 %v6080_v40, %v6080_v40  ;;  %v13740_v40 = vld [vmem:[%s15965_s23 + $0x2c0] sm:$0xff] }
0x2037   :  { %v6097_v60 = vpack.c.bf16 %v6081_v54, %v6081_v54  ;;  %6987 = vmatpush.bf16.msrb.mxu1 %v13722_v20  ;;  %v13779_v54 = vld [vmem:[%s15965_s23 + $0x3f8] sm:$0xff] }
0x2038   :  { %7026 = vmatpush.bf16.msrb.mxu0 %v13746_v21  ;;  %6903 = vmatmul.bf16.vlgmr.msra.gmra.mxu3 %v6096_v24 }
0x2039   :  { %6916 = vmatmul.bf16.vlgmr.msra.gmra.mxu2 %v6097_v60  ;;  %6999 = vmatpush.bf16.msra.mxu3 %v13731_v23  ;;  %v5895_v30 = vpop.f32.mrf.mxu3  ;;  %v13725_v23 = vld [vmem:[%s15965_s23 + $0x248] sm:$0xff]  ;;  %v5685_v60 = vperm.slane %v15432_v4, 1 }
0x203a   :  { %7012 = vmatpush.bf16.msra.mxu2 %v13739_v25  ;;  %v5908_v33 = vpop.f32.mrf.mxu2  ;;  %v13733_v25 = vld [vmem:[%s15965_s23 + $0x288] sm:$0xff]  ;;  %v13754_v30 = vld [vmem:[%s15965_s23 + $0x330] sm:$0xff] }
0x203b   :  { %6988 = vmatpush.bf16.msrb.mxu1 %v13721_v16  ;;  %v5932_v18 = vpop.f32.mrf.mxu1  ;;  %v13778_v33 = vld [vmem:[%s15965_s23 + $0x3f0] sm:$0xff] }
0x203c   :  { %7027 = vmatpush.bf16.msrb.mxu0 %v13745_v28  ;;  %v5933_v62 = vadd.f32 %v5932_v18, %v5680_v29  ;;  %v5971_v36 = vpop.f32.mrf.mxu0  ;;  %v5686_v28 = vperm.slane %v15432_v4, 2 }
0x203d   :  { %v5972_v38 = vadd.f32 %v5971_v36, %v5683_v31  ;;  %7000 = vmatpush.bf16.msra.mxu3 %v13730_v32  ;;  %v13763_v36 = vld [vmem:[%s15965_s23 + $0x378] sm:$0xff] }
0x203e   :  { %v6083_v42 = vmax.f32 %v5933_v62, 0.0  ;;  %7013 = vmatpush.bf16.msra.mxu2 %v13738_v34  ;;  %v13724_v34 = vld [vmem:[%s15965_s23 + $0x240] sm:$0xff] }
0x203f   :  { %v6086_v44 = vmax.f32 %v5972_v38, 0.0  ;;  %6989 = vmatpush.bf16.msrb.mxu1 %v13720_v35  ;;  %v13732_v62 = vld [vmem:[%s15965_s23 + $0x280] sm:$0xff] }
0x2040   :  { %v6099_v50 = vpack.c.bf16 %v6083_v42, %v6083_v42  ;;  %7028 = vmatpush.bf16.msrb.mxu0 %v13744_v37 }
0x2041   :  { %v6102_v22 = vpack.c.bf16 %v6086_v44, %v6086_v44  ;;  %7001 = vmatpush.bf16.msra.mxu3 %v13729_v39  ;;  %v5945_v7 = vpop.f32.mrf.mxu3  ;;  %v13771_v39 = vld [vmem:[%s15965_s23 + $0x3b8] sm:$0xff] }
0x2042   :  { %7014 = vmatpush.bf16.msra.mxu2 %v13737_v43  ;;  %v5946_v53 = vadd.f32 %v5945_v7, %v5681_v41  ;;  %v5958_v55 = vpop.f32.mrf.mxu2  ;;  %6942 = vmatmul.bf16.vlgmr.msra.gmra.mxu1 %v6099_v50  ;;  %v13753_v41 = vld [vmem:[%s15965_s23 + $0x328] sm:$0xff]  ;;  %v13762_v50 = vld [vmem:[%s15965_s23 + $0x370] sm:$0xff]  ;;  %v13752_v7 = vld [vmem:[%s15965_s23 + $0x320] sm:$0xff] }
0x2043   :  { %v5959_v57 = vadd.f32 %v5958_v55, %v5682_v45  ;;  %6981 = vmatmul.bf16.vlgmr.msra.gmra.mxu0 %v6102_v22  ;;  %6990 = vmatpush.bf16.msrb.mxu1 %v13719_v48  ;;  %v5934_v58 = vpop.f32.mrf.mxu1  ;;  %v13777_v45 = vld [vmem:[%s15965_s23 + $0x3e8] sm:$0xff]  ;;  %v13770_v22 = vld [vmem:[%s15965_s23 + $0x3b0] sm:$0xff] }
0x2044   :  { %v6084_v61 = vmax.f32 %v5946_v53, 0.0  ;;  %7029 = vmatpush.bf16.msrb.mxu0 %v13743_v51  ;;  %v5973_v63 = vpop.f32.mrf.mxu0  ;;  %v13776_v53 = vld [vmem:[%s15965_s23 + $0x3e0] sm:$0xff]  ;;  %v13769_v58 = vld [vmem:[%s15965_s23 + $0x3a8] sm:$0xff] }
0x2045   :  { %v6085_v1 = vmax.f32 %v5959_v57, 0.0  ;;  %7002 = vmatpush.bf16.msra.mxu3 %v13728_v52  ;;  %v13775_v63 = vld [vmem:[%s15965_s23 + $0x3d8] sm:$0xff] }
0x2046   :  { %v6100_v5 = vpack.c.bf16 %v6084_v61, %v6084_v61  ;;  %7015 = vmatpush.bf16.msra.mxu2 %v13736_v56  ;;  %v13761_v56 = vld [vmem:[%s15965_s23 + $0x368] sm:$0xff]  ;;  %v13751_v61 = vld [vmem:[%s15965_s23 + $0x318] sm:$0xff] }
0x2047   :  { %v6101_v49 = vpack.c.bf16 %v6085_v1, %v6085_v1  ;;  %6991 = vmatpush.bf16.msrb.mxu1 %v13718_v59  ;;  %v13768_v1 = vld [vmem:[%s15965_s23 + $0x3a0] sm:$0xff] }
0x2048   :  { %7030 = vmatpush.bf16.msrb.mxu0 %v13742_v0  ;;  %6955 = vmatmul.bf16.vlgmr.msrb.gmra.mxu3 %v6100_v5  ;;  %v13760_v0 = vld [vmem:[%s15965_s23 + $0x360] sm:$0xff]  ;;  %v5688_v5 = vperm.slane %v15432_v4, 4 }
0x2049   :  { %6968 = vmatmul.bf16.vlgmr.msrb.gmra.mxu2 %v6101_v49  ;;  %7003 = vmatpush.bf16.msra.mxu3 %v13727_v2  ;;  %v5947_v13 = vpop.f32.mrf.mxu3  ;;  %v13750_v2 = vld [vmem:[%s15965_s23 + $0x310] sm:$0xff] }
0x204a   :  { %7016 = vmatpush.bf16.msra.mxu2 %v13735_v26  ;;  %v5960_v12 = vpop.f32.mrf.mxu2  ;;  %v13774_v49 = vld [vmem:[%s15965_s23 + $0x3d0] sm:$0xff] }
0x204b   :  { %6992 = vmatpush.bf16.msrb.mxu1 %v13717_v6  ;;  %v5984_v15 = vpop.f32.mrf.mxu1  ;;  %v5691_v6 = vperm.slane %v15432_v4, 7  ;;  %v13749_v12 = vld [vmem:[%s15965_s23 + $0x308] sm:$0xff] }
0x204c   :  { %7031 = vmatpush.bf16.msrb.mxu0 %v13741_v9  ;;  %v5985_v19 = vadd.f32 %v5984_v15, %v5684_v11  ;;  %v6023_v20 = vpop.f32.mrf.mxu0  ;;  %v13759_v11 = vld [vmem:[%s15965_s23 + $0x358] sm:$0xff]  ;;  %v13773_v15 = vld [vmem:[%s15965_s23 + $0x3c8] sm:$0xff] }
0x204d   :  { %v6024_v21 = vadd.f32 %v6023_v20, %v5687_v14  ;;  %7004 = vmatpush.bf16.msra.mxu3 %v13726_v47  ;;  %v13767_v14 = vld [vmem:[%s15965_s23 + $0x398] sm:$0xff]  ;;  %v5689_v20 = vperm.slane %v15432_v4, 5 }
0x204e   :  { %v6087_v24 = vmax.f32 %v5985_v19, 0.0  ;;  %7017 = vmatpush.bf16.msra.mxu2 %v13734_v8  ;;  %v13758_v19 = vld [vmem:[%s15965_s23 + $0x350] sm:$0xff] }
0x204f   :  { %v6090_v16 = vmax.f32 %v6024_v21, 0.0  ;;  %6993 = vmatpush.bf16.msrb.mxu1 %v13716_v17  ;;  %v13748_v21 = vld [vmem:[%s15965_s23 + $0x300] sm:$0xff] }
0x2050   :  { %v6103_v29 = vpack.c.bf16 %v6087_v24, %v6087_v24  ;;  %7032 = vmatpush.bf16.msrb.mxu0 %v13740_v40  ;;  %v13766_v40 = vld [vmem:[%s15965_s23 + $0x390] sm:$0xff]  ;;  %v13772_v24 = vld [vmem:[%s15965_s23 + $0x3c0] sm:$0xff] }
0x2051   :  { %v6106_v31 = vpack.c.bf16 %v6090_v16, %v6090_v16  ;;  %7005 = vmatpush.bf16.msra.mxu3 %v13725_v23  ;;  %v5997_v32 = vpop.f32.mrf.mxu3  ;;  %v13757_v16 = vld [vmem:[%s15965_s23 + $0x348] sm:$0xff] }
0x2052   :  { %7018 = vmatpush.bf16.msra.mxu2 %v13733_v25  ;;  %v5998_v18 = vadd.f32 %v5997_v32, %v5685_v60  ;;  %v6010_v35 = vpop.f32.mrf.mxu2  ;;  %6994 = vmatmul.bf16.vlgmr.msrb.gmra.mxu1 %v6103_v29  ;;  %v13765_v29 = vld [vmem:[%s15965_s23 + $0x388] sm:$0xff]  ;;  %v13756_v32 = vld [vmem:[%s15965_s23 + $0x340] sm:$0xff] }
0x2053   :  { %7038 = vmatpush.bf16.msra.mxu1 %v13755_v3  ;;  %v6011_v37 = vadd.f32 %v6010_v35, %v5686_v28  ;;  %7033 = vmatmul.bf16.vlgmr.msrb.gmra.mxu0 %v6106_v31  ;;  %v5986_v38 = vpop.f32.mrf.mxu1  ;;  %v5690_v3 = vperm.slane %v15432_v4, 6 }
0x2054   :  { %7077 = vmatpush.bf16.msra.mxu0 %v13779_v54  ;;  %v6088_v42 = vmax.f32 %v5998_v18, 0.0  ;;  %v6025_v43 = vpop.f32.mrf.mxu0 }
0x2055   :  { %v6089_v44 = vmax.f32 %v6011_v37, 0.0  ;;  %7006 = vmatpush.bf16.msra.mxu3 %v13724_v34  ;;  %v13764_v34 = vld [vmem:[%s15965_s23 + $0x380] sm:$0xff] }
0x2056   :  { %v6104_v48 = vpack.c.bf16 %v6088_v42, %v6088_v42  ;;  %7019 = vmatpush.bf16.msra.mxu2 %v13732_v62 }
0x2057   :  { %7039 = vmatpush.bf16.msra.mxu1 %v13754_v30  ;;  %v6105_v51 = vpack.c.bf16 %v6089_v44, %v6089_v44 }
0x2058   :  { %7078 = vmatpush.bf16.msra.mxu0 %v13778_v33  ;;  %7007 = vmatmul.bf16.vlgmr.msra.gmra.mxu3 %v6104_v48 }
0x2059   :  { %7051 = vmatpush.bf16.msrb.mxu3 %v13763_v36  ;;  %7020 = vmatmul.bf16.vlgmr.msra.gmra.mxu2 %v6105_v51  ;;  %v5999_v52 = vpop.f32.mrf.mxu3 }
0x205a   :  { %7064 = vmatpush.bf16.msrb.mxu2 %v13771_v39  ;;  %v6012_v55 = vpop.f32.mrf.mxu2 }
0x205b   :  { %7040 = vmatpush.bf16.msra.mxu1 %v13753_v41  ;;  %v6036_v57 = vpop.f32.mrf.mxu1 }
0x205c   :  { %7079 = vmatpush.bf16.msra.mxu0 %v13777_v45  ;;  %v6075_v59 = vpop.f32.mrf.mxu0  ;;  %v6037_v8 = vadd.f32 %v6036_v57, %v5688_v5 }
0x205d   :  { %7052 = vmatpush.bf16.msrb.mxu3 %v13762_v50  ;;  %v6076_v17 = vadd.f32 %v6075_v59, %v5691_v6 }
0x205e   :  { %7065 = vmatpush.bf16.msrb.mxu2 %v13770_v22  ;;  %v6091_v54 = vmax.f32 %v6037_v8, 0.0  ;;  %v14005_v22 = vld [vmem:[%s15967_s26] ss:$0 sm:$0xff] }
0x205f   :  { %7041 = vmatpush.bf16.msra.mxu1 %v13752_v7  ;;  %v6094_v25 = vmax.f32 %v6076_v17, 0.0 }
0x2060   :  { %7080 = vmatpush.bf16.msra.mxu0 %v13776_v53  ;;  %v6107_v31 = vpack.c.bf16 %v6091_v54, %v6091_v54 }
0x2061   :  { %7053 = vmatpush.bf16.msrb.mxu3 %v13761_v56  ;;  %v6049_v26 = vpop.f32.mrf.mxu3  ;;  %v6110_v4 = vpack.c.bf16 %v6094_v25, %v6094_v25 }
0x2062   :  { %7066 = vmatpush.bf16.msrb.mxu2 %v13769_v58  ;;  %v6062_v9 = vpop.f32.mrf.mxu2  ;;  %v6050_v28 = vadd.f32 %v6049_v26, %v5689_v20 }
0x2063   :  { %7042 = vmatpush.bf16.msra.mxu1 %v13751_v61  ;;  %v6038_v13 = vpop.f32.mrf.mxu1  ;;  %v6063_v30 = vadd.f32 %v6062_v9, %v5690_v3 }
0x2064   :  { %7081 = vmatpush.bf16.msra.mxu0 %v13775_v63  ;;  %v6077_v47 = vpop.f32.mrf.mxu0  ;;  %v6092_v33 = vmax.f32 %v6050_v28, 0.0 }
0x2065   :  { %7054 = vmatpush.bf16.msrb.mxu3 %v13760_v0  ;;  %v6093_v18 = vmax.f32 %v6063_v30, 0.0 }
0x2066   :  { %7067 = vmatpush.bf16.msrb.mxu2 %v13768_v1  ;;  %v6108_v35 = vpack.c.bf16 %v6092_v33, %v6092_v33  ;;  %v13781_v33 = vld [vmem:[%s14310_s4 + $0x18] sm:$0xff] }
0x2067   :  { %7043 = vmatpush.bf16.msra.mxu1 %v13750_v2  ;;  %v6109_v62 = vpack.c.bf16 %v6093_v18, %v6093_v18 }
0x2068   :  { %7082 = vmatpush.bf16.msra.mxu0 %v13774_v49 }
0x2069   :  { %7055 = vmatpush.bf16.msrb.mxu3 %v13759_v11  ;;  %v6051_v23 = vpop.f32.mrf.mxu3 }
0x206a   :  { %7068 = vmatpush.bf16.msrb.mxu2 %v13767_v14  ;;  %v6064_v60 = vpop.f32.mrf.mxu2 }
0x206b   :  { %7044 = vmatpush.bf16.msra.mxu1 %v13749_v12 }
0x206c   :  { %7083 = vmatpush.bf16.msra.mxu0 %v13773_v15 }
0x206d   :  { %7056 = vmatpush.bf16.msrb.mxu3 %v13758_v19 }
0x206e   :  { %7069 = vmatpush.bf16.msrb.mxu2 %v13766_v40 }
0x206f   :  { %7045 = vmatpush.bf16.msra.mxu1 %v13748_v21 }
0x2070   :  { %7084 = vmatpush.bf16.msra.mxu0 %v13772_v24 }
0x2071   :  { %7057 = vmatpush.bf16.msrb.mxu3 %v13757_v16 }
0x2072   :  { %7070 = vmatpush.bf16.msrb.mxu2 %v13765_v29  ;;  %7046 = vmatmul.bf16.vlgmr.msra.gmra.mxu1 %v6107_v31 }
0x2073   :  { %7085 = vmatmul.bf16.vlgmr.msra.gmra.mxu0 %v6110_v4  ;;  %7151 = vmatpush.bf16.msrb.mxu1 %v13781_v33 }
0x2075   :  { %7058 = vmatpush.bf16.msrb.mxu3 %v13756_v32 }
0x2076   :  { %7071 = vmatpush.bf16.msrb.mxu2 %v13764_v34  ;;  %v13780_v34 = vld [vmem:[%s14310_s4 + $0x10] sm:$0xff] }
0x2077   :  { %7152 = vmatpush.bf16.msrb.mxu1 %v13780_v34 }
0x2078   :  { %7059 = vmatmul.bf16.vlgmr.msrb.gmra.mxu3 %v6108_v35 }
0x2079   :  { %7072 = vmatmul.bf16.vlgmr.msrb.gmra.mxu2 %v6109_v62 }
0x20af   :  { %v6891_v36 = vpop.f32.mrf.mxu1 }
0x20b0   :  { %v6930_v37 = vpop.f32.mrf.mxu0  ;;  %v6892_v53 = vadd.f32 %v14005_v22, %v6891_v36 }
0x20b7   :  { %v6893_v38 = vpop.f32.mrf.mxu1 }
0x20b8   :  { %v6932_v39 = vpop.f32.mrf.mxu0 }
0x20bb   :  { %v6904_v42 = vpop.f32.mrf.mxu3 }
0x20bc   :  { %v6917_v43 = vpop.f32.mrf.mxu2  ;;  %v6905_v57 = vadd.f32 %v6904_v42, %v6892_v53 }
0x20be   :  { %v6918_v61 = vadd.f32 %v6917_v43, %v6905_v57  ;;  %v14143_v43 = vld [vmem:[%s15959_s8] sm:$0x3f] }
0x20bf   :  { %v6943_v41 = vpop.f32.mrf.mxu1 }
0x20c0   :  { %v6982_v44 = vpop.f32.mrf.mxu0  ;;  %v6931_v1 = vadd.f32 %v6930_v37, %v6918_v61 }
0x20c2   :  { %v6944_v26 = vadd.f32 %v6943_v41, %v6931_v1  ;;  %v7113_v41 = vperm.slane %v14143_v43, 4 }
0x20c3   :  { %v6906_v45 = vpop.f32.mrf.mxu3 }
0x20c4   :  { %v6919_v48 = vpop.f32.mrf.mxu2  ;;  %v7115_v45 = vperm.slane %v14143_v43, 5  ;;  %v12263_v43 = vld [vmem:[%s15954_s13 + $0x14] sm:$0xf] }
0x20c7   :  { %v6945_v50 = vpop.f32.mrf.mxu1 }
0x20c8   :  { %v6984_v51 = vpop.f32.mrf.mxu0 }
0x20cb   :  { %v6956_v7 = vpop.f32.mrf.mxu3 }
0x20cc   :  { %v6969_v52 = vpop.f32.mrf.mxu2  ;;  %v6957_v49 = vadd.f32 %v6956_v7, %v6944_v26  ;;  %v14006_v7 = vld [vmem:[%s14305_s27 + $0x1] ss:$0 sm:$0xff] }
0x20ce   :  { %v6970_v6 = vadd.f32 %v6969_v52, %v6957_v49 }
0x20cf   :  { %v6995_v55 = vpop.f32.mrf.mxu1 }
0x20d0   :  { %v7034_v56 = vpop.f32.mrf.mxu0  ;;  %v6983_v13 = vadd.f32 %v6982_v44, %v6970_v6 }
0x20d2   :  { %v6996_v14 = vadd.f32 %v6995_v55, %v6983_v13 }
0x20d3   :  { %v6958_v58 = vpop.f32.mrf.mxu3 }
0x20d4   :  { %v6971_v59 = vpop.f32.mrf.mxu2 }
0x20d7   :  { %v6997_v63 = vpop.f32.mrf.mxu1 }
0x20d8   :  { %v7036_v0 = vpop.f32.mrf.mxu0 }
0x20db   :  { %v7008_v2 = vpop.f32.mrf.mxu3 }
0x20dc   :  { %v7021_v5 = vpop.f32.mrf.mxu2  ;;  %v7009_v12 = vadd.f32 %v7008_v2, %v6996_v14 }
0x20de   :  { %v7022_v15 = vadd.f32 %v7021_v5, %v7009_v12  ;;  %v15520_v5 = vld [vmem:[%s14230_s9] sm:$0xff]  ;;  %s15968_s9 = sld [smem:[#allocation16_spill]] }
0x20e0   :  { %v7035_v19 = vadd.f32 %v7034_v56, %v7022_v15 }
0x20e3   :  { %v7010_v9 = vpop.f32.mrf.mxu3 }
0x20e4   :  { %v7023_v11 = vpop.f32.mrf.mxu2 }
0x20ef   :  { %v7047_v47 = vpop.f32.mrf.mxu1 }
0x20f0   :  { %v7086_v8 = vpop.f32.mrf.mxu0  ;;  %v7048_v40 = vadd.f32 %v7047_v47, %v7035_v19 }
0x20f7   :  { %v7049_v17 = vpop.f32.mrf.mxu1 }
0x20f8   :  { %v7088_v20 = vpop.f32.mrf.mxu0 }
0x20fb   :  { %v7060_v3 = vpop.f32.mrf.mxu3 }
0x20fc   :  { %v7061_v21 = vadd.f32 %v7060_v3, %v7048_v40  ;;  %v7073_v54 = vpop.f32.mrf.mxu2 }
0x20fe   :  { %v7074_v23 = vadd.f32 %v7073_v54, %v7061_v21 }
0x2100   :  { %v7087_v24 = vadd.f32 %v7086_v8, %v7074_v23 }
0x2102   :  { %v7090_v25 = vadd.f32 %v7087_v24, %v15270_v27 }
0x2103   :  { %v7062_v60 = vpop.f32.mrf.mxu3 }
0x2104   :  { %v7075_v16 = vpop.f32.mrf.mxu2  ;;  %v7091_v28 = vsel %vm190_vm1, %v7090_v25, 0.0 }
0x2105   :  { %7092 = vadd.xlane.f32.xlu1 %v7091_v28 }
0x2178   :  { %v7093_v29 = vpop.xlane.xlu1 %7092 }
0x2179   :  { %v7094_v30 = vmul.f32 %v7093_v29, %v14465_v46 }
0x217b   :  { %v7095_v31 = vsub.f32 %v7090_v25, %v7094_v30 }
0x217d   :  { %v7096_v4 = vmul.f32 %v7095_v31, %v7095_v31 }
0x217f   :  { %v7097_v32 = vsel %vm190_vm1, %v7096_v4, 0.0 }
0x2180   :  { %7098 = vadd.xlane.f32.xlu2 %v7097_v32 }
0x21f3   :  { %v7099_v18 = vpop.xlane.xlu2 %7098 }
0x21f4   :  { %v7100_v27 = vmul.f32 %v7099_v18, %v14465_v46 }
0x21f6   :  { %v7101_v35 = vadd.f32 1e-05, %v7100_v27  ;;  %v12264_v27 = vld [vmem:[%s15954_s13 + $0x18] sm:$0xf] }
0x21f8   :  { %14093 = vrsqrt.f32 %v7101_v35  ;;  %vm7108_vm14 = vweird.f32 %v7101_v35 }
0x21fe   :  { %v14094_v62 = vpop.eup %14093 }
0x21ff   :  { %v7103_v36 = vmul.f32 %v14094_v62, %v7101_v35  ;;  %vm7109_vm13 = vweird.f32 %v14094_v62  ;;  %v7406_v35 = vsel %vm349_vm3, %v12264_v27, 0 }
0x2200   :  { %vm7110_vm15 = vmor %vm7108_vm14, %vm7109_vm13 }
0x2201   :  { %v7104_v37 = vmul.f32 %v14094_v62, %v7103_v36 }
0x2203   :  { %v7105_v38 = vmul.f32 0.5, %v7104_v37 }
0x2205   :  { %v7106_v39 = vsub.f32 1.5, %v7105_v38 }
0x2207   :  { %v7107_v42 = vmul.f32 %v14094_v62, %v7106_v39 }
0x2209   :  { %v7111_v44 = vsel %vm7110_vm15, %v14094_v62, %v7107_v42 }
0x220a   :  { %v7112_v48 = vmul.f32 %v7111_v44, %v7095_v31 }
0x220c   :  { %v7114_v50 = vmul.f32 %v7113_v41, %v7112_v48  ;;  %v7302_v41 = vsel %vm349_vm3, %v12263_v43, 0 }
0x220e   :  { %v15494_v51 = vadd.f32 %v7115_v45, %v7114_v50 }
0x2210   :  { %v7124_v22 = vpack.c.bf16 %v15494_v51, %v15494_v51 }
0x2212   :  { %12261 = vmatmul.msk.bf16.vlgmr.msrb.gmra.mxu1 %vm190_vm1, %v7124_v22 }
0x228f   :  { %v7154_v52 = vpop.f32.mrf.mxu1 }
0x2290   :  { %v15500_v53 = vadd.f32 %v14006_v7, %v7154_v52 }
0x2292   :  { %7271 = vrot.lane.b32.xlu1 %v15500_v53, %s14207_s6  ;;  %7234 = vrot.lane.b32.xlu2 %v15500_v53, %s14204_s0  ;;  %v7165_v56 = vmul.f32 0.35355338, %v15500_v53 }
0x2293   :  { %7167 = vrot.lane.b32.xlu0 %v15500_v53, %s14205_s5 }
0x2297   :  { %v7156_v55 = vpop.f32.mrf.mxu1 }
0x229b   :  { %7338 = vrot.lane.b32.xlu0 %v15500_v53, %s14210_s2 }
0x22a3   :  { %7232 = vrot.lane.b32.xlu0 %v7165_v56, %s14206_s19 }
0x22ab   :  { %7336 = vrot.lane.b32.xlu0 %v7165_v56, %s14208_s1 }
0x22ec   :  { %v7235_v59 = vpop.permute.xlu2 %7234 }
0x2304   :  { %v7272_v57 = vpop.permute.xlu1 %7271 }
0x2305   :  { %v7168_v58 = vpop.permute.xlu0 %7167  ;;  %7292 = vmatpush.msrb.mxu0 %v7272_v57 }
0x2306   :  { %12267 = vmatpush.xpose.msk.msra.mxu3 %vm216_vm2, %v7168_v58 }
0x2309   :  { %12268 = vmatmul.msk.f32.vlgmr.msra.gmra.mxu3 %vm216_vm2, %v7165_v56 }
0x230a   :  { %12270 = vmatpush.xpose.msk.msrb.mxu3 %vm216_vm2, %v7235_v59  ;;  %v12262_v59 = vld [vmem:[%s15954_s13 + $0x10] sm:$0xf] }
0x230d   :  { %v7339_v61 = vpop.permute.xlu0 %7338 }
0x230e   :  { %12275 = vmatpush.xpose.msk.msra.mxu3 %vm216_vm2, %v7339_v61  ;;  %v7321_v61 = vsel %vm349_vm3, %v12262_v59, 0 }
0x230f   :  { %7330 = vmatpush.bf16.msra.mxu1 %v7321_v61 }
0x2315   :  { %v7233_v63 = vpop.permute.xlu0 %7232 }
0x2316   :  { %12271 = vmatmul.msk.f32.vlgmr.msrb.gmra.mxu3 %vm216_vm2, %v7233_v63 }
0x2317   :  { %7415 = vmatpush.bf16.msrb.mxu3 %v7406_v35 }
0x231d   :  { %v7337_v0 = vpop.permute.xlu0 %7336 }
0x231e   :  { %12276 = vmatmul.msk.f32.vlgmr.msra.gmra.mxu3 %vm216_vm2, %v7337_v0 }
0x238c   :  { %v7191_v1 = vpop.f32.mrf.mxu3 }
0x238d   :  { %v7192_v21 = vadd.f32 %v15520_v5, %v7191_v1 }
0x238f   :  { %v7194_v54 = vsel %vm216_vm2, %v7192_v21, -inf }
0x2399   :  { %v7257_v2 = vpop.f32.mrf.mxu3 }
0x239a   :  { %v7258_v26 = vadd.f32 %v15520_v5, %v7257_v2 }
0x239c   :  { %v7260_v49 = vsel %vm216_vm2, %v7258_v26, -inf }
0x239d   :  { %7261 = vmax.xlane.f32.xlu2 %v7260_v49  ;;  %v13784_v49 = vld [vmem:[%s15956_s29 + $0x10] sm:$0xff] }
0x23a1   :  { %v7361_v6 = vpop.f32.mrf.mxu3 }
0x23a2   :  { %v7362_v9 = vadd.f32 %v15520_v5, %v7361_v6 }
0x23a4   :  { %v7364_v11 = vsel %vm216_vm2, %v7362_v9, -inf }
0x23a5   :  { %7365 = vmax.xlane.f32.xlu0 %v7364_v11 }
0x23b5   :  { %7375 = vrot.lane.b32.xlu2 %v15500_v53, %s14211_s10 }
0x23b9   :  { %7424 = vrot.lane.b32.xlu0 %v15500_v53, %s14213_s11 }
0x2410   :  { %v7262_v13 = vpop.xlane.xlu2 %7261 }
0x2411   :  { %v7263_v14 = vsub.f32 %v7258_v26, %v7262_v13  ;;  %v13785_v26 = vld [vmem:[%s15956_s29 + $0x18] sm:$0xff] }
0x2412   :  { %v12265_v13 = vld [vmem:[%s15954_s13 + $0x1c] sm:$0xf] }
0x2413   :  { %v7264_v47 = vmul.f32 1.442695, %v7263_v14  ;;  %v7492_v14 = vsel %vm349_vm3, %v12265_v13, 0 }
0x2414   :  { %7501 = vmatpush.bf16.msrb.mxu1 %v7492_v14 }
0x2415   :  { %14095 = vpow2.f32 %v7264_v47 }
0x2418   :  { %v7366_v12 = vpop.xlane.xlu0 %7365  ;;  %v7376_v8 = vpop.permute.xlu2 %7375 }
0x2419   :  { %v7367_v15 = vsub.f32 %v7362_v9, %v7366_v12  ;;  %7396 = vmatpush.msra.mxu0 %v7376_v8 }
0x241b   :  { %v14096_v17 = vpop.eup %14095  ;;  %v7368_v19 = vmul.f32 1.442695, %v7367_v15 }
0x241c   :  { %v7266_v20 = vsel %vm216_vm2, %v14096_v17, 0.0 }
0x241d   :  { %14097 = vpow2.f32 %v7368_v19  ;;  %7267 = vadd.xlane.f32.xlu1 %v7266_v20 }
0x2423   :  { %v14098_v40 = vpop.eup %14097 }
0x2424   :  { %v7370_v3 = vsel %vm216_vm2, %v14098_v40, 0.0 }
0x2425   :  { %7371 = vadd.xlane.f32.xlu1 %v7370_v3 }
0x242b   :  { %v7425_v16 = vpop.permute.xlu0 %7424 }
0x243e   :  { %7422 = vrot.lane.b32.xlu1 %v7165_v56, %s14212_s7 }
0x2468   :  { %7195 = vmax.xlane.f32.xlu1 %v7194_v54  ;;  %v14008_v54 = vld [vmem:[%s15955_s21 + $0x1] ss:$0 sm:$0xff] }
0x2481   :  { %7205 = vrot.lane.b32.xlu1 %v15500_v53, %s14209_s28 }
0x2490   :  { %v7268_v23 = vpop.xlane.xlu1 %7267 }
0x2491   :  { %14099 = vrcp.f32 %v7268_v23 }
0x2497   :  { %v14100_v24 = vpop.eup %14099 }
0x2498   :  { %v7270_v25 = vmul.f32 %v14100_v24, %v14096_v17  ;;  %v7372_v60 = vpop.xlane.xlu1 %7371  ;;  %v14007_v17 = vld [vmem:[%s15960_s14 + $0x1] ss:$0 sm:$0xff] }
0x2499   :  { %14101 = vrcp.f32 %v7372_v60 }
0x249a   :  { %12272 = vmatmul.msk.f32.vlgmr.msrb.gmra.mxu0 %vm216_vm2, %v7270_v25 }
0x249b   :  { %12279 = vmatpush.xpose.msk.msrb.mxu0 %vm216_vm2, %v7425_v16 }
0x249f   :  { %v14102_v28 = vpop.eup %14101 }
0x24a0   :  { %v7374_v29 = vmul.f32 %v14102_v28, %v14098_v40 }
0x24a2   :  { %12277 = vmatmul.msk.f32.vlgmr.msra.gmra.mxu0 %vm216_vm2, %v7374_v29 }
0x24b0   :  { %v7423_v30 = vpop.permute.xlu1 %7422 }
0x24b1   :  { %12280 = vmatmul.msk.f32.vlgmr.msrb.gmra.mxu0 %vm216_vm2, %v7423_v30 }
0x24db   :  { %v7196_v31 = vpop.xlane.xlu1 %7195 }
0x24dc   :  { %v7197_v4 = vsub.f32 %v7192_v21, %v7196_v31 }
0x24de   :  { %v7198_v32 = vmul.f32 1.442695, %v7197_v4 }
0x24e0   :  { %14103 = vpow2.f32 %v7198_v32 }
0x24e6   :  { %v14104_v33 = vpop.eup %14103 }
0x24e7   :  { %v7200_v34 = vsel %vm216_vm2, %v14104_v33, 0.0 }
0x24e8   :  { %7201 = vadd.xlane.f32.xlu2 %v7200_v34  ;;  %v13782_v34 = vld [vmem:[%s15958_s3 + $0x10] sm:$0xff] }
0x24f3   :  { %v7206_v18 = vpop.permute.xlu1 %7205 }
0x24f4   :  { %7226 = vmatpush.msra.mxu2 %v7206_v18 }
0x24f6   :  { %7311 = vmatpush.bf16.msrb.mxu2 %v7302_v41 }
0x2517   :  { %v7294_v62 = vpop.f32.mrf.mxu0 }
0x2518   :  { %v7297_v50 = vpack.c.bf16 %v7294_v62, %v7294_v62 }
0x251f   :  { %v7398_v36 = vpop.f32.mrf.mxu0 }
0x2520   :  { %v7401_v37 = vpack.c.bf16 %v7398_v36, %v7398_v36 }
0x2522   :  { %12278 = vmatmul.msk.bf16.vlgmr.msrb.gmra.mxu3 %vm216_vm2, %v7401_v37 }
0x252e   :  { %v7447_v38 = vpop.f32.mrf.mxu0 }
0x252f   :  { %v7448_v39 = vadd.f32 %v15520_v5, %v7447_v38  ;;  %v15584_v38 = vld [vmem:[%s15959_s8 + $0x8] sm:$0x3f] }
0x2530   :  { %v7535_v43 = vperm.slane %v15584_v38, 0 }
0x2531   :  { %v7450_v42 = vsel %vm216_vm2, %v7448_v39, -inf }
0x2532   :  { %7451 = vmax.xlane.f32.xlu0 %v7450_v42 }
0x2546   :  { %7461 = vrot.lane.b32.xlu0 %v15500_v53, %s14214_s16 }
0x255b   :  { %v7202_v44 = vpop.xlane.xlu2 %7201 }
0x255c   :  { %14105 = vrcp.f32 %v7202_v44  ;;  %v7537_v44 = vperm.slane %v15584_v38, 1 }
0x2562   :  { %v14106_v45 = vpop.eup %14105 }
0x2563   :  { %v7204_v48 = vmul.f32 %v14106_v45, %v14104_v33  ;;  %v13783_v33 = vld [vmem:[%s15958_s3 + $0x18] sm:$0xff] }
0x2564   :  { %7571 = vmatpush.bf16.msra.mxu0 %v13783_v33 }
0x2565   :  { %12269 = vmatmul.msk.f32.vlgmr.msra.gmra.mxu2 %vm216_vm2, %v7204_v48 }
0x2568   :  { %7572 = vmatpush.bf16.msra.mxu0 %v13782_v34 }
0x256d   :  { %12273 = vmatmul.msk.bf16.vlgmr.msrb.gmra.mxu2 %vm216_vm2, %v7297_v50 }
0x25a5   :  { %v7452_v22 = vpop.xlane.xlu0 %7451  ;;  %v7417_v7 = vpop.f32.mrf.mxu3 }
0x25a6   :  { %v7453_v52 = vsub.f32 %v7448_v39, %v7452_v22 }
0x25a8   :  { %v7454_v55 = vmul.f32 1.442695, %v7453_v52 }
0x25aa   :  { %14107 = vpow2.f32 %v7454_v55 }
0x25ad   :  { %v7419_v53 = vpop.f32.mrf.mxu3 }
0x25b0   :  { %v14108_v56 = vpop.eup %14107 }
0x25b1   :  { %v7456_v57 = vsel %vm216_vm2, %v14108_v56, 0.0 }
0x25b2   :  { %7457 = vadd.xlane.f32.xlu2 %v7456_v57 }
0x25b8   :  { %v7462_v58 = vpop.permute.xlu0 %7461 }
0x25b9   :  { %7482 = vmatpush.msra.mxu2 %v7462_v58 }
0x25bb   :  { %7606 = vmatpush.bf16.msrb.mxu2 %v13785_v26 }
0x25bf   :  { %7607 = vmatpush.bf16.msrb.mxu2 %v13784_v49 }
0x25e8   :  { %v7228_v63 = vpop.f32.mrf.mxu2 }
0x25e9   :  { %v7231_v0 = vpack.c.bf16 %v7228_v63, %v7228_v63 }
0x25eb   :  { %12274 = vmatmul.msk.bf16.vlgmr.msra.gmra.mxu1 %vm216_vm2, %v7231_v0 }
0x25f0   :  { %v7313_v1 = vpop.f32.mrf.mxu2 }
0x25f8   :  { %v7315_v2 = vpop.f32.mrf.mxu2 }
0x2625   :  { %v7458_v6 = vpop.xlane.xlu2 %7457 }
0x2626   :  { %14109 = vrcp.f32 %v7458_v6 }
0x262c   :  { %v14110_v9 = vpop.eup %14109 }
0x262d   :  { %v7460_v11 = vmul.f32 %v14110_v9, %v14108_v56 }
0x262f   :  { %12281 = vmatmul.msk.f32.vlgmr.msra.gmra.mxu2 %vm216_vm2, %v7460_v11 }
0x2637   :  { %12310 = vmatmul.msk.bf16.vlgmr.msrb.gmra.mxu2 %vm190_vm1, %v15145_v10 }
0x2668   :  { %v7332_v47 = vpop.f32.mrf.mxu1 }
0x2669   :  { %v7333_v40 = vadd.f32 %v7332_v47, %v7313_v1 }
0x266b   :  { %v7421_v21 = vadd.f32 %v7417_v7, %v7333_v40  ;;  %v14009_v7 = vld [vmem:[%s15961_s24 + $0x1] ss:$0 sm:$0xff] }
0x2670   :  { %v7334_v12 = vpop.f32.mrf.mxu1 }
0x26b2   :  { %v7484_v8 = vpop.f32.mrf.mxu2 }
0x26b3   :  { %v7487_v15 = vpack.c.bf16 %v7484_v8, %v7484_v8 }
0x26b5   :  { %12282 = vmatmul.msk.bf16.vlgmr.msrb.gmra.mxu1 %vm216_vm2, %v7487_v15 }
0x26ba   :  { %v7609_v19 = vpop.f32.mrf.mxu2 }
0x26bb   :  { %v15566_v20 = vadd.f32 %v14007_v17, %v7609_v19 }
0x26bd   :  { %7687 = vrot.lane.b32.xlu1 %v15566_v20, %s14206_s19  ;;  %12316 = vmatpush.xpose.msk.msra.mxu3 %vm216_vm2, %v15566_v20 }
0x26c2   :  { %v7611_v10 = vpop.f32.mrf.mxu2 }
0x272f   :  { %v7688_v3 = vpop.permute.xlu1 %7687 }
0x2730   :  { %12319 = vmatpush.xpose.msk.msrb.mxu3 %vm216_vm2, %v7688_v3 }
0x2732   :  { %v7503_v23 = vpop.f32.mrf.mxu1 }
0x2733   :  { %v7507_v24 = vadd.f32 %v7503_v23, %v7421_v21 }
0x2735   :  { %v7511_v25 = vadd.f32 %v14008_v54, %v7507_v24 }
0x2737   :  { %v7512_v60 = vadd.f32 %v7511_v25, %v15494_v51 }
0x2739   :  { %v7513_v16 = vsel %vm190_vm1, %v7512_v60, 0.0 }
0x273a   :  { %v7505_v28 = vpop.f32.mrf.mxu1  ;;  %7514 = vadd.xlane.f32.xlu2 %v7513_v16 }
0x27ad   :  { %v7515_v29 = vpop.xlane.xlu2 %7514 }
0x27ae   :  { %v7516_v30 = vmul.f32 %v7515_v29, %v14465_v46 }
0x27b0   :  { %v7517_v31 = vsub.f32 %v7512_v60, %v7516_v30 }
0x27b2   :  { %v7518_v4 = vmul.f32 %v7517_v31, %v7517_v31 }
0x27b4   :  { %v7519_v32 = vsel %vm190_vm1, %v7518_v4, 0.0 }
0x27b5   :  { %7520 = vadd.xlane.f32.xlu2 %v7519_v32 }
0x27cd   :  { %7791 = vrot.lane.b32.xlu2 %v15566_v20, %s14208_s1 }
0x2828   :  { %v7521_v51 = vpop.xlane.xlu2 %7520 }
0x2829   :  { %v7522_v18 = vmul.f32 %v7521_v51, %v14465_v46 }
0x282b   :  { %v7523_v27 = vadd.f32 1e-05, %v7522_v18 }
0x282d   :  { %14111 = vrsqrt.f32 %v7523_v27  ;;  %vm7530_vm4 = vweird.f32 %v7523_v27 }
0x2830   :  { %v7792_v56 = vpop.permute.xlu2 %7791 }
0x2833   :  { %v14112_v35 = vpop.eup %14111 }
0x2834   :  { %v7525_v62 = vmul.f32 %v14112_v35, %v7523_v27  ;;  %vm7531_vm0 = vweird.f32 %v14112_v35 }
0x2835   :  { %vm7532_vm5 = vmor %vm7530_vm4, %vm7531_vm0 }
0x2836   :  { %v7526_v36 = vmul.f32 %v14112_v35, %v7525_v62  ;;  %v12313_v62 = vld [vmem:[%s15962_s30 + $0x18] sm:$0xf] }
0x2838   :  { %v7527_v37 = vmul.f32 0.5, %v7526_v36  ;;  %v7859_v36 = vsel %vm349_vm3, %v12313_v62, 0  ;;  %v12633_v62 = vld [vmem:[%s15964_s18 + $0x108] sm:$0xf] }
0x283a   :  { %v7528_v39 = vsub.f32 1.5, %v7527_v37 }
0x283c   :  { %v7529_v42 = vmul.f32 %v14112_v35, %v7528_v39 }
0x283e   :  { %v7533_v41 = vsel %vm7532_vm5, %v14112_v35, %v7529_v42 }
0x283f   :  { %v7534_v45 = vmul.f32 %v7533_v41, %v7517_v31 }
0x2841   :  { %v7536_v48 = vmul.f32 %v7535_v43, %v7534_v45 }
0x2843   :  { %v15588_v50 = vadd.f32 %v7537_v44, %v7536_v48  ;;  %v12311_v48 = vld [vmem:[%s15962_s30 + $0x10] sm:$0xf] }
0x2845   :  { %v7544_v22 = vpack.c.bf16 %v15588_v50, %v15588_v50 }
0x2847   :  { %12296 = vmatmul.msk.bf16.vlgmr.msra.gmra.mxu0 %vm190_vm1, %v7544_v22  ;;  %v7774_v22 = vsel %vm349_vm3, %v12311_v48, 0  ;;  %v13812_v48 = vld [vmem:[%s15964_s18 + $0x1cc] sm:$0xf0] }
0x28c4   :  { %v7574_v52 = vpop.f32.mrf.mxu0 }
0x28c5   :  { %v7575_v55 = vadd.f32 %v14009_v7, %v7574_v52 }
0x28c7   :  { %v7620_v53 = vmul.f32 0.35355338, %v7575_v55 }
0x28c9   :  { %7789 = vrot.lane.b32.xlu1 %v7620_v53, %s14208_s1  ;;  %7685 = vrot.lane.b32.xlu0 %v7620_v53, %s14206_s19 }
0x28ca   :  { %12317 = vmatmul.msk.f32.vlgmr.msra.gmra.mxu3 %vm216_vm2, %v7620_v53 }
0x28cb   :  { %12324 = vmatpush.xpose.msk.msra.mxu3 %vm216_vm2, %v7792_v56 }
0x28cc   :  { %v7576_v57 = vpop.f32.mrf.mxu0 }
0x293b   :  { %v7686_v58 = vpop.permute.xlu0 %7685  ;;  %v7790_v59 = vpop.permute.xlu1 %7789 }
0x293c   :  { %12320 = vmatmul.msk.f32.vlgmr.msrb.gmra.mxu3 %vm216_vm2, %v7686_v58 }
0x293d   :  { %7868 = vmatpush.bf16.msrb.mxu3 %v7859_v36  ;;  %v13795_v36 = vld [vmem:[%s15964_s18 + $0x144] sm:$0xf0] }
0x2944   :  { %12325 = vmatmul.msk.f32.vlgmr.msra.gmra.mxu3 %vm216_vm2, %v7790_v59 }
0x294d   :  { %v7644_v61 = vpop.f32.mrf.mxu3 }
0x294e   :  { %v7645_v6 = vadd.f32 %v15520_v5, %v7644_v61 }
0x2950   :  { %v7647_v9 = vsel %vm216_vm2, %v7645_v6, -inf }
0x29bf   :  { %v7710_v63 = vpop.f32.mrf.mxu3 }
0x29c0   :  { %v7711_v0 = vadd.f32 %v15520_v5, %v7710_v63 }
0x29c2   :  { %v7713_v1 = vsel %vm216_vm2, %v7711_v0, -inf }
0x29c3   :  { %7714 = vmax.xlane.f32.xlu0 %v7713_v1 }
0x29c7   :  { %v7814_v2 = vpop.f32.mrf.mxu3 }
0x29c8   :  { %v7815_v26 = vadd.f32 %v15520_v5, %v7814_v2 }
0x29ca   :  { %v7817_v49 = vsel %vm216_vm2, %v7815_v26, -inf }
0x29cb   :  { %7818 = vmax.xlane.f32.xlu1 %v7817_v49  ;;  %v12314_v49 = vld [vmem:[%s15962_s30 + $0x1c] sm:$0xf] }
0x29d7   :  { %7828 = vrot.lane.b32.xlu0 %v15566_v20, %s14210_s2 }
0x29e4   :  { %7724 = vrot.lane.b32.xlu1 %v15566_v20, %s14204_s0 }
0x2a0e   :  { %7648 = vmax.xlane.f32.xlu1 %v7647_v9 }
0x2a27   :  { %7658 = vrot.lane.b32.xlu1 %v15566_v20, %s14205_s5  ;;  %s14162_s5 = scalar_lea.hbm %s14383_s20, 8 }
0x2a36   :  { %v7715_v11 = vpop.xlane.xlu0 %7714 }
0x2a37   :  { %v7716_v13 = vsub.f32 %v7711_v0, %v7715_v11 }
0x2a39   :  { %v7717_v14 = vmul.f32 1.442695, %v7716_v13 }
0x2a3b   :  { %14113 = vpow2.f32 %v7717_v14 }
0x2a3e   :  { %v7819_v47 = vpop.xlane.xlu1 %7818 }
0x2a3f   :  { %v7820_v12 = vsub.f32 %v7815_v26, %v7819_v47 }
0x2a41   :  { %v14114_v8 = vpop.eup %14113  ;;  %v7821_v15 = vmul.f32 1.442695, %v7820_v12  ;;  %v14010_v12 = vld [vmem:[%s15963_s15 + $0x1] ss:$0 sm:$0xff] }
0x2a42   :  { %v7719_v17 = vsel %vm216_vm2, %v14114_v8, 0.0 }
0x2a43   :  { %14115 = vpow2.f32 %v7821_v15  ;;  %7720 = vadd.xlane.f32.xlu2 %v7719_v17 }
0x2a49   :  { %v14116_v19 = vpop.eup %14115  ;;  %v7829_v3 = vpop.permute.xlu0 %7828 }
0x2a4a   :  { %v7823_v10 = vsel %vm216_vm2, %v14116_v19, 0.0 }
0x2a4b   :  { %7824 = vadd.xlane.f32.xlu0 %v7823_v10 }
0x2a56   :  { %v7725_v40 = vpop.permute.xlu1 %7724 }
0x2a57   :  { %7745 = vmatpush.msrb.mxu0 %v7725_v40 }
0x2a59   :  { %7849 = vmatpush.msra.mxu0 %v7829_v3 }
0x2a5b   :  { %7877 = vrot.lane.b32.xlu2 %v15566_v20, %s14212_s7 }
0x2a5f   :  { %7875 = vrot.lane.b32.xlu0 %v7620_v53, %s14212_s7 }
0x2a81   :  { %v7649_v21 = vpop.xlane.xlu1 %7648 }
0x2a82   :  { %v7650_v54 = vsub.f32 %v7645_v6, %v7649_v21  ;;  %v7945_v6 = vsel %vm349_vm3, %v12314_v49, 0  ;;  %v12643_v49 = vld [vmem:[%s15964_s18 + $0x150] sm:$0xf0] }
0x2a84   :  { %v7651_v23 = vmul.f32 1.442695, %v7650_v54 }
0x2a86   :  { %14117 = vpow2.f32 %v7651_v23 }
0x2a8c   :  { %v14118_v24 = vpop.eup %14117 }
0x2a8d   :  { %v7653_v25 = vsel %vm216_vm2, %v14118_v24, 0.0 }
0x2a8e   :  { %7654 = vadd.xlane.f32.xlu2 %v7653_v25  ;;  %v13810_v25 = vld [vmem:[%s15964_s18 + $0x1bc] sm:$0xf0] }
0x2a99   :  { %v7659_v60 = vpop.permute.xlu1 %7658 }
0x2a9a   :  { %7679 = vmatpush.msra.mxu1 %v7659_v60  ;;  %v13802_v60 = vld [vmem:[%s15964_s18 + $0x184] sm:$0xf] }
0x2a9c   :  { %7783 = vmatpush.bf16.msrb.mxu1 %v7774_v22  ;;  %v13804_v22 = vld [vmem:[%s15964_s18 + $0x194] sm:$0xf] }
0x2aa6   :  { %7914 = vrot.lane.b32.xlu2 %v15566_v20, %s14213_s11  ;;  %v12312_v20 = vld [vmem:[%s15962_s30 + $0x14] sm:$0xf] }
0x2aa7   :  { %v7755_v34 = vsel %vm349_vm3, %v12312_v20, 0 }
0x2aa8   :  { %7764 = vmatpush.bf16.msra.mxu2 %v7755_v34  ;;  %v12625_v34 = vld [vmem:[%s15964_s18 + $0x100] sm:$0xf] }
0x2ab6   :  { %v7721_v16 = vpop.xlane.xlu2 %7720 }
0x2ab7   :  { %14119 = vrcp.f32 %v7721_v16 }
0x2abd   :  { %v14120_v28 = vpop.eup %14119 }
0x2abe   :  { %v7723_v29 = vmul.f32 %v14120_v28, %v14114_v8  ;;  %v7825_v30 = vpop.xlane.xlu0 %7824  ;;  %v7878_v31 = vpop.permute.xlu2 %7877  ;;  %v12691_v28 = vld [vmem:[%s15964_s18 + $0x1c0] sm:$0xf0] }
0x2abf   :  { %14121 = vrcp.f32 %v7825_v30  ;;  %v13811_v30 = vld [vmem:[%s15964_s18 + $0x1c4] sm:$0xf0] }
0x2ac0   :  { %12321 = vmatmul.msk.f32.vlgmr.msrb.gmra.mxu0 %vm216_vm2, %v7723_v29  ;;  %v12697_v29 = vld [vmem:[%s15964_s18 + $0x188] sm:$0xf] }
0x2ac1   :  { %12328 = vmatpush.xpose.msk.msrb.mxu0 %vm216_vm2, %v7878_v31  ;;  %v12694_v31 = vor.u32 %v13802_v60, %v12691_v28  ;;  %v13814_v60 = vld [vmem:[%s15964_s18 + $0x1dc] sm:$0xf0]  ;;  %v12723_v28 = vld [vmem:[%s15964_s18 + $0x1e0] sm:$0xf0] }
0x2ac5   :  { %v14122_v4 = vpop.eup %14121 }
0x2ac6   :  { %v7827_v32 = vmul.f32 %v14122_v4, %v14116_v19  ;;  %v12698_v4 = vor.u32 %v13811_v30, %v12697_v29  ;;  %v12729_v29 = vld [vmem:[%s15964_s18 + $0x1a8] sm:$0xf] }
0x2ac8   :  { %12326 = vmatmul.msk.f32.vlgmr.msra.gmra.mxu0 %vm216_vm2, %v7827_v32  ;;  %v13803_v32 = vld [vmem:[%s15964_s18 + $0x18c] sm:$0xf]  ;;  %8517 = vmatpush.bf16.msra.mxu3 %v12698_v4 }
0x2ac9   :  { %v13807_v4 = vld [vmem:[%s15964_s18 + $0x1ac] sm:$0xf] }
0x2ad1   :  { %v7876_v33 = vpop.permute.xlu0 %7875 }
0x2ad2   :  { %12329 = vmatmul.msk.f32.vlgmr.msrb.gmra.mxu0 %vm216_vm2, %v7876_v33  ;;  %v12699_v33 = vld [vmem:[%s15964_s18 + $0x1c8] sm:$0xf0] }
0x2ad3   :  { %v12702_v20 = vor.u32 %v13803_v32, %v12699_v33 }
0x2b01   :  { %v7655_v51 = vpop.xlane.xlu2 %7654 }
0x2b02   :  { %14123 = vrcp.f32 %v7655_v51  ;;  %v13794_v51 = vld [vmem:[%s15964_s18 + $0x13c] sm:$0xf0] }
0x2b08   :  { %v14124_v18 = vpop.eup %14123 }
0x2b09   :  { %v7657_v27 = vmul.f32 %v14124_v18, %v14118_v24  ;;  %v7915_v35 = vpop.permute.xlu2 %7914  ;;  %v13786_v18 = vld [vmem:[%s15964_s18 + $0x104] sm:$0xf] }
0x2b0a   :  { %7935 = vmatpush.msrb.mxu2 %v7915_v35  ;;  %v12627_v35 = vld [vmem:[%s15964_s18 + $0x140] sm:$0xf0] }
0x2b0b   :  { %12318 = vmatmul.msk.f32.vlgmr.msra.gmra.mxu1 %vm216_vm2, %v7657_v27  ;;  %v12626_v27 = vor.u32 %v13794_v51, %v12625_v34  ;;  %v13798_v34 = vld [vmem:[%s15964_s18 + $0x15c] sm:$0xf0] }
0x2b0c   :  { %7954 = vmatpush.bf16.msra.mxu1 %v7945_v6  ;;  %v12649_v6 = vld [vmem:[%s15964_s18 + $0x118] sm:$0xf] }
0x2b3d   :  { %v7747_v37 = vpop.f32.mrf.mxu0 }
0x2b3e   :  { %v7750_v39 = vpack.c.bf16 %v7747_v37, %v7747_v37  ;;  %v12630_v37 = vor.u32 %v13786_v18, %v12627_v35  ;;  %v12659_v35 = vld [vmem:[%s15964_s18 + $0x160] sm:$0xf0] }
0x2b40   :  { %12322 = vmatmul.msk.bf16.vlgmr.msra.gmra.mxu2 %vm216_vm2, %v7750_v39  ;;  %v12634_v39 = vor.u32 %v13795_v36, %v12633_v62  ;;  %v12665_v62 = vld [vmem:[%s15964_s18 + $0x128] sm:$0xf] }
0x2b41   :  { %8504 = vmatpush.bf16.msra.mxu2 %v12694_v31  ;;  %v13815_v31 = vld [vmem:[%s15964_s18 + $0x1e4] sm:$0xf0] }
0x2b42   :  { %8518 = vmatpush.bf16.msra.mxu3 %v12634_v39  ;;  %v12730_v51 = vor.u32 %v13815_v31, %v12729_v29  ;;  %v13799_v36 = vld [vmem:[%s15964_s18 + $0x164] sm:$0xf0]  ;;  %v12667_v39 = vld [vmem:[%s15964_s18 + $0x168] sm:$0xf0]  ;;  %v13845_v29 = vld [vmem:[%s15965_s23 + $0x4d8] sm:$0xff] }
0x2b43   :  { %v13829_v31 = vld [vmem:[%s15965_s23 + $0x458] sm:$0xff] }
0x2b45   :  { %v7851_v42 = vpop.f32.mrf.mxu0  ;;  %8505 = vmatpush.bf16.msra.mxu2 %v12630_v37  ;;  %v13791_v37 = vld [vmem:[%s15964_s18 + $0x12c] sm:$0xf] }
0x2b46   :  { %v7854_v43 = vpack.c.bf16 %v7851_v42, %v7851_v42  ;;  %v13787_v42 = vld [vmem:[%s15964_s18 + $0x10c] sm:$0xf] }
0x2b48   :  { %12327 = vmatmul.msk.bf16.vlgmr.msrb.gmra.mxu3 %vm216_vm2, %v7854_v43  ;;  %v12635_v43 = vld [vmem:[%s15964_s18 + $0x148] sm:$0xf0] }
0x2b4f   :  { %v7900_v41 = vpop.f32.mrf.mxu0 }
0x2b50   :  { %v7901_v44 = vadd.f32 %v15520_v5, %v7900_v41  ;;  %v12638_v41 = vor.u32 %v13787_v42, %v12635_v43 }
0x2b52   :  { %v7903_v45 = vsel %vm216_vm2, %v7901_v44, -inf }
0x2b53   :  { %7904 = vmax.xlane.f32.xlu0 %v7903_v45  ;;  %v12705_v45 = vld [vmem:[%s15964_s18 + $0x190] sm:$0xf] }
0x2b88   :  { %v7681_v7 = vpop.f32.mrf.mxu1 }
0x2b89   :  { %v7684_v52 = vpack.c.bf16 %v7681_v7, %v7681_v7 }
0x2b8b   :  { %12323 = vmatmul.msk.bf16.vlgmr.msrb.gmra.mxu1 %vm216_vm2, %v7684_v52  ;;  %v12706_v52 = vor.u32 %v13812_v48, %v12705_v45  ;;  %v12737_v45 = vld [vmem:[%s15964_s18 + $0x1b0] sm:$0xf] }
0x2b8c   :  { %8530 = vmatpush.bf16.msrb.mxu1 %v12702_v20  ;;  %v12657_v20 = vld [vmem:[%s15964_s18 + $0x120] sm:$0xf]  ;;  %v13816_v48 = vld [vmem:[%s15964_s18 + $0x1ec] sm:$0xf0] }
0x2b8d   :  { %v12658_v42 = vor.u32 %v13798_v34, %v12657_v20  ;;  %v13836_v20 = vld [vmem:[%s15965_s23 + $0x490] sm:$0xff]  ;;  %v13819_v34 = vld [vmem:[%s15965_s23 + $0x408] sm:$0xff] }
0x2b90   :  { %8531 = vmatpush.bf16.msrb.mxu1 %v12638_v41  ;;  %v12666_v41 = vor.u32 %v13799_v36, %v12665_v62  ;;  %v13857_v62 = vld [vmem:[%s15965_s23 + $0x538] sm:$0xff] }
0x2b91   :  { %v13881_v36 = vld [vmem:[%s15965_s23 + $0x5f8] sm:$0xff] }
0x2bc3   :  { %v7766_v55 = vpop.f32.mrf.mxu2 }
0x2bc6   :  { %v7905_v53 = vpop.xlane.xlu0 %7904 }
0x2bc7   :  { %v7906_v56 = vsub.f32 %v7901_v44, %v7905_v53  ;;  %v12713_v53 = vld [vmem:[%s15964_s18 + $0x198] sm:$0xf] }
0x2bc9   :  { %v7907_v57 = vmul.f32 1.442695, %v7906_v56  ;;  %v13813_v56 = vld [vmem:[%s15964_s18 + $0x1d4] sm:$0xf0] }
0x2bcb   :  { %14125 = vpow2.f32 %v7907_v57  ;;  %v7768_v58 = vpop.f32.mrf.mxu2  ;;  %v7870_v59 = vpop.f32.mrf.mxu3 }
0x2bcc   :  { %v12714_v58 = vor.u32 %v13813_v56, %v12713_v53  ;;  %v13809_v53 = vld [vmem:[%s15964_s18 + $0x1bc] sm:$0xf] }
0x2bcd   :  { %v12747_v56 = vld [vmem:[%s15964_s18 + $0x1f8] sm:$0xf0] }
0x2bce   :  { %8569 = vmatpush.bf16.msrb.mxu3 %v12714_v58 }
0x2bd1   :  { %v14126_v5 = vpop.eup %14125 }
0x2bd2   :  { %v7909_v61 = vsel %vm216_vm2, %v14126_v5, 0.0 }
0x2bd3   :  { %v7872_v63 = vpop.f32.mrf.mxu3  ;;  %7910 = vadd.xlane.f32.xlu0 %v7909_v61  ;;  %v12641_v61 = vld [vmem:[%s15964_s18 + $0x110] sm:$0xf] }
0x2c08   :  { %v7785_v0 = vpop.f32.mrf.mxu1 }
0x2c09   :  { %v7786_v1 = vadd.f32 %v7785_v0, %v7766_v55  ;;  %v12707_v55 = vld [vmem:[%s15964_s18 + $0x1d0] sm:$0xf0] }
0x2c0a   :  { %v12710_v57 = vor.u32 %v13804_v22, %v12707_v55  ;;  %v13808_v22 = vld [vmem:[%s15964_s18 + $0x1b4] sm:$0xf]  ;;  %v13817_v55 = vld [vmem:[%s15964_s18 + $0x1f4] sm:$0xf0] }
0x2c0b   :  { %v7874_v2 = vadd.f32 %v7870_v59, %v7786_v1  ;;  %v13805_v59 = vld [vmem:[%s15964_s18 + $0x19c] sm:$0xf]  ;;  %v13796_v1 = vld [vmem:[%s15964_s18 + $0x14c] sm:$0xf0] }
0x2c10   :  { %v7787_v26 = vpop.f32.mrf.mxu1 }
0x2c11   :  { %v12642_v26 = vor.u32 %v13796_v1, %v12641_v61  ;;  %v12675_v1 = vld [vmem:[%s15964_s18 + $0x170] sm:$0xf0] }
0x2c46   :  { %v7911_v9 = vpop.xlane.xlu0 %7910 }
0x2c47   :  { %14127 = vrcp.f32 %v7911_v9  ;;  %v13797_v9 = vld [vmem:[%s15964_s18 + $0x154] sm:$0xf0] }
0x2c4d   :  { %v14128_v11 = vpop.eup %14127 }
0x2c4e   :  { %v7913_v13 = vmul.f32 %v14128_v11, %v14126_v5  ;;  %v12715_v5 = vld [vmem:[%s15964_s18 + $0x1d8] sm:$0xf0] }
0x2c4f   :  { %v12718_v0 = vor.u32 %v13805_v59, %v12715_v5  ;;  %v12673_v59 = vld [vmem:[%s15964_s18 + $0x130] sm:$0xf] }
0x2c50   :  { %12330 = vmatmul.msk.f32.vlgmr.msrb.gmra.mxu2 %vm216_vm2, %v7913_v13  ;;  %v12650_v13 = vor.u32 %v13797_v9, %v12649_v6  ;;  %v13800_v5 = vld [vmem:[%s15964_s18 + $0x16c] sm:$0xf0]  ;;  %v12683_v6 = vld [vmem:[%s15964_s18 + $0x178] sm:$0xf0] }
0x2c51   :  { %8556 = vmatpush.bf16.msrb.mxu2 %v12710_v57  ;;  %v12738_v57 = vor.u32 %v13816_v48, %v12737_v45  ;;  %v12674_v9 = vor.u32 %v13800_v5, %v12673_v59  ;;  %v13864_v45 = vld [vmem:[%s15965_s23 + $0x570] sm:$0xff]  ;;  %v13853_v59 = vld [vmem:[%s15965_s23 + $0x518] sm:$0xff] }
0x2c52   :  { %8570 = vmatpush.bf16.msrb.mxu3 %v12650_v13  ;;  %v13872_v48 = vld [vmem:[%s15965_s23 + $0x5b0] sm:$0xff]  ;;  %v13877_v5 = vld [vmem:[%s15965_s23 + $0x5d8] sm:$0xff] }
0x2cd3   :  { %v7937_v14 = vpop.f32.mrf.mxu2 }
0x2cd4   :  { %v7940_v47 = vpack.c.bf16 %v7937_v14, %v7937_v14  ;;  %v13789_v14 = vld [vmem:[%s15964_s18 + $0x11c] sm:$0xf] }
0x2cd6   :  { %12331 = vmatmul.msk.bf16.vlgmr.msra.gmra.mxu1 %vm216_vm2, %v7940_v47  ;;  %v12651_v47 = vld [vmem:[%s15964_s18 + $0x158] sm:$0xf0] }
0x2cd7   :  { %8582 = vmatpush.bf16.msra.mxu1 %v12718_v0  ;;  %v13792_v0 = vld [vmem:[%s15964_s18 + $0x134] sm:$0xf] }
0x2d53   :  { %v7956_v8 = vpop.f32.mrf.mxu1 }
0x2d54   :  { %v7960_v15 = vadd.f32 %v7956_v8, %v7874_v2  ;;  %v13788_v2 = vld [vmem:[%s15964_s18 + $0x114] sm:$0xf] }
0x2d55   :  { %v12646_v11 = vor.u32 %v13788_v2, %v12643_v49  ;;  %v12681_v2 = vld [vmem:[%s15964_s18 + $0x138] sm:$0xf]  ;;  %v13793_v49 = vld [vmem:[%s15964_s18 + $0x13c] sm:$0xf] }
0x2d56   :  { %v7964_v17 = vadd.f32 %v14010_v12, %v7960_v15  ;;  %v12654_v12 = vor.u32 %v13789_v14, %v12651_v47  ;;  %v12686_v14 = vor.u32 %v13793_v49, %v12683_v6  ;;  %v13825_v47 = vld [vmem:[%s15965_s23 + $0x438] sm:$0xff]  ;;  %v13860_v49 = vld [vmem:[%s15965_s23 + $0x550] sm:$0xff] }
0x2d57   :  { %8557 = vmatpush.bf16.msrb.mxu2 %v12646_v11  ;;  %v12678_v11 = vor.u32 %v13792_v0, %v12675_v1  ;;  %v13861_v0 = vld [vmem:[%s15965_s23 + $0x558] sm:$0xff]  ;;  %v13868_v6 = vld [vmem:[%s15965_s23 + $0x590] sm:$0xff] }
0x2d58   :  { %v7965_v19 = vadd.f32 %v7964_v17, %v15588_v50  ;;  %v12689_v50 = vld [vmem:[%s15964_s18 + $0x180] sm:$0xf]  ;;  %8583 = vmatpush.bf16.msra.mxu1 %v12654_v12  ;;  %v13849_v12 = vld [vmem:[%s15965_s23 + $0x4f8] sm:$0xff] }
0x2d59   :  { %v12690_v16 = vor.u32 %v13810_v25, %v12689_v50  ;;  %v12721_v25 = vld [vmem:[%s15964_s18 + $0x1a0] sm:$0xf]  ;;  %v13869_v1 = vld [vmem:[%s15965_s23 + $0x598] sm:$0xff] }
0x2d5a   :  { %v7966_v10 = vsel %vm190_vm1, %v7965_v19, 0.0  ;;  %v12722_v32 = vor.u32 %v13814_v60, %v12721_v25  ;;  %v13846_v25 = vld [vmem:[%s15965_s23 + $0x4e0] sm:$0xff] }
0x2d5b   :  { %7967 = vadd.xlane.f32.xlu0 %v7966_v10  ;;  %v7958_v40 = vpop.f32.mrf.mxu1  ;;  %8491 = vmatpush.bf16.msra.mxu0 %v12690_v16  ;;  %v13806_v16 = vld [vmem:[%s15964_s18 + $0x1a4] sm:$0xf] }
0x2d5c   :  { %v12726_v33 = vor.u32 %v13806_v16, %v12723_v28  ;;  %v13830_v60 = vld [vmem:[%s15965_s23 + $0x460] sm:$0xff]  ;;  %v13821_v28 = vld [vmem:[%s15965_s23 + $0x418] sm:$0xff] }
0x2d5d   :  { %v13838_v16 = vld [vmem:[%s15965_s23 + $0x4a0] sm:$0xff] }
0x2d5f   :  { %8492 = vmatpush.bf16.msra.mxu0 %v12626_v27  ;;  %v13790_v27 = vld [vmem:[%s15964_s18 + $0x124] sm:$0xf] }
0x2d60   :  { %v12662_v43 = vor.u32 %v13790_v27, %v12659_v35  ;;  %v13818_v27 = vld [vmem:[%s15965_s23 + $0x400] sm:$0xff] }
0x2d61   :  { %v13842_v35 = vld [vmem:[%s15965_s23 + $0x4c0] sm:$0xff] }
0x2d63   :  { %8543 = vmatpush.bf16.msrb.mxu0 %v12706_v52  ;;  %v12745_v52 = vld [vmem:[%s15964_s18 + $0x1b8] sm:$0xf] }
0x2d64   :  { %v12746_v61 = vor.u32 %v13817_v55, %v12745_v52  ;;  %v13863_v52 = vld [vmem:[%s15965_s23 + $0x568] sm:$0xff] }
0x2d65   :  { %v13871_v55 = vld [vmem:[%s15965_s23 + $0x5a8] sm:$0xff] }
0x2d67   :  { %8544 = vmatpush.bf16.msrb.mxu0 %v12642_v26  ;;  %v13801_v26 = vld [vmem:[%s15964_s18 + $0x174] sm:$0xf0] }
0x2d68   :  { %v12682_v13 = vor.u32 %v13801_v26, %v12681_v2  ;;  %v13851_v2 = vld [vmem:[%s15965_s23 + $0x508] sm:$0xff] }
0x2d69   :  { %v13875_v26 = vld [vmem:[%s15965_s23 + $0x5c8] sm:$0xff] }
0x2dce   :  { %v7968_v3 = vpop.xlane.xlu0 %7967 }
0x2dcf   :  { %v7969_v21 = vmul.f32 %v7968_v3, %v14465_v46  ;;  %v7988_v3 = vperm.slane %v15584_v38, 2 }
0x2dd1   :  { %v15645_v54 = vsub.f32 %v7965_v19, %v7969_v21 }
0x2dd3   :  { %v7971_v23 = vmul.f32 %v15645_v54, %v15645_v54 }
0x2dd5   :  { %v7972_v24 = vsel %vm190_vm1, %v7971_v23, 0.0  ;;  %v7990_v23 = vperm.slane %v15584_v38, 3  ;;  %v12731_v38 = vld [vmem:[%s15964_s18 + $0x1e8] sm:$0xf0] }
0x2dd6   :  { %7973 = vadd.xlane.f32.xlu0 %v7972_v24  ;;  %v12734_v18 = vor.u32 %v13807_v4, %v12731_v38  ;;  %v13837_v4 = vld [vmem:[%s15965_s23 + $0x498] sm:$0xff]  ;;  %v13820_v38 = vld [vmem:[%s15965_s23 + $0x410] sm:$0xff] }
0x2e49   :  { %v7974_v44 = vpop.xlane.xlu0 %7973 }
0x2e4a   :  { %v7975_v7 = vmul.f32 %v7974_v44, %v14465_v46  ;;  %v12670_v44 = vor.u32 %v13791_v37, %v12667_v39  ;;  %v13826_v37 = vld [vmem:[%s15965_s23 + $0x440] sm:$0xff] }
0x2e4b   :  { %v13834_v39 = vld [vmem:[%s15965_s23 + $0x480] sm:$0xff] }
0x2e4c   :  { %v7976_v63 = vadd.f32 1e-05, %v7975_v7  ;;  %v12739_v7 = vld [vmem:[%s15964_s18 + $0x1f0] sm:$0xf0] }
0x2e4d   :  { %v12742_v58 = vor.u32 %v13808_v22, %v12739_v7  ;;  %v13855_v22 = vld [vmem:[%s15965_s23 + $0x528] sm:$0xff] }
0x2e4e   :  { %14129 = vrsqrt.f32 %v7976_v63  ;;  %vm7983_vm3 = vweird.f32 %v7976_v63  ;;  %v13879_v7 = vld [vmem:[%s15965_s23 + $0x5e8] sm:$0xff] }
0x2e54   :  { %v14130_v8 = vpop.eup %14129 }
0x2e55   :  { %v7978_v15 = vmul.f32 %v14130_v8, %v7976_v63  ;;  %vm7984_vm2 = vweird.f32 %v14130_v8  ;;  %v12750_v63 = vor.u32 %v13809_v53, %v12747_v56  ;;  %v13854_v53 = vld [vmem:[%s15965_s23 + $0x520] sm:$0xff] }
0x2e56   :  { %vm7985_vm6 = vmor %vm7983_vm3, %vm7984_vm2  ;;  %v13878_v56 = vld [vmem:[%s15965_s23 + $0x5e0] sm:$0xff] }
0x2e57   :  { %v7979_v17 = vmul.f32 %v14130_v8, %v7978_v15  ;;  %v13841_v15 = vld [vmem:[%s15965_s23 + $0x4b8] sm:$0xff] }
0x2e59   :  { %v7980_v19 = vmul.f32 0.5, %v7979_v17  ;;  %v13824_v17 = vld [vmem:[%s15965_s23 + $0x430] sm:$0xff] }
0x2e5b   :  { %v7981_v10 = vsub.f32 1.5, %v7980_v19  ;;  %v13848_v19 = vld [vmem:[%s15965_s23 + $0x4f0] sm:$0xff] }
0x2e5d   :  { %v7982_v40 = vmul.f32 %v14130_v8, %v7981_v10  ;;  %v13832_v10 = vld [vmem:[%s15965_s23 + $0x470] sm:$0xff] }
0x2e5f   :  { %v7986_v21 = vsel %vm7985_vm6, %v14130_v8, %v7982_v40  ;;  %v13833_v8 = vld [vmem:[%s15965_s23 + $0x478] sm:$0xff]  ;;  %v13840_v40 = vld [vmem:[%s15965_s23 + $0x4b0] sm:$0xff] }
0x2e60   :  { %v7987_v24 = vmul.f32 %v7986_v21, %v15645_v54  ;;  %v13847_v21 = vld [vmem:[%s15965_s23 + $0x4e8] sm:$0xff] }
0x2e62   :  { %v7989_v50 = vmul.f32 %v7988_v3, %v7987_v24  ;;  %v13823_v3 = vld [vmem:[%s15965_s23 + $0x428] sm:$0xff] }
0x2e63   :  { %v13839_v24 = vld [vmem:[%s15965_s23 + $0x4a8] sm:$0xff] }
0x2e64   :  { %v15691_v30 = vadd.f32 %v7990_v23, %v7989_v50  ;;  %v13831_v23 = vld [vmem:[%s15965_s23 + $0x468] sm:$0xff]  ;;  %v13822_v50 = vld [vmem:[%s15965_s23 + $0x420] sm:$0xff] }
0x2e66   :  { %v15698_v54 = vpack.c.bf16 %v15691_v30, %v15691_v30 }
0x2e68   :  { %12751 = vmatmul.msk.bf16.vlgmr.msra.gmra.mxu0 %vm190_vm1, %v15698_v54  ;;  %12752 = vmatmul.msk.bf16.vlgmr.msra.gmra.mxu2 %vm190_vm1, %v15698_v54 }
0x2e69   :  { %12753 = vmatmul.msk.bf16.vlgmr.msra.gmra.mxu3 %vm190_vm1, %v15698_v54  ;;  %12754 = vmatmul.msk.bf16.vlgmr.msrb.gmra.mxu1 %vm190_vm1, %v15698_v54 }
0x2e6a   :  { %8595 = vmatpush.bf16.msra.mxu0 %v12722_v32  ;;  %8608 = vmatpush.bf16.msra.mxu2 %v12726_v33  ;;  %v13844_v32 = vld [vmem:[%s15965_s23 + $0x4d0] sm:$0xff] }
0x2e6b   :  { %8621 = vmatpush.bf16.msra.mxu3 %v12730_v51  ;;  %8634 = vmatpush.bf16.msrb.mxu1 %v12734_v18  ;;  %v13828_v33 = vld [vmem:[%s15965_s23 + $0x450] sm:$0xff]  ;;  %v13827_v51 = vld [vmem:[%s15965_s23 + $0x448] sm:$0xff] }
0x2e6c   :  { %v13835_v18 = vld [vmem:[%s15965_s23 + $0x488] sm:$0xff] }
0x2e6e   :  { %8596 = vmatpush.bf16.msra.mxu0 %v12658_v42  ;;  %8609 = vmatpush.bf16.msra.mxu2 %v12662_v43  ;;  %v13865_v42 = vld [vmem:[%s15965_s23 + $0x578] sm:$0xff] }
0x2e6f   :  { %8622 = vmatpush.bf16.msra.mxu3 %v12666_v41  ;;  %8635 = vmatpush.bf16.msrb.mxu1 %v12670_v44  ;;  %v13873_v43 = vld [vmem:[%s15965_s23 + $0x5b8] sm:$0xff]  ;;  %v13856_v41 = vld [vmem:[%s15965_s23 + $0x530] sm:$0xff] }
0x2e70   :  { %v13880_v44 = vld [vmem:[%s15965_s23 + $0x5f0] sm:$0xff] }
0x2e78   :  { %12755 = vmatmul.msk.bf16.vlgmr.msrb.gmra.mxu0 %vm190_vm1, %v15698_v54  ;;  %12756 = vmatmul.msk.bf16.vlgmr.msrb.gmra.mxu2 %vm190_vm1, %v15698_v54 }
0x2e79   :  { %12757 = vmatmul.msk.bf16.vlgmr.msrb.gmra.mxu3 %vm190_vm1, %v15698_v54  ;;  %12758 = vmatmul.msk.bf16.vlgmr.msra.gmra.mxu1 %vm190_vm1, %v15698_v54 }
0x2e7a   :  { %8647 = vmatpush.bf16.msrb.mxu0 %v12738_v57  ;;  %8660 = vmatpush.bf16.msrb.mxu2 %v12742_v58  ;;  %v13862_v57 = vld [vmem:[%s15965_s23 + $0x560] sm:$0xff] }
0x2e7b   :  { %8673 = vmatpush.bf16.msrb.mxu3 %v12746_v61  ;;  %8686 = vmatpush.bf16.msra.mxu1 %v12750_v63  ;;  %v13870_v58 = vld [vmem:[%s15965_s23 + $0x5a0] sm:$0xff]  ;;  %v13852_v61 = vld [vmem:[%s15965_s23 + $0x510] sm:$0xff] }
0x2e7c   :  { %v13876_v63 = vld [vmem:[%s15965_s23 + $0x5d0] sm:$0xff] }
0x2e7e   :  { %8648 = vmatpush.bf16.msrb.mxu0 %v12674_v9  ;;  %8661 = vmatpush.bf16.msrb.mxu2 %v12678_v11  ;;  %v13850_v9 = vld [vmem:[%s15965_s23 + $0x500] sm:$0xff] }
0x2e7f   :  { %8674 = vmatpush.bf16.msrb.mxu3 %v12682_v13  ;;  %8687 = vmatpush.bf16.msra.mxu1 %v12686_v14  ;;  %v13874_v11 = vld [vmem:[%s15965_s23 + $0x5c0] sm:$0xff]  ;;  %v13859_v13 = vld [vmem:[%s15965_s23 + $0x548] sm:$0xff] }
0x2e80   :  { %v13867_v14 = vld [vmem:[%s15965_s23 + $0x588] sm:$0xff] }
0x2e88   :  { %12759 = vmatmul.msk.bf16.vlgmr.msra.gmra.mxu0 %vm190_vm1, %v15698_v54  ;;  %12760 = vmatmul.msk.bf16.vlgmr.msra.gmra.mxu2 %vm190_vm1, %v15698_v54 }
0x2e89   :  { %12761 = vmatmul.msk.bf16.vlgmr.msra.gmra.mxu3 %vm190_vm1, %v15698_v54  ;;  %12762 = vmatmul.msk.bf16.vlgmr.msrb.gmra.mxu1 %vm190_vm1, %v15698_v54 }
0x2e8a   :  { %9496 = vmatpush.bf16.msra.mxu0 %v13825_v47  ;;  %9535 = vmatpush.bf16.msrb.mxu1 %v13849_v12  ;;  %v13858_v47 = vld [vmem:[%s15965_s23 + $0x540] sm:$0xff] }
0x2e8b   :  { %9509 = vmatpush.bf16.msra.mxu2 %v13833_v8  ;;  %9522 = vmatpush.bf16.msra.mxu3 %v13841_v15  ;;  %v13866_v12 = vld [vmem:[%s15965_s23 + $0x580] sm:$0xff]  ;;  %v15821_v8 = vld [vmem:[%s15966_s22 + $0x10] sm:$0xff] }
0x2e8c   :  { %v8290_v15 = vperm.slane %v15821_v8, 0 }
0x2e8e   :  { %9497 = vmatpush.bf16.msra.mxu0 %v13824_v17  ;;  %9536 = vmatpush.bf16.msrb.mxu1 %v13848_v19  ;;  %v8293_v17 = vperm.slane %v15821_v8, 3 }
0x2e8f   :  { %9510 = vmatpush.bf16.msra.mxu2 %v13832_v10  ;;  %9523 = vmatpush.bf16.msra.mxu3 %v13840_v40 }
0x2e92   :  { %9498 = vmatpush.bf16.msra.mxu0 %v13823_v3  ;;  %9537 = vmatpush.bf16.msrb.mxu1 %v13847_v21 }
0x2e93   :  { %9511 = vmatpush.bf16.msra.mxu2 %v13831_v23  ;;  %9524 = vmatpush.bf16.msra.mxu3 %v13839_v24  ;;  %v8291_v23 = vperm.slane %v15821_v8, 1 }
0x2e96   :  { %9499 = vmatpush.bf16.msra.mxu0 %v13822_v50  ;;  %9538 = vmatpush.bf16.msrb.mxu1 %v13846_v25  ;;  %v8292_v50 = vperm.slane %v15821_v8, 2  ;;  %v13889_v25 = vld [vmem:[%s15965_s23 + $0x638] sm:$0xff] }
0x2e97   :  { %9512 = vmatpush.bf16.msra.mxu2 %v13830_v60  ;;  %9525 = vmatpush.bf16.msra.mxu3 %v13838_v16  ;;  %v13913_v16 = vld [vmem:[%s15965_s23 + $0x6f8] sm:$0xff] }
0x2e98   :  { %12763 = vmatmul.msk.bf16.vlgmr.msrb.gmra.mxu0 %vm190_vm1, %v15698_v54  ;;  %12764 = vmatmul.msk.bf16.vlgmr.msrb.gmra.mxu2 %vm190_vm1, %v15698_v54 }
0x2e99   :  { %12765 = vmatmul.msk.bf16.vlgmr.msrb.gmra.mxu3 %vm190_vm1, %v15698_v54  ;;  %12766 = vmatmul.msk.bf16.vlgmr.msra.gmra.mxu1 %vm190_vm1, %v15698_v54  ;;  %v13843_v54 = vld [vmem:[%s15965_s23 + $0x4c8] sm:$0xff] }
0x2e9a   :  { %9500 = vmatpush.bf16.msra.mxu0 %v13821_v28  ;;  %9539 = vmatpush.bf16.msrb.mxu1 %v13845_v29 }
0x2e9b   :  { %9513 = vmatpush.bf16.msra.mxu2 %v13829_v31  ;;  %9526 = vmatpush.bf16.msra.mxu3 %v13837_v4 }
0x2e9e   :  { %9501 = vmatpush.bf16.msra.mxu0 %v13820_v38  ;;  %9540 = vmatpush.bf16.msrb.mxu1 %v13844_v32 }
0x2e9f   :  { %9514 = vmatpush.bf16.msra.mxu2 %v13828_v33  ;;  %9527 = vmatpush.bf16.msra.mxu3 %v13836_v20  ;;  %v13888_v33 = vld [vmem:[%s15965_s23 + $0x630] sm:$0xff] }
0x2ea2   :  { %9502 = vmatpush.bf16.msra.mxu0 %v13819_v34  ;;  %9541 = vmatpush.bf16.msrb.mxu1 %v13843_v54  ;;  %v13912_v54 = vld [vmem:[%s15965_s23 + $0x6f0] sm:$0xff] }
0x2ea3   :  { %9515 = vmatpush.bf16.msra.mxu2 %v13827_v51  ;;  %9528 = vmatpush.bf16.msra.mxu3 %v13835_v18  ;;  %v13897_v18 = vld [vmem:[%s15965_s23 + $0x678] sm:$0xff] }
0x2ea6   :  { %9503 = vmatpush.bf16.msra.mxu0 %v13818_v27  ;;  %9542 = vmatpush.bf16.msrb.mxu1 %v13842_v35  ;;  %v13905_v35 = vld [vmem:[%s15965_s23 + $0x6b8] sm:$0xff] }
0x2ea7   :  { %9516 = vmatpush.bf16.msra.mxu2 %v13826_v37  ;;  %9529 = vmatpush.bf16.msra.mxu3 %v13834_v39  ;;  %v13911_v37 = vld [vmem:[%s15965_s23 + $0x6e8] sm:$0xff]  ;;  %v8294_v39 = vperm.slane %v15821_v8, 4 }
0x2eaa   :  { %9548 = vmatpush.bf16.msrb.mxu0 %v13857_v62  ;;  %9587 = vmatpush.bf16.msra.mxu1 %v13881_v36  ;;  %v13887_v36 = vld [vmem:[%s15965_s23 + $0x628] sm:$0xff] }
0x2eab   :  { %9561 = vmatpush.bf16.msrb.mxu2 %v13865_v42  ;;  %9574 = vmatpush.bf16.msrb.mxu3 %v13873_v43  ;;  %v8297_v43 = vperm.slane %v15821_v8, 7 }
0x2eae   :  { %9549 = vmatpush.bf16.msrb.mxu0 %v13856_v41  ;;  %9588 = vmatpush.bf16.msra.mxu1 %v13880_v44  ;;  %v13896_v41 = vld [vmem:[%s15965_s23 + $0x670] sm:$0xff] }
0x2eaf   :  { %9562 = vmatpush.bf16.msrb.mxu2 %v13864_v45  ;;  %9575 = vmatpush.bf16.msrb.mxu3 %v13872_v48  ;;  %v13904_v45 = vld [vmem:[%s15965_s23 + $0x6b0] sm:$0xff] }
0x2eb2   :  { %9550 = vmatpush.bf16.msrb.mxu0 %v13855_v22  ;;  %9589 = vmatpush.bf16.msra.mxu1 %v13879_v7  ;;  %v13886_v22 = vld [vmem:[%s15965_s23 + $0x620] sm:$0xff] }
0x2eb3   :  { %9563 = vmatpush.bf16.msrb.mxu2 %v13863_v52  ;;  %9576 = vmatpush.bf16.msrb.mxu3 %v13871_v55  ;;  %v13910_v55 = vld [vmem:[%s15965_s23 + $0x6e0] sm:$0xff] }
0x2eb6   :  { %9551 = vmatpush.bf16.msrb.mxu0 %v13854_v53  ;;  %9590 = vmatpush.bf16.msra.mxu1 %v13878_v56  ;;  %v13895_v56 = vld [vmem:[%s15965_s23 + $0x668] sm:$0xff] }
0x2eb7   :  { %9564 = vmatpush.bf16.msrb.mxu2 %v13862_v57  ;;  %9577 = vmatpush.bf16.msrb.mxu3 %v13870_v58  ;;  %v13903_v58 = vld [vmem:[%s15965_s23 + $0x6a8] sm:$0xff] }
0x2eba   :  { %9552 = vmatpush.bf16.msrb.mxu0 %v13853_v59  ;;  %9591 = vmatpush.bf16.msra.mxu1 %v13877_v5  ;;  %v8295_v59 = vperm.slane %v15821_v8, 5 }
0x2ebb   :  { %9565 = vmatpush.bf16.msrb.mxu2 %v13861_v0  ;;  %9578 = vmatpush.bf16.msrb.mxu3 %v13869_v1  ;;  %v13909_v1 = vld [vmem:[%s15965_s23 + $0x6d8] sm:$0xff] }
0x2ebe   :  { %9553 = vmatpush.bf16.msrb.mxu0 %v13852_v61  ;;  %9592 = vmatpush.bf16.msra.mxu1 %v13876_v63  ;;  %v8296_v61 = vperm.slane %v15821_v8, 6  ;;  %v13885_v63 = vld [vmem:[%s15965_s23 + $0x618] sm:$0xff] }
0x2ebf   :  { %9566 = vmatpush.bf16.msrb.mxu2 %v13860_v49  ;;  %9579 = vmatpush.bf16.msrb.mxu3 %v13868_v6  ;;  %v13894_v49 = vld [vmem:[%s15965_s23 + $0x660] sm:$0xff] }
0x2ec2   :  { %9554 = vmatpush.bf16.msrb.mxu0 %v13851_v2  ;;  %9593 = vmatpush.bf16.msra.mxu1 %v13875_v26 }
0x2ec3   :  { %9567 = vmatpush.bf16.msrb.mxu2 %v13859_v13  ;;  %9580 = vmatpush.bf16.msrb.mxu3 %v13867_v14 }
0x2ec6   :  { %9555 = vmatpush.bf16.msrb.mxu0 %v13850_v9  ;;  %9594 = vmatpush.bf16.msra.mxu1 %v13874_v11  ;;  %v13902_v11 = vld [vmem:[%s15965_s23 + $0x6a0] sm:$0xff] }
0x2ec7   :  { %9568 = vmatpush.bf16.msrb.mxu2 %v13858_v47  ;;  %9581 = vmatpush.bf16.msrb.mxu3 %v13866_v12  ;;  %v13884_v47 = vld [vmem:[%s15965_s23 + $0x610] sm:$0xff] }
0x2ee5   :  { %v8494_v19 = vpop.f32.mrf.mxu0 }
0x2ee6   :  { %v8495_v10 = vadd.f32 %v8494_v19, %v8290_v15  ;;  %v8533_v40 = vpop.f32.mrf.mxu1  ;;  %v13908_v15 = vld [vmem:[%s15965_s23 + $0x6d0] sm:$0xff]  ;;  %v13893_v19 = vld [vmem:[%s15965_s23 + $0x658] sm:$0xff] }
0x2ee7   :  { %v8534_v3 = vadd.f32 %v8533_v40, %v8293_v17 }
0x2ee8   :  { %v8693_v21 = vmax.f32 %v8495_v10, 0.0  ;;  %v15853_v10 = vld [vmem:[%s15966_s22 + $0x18] sm:$0xff] }
0x2ee9   :  { %v8696_v24 = vmax.f32 %v8534_v3, 0.0  ;;  %v13901_v3 = vld [vmem:[%s15965_s23 + $0x698] sm:$0xff] }
0x2eea   :  { %v8709_v60 = vpack.c.bf16 %v8693_v21, %v8693_v21 }
0x2eeb   :  { %v8712_v28 = vpack.c.bf16 %v8696_v24, %v8696_v24  ;;  %v8507_v29 = vpop.f32.mrf.mxu2  ;;  %v13907_v24 = vld [vmem:[%s15965_s23 + $0x6c8] sm:$0xff] }
0x2eec   :  { %v8508_v31 = vadd.f32 %v8507_v29, %v8291_v23  ;;  %v8520_v4 = vpop.f32.mrf.mxu3  ;;  %9504 = vmatmul.bf16.vlgmr.msra.gmra.mxu0 %v8709_v60  ;;  %v13883_v23 = vld [vmem:[%s15965_s23 + $0x608] sm:$0xff]  ;;  %v8301_v60 = vperm.slane %v15853_v10, 3  ;;  %v13900_v29 = vld [vmem:[%s15965_s23 + $0x690] sm:$0xff] }
0x2eed   :  { %v8521_v38 = vadd.f32 %v8520_v4, %v8292_v50  ;;  %9543 = vmatmul.bf16.vlgmr.msrb.gmra.mxu1 %v8712_v28  ;;  %9600 = vmatpush.bf16.msra.mxu0 %v13889_v25  ;;  %v8496_v32 = vpop.f32.mrf.mxu0  ;;  %v8298_v50 = vperm.slane %v15853_v10, 0  ;;  %v13882_v4 = vld [vmem:[%s15965_s23 + $0x600] sm:$0xff] }
0x2eee   :  { %v8694_v20 = vmax.f32 %v8508_v31, 0.0  ;;  %9639 = vmatpush.bf16.msrb.mxu1 %v13913_v16  ;;  %v8535_v34 = vpop.f32.mrf.mxu1  ;;  %v13892_v16 = vld [vmem:[%s15965_s23 + $0x650] sm:$0xff] }
0x2eef   :  { %v8695_v51 = vmax.f32 %v8521_v38, 0.0 }
0x2ef0   :  { %v8710_v27 = vpack.c.bf16 %v8694_v20, %v8694_v20  ;;  %v13921_v20 = vld [vmem:[%s15965_s23 + $0x738] sm:$0xff] }
0x2ef1   :  { %v8711_v62 = vpack.c.bf16 %v8695_v51, %v8695_v51  ;;  %9601 = vmatpush.bf16.msra.mxu0 %v13888_v33  ;;  %v13906_v33 = vld [vmem:[%s15965_s23 + $0x6c0] sm:$0xff]  ;;  %v13891_v51 = vld [vmem:[%s15965_s23 + $0x648] sm:$0xff] }
0x2ef2   :  { %9640 = vmatpush.bf16.msrb.mxu1 %v13912_v54  ;;  %9517 = vmatmul.bf16.vlgmr.msra.gmra.mxu2 %v8710_v27  ;;  %v13945_v54 = vld [vmem:[%s15965_s23 + $0x7f8] sm:$0xff]  ;;  %v13899_v27 = vld [vmem:[%s15965_s23 + $0x688] sm:$0xff] }
0x2ef3   :  { %9530 = vmatmul.bf16.vlgmr.msra.gmra.mxu3 %v8711_v62  ;;  %9613 = vmatpush.bf16.msra.mxu2 %v13897_v18  ;;  %v8509_v42 = vpop.f32.mrf.mxu2 }
0x2ef4   :  { %9626 = vmatpush.bf16.msra.mxu3 %v13905_v35  ;;  %v8522_v44 = vpop.f32.mrf.mxu3  ;;  %v8299_v35 = vperm.slane %v15853_v10, 1 }
0x2ef5   :  { %9602 = vmatpush.bf16.msra.mxu0 %v13887_v36  ;;  %v8546_v48 = vpop.f32.mrf.mxu0  ;;  %v8300_v36 = vperm.slane %v15853_v10, 2  ;;  %v13890_v44 = vld [vmem:[%s15965_s23 + $0x640] sm:$0xff] }
0x2ef6   :  { %9641 = vmatpush.bf16.msrb.mxu1 %v13911_v37  ;;  %v8547_v7 = vadd.f32 %v8546_v48, %v8294_v39  ;;  %v8585_v52 = vpop.f32.mrf.mxu1  ;;  %v13920_v39 = vld [vmem:[%s15965_s23 + $0x730] sm:$0xff] }
0x2ef7   :  { %v8586_v53 = vadd.f32 %v8585_v52, %v8297_v43  ;;  %9614 = vmatpush.bf16.msra.mxu2 %v13896_v41  ;;  %v13944_v41 = vld [vmem:[%s15965_s23 + $0x7f0] sm:$0xff] }
0x2ef8   :  { %v8697_v57 = vmax.f32 %v8547_v7, 0.0  ;;  %9627 = vmatpush.bf16.msra.mxu3 %v13904_v45  ;;  %v13929_v7 = vld [vmem:[%s15965_s23 + $0x778] sm:$0xff] }
0x2ef9   :  { %v8700_v5 = vmax.f32 %v8586_v53, 0.0  ;;  %9603 = vmatpush.bf16.msra.mxu0 %v13886_v22  ;;  %v13898_v22 = vld [vmem:[%s15965_s23 + $0x680] sm:$0xff]  ;;  %v13937_v53 = vld [vmem:[%s15965_s23 + $0x7b8] sm:$0xff] }
0x2efa   :  { %v8713_v0 = vpack.c.bf16 %v8697_v57, %v8697_v57  ;;  %9642 = vmatpush.bf16.msrb.mxu1 %v13910_v55 }
0x2efb   :  { %v8716_v2 = vpack.c.bf16 %v8700_v5, %v8700_v5  ;;  %9615 = vmatpush.bf16.msra.mxu2 %v13895_v56  ;;  %v8559_v26 = vpop.f32.mrf.mxu2  ;;  %v13943_v5 = vld [vmem:[%s15965_s23 + $0x7e8] sm:$0xff] }
0x2efc   :  { %9628 = vmatpush.bf16.msra.mxu3 %v13903_v58  ;;  %v8560_v6 = vadd.f32 %v8559_v26, %v8295_v59  ;;  %v8572_v9 = vpop.f32.mrf.mxu3  ;;  %9556 = vmatmul.bf16.vlgmr.msrb.gmra.mxu0 %v8713_v0  ;;  %v13919_v58 = vld [vmem:[%s15965_s23 + $0x728] sm:$0xff] }
0x2efd   :  { %v8573_v13 = vadd.f32 %v8572_v9, %v8296_v61  ;;  %9595 = vmatmul.bf16.vlgmr.msra.gmra.mxu1 %v8716_v2  ;;  %9604 = vmatpush.bf16.msra.mxu0 %v13885_v63  ;;  %v8548_v14 = vpop.f32.mrf.mxu0  ;;  %v13928_v63 = vld [vmem:[%s15965_s23 + $0x770] sm:$0xff]  ;;  %v13918_v2 = vld [vmem:[%s15965_s23 + $0x720] sm:$0xff]  ;;  %v13927_v9 = vld [vmem:[%s15965_s23 + $0x768] sm:$0xff] }
0x2efe   :  { %v8698_v12 = vmax.f32 %v8560_v6, 0.0  ;;  %9643 = vmatpush.bf16.msrb.mxu1 %v13909_v1  ;;  %v8587_v8 = vpop.f32.mrf.mxu1  ;;  %v13936_v1 = vld [vmem:[%s15965_s23 + $0x7b0] sm:$0xff] }
0x2eff   :  { %v8699_v17 = vmax.f32 %v8573_v13, 0.0  ;;  %9616 = vmatpush.bf16.msra.mxu2 %v13894_v49  ;;  %v13942_v49 = vld [vmem:[%s15965_s23 + $0x7e0] sm:$0xff]  ;;  %v13935_v13 = vld [vmem:[%s15965_s23 + $0x7a8] sm:$0xff] }
0x2f00   :  { %v8714_v40 = vpack.c.bf16 %v8698_v12, %v8698_v12  ;;  %9629 = vmatpush.bf16.msra.mxu3 %v13902_v11  ;;  %v13941_v12 = vld [vmem:[%s15965_s23 + $0x7d8] sm:$0xff]  ;;  %v13926_v8 = vld [vmem:[%s15965_s23 + $0x760] sm:$0xff] }
0x2f01   :  { %v8715_v21 = vpack.c.bf16 %v8699_v17, %v8699_v17  ;;  %9605 = vmatpush.bf16.msra.mxu0 %v13884_v47  ;;  %v13917_v47 = vld [vmem:[%s15965_s23 + $0x718] sm:$0xff]  ;;  %v13916_v17 = vld [vmem:[%s15965_s23 + $0x710] sm:$0xff] }
0x2f02   :  { %9644 = vmatpush.bf16.msrb.mxu1 %v13908_v15  ;;  %9569 = vmatmul.bf16.vlgmr.msrb.gmra.mxu2 %v8714_v40  ;;  %v13934_v15 = vld [vmem:[%s15965_s23 + $0x7a0] sm:$0xff] }
0x2f03   :  { %9582 = vmatmul.bf16.vlgmr.msrb.gmra.mxu3 %v8715_v21  ;;  %9617 = vmatpush.bf16.msra.mxu2 %v13893_v19  ;;  %v8561_v25 = vpop.f32.mrf.mxu2  ;;  %v8302_v19 = vperm.slane %v15853_v10, 4  ;;  %v8305_v21 = vperm.slane %v15853_v10, 7 }
0x2f04   :  { %9630 = vmatpush.bf16.msra.mxu3 %v13901_v3  ;;  %v8574_v28 = vpop.f32.mrf.mxu3  ;;  %v13940_v3 = vld [vmem:[%s15965_s23 + $0x7d0] sm:$0xff]  ;;  %v13933_v25 = vld [vmem:[%s15965_s23 + $0x798] sm:$0xff] }
0x2f05   :  { %9606 = vmatpush.bf16.msra.mxu0 %v13883_v23  ;;  %v8598_v31 = vpop.f32.mrf.mxu0 }
0x2f06   :  { %9645 = vmatpush.bf16.msrb.mxu1 %v13907_v24  ;;  %v8599_v38 = vadd.f32 %v8598_v31, %v8298_v50  ;;  %v8637_v32 = vpop.f32.mrf.mxu1  ;;  %v13925_v24 = vld [vmem:[%s15965_s23 + $0x758] sm:$0xff] }
0x2f07   :  { %v8638_v34 = vadd.f32 %v8637_v32, %v8301_v60  ;;  %9618 = vmatpush.bf16.msra.mxu2 %v13892_v16  ;;  %v13915_v16 = vld [vmem:[%s15965_s23 + $0x708] sm:$0xff]  ;;  %v13932_v32 = vld [vmem:[%s15965_s23 + $0x790] sm:$0xff] }
0x2f08   :  { %v8701_v18 = vmax.f32 %v8599_v38, 0.0  ;;  %9631 = vmatpush.bf16.msra.mxu3 %v13900_v29  ;;  %v13939_v29 = vld [vmem:[%s15965_s23 + $0x7c8] sm:$0xff]  ;;  %v8303_v38 = vperm.slane %v15853_v10, 5 }
0x2f09   :  { %v8704_v62 = vmax.f32 %v8638_v34, 0.0  ;;  %9607 = vmatpush.bf16.msra.mxu0 %v13882_v4  ;;  %v13924_v4 = vld [vmem:[%s15965_s23 + $0x750] sm:$0xff] }
0x2f0a   :  { %v8717_v37 = vpack.c.bf16 %v8701_v18, %v8701_v18  ;;  %9646 = vmatpush.bf16.msrb.mxu1 %v13906_v33  ;;  %v8304_v33 = vperm.slane %v15853_v10, 6 }
0x2f0b   :  { %v8720_v42 = vpack.c.bf16 %v8704_v62, %v8704_v62  ;;  %9619 = vmatpush.bf16.msra.mxu2 %v13891_v51  ;;  %v8611_v43 = vpop.f32.mrf.mxu2  ;;  %v13938_v51 = vld [vmem:[%s15965_s23 + $0x7c0] sm:$0xff] }
0x2f0c   :  { %9632 = vmatpush.bf16.msra.mxu3 %v13899_v27  ;;  %v8612_v45 = vadd.f32 %v8611_v43, %v8299_v35  ;;  %v8624_v48 = vpop.f32.mrf.mxu3  ;;  %9608 = vmatmul.bf16.vlgmr.msra.gmra.mxu0 %v8717_v37  ;;  %v13923_v35 = vld [vmem:[%s15965_s23 + $0x748] sm:$0xff] }
0x2f0d   :  { %9652 = vmatpush.bf16.msrb.mxu0 %v13921_v20  ;;  %v8625_v52 = vadd.f32 %v8624_v48, %v8300_v36  ;;  %9647 = vmatmul.bf16.vlgmr.msrb.gmra.mxu1 %v8720_v42  ;;  %v8600_v55 = vpop.f32.mrf.mxu0  ;;  %v13914_v20 = vld [vmem:[%s15965_s23 + $0x700] sm:$0xff]  ;;  %v13931_v36 = vld [vmem:[%s15965_s23 + $0x788] sm:$0xff] }
0x2f0e   :  { %9691 = vmatpush.bf16.msra.mxu1 %v13945_v54  ;;  %v8702_v56 = vmax.f32 %v8612_v45, 0.0  ;;  %v8639_v57 = vpop.f32.mrf.mxu1  ;;  %v13922_v42 = vld [vmem:[%s15965_s23 + $0x740] sm:$0xff] }
0x2f0f   :  { %v8703_v59 = vmax.f32 %v8625_v52, 0.0  ;;  %9620 = vmatpush.bf16.msra.mxu2 %v13890_v44 }
0x2f10   :  { %v8718_v61 = vpack.c.bf16 %v8702_v56, %v8702_v56  ;;  %9633 = vmatpush.bf16.msra.mxu3 %v13898_v22 }
0x2f11   :  { %9653 = vmatpush.bf16.msrb.mxu0 %v13920_v39  ;;  %v8719_v0 = vpack.c.bf16 %v8703_v59, %v8703_v59 }
0x2f12   :  { %9692 = vmatpush.bf16.msra.mxu1 %v13944_v41  ;;  %9621 = vmatmul.bf16.vlgmr.msra.gmra.mxu2 %v8718_v61  ;;  %v13930_v41 = vld [vmem:[%s15965_s23 + $0x780] sm:$0xff] }
0x2f13   :  { %9665 = vmatpush.bf16.msrb.mxu2 %v13929_v7  ;;  %9634 = vmatmul.bf16.vlgmr.msra.gmra.mxu3 %v8719_v0  ;;  %v8613_v26 = vpop.f32.mrf.mxu2  ;;  %v14011_v0 = vld [vmem:[%s15967_s26 + $0x1] ss:$0 sm:$0xff] }
0x2f14   :  { %9678 = vmatpush.bf16.msrb.mxu3 %v13937_v53  ;;  %v8626_v6 = vpop.f32.mrf.mxu3 }
0x2f15   :  { %9654 = vmatpush.bf16.msrb.mxu0 %v13919_v58  ;;  %v8650_v11 = vpop.f32.mrf.mxu0 }
0x2f16   :  { %9693 = vmatpush.bf16.msra.mxu1 %v13943_v5  ;;  %v8689_v14 = vpop.f32.mrf.mxu1  ;;  %v8651_v28 = vadd.f32 %v8650_v11, %v8302_v19 }
0x2f17   :  { %9666 = vmatpush.bf16.msrb.mxu2 %v13928_v63  ;;  %v8690_v31 = vadd.f32 %v8689_v14, %v8305_v21 }
0x2f18   :  { %9679 = vmatpush.bf16.msrb.mxu3 %v13936_v1  ;;  %v8705_v34 = vmax.f32 %v8651_v28, 0.0 }
0x2f19   :  { %9655 = vmatpush.bf16.msrb.mxu0 %v13918_v2  ;;  %v8708_v18 = vmax.f32 %v8690_v31, 0.0 }
0x2f1a   :  { %9694 = vmatpush.bf16.msra.mxu1 %v13942_v49  ;;  %v8721_v39 = vpack.c.bf16 %v8705_v34, %v8705_v34 }
0x2f1b   :  { %9667 = vmatpush.bf16.msrb.mxu2 %v13927_v9  ;;  %v8663_v40 = vpop.f32.mrf.mxu2  ;;  %v8724_v10 = vpack.c.bf16 %v8708_v18, %v8708_v18 }
0x2f1c   :  { %9680 = vmatpush.bf16.msrb.mxu3 %v13935_v13  ;;  %v8676_v23 = vpop.f32.mrf.mxu3  ;;  %v8664_v62 = vadd.f32 %v8663_v40, %v8303_v38 }
0x2f1d   :  { %9656 = vmatpush.bf16.msrb.mxu0 %v13917_v47  ;;  %v8652_v50 = vpop.f32.mrf.mxu0  ;;  %v8677_v37 = vadd.f32 %v8676_v23, %v8304_v33 }
0x2f1e   :  { %9695 = vmatpush.bf16.msra.mxu1 %v13941_v12  ;;  %v8691_v60 = vpop.f32.mrf.mxu1  ;;  %v8706_v43 = vmax.f32 %v8664_v62, 0.0 }
0x2f1f   :  { %9668 = vmatpush.bf16.msrb.mxu2 %v13926_v8  ;;  %v8707_v44 = vmax.f32 %v8677_v37, 0.0 }
0x2f20   :  { %9681 = vmatpush.bf16.msrb.mxu3 %v13934_v15  ;;  %v8722_v45 = vpack.c.bf16 %v8706_v43, %v8706_v43 }
0x2f21   :  { %9657 = vmatpush.bf16.msrb.mxu0 %v13916_v17  ;;  %v8723_v48 = vpack.c.bf16 %v8707_v44, %v8707_v44 }
0x2f22   :  { %9696 = vmatpush.bf16.msra.mxu1 %v13940_v3 }
0x2f23   :  { %9669 = vmatpush.bf16.msrb.mxu2 %v13925_v24  ;;  %v8665_v54 = vpop.f32.mrf.mxu2 }
0x2f24   :  { %9682 = vmatpush.bf16.msrb.mxu3 %v13933_v25  ;;  %v8678_v27 = vpop.f32.mrf.mxu3 }
0x2f25   :  { %9658 = vmatpush.bf16.msrb.mxu0 %v13915_v16 }
0x2f26   :  { %9697 = vmatpush.bf16.msra.mxu1 %v13939_v29 }
0x2f27   :  { %9670 = vmatpush.bf16.msrb.mxu2 %v13924_v4 }
0x2f28   :  { %9683 = vmatpush.bf16.msrb.mxu3 %v13932_v32 }
0x2f29   :  { %9659 = vmatpush.bf16.msrb.mxu0 %v13914_v20 }
0x2f2a   :  { %9698 = vmatpush.bf16.msra.mxu1 %v13938_v51 }
0x2f2b   :  { %9671 = vmatpush.bf16.msrb.mxu2 %v13923_v35 }
0x2f2c   :  { %9684 = vmatpush.bf16.msrb.mxu3 %v13931_v36  ;;  %9660 = vmatmul.bf16.vlgmr.msrb.gmra.mxu0 %v8721_v39 }
0x2f2d   :  { %9699 = vmatmul.bf16.vlgmr.msra.gmra.mxu1 %v8724_v10 }
0x2f2f   :  { %9672 = vmatpush.bf16.msrb.mxu2 %v13922_v42 }
0x2f30   :  { %9685 = vmatpush.bf16.msrb.mxu3 %v13930_v41 }
0x2f32   :  { %9673 = vmatmul.bf16.vlgmr.msrb.gmra.mxu2 %v8722_v45 }
0x2f33   :  { %9686 = vmatmul.bf16.vlgmr.msrb.gmra.mxu3 %v8723_v48 }
0x2f69   :  { %v9505_v22 = vpop.f32.mrf.mxu0 }
0x2f6a   :  { %v9544_v7 = vpop.f32.mrf.mxu1  ;;  %v9506_v26 = vadd.f32 %v14011_v0, %v9505_v22 }
0x2f71   :  { %v9507_v52 = vpop.f32.mrf.mxu0 }
0x2f72   :  { %v9546_v55 = vpop.f32.mrf.mxu1  ;;  %v14145_v52 = vld [vmem:[%s15959_s8 + $0x8] sm:$0x3f] }
0x2f73   :  { %v9727_v55 = vperm.slane %v14145_v52, 4 }
0x2f75   :  { %v9518_v53 = vpop.f32.mrf.mxu2 }
0x2f76   :  { %v9531_v56 = vpop.f32.mrf.mxu3  ;;  %v9519_v9 = vadd.f32 %v9518_v53, %v9506_v26  ;;  %v13947_v26 = vld [vmem:[%s14378_s12 + $0x8] sm:$0xff] }
0x2f77   :  { %9788 = vmatpush.bf16.msra.mxu0 %v13947_v26 }
0x2f78   :  { %v9532_v14 = vadd.f32 %v9531_v56, %v9519_v9 }
0x2f79   :  { %v9557_v57 = vpop.f32.mrf.mxu0 }
0x2f7a   :  { %v9596_v58 = vpop.f32.mrf.mxu1  ;;  %v9545_v8 = vadd.f32 %v9544_v7, %v9532_v14 }
0x2f7c   :  { %v9558_v19 = vadd.f32 %v9557_v57, %v9545_v8  ;;  %v9729_v57 = vperm.slane %v14145_v52, 5  ;;  %v9731_v8 = vld [vmem:[%s15968_s9] sm:$0x3] }
0x2f7d   :  { %v9520_v59 = vpop.f32.mrf.mxu2 }
0x2f7e   :  { %v9533_v5 = vpop.f32.mrf.mxu3 }
0x2f81   :  { %v9559_v61 = vpop.f32.mrf.mxu0 }
0x2f82   :  { %v9598_v63 = vpop.f32.mrf.mxu1 }
0x2f85   :  { %v9570_v1 = vpop.f32.mrf.mxu2 }
0x2f86   :  { %v9583_v2 = vpop.f32.mrf.mxu3  ;;  %v9571_v40 = vadd.f32 %v9570_v1, %v9558_v19  ;;  %v9754_v19 = vperm.slane %v9731_v8, 0 }
0x2f88   :  { %v9584_v3 = vadd.f32 %v9583_v2, %v9571_v40 }
0x2f89   :  { %v9609_v49 = vpop.f32.mrf.mxu0 }
0x2f8a   :  { %v9648_v6 = vpop.f32.mrf.mxu1  ;;  %v9597_v24 = vadd.f32 %v9596_v58, %v9584_v3  ;;  %v9756_v3 = vperm.slane %v9731_v8, 1 }
0x2f8c   :  { %v9610_v50 = vadd.f32 %v9609_v49, %v9597_v24  ;;  %v13946_v49 = vld [vmem:[%s14378_s12] sm:$0xff]  ;;  %s14216_s12 = smov [#allocation2]  }
0x2f8d   :  { %v9572_v11 = vpop.f32.mrf.mxu2  ;;  %9789 = vmatpush.bf16.msra.mxu0 %v13946_v49  ;;  %s9820_s27 = sshll.u32 %s14216_s12, 4  ;;  %s9821_s27 = int_to_ptr.vmem [resolvable:$true] %s9820_s27 }
0x2f8e   :  { %v9585_v13 = vpop.f32.mrf.mxu3 }
0x2f91   :  { %v9611_v47 = vpop.f32.mrf.mxu0 }
0x2f92   :  { %v9650_v12 = vpop.f32.mrf.mxu1 }
0x2f95   :  { %v9622_v15 = vpop.f32.mrf.mxu2 }
0x2f96   :  { %v9635_v17 = vpop.f32.mrf.mxu3  ;;  %v9623_v60 = vadd.f32 %v9622_v15, %v9610_v50  ;;  %v14012_v50 = vld [vmem:[%s14373_s17] ss:$0 sm:$0xff]  ;;  %s9822_s17 = sshll.u32 %s14383_s20, 4  ;;  %s9823_s17 = int_to_ptr.hbm [resolvable:$true] %s9822_s17 }
0x2f97   :  { %s14158_s4 = sshra.s32 %s9823_s17, 4  ;;  %s14159_s4 = int_to_ptr.hbm [resolvable:$true] %s14158_s4 }
0x2f98   :  { %v9636_v28 = vadd.f32 %v9635_v17, %v9623_v60  ;;  %s14160_s0 = scalar_lea.hbm %s14159_s4, 8  ;;  %p14163_p1 = scmp.lt.s32.totalorder %s14159_s4, %s14383_s20 }
0x2f99   :  { %p14161_p0 = scmp.ne.s32.totalorder %s14159_s4, %s14160_s0  ;;  %p14164_p2 = scmp.lt.s32.totalorder %s14162_s5, %s14160_s0 }
0x2f9a   :  { %v9649_v31 = vadd.f32 %v9648_v6, %v9636_v28 }
0x2f9b   :  { %p14165_p3 = por %p14164_p2, %p14163_p1 }
0x2f9d   :  { %v9624_v21 = vpop.f32.mrf.mxu2  ;;  %p14166_p4 = pnand %p14165_p3, %p14161_p0 }
0x2f9e   :  { %v9637_v23 = vpop.f32.mrf.mxu3 }
0x2fa9   :  { %v9661_v25 = vpop.f32.mrf.mxu0 }
0x2faa   :  { %v9700_v16 = vpop.f32.mrf.mxu1  ;;  %v9662_v38 = vadd.f32 %v9661_v25, %v9649_v31 }
0x2fb1   :  { %v9663_v29 = vpop.f32.mrf.mxu0 }
0x2fb2   :  { %v9702_v4 = vpop.f32.mrf.mxu1 }
0x2fb5   :  { %v9674_v32 = vpop.f32.mrf.mxu2 }
0x2fb6   :  { %v9675_v33 = vadd.f32 %v9674_v32, %v9662_v38  ;;  %v9687_v20 = vpop.f32.mrf.mxu3 }
0x2fb8   :  { %v9688_v34 = vadd.f32 %v9687_v20, %v9675_v33 }
0x2fba   :  { %v9701_v54 = vadd.f32 %v9700_v16, %v9688_v34 }
0x2fbc   :  { %v9704_v51 = vadd.f32 %v9701_v54, %v15691_v30 }
0x2fbd   :  { %v9676_v18 = vpop.f32.mrf.mxu2 }
0x2fbe   :  { %v9689_v27 = vpop.f32.mrf.mxu3  ;;  %v9705_v35 = vsel %vm190_vm1, %v9704_v51, 0.0 }
0x2fbf   :  { %9706 = vadd.xlane.f32.xlu1 %v9705_v35 }
0x3032   :  { %v9707_v62 = vpop.xlane.xlu1 %9706 }
0x3033   :  { %v9708_v36 = vmul.f32 %v9707_v62, %v14465_v46 }
0x3035   :  { %v9709_v37 = vsub.f32 %v9704_v51, %v9708_v36 }
0x3037   :  { %v9710_v39 = vmul.f32 %v9709_v37, %v9709_v37 }
0x3039   :  { %v9711_v10 = vsel %vm190_vm1, %v9710_v39, 0.0 }
0x303a   :  { %9712 = vadd.xlane.f32.xlu0 %v9711_v10 }
0x30ad   :  { %v9713_v42 = vpop.xlane.xlu0 %9712 }
0x30ae   :  { %v9714_v43 = vmul.f32 %v9713_v42, %v14465_v46 }
0x30b0   :  { %v9715_v41 = vadd.f32 1e-05, %v9714_v43 }
0x30b2   :  { %14131 = vrsqrt.f32 %v9715_v41  ;;  %vm9722_vm8 = vweird.f32 %v9715_v41 }
0x30b8   :  { %v14132_v30 = vpop.eup %14131 }
0x30b9   :  { %v9717_v44 = vmul.f32 %v14132_v30, %v9715_v41  ;;  %vm9723_vm7 = vweird.f32 %v14132_v30 }
0x30ba   :  { %vm9724_vm9 = vmor %vm9722_vm8, %vm9723_vm7 }
0x30bb   :  { %v9718_v45 = vmul.f32 %v14132_v30, %v9717_v44 }
0x30bd   :  { %v9719_v48 = vmul.f32 0.5, %v9718_v45 }
0x30bf   :  { %v9720_v22 = vsub.f32 1.5, %v9719_v48 }
0x30c1   :  { %v9721_v7 = vmul.f32 %v14132_v30, %v9720_v22 }
0x30c3   :  { %v9725_v53 = vsel %vm9724_vm9, %v14132_v30, %v9721_v7 }
0x30c4   :  { %v9726_v56 = vmul.f32 %v9725_v53, %v9709_v37 }
0x30c6   :  { %v9728_v58 = vmul.f32 %v9727_v55, %v9726_v56 }
0x30c8   :  { %v9730_v59 = vadd.f32 %v9729_v57, %v9728_v58 }
0x30ca   :  { %v9732_v5 = vsel %vm190_vm1, %v9730_v59, 0.0 }
0x30cb   :  { %9733 = vadd.xlane.f32.xlu2 %v9732_v5 }
0x313e   :  { %v9734_v61 = vpop.xlane.xlu2 %9733 }
0x313f   :  { %v9735_v63 = vmul.f32 %v9734_v61, %v14465_v46 }
0x3141   :  { %v9736_v0 = vsub.f32 %v9730_v59, %v9735_v63 }
0x3143   :  { %v9737_v1 = vmul.f32 %v9736_v0, %v9736_v0 }
0x3145   :  { %v9738_v2 = vsel %vm190_vm1, %v9737_v1, 0.0 }
0x3146   :  { %9739 = vadd.xlane.f32.xlu0 %v9738_v2 }
0x31b9   :  { %v9740_v6 = vpop.xlane.xlu0 %9739 }
0x31ba   :  { %v9741_v9 = vmul.f32 %v9740_v6, %v14465_v46 }
0x31bc   :  { %v9742_v11 = vadd.f32 1e-05, %v9741_v9 }
0x31be   :  { %14133 = vrsqrt.f32 %v9742_v11  ;;  %vm9749_vm11 = vweird.f32 %v9742_v11 }
0x31c4   :  { %v14134_v13 = vpop.eup %14133 }
0x31c5   :  { %v9744_v14 = vmul.f32 %v14134_v13, %v9742_v11  ;;  %vm9750_vm10 = vweird.f32 %v14134_v13 }
0x31c6   :  { %vm9751_vm12 = vmor %vm9749_vm11, %vm9750_vm10 }
0x31c7   :  { %v9745_v47 = vmul.f32 %v14134_v13, %v9744_v14 }
0x31c9   :  { %v9746_v12 = vmul.f32 0.5, %v9745_v47 }
0x31cb   :  { %v9747_v15 = vsub.f32 1.5, %v9746_v12 }
0x31cd   :  { %v9748_v17 = vmul.f32 %v14134_v13, %v9747_v15 }
0x31cf   :  { %v9752_v40 = vsel %vm9751_vm12, %v14134_v13, %v9748_v17 }
0x31d0   :  { %v9753_v21 = vmul.f32 %v9752_v40, %v9736_v0 }
0x31d2   :  { %v9755_v23 = vmul.f32 %v9754_v19, %v9753_v21 }
0x31d4   :  { %v9757_v24 = vadd.f32 %v9756_v3, %v9755_v23 }
0x31d6   :  { %v9762_v46 = vpack.c.bf16 %v9757_v24, %v9757_v24 }
0x31d8   :  { %13287 = vmatmul.msk.bf16.vlgmr.msra.gmra.mxu0 %vm190_vm1, %v9762_v46 }
0x3255   :  { %v9791_v25 = vpop.f32.mrf.mxu0 }
0x3256   :  { %v9792_v60 = vadd.f32 %v14012_v50, %v9791_v25 }
0x3258   :  { %v13288_v16 = vmul.f32 -1.442695, %v9792_v60 }
0x325a   :  { %14135 = vpow2.f32 %v13288_v16 }
0x325d   :  { %v9793_v28 = vpop.f32.mrf.mxu0 }
0x3260   :  { %v14136_v29 = vpop.eup %14135 }
0x3261   :  { %v9798_v31 = vadd.f32 1.0, %v14136_v29 }
0x3263   :  { %14137 = vrcp.f32 %v9798_v31  ;;  %v9810_v33 = vand.u32 2147483648, %v9798_v31  ;;  %v9808_v34 = vand.u32 2147483647, %v9798_v31  ;;  %vm9804_vm1 = vweird.f32 %v9798_v31 }
0x3265   :  { %v9811_v51 = vor.u32 1.1754944e-38, %v9810_v33  ;;  %vm9809_vm15 = vcmp.eq.f32.partialorder %v9808_v34, 8.507059e+37 }
0x3269   :  { %v14138_v4 = vpop.eup %14137 }
0x326a   :  { %v9800_v38 = vmul.f32 %v14138_v4, %v9798_v31  ;;  %vm9805_vm13 = vweird.f32 %v14138_v4 }
0x326b   :  { %vm9806_vm14 = vmor %vm9804_vm1, %vm9805_vm13 }
0x326c   :  { %v9801_v32 = vsub.f32 1.0, %v9800_v38 }
0x326e   :  { %v9802_v20 = vmul.f32 %v14138_v4, %v9801_v32 }
0x3270   :  { %v9803_v54 = vadd.f32 %v14138_v4, %v9802_v20 }
0x3272   :  { %v9807_v18 = vsel %vm9806_vm14, %v14138_v4, %v9803_v54 }
0x3273   :  { %v9812_v27 = vsel %vm9809_vm15, %v9811_v51, %v9807_v18 }
0x3274   :  { %9814 = vst [vmem:[#allocation2] sm:$0xff] %v9812_v27 }
0x3275   :  { %14169 = shalt.err (!%p14166_p4)
}
0x3276   :  { %9825 = dma.vmem_to_hbm [thread:$0]  %s9821_s27, 128, %s9823_s17, [#allocation3]  }
0x3277   :  { %14170 = dma.done.wait [#allocation3], 128  }
0x3278   :  { %14171 = vsyncadd [#allocation3], 4294967168 }
0x3279   :  { %9830 = vsyncpa [#allocation3], 1 }

</bundles_post_ra>
